<compile_context>
chip_gen: v6e
topology: v6e:2x2x1
jax: 0.10.0
libtpu: 0.0.40
codegen_flags: <defaults>
</compile_context>

<pallas_src>
import functools

import jax
import jax.numpy as jnp
from jax.experimental import pallas as pl
from jax.experimental.pallas import tpu as pltpu


# ----------------------------------------------------------------------------
# MRConvLayer kernel
# ----------------------------------------------------------------------------
def mrconv_kernel(xcs_ref, xsc_ref, emb_ref, lin_ref, o_ref, *, k):
    x = xcs_ref[...].astype(jnp.float32)          # (C, S) channels x nodes
    xt = xsc_ref[...].astype(jnp.float32)         # (S, C) nodes x channels
    S = x.shape[1]

    # Neighbour ranking: for target node i (sublanes) rank sources j (lanes) by
    # squared L2 distance.  ||x_i||^2 is constant per row, so ranking by
    # ||x_j||^2 - 2<x_i, x_j> is equivalent and needs only a Gram matmul.
    g = jnp.dot(xt, x, preferred_element_type=jnp.float32)        # (S, S)
    sq = jnp.sum(x * x, axis=0, keepdims=True)                    # (1, S)
    r = sq - 2.0 * g
    row_i = jax.lax.broadcasted_iota(jnp.int32, (S, S), 0)
    col_i = jax.lax.broadcasted_iota(jnp.int32, (S, S), 1)
    colf = col_i.astype(jnp.float32)
    r = jnp.where(row_i == col_i, jnp.inf, r)                     # loop=False

    # Learnable relative-position embedding is added AFTER the graph is built
    # (same ordering as MRConvLayer.forward).
    xp = x + emb_ref[...].astype(jnp.float32)                     # (C, S)

    # Max-Relative aggregation over the k nearest neighbours.  Each (static,
    # unrolled) iteration extracts the per-row minimum as a one-hot selection
    # matrix and gathers that neighbour's features with one (C,S)x(S,S) MXU
    # matmul.  The self-loop contributes the zero message.
    agg = jnp.zeros_like(xp)
    cur = r
    for _ in range(k):
        rowmin = jnp.min(cur, axis=1, keepdims=True)              # (S, 1)
        cand = cur == rowmin
        first = jnp.min(jnp.where(cand, colf, float(S)), axis=1, keepdims=True)
        sel = colf == first                                       # exactly-one-hot rows
        sel_f = sel.astype(jnp.float32)
        nbr = jax.lax.dot_general(xp, sel_f, (((1,), (1,)), ((), ())),
                                  preferred_element_type=jnp.float32)   # (C, S)
        agg = jnp.maximum(agg, nbr - xp)
        cur = jnp.where(sel, jnp.inf, cur)

    # MRConv.update: node-wise linear transform (bias-free).
    o_ref[...] = jnp.dot(lin_ref[...].astype(jnp.float32), agg,
                         preferred_element_type=jnp.float32).astype(o_ref.dtype)


def mrconv_pallas(x_cs, x_sc, emb_cs, lin_w, *, k,
                  vmem_limit_bytes=48 * 1024 * 1024):
    """Max-Relative graph conv on (B, C, S) node features, one image per grid step."""
    B, C, S = x_cs.shape
    assert x_sc.shape == (B, S, C)
    assert emb_cs.shape == (C, S)
    Cout, Cin = lin_w.shape
    assert Cin == C and 0 < k < S

    kernel = functools.partial(mrconv_kernel, k=k)
    return pl.pallas_call(
        kernel,
        out_shape=jax.ShapeDtypeStruct((B, Cout, S), x_cs.dtype),
        grid_spec=pltpu.PrefetchScalarGridSpec(
            num_scalar_prefetch=0,
            grid=(B,),
            in_specs=[
                pl.BlockSpec((None, C, S), lambda b: (b, 0, 0)),   # x, channel-major
                pl.BlockSpec((None, S, C), lambda b: (b, 0, 0)),   # x, node-major
                pl.BlockSpec((C, S), lambda b: (0, 0)),            # rel-pos embedding
                pl.BlockSpec((Cout, C), lambda b: (0, 0)),         # MRConv.lin weight
            ],
            out_specs=pl.BlockSpec((None, Cout, S), lambda b: (b, 0, 0)),
        ),
        compiler_params=pltpu.CompilerParams(
            dimension_semantics=("parallel",),
            vmem_limit_bytes=vmem_limit_bytes,
        ),
    )(x_cs, x_sc, emb_cs, lin_w)


# ----------------------------------------------------------------------------
# FFN kernel (BN scales folded into the conv weights; both residuals fused)
# ----------------------------------------------------------------------------
def ffn_kernel(x_ref, sc_ref, w1_ref, b1_ref, w2_ref, b2_ref, o_ref):
    x = x_ref[...]                                                # (C, ts)

    h = jnp.dot(w1_ref[...], x, preferred_element_type=jnp.float32)
    h = jnp.maximum(h + b1_ref[...], 0.0)                         # BN1 shift + ReLU
    # Dropout(p=0.1): identity in eval mode.

    y = jnp.dot(w2_ref[...], h.astype(w2_ref.dtype),
                preferred_element_type=jnp.float32)
    y = y + b2_ref[...]                                           # BN2 shift

    # drop_path = Identity; FFN residual (x) and Block residual (shortcut) fused.
    o_ref[...] = (y + x.astype(jnp.float32)
                  + sc_ref[...].astype(jnp.float32)).astype(o_ref.dtype)


def _pick_spatial_tile(S, C, Hid, itemsize, max_tile, vmem_budget_bytes):
    """Largest legal spatial tile that fits the VMEM budget."""
    if S <= max_tile:
        return S                                                   # full-extent block

    def vmem_est(t):
        io = 3 * 2 * C * t * itemsize                              # x / shortcut / out (x2 buffers)
        wts = 2 * (2 * Hid * C + Hid + C) * itemsize               # weights + shifts
        mid = (Hid + C) * t * 4                                    # f32 intermediates
        return io + wts + mid

    ts = max(128, (max_tile // 128) * 128)
    while ts > 128 and vmem_est(ts) > vmem_budget_bytes:
        ts = max(128, (ts // 2) // 128 * 128)
    return ts


def ffn_pallas(x3, shortcut3, w1f, b1s, w2f, b2s, *, max_spatial_tile=1024,
               vmem_limit_bytes=48 * 1024 * 1024):
    """Fused eval-mode FFN + FFN-residual + Block-residual on (B, C, S) tensors."""
    B, C, S = x3.shape
    assert shortcut3.shape == (B, C, S)
    Hid = w1f.shape[0]
    assert w1f.shape == (Hid, C) and w2f.shape == (C, Hid)
    assert b1s.shape == (Hid, 1) and b2s.shape == (C, 1)

    ts = _pick_spatial_tile(S, C, Hid, x3.dtype.itemsize,
                            max_spatial_tile, int(vmem_limit_bytes * 0.6))
    grid = (B, pl.cdiv(S, ts))
    const = lambda b, s: (0, 0)

    return pl.pallas_call(
        ffn_kernel,
        out_shape=jax.ShapeDtypeStruct((B, C, S), x3.dtype),
        grid_spec=pltpu.PrefetchScalarGridSpec(
            num_scalar_prefetch=0,
            grid=grid,
            in_specs=[
                pl.BlockSpec((None, C, ts), lambda b, s: (b, 0, s)),  # FFN input (mrconv out)
                pl.BlockSpec((None, C, ts), lambda b, s: (b, 0, s)),  # Block shortcut
                pl.BlockSpec((Hid, C), const),                        # w1 (BN1 folded)
                pl.BlockSpec((Hid, 1), const),                        # BN1 shift
                pl.BlockSpec((C, Hid), const),                        # w2 (BN2 folded)
                pl.BlockSpec((C, 1), const),                          # BN2 shift
            ],
            out_specs=pl.BlockSpec((None, C, ts), lambda b, s: (b, 0, s)),
        ),
        compiler_params=pltpu.CompilerParams(
            dimension_semantics=("parallel", "parallel"),
            vmem_limit_bytes=vmem_limit_bytes,
        ),
    )(x3, shortcut3, w1f, b1s, w2f, b2s)


# ----------------------------------------------------------------------------
# Parameter prep + Block wrapper
# ----------------------------------------------------------------------------
def fold_bn_into_conv(conv_w, gamma, beta, running_mean, running_var, eps=1e-5):
    """conv_w: (out, in) 1x1 conv weight.  Returns (folded weight, shift[:, None])."""
    scale = gamma / jnp.sqrt(running_var + eps)
    return conv_w * scale[:, None], (beta - running_mean * scale)[:, None]


def compute_relative_positions(grid_size):
    idx = jnp.arange(grid_size, dtype=jnp.int32)
    rel = idx[:, None] - idx[None, :] + (grid_size - 1)
    return rel.reshape(-1)


def block_forward(x_nchw, lin_w, rel_pos_table, w1f, b1s, w2f, b2s, *, k, dilation=1):
    """Eval-mode Block forward: x -> MRConvLayer -> FFN -> + shortcut."""
    N, C, H, W = x_nchw.shape
    S = H * W
    gsz = int(round(S ** 0.5))
    assert gsz * gsz == S, "MRConvLayer relative positions need a square node grid"

    x3 = x_nchw.reshape(N, C, S)                         # free reshape, NCHW-native
    x3_nodes = jnp.transpose(x3, (0, 2, 1))              # tiny node-major view for the Gram matmul

    rel_idx = compute_relative_positions(gsz)            # (S,)
    emb_cs = rel_pos_table[rel_idx].T.astype(x3.dtype)   # (C, S) learnable rel-pos embedding

    m3 = mrconv_pallas(x3, x3_nodes, emb_cs, lin_w, k=k * dilation)
    out3 = ffn_pallas(m3, x3, w1f, b1s, w2f, b2s)        # FFN + both residuals fused
    return out3.reshape(N, C, H, W)


# ----------------------------------------------------------------------------
# Pure-JAX reference (same eval-mode math)
# ----------------------------------------------------------------------------
def reference_block(x_nchw, lin_w, rel_tab, w1f, b1s, w2f, b2s, *, k, dilation):
    hi = jax.lax.Precision.HIGHEST
    B, C, H, W = x_nchw.shape
    S = H * W
    kk = k * dilation
    x3 = x_nchw.reshape(B, C, S)
    xs = jnp.transpose(x3, (0, 2, 1))                                   # (B, S, C)

    d = jnp.sum((xs[:, :, None, :] - xs[:, None, :, :]) ** 2, axis=-1)  # (B, S, S)
    d = jnp.where(jnp.eye(S, dtype=bool)[None], jnp.inf, d)             # loop=False
    _, idx = jax.lax.top_k(-d, kk)                                      # (B, S, kk)

    rel_idx = compute_relative_positions(int(round(S ** 0.5)))
    xp = xs + rel_tab[rel_idx][None]                                    # (B, S, C)

    nbr = jax.vmap(lambda f, i: f[i])(xp, idx)                          # (B, S, kk, C)
    agg = jnp.maximum(jnp.max(nbr - xp[:, :, None, :], axis=2), 0.0)    # (B, S, C)
    m = jnp.einsum("oc,bsc->bos", lin_w, agg, precision=hi)             # (B, C, S)

    h = jnp.maximum(jnp.einsum("oc,bcs->bos", w1f, m, precision=hi) + b1s[None], 0.0)
    f = jnp.einsum("oh,bhs->bos", w2f, h, precision=hi) + b2s[None] + m
    return (f + x3).reshape(B, C, H, W)


# ----------------------------------------------------------------------------
if __name__ == "__main__":
    key = jax.random.PRNGKey(0)
    B, dim, Hs, Ws = 2, 4, 16, 16
    k, dilation = 9, 1
    Hid = dim * 4
    S = Hs * Ws

    ks = jax.random.split(key, 13)
    x = jax.random.normal(ks[0], (B, dim, Hs, Ws), dtype=jnp.float32)

    # MRConv.lin (out, in), bias=False; learnable rel-pos embedding table.
    lin_w = 0.3 * jax.random.normal(ks[1], (dim, dim), dtype=jnp.float32)
    rel_tab = 0.1 * jax.random.normal(ks[2], ((2 * k - 1) ** 2, dim), dtype=jnp.float32)

    # FFN: Conv2d 1x1 weights ([out,in,1,1] -> (out,in)) + BatchNorm2d running stats.
    conv1_w = 0.2 * jax.random.normal(ks[3], (Hid, dim), dtype=jnp.float32)
    conv2_w = 0.2 * jax.random.normal(ks[4], (dim, Hid), dtype=jnp.float32)
    g1 = 1.0 + 0.1 * jax.random.normal(ks[5], (Hid,), dtype=jnp.float32)
    be1 = 0.1 * jax.random.normal(ks[6], (Hid,), dtype=jnp.float32)
    rm1 = 0.1 * jax.random.normal(ks[7], (Hid,), dtype=jnp.float32)
    rv1 = jax.random.uniform(ks[8], (Hid,), minval=0.5, maxval=1.5, dtype=jnp.float32)
    g2 = 1.0 + 0.1 * jax.random.normal(ks[9], (dim,), dtype=jnp.float32)
    be2 = 0.1 * jax.random.normal(ks[10], (dim,), dtype=jnp.float32)
    rm2 = 0.1 * jax.random.normal(ks[11], (dim,), dtype=jnp.float32)
    rv2 = jax.random.uniform(ks[12], (dim,), minval=0.5, maxval=1.5, dtype=jnp.float32)

    w1f, b1s = fold_bn_into_conv(conv1_w, g1, be1, rm1, rv1)
    w2f, b2s = fold_bn_into_conv(conv2_w, g2, be2, rm2, rv2)

    out = jax.block_until_ready(
        block_forward(x, lin_w, rel_tab, w1f, b1s, w2f, b2s, k=k, dilation=dilation))

    ref = reference_block(x, lin_w, rel_tab, w1f, b1s, w2f, b2s, k=k, dilation=dilation)
    assert out.shape == x.shape
    err = float(jnp.max(jnp.abs(out - ref)))
    assert jnp.allclose(out, ref, atol=1e-3, rtol=1e-3), f"mismatch vs reference, max err {err}"

    print("KERNEL_OK")
</pallas_src>

<mosaic_0001>
module attributes {stable_mosaic.version = 11 : i64} {
  func.func @mrconv_kernel(%arg0: i32, %arg1: memref<1x4x256xf32, #tpu.memory_space<vmem>>, %arg2: memref<1x256x4xf32, #tpu.memory_space<vmem>>, %arg3: memref<4x256xf32, #tpu.memory_space<vmem>>, %arg4: memref<4x4xf32, #tpu.memory_space<vmem>>, %arg5: memref<1x4x256xf32, #tpu.memory_space<vmem>>) attributes {dimension_semantics = [#tpu.dimension_semantics<parallel>], iteration_bounds = array<i64: 2>, scalar_prefetch = 0 : i64, scratch_operands = 0 : i64, tpu.core_type = #tpu.core_type<tc>, window_params = [{transform_indices = @transform_0, window_bounds = array<i64: 1, 4, 256>}, {transform_indices = @transform_1, window_bounds = array<i64: 1, 256, 4>}, {pipeline_mode = #tpu.pipeline_mode<synchronous>, transform_indices = @transform_2, window_bounds = array<i64: 4, 256>}, {pipeline_mode = #tpu.pipeline_mode<synchronous>, transform_indices = @transform_3, window_bounds = array<i64: 4, 4>}, {transform_indices = @transform_4, window_bounds = array<i64: 1, 4, 256>}]} {
    %c0 = arith.constant 0 : index
    %c0_0 = arith.constant 0 : index
    %c0_1 = arith.constant 0 : index
    %0 = vector.load %arg1[%c0, %c0_0, %c0_1] : memref<1x4x256xf32, #tpu.memory_space<vmem>>, vector<1x4x256xf32>
    %1 = vector.shape_cast %0 : vector<1x4x256xf32> to vector<4x256xf32>
    %c0_2 = arith.constant 0 : index
    %c0_3 = arith.constant 0 : index
    %c0_4 = arith.constant 0 : index
    %2 = vector.load %arg2[%c0_2, %c0_3, %c0_4] : memref<1x256x4xf32, #tpu.memory_space<vmem>>, vector<1x256x4xf32>
    %3 = vector.shape_cast %2 : vector<1x256x4xf32> to vector<256x4xf32>
    %cst = arith.constant dense<0.000000e+00> : vector<256x256xf32>
    %4 = tpu.matmul %3, %1, %cst {dimension_numbers = #tpu.dot_dimension_numbers<[1], [0], [0], [1], [0, 0, 1, 1], [], []>} : vector<256x4xf32>, vector<4x256xf32>, vector<256x256xf32> -> vector<256x256xf32>
    %5 = arith.mulf %1, %1 : vector<4x256xf32>
    %cst_5 = arith.constant dense<0.000000e+00> : vector<256xf32>
    %6 = vector.multi_reduction <add>, %5, %cst_5 [0] : vector<4x256xf32> to vector<256xf32>
    %7 = vector.shape_cast %6 : vector<256xf32> to vector<1x256xf32>
    %cst_6 = arith.constant 2.000000e+00 : f32
    %8 = vector.broadcast %cst_6 : f32 to vector<256x256xf32>
    %9 = arith.mulf %8, %4 : vector<256x256xf32>
    %10 = vector.broadcast %7 : vector<1x256xf32> to vector<256x256xf32>
    %11 = arith.subf %10, %9 : vector<256x256xf32>
    %12 = tpu.iota {dimensions = array<i32: 0>} : vector<256x256xi32>
    %13 = tpu.iota {dimensions = array<i32: 1>} : vector<256x256xi32>
    %14 = arith.sitofp %13 : vector<256x256xi32> to vector<256x256xf32>
    %15 = arith.cmpi eq, %12, %13 : vector<256x256xi32>
    %cst_7 = arith.constant 0x7F800000 : f32
    %16 = vector.broadcast %cst_7 : f32 to vector<256x256xf32>
    %17 = arith.select %15, %16, %11 : vector<256x256xi1>, vector<256x256xf32>
    %c0_8 = arith.constant 0 : index
    %c0_9 = arith.constant 0 : index
    %18 = vector.load %arg3[%c0_8, %c0_9] : memref<4x256xf32, #tpu.memory_space<vmem>>, vector<4x256xf32>
    %19 = arith.addf %1, %18 : vector<4x256xf32>
    %cst_10 = arith.constant 0.000000e+00 : f32
    %20 = vector.broadcast %cst_10 : f32 to vector<4x256xf32>
    %cst_11 = arith.constant dense<0x7F800000> : vector<256xf32>
    %21 = vector.multi_reduction <minimumf>, %17, %cst_11 [1] : vector<256x256xf32> to vector<256xf32>
    %22 = vector.shape_cast %21 : vector<256xf32> to vector<256x1xf32>
    %23 = vector.broadcast %22 : vector<256x1xf32> to vector<256x256xf32>
    %24 = arith.cmpf oeq, %17, %23 : vector<256x256xf32>
    %cst_12 = arith.constant 2.560000e+02 : f32
    %25 = vector.broadcast %cst_12 : f32 to vector<256x256xf32>
    %26 = arith.select %24, %14, %25 : vector<256x256xi1>, vector<256x256xf32>
    %cst_13 = arith.constant dense<0x7F800000> : vector<256xf32>
    %27 = vector.multi_reduction <minimumf>, %26, %cst_13 [1] : vector<256x256xf32> to vector<256xf32>
    %28 = vector.shape_cast %27 : vector<256xf32> to vector<256x1xf32>
    %29 = vector.broadcast %28 : vector<256x1xf32> to vector<256x256xf32>
    %30 = arith.cmpf oeq, %14, %29 : vector<256x256xf32>
    %31 = arith.extui %30 : vector<256x256xi1> to vector<256x256xi32>
    %32 = arith.sitofp %31 : vector<256x256xi32> to vector<256x256xf32>
    %cst_14 = arith.constant dense<0.000000e+00> : vector<4x256xf32>
    %33 = tpu.matmul %19, %32, %cst_14 {dimension_numbers = #tpu.dot_dimension_numbers<[1], [1], [0], [0], [0, 0, 1, 0], [], []>} : vector<4x256xf32>, vector<256x256xf32>, vector<4x256xf32> -> vector<4x256xf32>
    %34 = arith.subf %33, %19 : vector<4x256xf32>
    %35 = arith.maximumf %20, %34 : vector<4x256xf32>
    %cst_15 = arith.constant 0x7F800000 : f32
    %36 = vector.broadcast %cst_15 : f32 to vector<256x256xf32>
    %37 = arith.select %30, %36, %17 : vector<256x256xi1>, vector<256x256xf32>
    %cst_16 = arith.constant dense<0x7F800000> : vector<256xf32>
    %38 = vector.multi_reduction <minimumf>, %37, %cst_16 [1] : vector<256x256xf32> to vector<256xf32>
    %39 = vector.shape_cast %38 : vector<256xf32> to vector<256x1xf32>
    %40 = vector.broadcast %39 : vector<256x1xf32> to vector<256x256xf32>
    %41 = arith.cmpf oeq, %37, %40 : vector<256x256xf32>
    %cst_17 = arith.constant 2.560000e+02 : f32
    %42 = vector.broadcast %cst_17 : f32 to vector<256x256xf32>
    %43 = arith.select %41, %14, %42 : vector<256x256xi1>, vector<256x256xf32>
    %cst_18 = arith.constant dense<0x7F800000> : vector<256xf32>
    %44 = vector.multi_reduction <minimumf>, %43, %cst_18 [1] : vector<256x256xf32> to vector<256xf32>
    %45 = vector.shape_cast %44 : vector<256xf32> to vector<256x1xf32>
    %46 = vector.broadcast %45 : vector<256x1xf32> to vector<256x256xf32>
    %47 = arith.cmpf oeq, %14, %46 : vector<256x256xf32>
    %48 = arith.extui %47 : vector<256x256xi1> to vector<256x256xi32>
    %49 = arith.sitofp %48 : vector<256x256xi32> to vector<256x256xf32>
    %cst_19 = arith.constant dense<0.000000e+00> : vector<4x256xf32>
    %50 = tpu.matmul %19, %49, %cst_19 {dimension_numbers = #tpu.dot_dimension_numbers<[1], [1], [0], [0], [0, 0, 1, 0], [], []>} : vector<4x256xf32>, vector<256x256xf32>, vector<4x256xf32> -> vector<4x256xf32>
    %51 = arith.subf %50, %19 : vector<4x256xf32>
    %52 = arith.maximumf %35, %51 : vector<4x256xf32>
    %cst_20 = arith.constant 0x7F800000 : f32
    %53 = vector.broadcast %cst_20 : f32 to vector<256x256xf32>
    %54 = arith.select %47, %53, %37 : vector<256x256xi1>, vector<256x256xf32>
    %cst_21 = arith.constant dense<0x7F800000> : vector<256xf32>
    %55 = vector.multi_reduction <minimumf>, %54, %cst_21 [1] : vector<256x256xf32> to vector<256xf32>
    %56 = vector.shape_cast %55 : vector<256xf32> to vector<256x1xf32>
    %57 = vector.broadcast %56 : vector<256x1xf32> to vector<256x256xf32>
    %58 = arith.cmpf oeq, %54, %57 : vector<256x256xf32>
    %cst_22 = arith.constant 2.560000e+02 : f32
    %59 = vector.broadcast %cst_22 : f32 to vector<256x256xf32>
    %60 = arith.select %58, %14, %59 : vector<256x256xi1>, vector<256x256xf32>
    %cst_23 = arith.constant dense<0x7F800000> : vector<256xf32>
    %61 = vector.multi_reduction <minimumf>, %60, %cst_23 [1] : vector<256x256xf32> to vector<256xf32>
    %62 = vector.shape_cast %61 : vector<256xf32> to vector<256x1xf32>
    %63 = vector.broadcast %62 : vector<256x1xf32> to vector<256x256xf32>
    %64 = arith.cmpf oeq, %14, %63 : vector<256x256xf32>
    %65 = arith.extui %64 : vector<256x256xi1> to vector<256x256xi32>
    %66 = arith.sitofp %65 : vector<256x256xi32> to vector<256x256xf32>
    %cst_24 = arith.constant dense<0.000000e+00> : vector<4x256xf32>
    %67 = tpu.matmul %19, %66, %cst_24 {dimension_numbers = #tpu.dot_dimension_numbers<[1], [1], [0], [0], [0, 0, 1, 0], [], []>} : vector<4x256xf32>, vector<256x256xf32>, vector<4x256xf32> -> vector<4x256xf32>
    %68 = arith.subf %67, %19 : vector<4x256xf32>
    %69 = arith.maximumf %52, %68 : vector<4x256xf32>
    %cst_25 = arith.constant 0x7F800000 : f32
    %70 = vector.broadcast %cst_25 : f32 to vector<256x256xf32>
    %71 = arith.select %64, %70, %54 : vector<256x256xi1>, vector<256x256xf32>
    %cst_26 = arith.constant dense<0x7F800000> : vector<256xf32>
    %72 = vector.multi_reduction <minimumf>, %71, %cst_26 [1] : vector<256x256xf32> to vector<256xf32>
    %73 = vector.shape_cast %72 : vector<256xf32> to vector<256x1xf32>
    %74 = vector.broadcast %73 : vector<256x1xf32> to vector<256x256xf32>
    %75 = arith.cmpf oeq, %71, %74 : vector<256x256xf32>
    %cst_27 = arith.constant 2.560000e+02 : f32
    %76 = vector.broadcast %cst_27 : f32 to vector<256x256xf32>
    %77 = arith.select %75, %14, %76 : vector<256x256xi1>, vector<256x256xf32>
    %cst_28 = arith.constant dense<0x7F800000> : vector<256xf32>
    %78 = vector.multi_reduction <minimumf>, %77, %cst_28 [1] : vector<256x256xf32> to vector<256xf32>
    %79 = vector.shape_cast %78 : vector<256xf32> to vector<256x1xf32>
    %80 = vector.broadcast %79 : vector<256x1xf32> to vector<256x256xf32>
    %81 = arith.cmpf oeq, %14, %80 : vector<256x256xf32>
    %82 = arith.extui %81 : vector<256x256xi1> to vector<256x256xi32>
    %83 = arith.sitofp %82 : vector<256x256xi32> to vector<256x256xf32>
    %cst_29 = arith.constant dense<0.000000e+00> : vector<4x256xf32>
    %84 = tpu.matmul %19, %83, %cst_29 {dimension_numbers = #tpu.dot_dimension_numbers<[1], [1], [0], [0], [0, 0, 1, 0], [], []>} : vector<4x256xf32>, vector<256x256xf32>, vector<4x256xf32> -> vector<4x256xf32>
    %85 = arith.subf %84, %19 : vector<4x256xf32>
    %86 = arith.maximumf %69, %85 : vector<4x256xf32>
    %cst_30 = arith.constant 0x7F800000 : f32
    %87 = vector.broadcast %cst_30 : f32 to vector<256x256xf32>
    %88 = arith.select %81, %87, %71 : vector<256x256xi1>, vector<256x256xf32>
    %cst_31 = arith.constant dense<0x7F800000> : vector<256xf32>
    %89 = vector.multi_reduction <minimumf>, %88, %cst_31 [1] : vector<256x256xf32> to vector<256xf32>
    %90 = vector.shape_cast %89 : vector<256xf32> to vector<256x1xf32>
    %91 = vector.broadcast %90 : vector<256x1xf32> to vector<256x256xf32>
    %92 = arith.cmpf oeq, %88, %91 : vector<256x256xf32>
    %cst_32 = arith.constant 2.560000e+02 : f32
    %93 = vector.broadcast %cst_32 : f32 to vector<256x256xf32>
    %94 = arith.select %92, %14, %93 : vector<256x256xi1>, vector<256x256xf32>
    %cst_33 = arith.constant dense<0x7F800000> : vector<256xf32>
    %95 = vector.multi_reduction <minimumf>, %94, %cst_33 [1] : vector<256x256xf32> to vector<256xf32>
    %96 = vector.shape_cast %95 : vector<256xf32> to vector<256x1xf32>
    %97 = vector.broadcast %96 : vector<256x1xf32> to vector<256x256xf32>
    %98 = arith.cmpf oeq, %14, %97 : vector<256x256xf32>
    %99 = arith.extui %98 : vector<256x256xi1> to vector<256x256xi32>
    %100 = arith.sitofp %99 : vector<256x256xi32> to vector<256x256xf32>
    %cst_34 = arith.constant dense<0.000000e+00> : vector<4x256xf32>
    %101 = tpu.matmul %19, %100, %cst_34 {dimension_numbers = #tpu.dot_dimension_numbers<[1], [1], [0], [0], [0, 0, 1, 0], [], []>} : vector<4x256xf32>, vector<256x256xf32>, vector<4x256xf32> -> vector<4x256xf32>
    %102 = arith.subf %101, %19 : vector<4x256xf32>
    %103 = arith.maximumf %86, %102 : vector<4x256xf32>
    %cst_35 = arith.constant 0x7F800000 : f32
    %104 = vector.broadcast %cst_35 : f32 to vector<256x256xf32>
    %105 = arith.select %98, %104, %88 : vector<256x256xi1>, vector<256x256xf32>
    %cst_36 = arith.constant dense<0x7F800000> : vector<256xf32>
    %106 = vector.multi_reduction <minimumf>, %105, %cst_36 [1] : vector<256x256xf32> to vector<256xf32>
    %107 = vector.shape_cast %106 : vector<256xf32> to vector<256x1xf32>
    %108 = vector.broadcast %107 : vector<256x1xf32> to vector<256x256xf32>
    %109 = arith.cmpf oeq, %105, %108 : vector<256x256xf32>
    %cst_37 = arith.constant 2.560000e+02 : f32
    %110 = vector.broadcast %cst_37 : f32 to vector<256x256xf32>
    %111 = arith.select %109, %14, %110 : vector<256x256xi1>, vector<256x256xf32>
    %cst_38 = arith.constant dense<0x7F800000> : vector<256xf32>
    %112 = vector.multi_reduction <minimumf>, %111, %cst_38 [1] : vector<256x256xf32> to vector<256xf32>
    %113 = vector.shape_cast %112 : vector<256xf32> to vector<256x1xf32>
    %114 = vector.broadcast %113 : vector<256x1xf32> to vector<256x256xf32>
    %115 = arith.cmpf oeq, %14, %114 : vector<256x256xf32>
    %116 = arith.extui %115 : vector<256x256xi1> to vector<256x256xi32>
    %117 = arith.sitofp %116 : vector<256x256xi32> to vector<256x256xf32>
    %cst_39 = arith.constant dense<0.000000e+00> : vector<4x256xf32>
    %118 = tpu.matmul %19, %117, %cst_39 {dimension_numbers = #tpu.dot_dimension_numbers<[1], [1], [0], [0], [0, 0, 1, 0], [], []>} : vector<4x256xf32>, vector<256x256xf32>, vector<4x256xf32> -> vector<4x256xf32>
    %119 = arith.subf %118, %19 : vector<4x256xf32>
    %120 = arith.maximumf %103, %119 : vector<4x256xf32>
    %cst_40 = arith.constant 0x7F800000 : f32
    %121 = vector.broadcast %cst_40 : f32 to vector<256x256xf32>
    %122 = arith.select %115, %121, %105 : vector<256x256xi1>, vector<256x256xf32>
    %cst_41 = arith.constant dense<0x7F800000> : vector<256xf32>
    %123 = vector.multi_reduction <minimumf>, %122, %cst_41 [1] : vector<256x256xf32> to vector<256xf32>
    %124 = vector.shape_cast %123 : vector<256xf32> to vector<256x1xf32>
    %125 = vector.broadcast %124 : vector<256x1xf32> to vector<256x256xf32>
    %126 = arith.cmpf oeq, %122, %125 : vector<256x256xf32>
    %cst_42 = arith.constant 2.560000e+02 : f32
    %127 = vector.broadcast %cst_42 : f32 to vector<256x256xf32>
    %128 = arith.select %126, %14, %127 : vector<256x256xi1>, vector<256x256xf32>
    %cst_43 = arith.constant dense<0x7F800000> : vector<256xf32>
    %129 = vector.multi_reduction <minimumf>, %128, %cst_43 [1] : vector<256x256xf32> to vector<256xf32>
    %130 = vector.shape_cast %129 : vector<256xf32> to vector<256x1xf32>
    %131 = vector.broadcast %130 : vector<256x1xf32> to vector<256x256xf32>
    %132 = arith.cmpf oeq, %14, %131 : vector<256x256xf32>
    %133 = arith.extui %132 : vector<256x256xi1> to vector<256x256xi32>
    %134 = arith.sitofp %133 : vector<256x256xi32> to vector<256x256xf32>
    %cst_44 = arith.constant dense<0.000000e+00> : vector<4x256xf32>
    %135 = tpu.matmul %19, %134, %cst_44 {dimension_numbers = #tpu.dot_dimension_numbers<[1], [1], [0], [0], [0, 0, 1, 0], [], []>} : vector<4x256xf32>, vector<256x256xf32>, vector<4x256xf32> -> vector<4x256xf32>
    %136 = arith.subf %135, %19 : vector<4x256xf32>
    %137 = arith.maximumf %120, %136 : vector<4x256xf32>
    %cst_45 = arith.constant 0x7F800000 : f32
    %138 = vector.broadcast %cst_45 : f32 to vector<256x256xf32>
    %139 = arith.select %132, %138, %122 : vector<256x256xi1>, vector<256x256xf32>
    %cst_46 = arith.constant dense<0x7F800000> : vector<256xf32>
    %140 = vector.multi_reduction <minimumf>, %139, %cst_46 [1] : vector<256x256xf32> to vector<256xf32>
    %141 = vector.shape_cast %140 : vector<256xf32> to vector<256x1xf32>
    %142 = vector.broadcast %141 : vector<256x1xf32> to vector<256x256xf32>
    %143 = arith.cmpf oeq, %139, %142 : vector<256x256xf32>
    %cst_47 = arith.constant 2.560000e+02 : f32
    %144 = vector.broadcast %cst_47 : f32 to vector<256x256xf32>
    %145 = arith.select %143, %14, %144 : vector<256x256xi1>, vector<256x256xf32>
    %cst_48 = arith.constant dense<0x7F800000> : vector<256xf32>
    %146 = vector.multi_reduction <minimumf>, %145, %cst_48 [1] : vector<256x256xf32> to vector<256xf32>
    %147 = vector.shape_cast %146 : vector<256xf32> to vector<256x1xf32>
    %148 = vector.broadcast %147 : vector<256x1xf32> to vector<256x256xf32>
    %149 = arith.cmpf oeq, %14, %148 : vector<256x256xf32>
    %150 = arith.extui %149 : vector<256x256xi1> to vector<256x256xi32>
    %151 = arith.sitofp %150 : vector<256x256xi32> to vector<256x256xf32>
    %cst_49 = arith.constant dense<0.000000e+00> : vector<4x256xf32>
    %152 = tpu.matmul %19, %151, %cst_49 {dimension_numbers = #tpu.dot_dimension_numbers<[1], [1], [0], [0], [0, 0, 1, 0], [], []>} : vector<4x256xf32>, vector<256x256xf32>, vector<4x256xf32> -> vector<4x256xf32>
    %153 = arith.subf %152, %19 : vector<4x256xf32>
    %154 = arith.maximumf %137, %153 : vector<4x256xf32>
    %cst_50 = arith.constant 0x7F800000 : f32
    %155 = vector.broadcast %cst_50 : f32 to vector<256x256xf32>
    %156 = arith.select %149, %155, %139 : vector<256x256xi1>, vector<256x256xf32>
    %cst_51 = arith.constant dense<0x7F800000> : vector<256xf32>
    %157 = vector.multi_reduction <minimumf>, %156, %cst_51 [1] : vector<256x256xf32> to vector<256xf32>
    %158 = vector.shape_cast %157 : vector<256xf32> to vector<256x1xf32>
    %159 = vector.broadcast %158 : vector<256x1xf32> to vector<256x256xf32>
    %160 = arith.cmpf oeq, %156, %159 : vector<256x256xf32>
    %cst_52 = arith.constant 2.560000e+02 : f32
    %161 = vector.broadcast %cst_52 : f32 to vector<256x256xf32>
    %162 = arith.select %160, %14, %161 : vector<256x256xi1>, vector<256x256xf32>
    %cst_53 = arith.constant dense<0x7F800000> : vector<256xf32>
    %163 = vector.multi_reduction <minimumf>, %162, %cst_53 [1] : vector<256x256xf32> to vector<256xf32>
    %164 = vector.shape_cast %163 : vector<256xf32> to vector<256x1xf32>
    %165 = vector.broadcast %164 : vector<256x1xf32> to vector<256x256xf32>
    %166 = arith.cmpf oeq, %14, %165 : vector<256x256xf32>
    %167 = arith.extui %166 : vector<256x256xi1> to vector<256x256xi32>
    %168 = arith.sitofp %167 : vector<256x256xi32> to vector<256x256xf32>
    %cst_54 = arith.constant dense<0.000000e+00> : vector<4x256xf32>
    %169 = tpu.matmul %19, %168, %cst_54 {dimension_numbers = #tpu.dot_dimension_numbers<[1], [1], [0], [0], [0, 0, 1, 0], [], []>} : vector<4x256xf32>, vector<256x256xf32>, vector<4x256xf32> -> vector<4x256xf32>
    %170 = arith.subf %169, %19 : vector<4x256xf32>
    %171 = arith.maximumf %154, %170 : vector<4x256xf32>
    %c0_55 = arith.constant 0 : index
    %c0_56 = arith.constant 0 : index
    %172 = vector.load %arg4[%c0_55, %c0_56] : memref<4x4xf32, #tpu.memory_space<vmem>>, vector<4x4xf32>
    %cst_57 = arith.constant dense<0.000000e+00> : vector<4x256xf32>
    %173 = tpu.matmul %172, %171, %cst_57 {dimension_numbers = #tpu.dot_dimension_numbers<[1], [0], [0], [1], [0, 0, 1, 1], [], []>} : vector<4x4xf32>, vector<4x256xf32>, vector<4x256xf32> -> vector<4x256xf32>
    %c0_58 = arith.constant 0 : index
    %c0_59 = arith.constant 0 : index
    %c0_60 = arith.constant 0 : index
    %174 = vector.load %arg5[%c0_58, %c0_59, %c0_60] : memref<1x4x256xf32, #tpu.memory_space<vmem>>, vector<1x4x256xf32>
    %175 = vector.shape_cast %174 : vector<1x4x256xf32> to vector<4x256xf32>
    %176 = vector.shape_cast %173 : vector<4x256xf32> to vector<1x4x256xf32>
    tpu.vector_store %arg5[%c0_58, %c0_59, %c0_60], %176 {strides = array<i32>} : memref<1x4x256xf32, #tpu.memory_space<vmem>>, vector<1x4x256xf32>,
    return
  }
  func.func @transform_0(%arg0: i32) -> (i32, i32, i32) {
    %c0_i32 = arith.constant 0 : i32
    %c0_i32_0 = arith.constant 0 : i32
    %c0_i32_1 = arith.constant 0 : i32
    return %arg0, %c0_i32, %c0_i32_0 : i32, i32, i32
  }
  func.func @transform_1(%arg0: i32) -> (i32, i32, i32) {
    %c0_i32 = arith.constant 0 : i32
    %c0_i32_0 = arith.constant 0 : i32
    %c0_i32_1 = arith.constant 0 : i32
    return %arg0, %c0_i32, %c0_i32_0 : i32, i32, i32
  }
  func.func @transform_2(%arg0: i32) -> (i32, i32) {
    %c0_i32 = arith.constant 0 : i32
    %c0_i32_0 = arith.constant 0 : i32
    %c0_i32_1 = arith.constant 0 : i32
    return %c0_i32, %c0_i32_0 : i32, i32
  }
  func.func @transform_3(%arg0: i32) -> (i32, i32) {
    %c0_i32 = arith.constant 0 : i32
    %c0_i32_0 = arith.constant 0 : i32
    %c0_i32_1 = arith.constant 0 : i32
    return %c0_i32, %c0_i32_0 : i32, i32
  }
  func.func @transform_4(%arg0: i32) -> (i32, i32, i32) {
    %c0_i32 = arith.constant 0 : i32
    %c0_i32_0 = arith.constant 0 : i32
    %c0_i32_1 = arith.constant 0 : i32
    return %arg0, %c0_i32, %c0_i32_0 : i32, i32, i32
  }
}

</mosaic_0001>

<bundles_post_ra>
// kernel: tpu_custom_call.1
= control target key start
LH: loop header
LB: loop body
LE: loop exit
PB: predicated region body
PF: predicated region fallthrough
CT: control target
= control target key end

     0   :  { %9 = vsyncpa [#allocation3], 0  ;;  %s13508_s0 = inlined_call_operand.vmem [shape: f32[2,4,256], index: 0, kind: input, shape index: {}]   ;;  %s13509_s1 = inlined_call_operand.vmem [shape: f32[2,256,4], index: 1, kind: input, shape index: {}]   ;;  %s13510_s2 = inlined_call_operand.vmem [shape: f32[4,256], index: 2, kind: input, shape index: {}]   ;;  %s13511_s3 = inlined_call_operand.vmem [shape: f32[4,4], index: 3, kind: input, shape index: {}]   ;;  %s13512_s4 = inlined_call_operand.hbm [shape: f32[2,4,256], index: 4, kind: output, shape index: {}]  }
   0x1   :  { %11 = vsyncpa [#allocation3 + $0x1], 0  ;;  %s8233_s15 = smov 0   ;;  %s8235_s16 = smov 0  }
   0x2   :  { %s8237_s17 = smov 0   ;;  %s8239_s18 = smov 0  }
   0x3 LB: > { %s8254_s19 = sadd.s32 4294967295, %s8203_s18   ;;  %s6894_s20 = sadd.s32 4294967294, %s8203_s18   ;;  %s8203_s18 = sphi %s8239_s18, %s14216_s18   ;;  %s8199_s17 = sphi %s8237_s17, %s14215_s17   ;;  %s8195_s16 = sphi %s8235_s16, %s14214_s16   ;;  %s8191_s15 = sphi %s8233_s15, %s14213_s15  }
   0x4   : > { %s8258_s21 = sadd.s32 1, %s8203_s18   ;;  %s118_s22 = sadd.s32 1, %s8199_s17 }
   0x5   : > { %s115_s23 = ssub.s32 %s8203_s18, %s8258_s21  ;;  %p128_p0 = scmp.ne.s32.totalorder %s8199_s17, %s8195_s16 }
   0x6   : > { %p116_p1 = scmp.eq.s32.totalorder %s115_s23, 0  ;;  %p129_p2 = scmp.eq.s32.totalorder %s8254_s19, 1 }
   0x7   : > { %p134_p3 = scmp.ne.s32.totalorder %s8195_s16, %s8191_s15  ;;  %p135_p4 = scmp.eq.s32.totalorder %s6894_s20, 1 }
   0x8   : > { %s8269_s24 = scalar_select %p116_p1, %s8199_s17, %s118_s22  }
   0x9   : > { %p8271_p5 = por %p129_p2, %p128_p0  ;;  %p8275_p6 = por %p135_p4, %p134_p3 }
   0xa   : > { %p6897_p7 = scmp.ge.s32.totalorder %s8203_s18, 1  ;;  %p175_p8 = scmp.lt.s32.totalorder %s8203_s18, 3 }
   0xc   : > { %p176_p9 = pnand %p6897_p7, %p175_p8 }
   0xe   : > { %179 = sbr.rel (%p176_p9) target bundleno = 3384 (0xd38), region = 36 }
  0x13   : > { %p206_p10 = scmp.lt.s32.totalorder %s8254_s19, 1  ;;  %v13513_v0 = vmov 0.0   ;;  %vm348_vm0 = vcmask 1043456   ;;  %vm251_vm1 = vcmask 31744   ;;  %s203_s14 = sand.u32 1, %s8195_s16  }
  0x14   : > { %417 = vmatprep.mubr.f32.mxu0 %v13513_v0  ;;  %s6898_s20 = sshll.u32 %s203_s14, 3  ;;  %s8099_s22 = sshll.u32 %s8254_s19, 7 }
  0x15   : > { %s207_s27 = scalar_select %p206_p10, %s8254_s19, 1 }
  0x16   : > { %s205_s23 = scalar_lea.vmem [#allocation2], %s6898_s20  ;;  %s6821_s30 = scalar_lea.hbm %s13512_s4, %s8099_s22 }
  0x17   : > { %s8097_s28 = sshll.u32 %s207_s27, 3  ;;  %s8098_s29 = sshll.u32 %s207_s27, 8 }
  0x18   : > { %s8287_s6 = scalar_lea.vmem %s13508_s0, %s8097_s28  ;;  %s8292_s9 = scalar_lea.vmem %s13509_s1, %s8098_s29 }
  0x19   : > { %v8295_v1 = vld [vmem:[%s8287_s6] sm:$0xff]  ;;  %v218_v4 = vld [vmem:[%s8292_s9 + $0x8] sm:$0xff]  ;;  %v219_v5 = vld [vmem:[%s8292_s9 + $0x10] sm:$0xff]  ;;  %s6823_s27 = sshll.u32 %s205_s23, 4  ;;  %s6809_s5 = scalar_lea.sflag [#allocation3], %s203_s14  ;;  %s6824_s27 = int_to_ptr.vmem [resolvable:$true] %s6823_s27 }
  0x1a   : > { %v250_v2 = vcombine.high %v8295_v1, %v8295_v1  ;;  %v217_v3 = vld [vmem:[%s8292_s9] sm:$0xff]  ;;  %v220_v6 = vld [vmem:[%s8292_s9 + $0x18] sm:$0xff]  ;;  %v222_v8 = vld [vmem:[%s8292_s9 + $0x28] sm:$0xff]  ;;  %v610_v46 = vmul.f32 %v8295_v1, %v8295_v1  ;;  %s8207_s7 = smov [#allocation2]  }
  0x1b   : > { %v221_v7 = vld [vmem:[%s8292_s9 + $0x20] sm:$0xff]  ;;  %v223_v9 = vld [vmem:[%s8292_s9 + $0x30] sm:$0xff]  ;;  %v224_v10 = vld [vmem:[%s8292_s9 + $0x38] sm:$0xff]  ;;  %s8147_s8 = sshll.u32 %s8207_s7, 4  ;;  %s8148_s8 = int_to_ptr.vmem [resolvable:$false] %s8147_s8 }
  0x1c   : > { %6903 = vmatprep.subr.msk.mxu0 %vm348_vm0, %v250_v2  ;;  %v225_v11 = vld [vmem:[%s8292_s9 + $0x40] sm:$0xff]  ;;  %v226_v12 = vld [vmem:[%s8292_s9 + $0x48] sm:$0xff]  ;;  %v227_v13 = vld [vmem:[%s8292_s9 + $0x50] sm:$0xff]  ;;  %v612_v49 = vcombine.high %v610_v46, %v610_v46  ;;  %v614_v52 = vsel %vm348_vm0, %v610_v46, 0.0  ;;  %s8149_s19 = scalar_lea.vmem %s8148_s8, 256  ;;  %p8150_p0 = scmp.lt.s32.totalorder %s6824_s27, %s8148_s8 }
  0x1d   : > { %6904 = vmatpush1.msk.msra.mxu0 %vm348_vm0, %v8295_v1  ;;  %v228_v14 = vld [vmem:[%s8292_s9 + $0x58] sm:$0xff]  ;;  %v229_v15 = vld [vmem:[%s8292_s9 + $0x60] sm:$0xff]  ;;  %v230_v16 = vld [vmem:[%s8292_s9 + $0x68] sm:$0xff]  ;;  %v615_v55 = vrot.slane %v614_v52, 4 }
  0x1e   : > { %6905 = vmatmul.mubr.msk.f32.vlgmr.msra.gmra.mxu0 %vm251_vm1, %v217_v3  ;;  %v231_v17 = vld [vmem:[%s8292_s9 + $0x70] sm:$0xff]  ;;  %v232_v18 = vld [vmem:[%s8292_s9 + $0x78] sm:$0xff]  ;;  %v233_v19 = vld [vmem:[%s8292_s9 + $0x80] sm:$0xff]  ;;  %v621_v53 = vsel %vm348_vm0, %v612_v49, 0.0 }
  0x1f   : > { %423 = vmatprep.mubr.f32.mxu0 %v13513_v0  ;;  %v234_v20 = vld [vmem:[%s8292_s9 + $0x88] sm:$0xff]  ;;  %v235_v21 = vld [vmem:[%s8292_s9 + $0x90] sm:$0xff]  ;;  %v236_v22 = vld [vmem:[%s8292_s9 + $0x98] sm:$0xff]  ;;  %v622_v57 = vrot.slane %v621_v53, 4  ;;  %v616_v59 = vadd.f32 %v615_v55, %v614_v52 }
  0x20   : > { %v237_v23 = vld [vmem:[%s8292_s9 + $0xa0] sm:$0xff]  ;;  %v238_v24 = vld [vmem:[%s8292_s9 + $0xa8] sm:$0xff]  ;;  %v239_v25 = vld [vmem:[%s8292_s9 + $0xb0] sm:$0xff] }
  0x21   : > { %v240_v26 = vld [vmem:[%s8292_s9 + $0xb8] sm:$0xff]  ;;  %v241_v27 = vld [vmem:[%s8292_s9 + $0xc0] sm:$0xff]  ;;  %v242_v28 = vld [vmem:[%s8292_s9 + $0xc8] sm:$0xff]  ;;  %v623_v61 = vadd.f32 %v622_v57, %v621_v53  ;;  %v617_v63 = vrot.slane %v616_v59, 2 }
  0x22   : > { %6906 = vmatmul.mubr.msk.f32.gmra.mxu0 %vm251_vm1, %v218_v4  ;;  %v243_v29 = vld [vmem:[%s8292_s9 + $0xd0] sm:$0xff]  ;;  %v244_v30 = vld [vmem:[%s8292_s9 + $0xd8] sm:$0xff]  ;;  %v245_v31 = vld [vmem:[%s8292_s9 + $0xe0] sm:$0xff] }
  0x23   : > { %429 = vmatprep.mubr.f32.mxu0 %v13513_v0  ;;  %v246_v32 = vld [vmem:[%s8292_s9 + $0xe8] sm:$0xff]  ;;  %v247_v33 = vld [vmem:[%s8292_s9 + $0xf0] sm:$0xff]  ;;  %v248_v34 = vld [vmem:[%s8292_s9 + $0xf8] sm:$0xff]  ;;  %v624_v2 = vrot.slane %v623_v61, 2  ;;  %v618_v4 = vadd.f32 %v617_v63, %v616_v59 }
  0x26   : > { %6907 = vmatmul.mubr.msk.f32.gmra.mxu0 %vm251_vm1, %v219_v5 }
  0x27   : > { %435 = vmatprep.mubr.f32.mxu0 %v13513_v0 }
  0x2a   : > { %6908 = vmatmul.mubr.msk.f32.gmra.mxu0 %vm251_vm1, %v220_v6  ;;  %v756_v6 = vlaneseq }
  0x2b   : > { %441 = vmatprep.mubr.f32.mxu0 %v13513_v0 }
  0x2e   : > { %6909 = vmatmul.mubr.msk.f32.gmra.mxu0 %vm251_vm1, %v221_v7  ;;  %v625_v7 = vadd.f32 %v624_v2, %v623_v61 }
  0x2f   : > { %447 = vmatprep.mubr.f32.mxu0 %v13513_v0 }
  0x32   : > { %6910 = vmatmul.mubr.msk.f32.gmra.mxu0 %vm251_vm1, %v222_v8 }
  0x33   : > { %453 = vmatprep.mubr.f32.mxu0 %v13513_v0 }
  0x36   : > { %6911 = vmatmul.mubr.msk.f32.gmra.mxu0 %vm251_vm1, %v223_v9  ;;  %v619_v9 = vrot.slane %v618_v4, 1 }
  0x37   : > { %459 = vmatprep.mubr.f32.mxu0 %v13513_v0 }
  0x3a   : > { %6912 = vmatmul.mubr.msk.f32.gmra.mxu0 %vm251_vm1, %v224_v10 }
  0x3b   : > { %465 = vmatprep.mubr.f32.mxu0 %v13513_v0 }
  0x3e   : > { %6913 = vmatmul.mubr.msk.f32.gmra.mxu0 %vm251_vm1, %v225_v11  ;;  %v8443_v11 = vshrl.u32 %v756_v6, 7 }
  0x3f   : > { %471 = vmatprep.mubr.f32.mxu0 %v13513_v0 }
  0x40   : > { %v8479_v49 = vadd.s32 88, %v8443_v11  ;;  %v772_v55 = vadd.s32 120, %v8443_v11  ;;  %v771_v57 = vadd.s32 112, %v8443_v11  ;;  %v8492_v2 = vadd.s32 128, %v8443_v11 }
  0x42   : > { %6914 = vmatmul.mubr.msk.f32.gmra.mxu0 %vm251_vm1, %v226_v12  ;;  %v626_v12 = vrot.slane %v625_v7, 1 }
  0x43   : > { %477 = vmatprep.mubr.f32.mxu0 %v13513_v0 }
  0x46   : > { %6915 = vmatmul.mubr.msk.f32.gmra.mxu0 %vm251_vm1, %v227_v13 }
  0x47   : > { %483 = vmatprep.mubr.f32.mxu0 %v13513_v0 }
  0x4a   : > { %6916 = vmatmul.mubr.msk.f32.gmra.mxu0 %vm251_vm1, %v228_v14  ;;  %v770_v14 = vadd.s32 104, %v8443_v11 }
  0x4b   : > { %489 = vmatprep.mubr.f32.mxu0 %v13513_v0 }
  0x4e   : > { %6917 = vmatmul.mubr.msk.f32.gmra.mxu0 %vm251_vm1, %v229_v15  ;;  %v8447_v15 = vadd.s32 64, %v8443_v11 }
  0x4f   : > { %495 = vmatprep.mubr.f32.mxu0 %v13513_v0 }
  0x52   : > { %6918 = vmatmul.mubr.msk.f32.gmra.mxu0 %vm251_vm1, %v230_v16  ;;  %v8449_v16 = vadd.f32 %v619_v9, %v618_v4 }
  0x53   : > { %501 = vmatprep.mubr.f32.mxu0 %v13513_v0 }
  0x56   : > { %6919 = vmatmul.mubr.msk.f32.gmra.mxu0 %vm251_vm1, %v231_v17 }
  0x57   : > { %507 = vmatprep.mubr.f32.mxu0 %v13513_v0 }
  0x5a   : > { %6920 = vmatmul.mubr.msk.f32.gmra.mxu0 %vm251_vm1, %v232_v18 }
  0x5b   : > { %513 = vmatprep.mubr.f32.mxu0 %v13513_v0 }
  0x5e   : > { %6921 = vmatmul.mubr.msk.f32.gmra.mxu0 %vm251_vm1, %v233_v19  ;;  %v8451_v19 = vand.u32 127, %v756_v6 }
  0x5f   : > { %519 = vmatprep.mubr.f32.mxu0 %v13513_v0 }
  0x60   : > { %vm820_vm2 = vcmp.eq.s32.totalorder %v770_v14, %v8451_v19  ;;  %vm810_vm3 = vcmp.eq.s32.totalorder %v8447_v15, %v8451_v19  ;;  %vm824_vm7 = vcmp.eq.s32.totalorder %v772_v55, %v8451_v19  ;;  %vm822_vm8 = vcmp.eq.s32.totalorder %v771_v57, %v8451_v19 }
  0x61   : > { %vm816_vm9 = vcmp.eq.s32.totalorder %v8479_v49, %v8451_v19 }
  0x62   : > { %6922 = vmatmul.mubr.msk.f32.gmra.mxu0 %vm251_vm1, %v234_v20  ;;  %v769_v20 = vadd.s32 96, %v8443_v11 }
  0x63   : > { %525 = vmatprep.mubr.f32.mxu0 %v13513_v0 }
  0x64   : > { %vm818_vm4 = vcmp.eq.s32.totalorder %v769_v20, %v8451_v19 }
  0x66   : > { %6923 = vmatmul.mubr.msk.f32.gmra.mxu0 %vm251_vm1, %v235_v21  ;;  %v8454_v21 = vadd.f32 %v626_v12, %v625_v7  ;;  %v8511_v12 = vadd.s32 136, %v8443_v11 }
  0x67   : > { %531 = vmatprep.mubr.f32.mxu0 %v13513_v0 }
  0x6a   : > { %6924 = vmatmul.mubr.msk.f32.gmra.mxu0 %vm251_vm1, %v236_v22 }
  0x6b   : > { %537 = vmatprep.mubr.f32.mxu0 %v13513_v0 }
  0x6e   : > { %6925 = vmatmul.mubr.msk.f32.gmra.mxu0 %vm251_vm1, %v237_v23  ;;  %v8457_v23 = vadd.s32 32, %v8443_v11 }
  0x6f   : > { %543 = vmatprep.mubr.f32.mxu0 %v13513_v0 }
  0x70   : > { %vm802_vm11 = vcmp.eq.s32.totalorder %v8457_v23, %v8451_v19 }
  0x72   : > { %6926 = vmatmul.mubr.msk.f32.gmra.mxu0 %vm251_vm1, %v238_v24  ;;  %v8460_v24 = vadd.s32 16, %v8443_v11 }
  0x73   : > { %549 = vmatprep.mubr.f32.mxu0 %v13513_v0 }
  0x74   : > { %vm798_vm14 = vcmp.eq.s32.totalorder %v8460_v24, %v8451_v19 }
  0x76   : > { %6927 = vmatmul.mubr.msk.f32.gmra.mxu0 %vm251_vm1, %v239_v25 }
  0x77   : > { %555 = vmatprep.mubr.f32.mxu0 %v13513_v0 }
  0x7a   : > { %6928 = vmatmul.mubr.msk.f32.gmra.mxu0 %vm251_vm1, %v240_v26  ;;  %v8464_v26 = vadd.s32 48, %v8443_v11 }
  0x7b   : > { %561 = vmatprep.mubr.f32.mxu0 %v13513_v0 }
  0x7c   : > { %vm806_vm6 = vcmp.eq.s32.totalorder %v8464_v26, %v8451_v19 }
  0x7e   : > { %6929 = vmatmul.mubr.msk.f32.gmra.mxu0 %vm251_vm1, %v241_v27  ;;  %v8467_v27 = vadd.s32 56, %v8443_v11 }
  0x7f   : > { %567 = vmatprep.mubr.f32.mxu0 %v13513_v0 }
  0x80   : > { %vm808_vm15 = vcmp.eq.s32.totalorder %v8467_v27, %v8451_v19 }
  0x82   : > { %6930 = vmatmul.mubr.msk.f32.gmra.mxu0 %vm251_vm1, %v242_v28  ;;  %v8470_v28 = vadd.s32 40, %v8443_v11 }
  0x83   : > { %573 = vmatprep.mubr.f32.mxu0 %v13513_v0 }
  0x86   : > { %6931 = vmatmul.mubr.msk.f32.gmra.mxu0 %vm251_vm1, %v243_v29 }
  0x87   : > { %579 = vmatprep.mubr.f32.mxu0 %v13513_v0 }
  0x8a   : > { %6932 = vmatmul.mubr.msk.f32.gmra.mxu0 %vm251_vm1, %v244_v30 }
  0x8b   : > { %585 = vmatprep.mubr.f32.mxu0 %v13513_v0 }
  0x8e   : > { %6933 = vmatmul.mubr.msk.f32.gmra.mxu0 %vm251_vm1, %v245_v31 }
  0x8f   : > { %591 = vmatprep.mubr.f32.mxu0 %v13513_v0 }
  0x92   : > { %6934 = vmatmul.mubr.msk.f32.gmra.mxu0 %vm251_vm1, %v246_v32  ;;  %v767_v32 = vadd.s32 80, %v8443_v11 }
  0x93   : > { %597 = vmatprep.mubr.f32.mxu0 %v13513_v0 }
  0x94   : > { %vm814_vm5 = vcmp.eq.s32.totalorder %v767_v32, %v8451_v19 }
  0x96   : > { %6935 = vmatmul.mubr.msk.f32.gmra.mxu0 %vm251_vm1, %v247_v33 }
  0x97   : > { %603 = vmatprep.mubr.f32.mxu0 %v13513_v0 }
  0x9a   : > { %6936 = vmatmul.mubr.msk.f32.gmra.mxu0 %vm251_vm1, %v248_v34 }
  0xde   : > { %v8397_v35 = vpop.f32.mrf.mxu0 }
  0xe0   : > { %v8399_v36 = vpop.f32.mrf.mxu0 }
  0xe2   : > { %v8401_v37 = vpop.f32.mrf.mxu0 }
  0xe4   : > { %v8403_v38 = vpop.f32.mrf.mxu0 }
  0xe6   : > { %v8405_v39 = vpop.f32.mrf.mxu0 }
  0xe8   : > { %v8407_v40 = vpop.f32.mrf.mxu0 }
  0xea   : > { %v8409_v41 = vpop.f32.mrf.mxu0 }
  0xec   : > { %v8411_v42 = vpop.f32.mrf.mxu0 }
  0xed   : > { %v635_v27 = vmul.f32 2.0, %v8411_v42  ;;  %v630_v42 = vmul.f32 2.0, %v8401_v37 }
  0xee   : > { %v8413_v43 = vpop.f32.mrf.mxu0 }
  0xf0   : > { %v8415_v44 = vpop.f32.mrf.mxu0 }
  0xf2   : > { %v8417_v45 = vpop.f32.mrf.mxu0 }
  0xf4   : > { %v8421_v47 = vpop.f32.mrf.mxu0 }
  0xf6   : > { %v8423_v48 = vpop.f32.mrf.mxu0 }
  0xf8   : > { %v8425_v50 = vpop.f32.mrf.mxu0 }
  0xf9   : > { %v641_v32 = vmul.f32 2.0, %v8425_v50 }
  0xfa   : > { %v8427_v51 = vpop.f32.mrf.mxu0 }
  0xfc   : > { %v8431_v54 = vpop.f32.mrf.mxu0 }
  0xfe   : > { %v467_v56 = vpop.f32.mrf.mxu0 }
  0xff   : > { %v644_v59 = vmul.f32 2.0, %v467_v56  ;;  %v8503_v56 = vadd.s32 72, %v8443_v11 }
 0x100   : > { %v8433_v58 = vpop.f32.mrf.mxu0 }
 0x101   : > { %vm812_vm13 = vcmp.eq.s32.totalorder %v8503_v56, %v8451_v19 }
 0x102   : > { %v8435_v60 = vpop.f32.mrf.mxu0 }
 0x104   : > { %v8437_v62 = vpop.f32.mrf.mxu0 }
 0x105   : > { %v647_v57 = vmul.f32 2.0, %v8437_v62 }
 0x106   : > { %v479_v1 = vpop.f32.mrf.mxu0 }
 0x107   : > { %v648_v33 = vmul.f32 2.0, %v479_v1  ;;  %v8489_v1 = vadd.s32 128, %v8451_v19 }
 0x108   : > { %v481_v3 = vpop.f32.mrf.mxu0 }
 0x109   : > { %v649_v61 = vmul.f32 2.0, %v481_v3  ;;  %v712_v3 = vsub.f32 %v8449_v16, %v648_v33  ;;  %vm827_vm10 = vcmp.eq.s32.totalorder %v8492_v2, %v8489_v1  ;;  %vm829_vm12 = vcmp.eq.s32.totalorder %v8511_v12, %v8489_v1 }
 0x10a   : > { %v8439_v5 = vpop.f32.mrf.mxu0  ;;  %v633_v2 = vmul.f32 2.0, %v8407_v40  ;;  %v8634_v40 = vsub.f32 %v8454_v21, %v647_v57 }
 0x10b   : > { %v8521_v20 = vsub.f32 %v8454_v21, %v649_v61 }
 0x10c   : > { %v8441_v8 = vpop.f32.mrf.mxu0  ;;  %13809 = vst [vmem:[#allocation11_spill] sm:$0xff] %v8634_v40 }
 0x10e   : > { %v491_v10 = vpop.f32.mrf.mxu0 }
 0x10f   : > { %v652_v17 = vmul.f32 2.0, %v491_v10 }
 0x110   : > { %v493_v13 = vpop.f32.mrf.mxu0 }
 0x111   : > { %v653_v29 = vmul.f32 2.0, %v493_v13  ;;  %v716_v34 = vsub.f32 %v8449_v16, %v652_v17  ;;  %v640_v13 = vmul.f32 2.0, %v8423_v48  ;;  %v708_v17 = vsub.f32 %v8449_v16, %v644_v59 }
 0x112   : > { %v497_v18 = vpop.f32.mrf.mxu0 }
 0x113   : > { %v654_v22 = vmul.f32 2.0, %v497_v18  ;;  %v8495_v4 = vsub.f32 %v8454_v21, %v653_v29  ;;  %v8508_v10 = vsel %vm818_vm4, inf, %v716_v34  ;;  %v645_v18 = vmul.f32 2.0, %v8433_v58 }
 0x114   : > { %v499_v25 = vpop.f32.mrf.mxu0  ;;  %v8536_v34 = vsel %vm814_vm5, inf, %v712_v3  ;;  %v704_v59 = vsub.f32 %v8449_v16, %v640_v13  ;;  %v8559_v3 = vsel %vm810_vm3, inf, %v708_v17  ;;  %v775_v17 = vadd.s32 144, %v8443_v11 }
 0x115   : > { %v718_v30 = vsub.f32 %v8449_v16, %v654_v22  ;;  %v655_v31 = vmul.f32 2.0, %v499_v25  ;;  %13804 = vst [vmem:[#allocation6_spill] sm:$0xff] %v8559_v3  ;;  %vm804_vm5 = vcmp.eq.s32.totalorder %v8470_v28, %v8451_v19 }
 0x116   : > { %v503_v46 = vpop.f32.mrf.mxu0  ;;  %vm831_vm3 = vcmp.eq.s32.totalorder %v775_v17, %v8489_v1 }
 0x117   : > { %v8482_v52 = vsub.f32 %v8454_v21, %v655_v31  ;;  %v8484_v53 = vsel %vm820_vm2, inf, %v718_v30  ;;  %v656_v7 = vmul.f32 2.0, %v503_v46  ;;  %v960_v30 = vmin.f32 %v8508_v10, %v8495_v4 }
 0x118   : > { %v505_v63 = vpop.f32.mrf.mxu0  ;;  %v650_v31 = vmul.f32 2.0, %v8439_v5  ;;  %v636_v46 = vmul.f32 2.0, %v8413_v43  ;;  %v651_v43 = vmul.f32 2.0, %v8441_v8  ;;  %v646_v8 = vmul.f32 2.0, %v8435_v60 }
 0x119   : > { %v963_v6 = vmin.f32 %v8484_v53, %v8482_v52  ;;  %v657_v48 = vmul.f32 2.0, %v505_v63  ;;  %v720_v58 = vsub.f32 %v8449_v16, %v656_v7  ;;  %v8553_v63 = vsub.f32 %v8454_v21, %v645_v18 }
 0x11a   : > { %v509_v9 = vpop.f32.mrf.mxu0  ;;  %v714_v13 = vsub.f32 %v8449_v16, %v650_v31  ;;  %v632_v18 = vmul.f32 2.0, %v8405_v39  ;;  %v8586_v60 = vsub.f32 %v8454_v21, %v641_v32  ;;  %vm794_vm2 = vcmp.eq.s32.totalorder %v8443_v11, %v8451_v19 }
 0x11b   : > { %v658_v14 = vmul.f32 2.0, %v509_v9  ;;  %964 = vmin.xlane.f32.xlu1 %v963_v6  ;;  %13803 = vst [vmem:[#allocation5_spill] sm:$0xff] %v8553_v63  ;;  %v8562_v55 = vsub.f32 %v8454_v21, %v657_v48  ;;  %v954_v9 = vmin.f32 %v8536_v34, %v8521_v20  ;;  %v637_v48 = vmul.f32 2.0, %v8415_v44 }
 0x11c   : > { %v511_v22 = vpop.f32.mrf.mxu0  ;;  %13805 = vst [vmem:[#allocation7_spill] sm:$0xff] %v8586_v60  ;;  %v948_v39 = vmin.f32 %v8559_v3, %v8553_v63  ;;  %v8594_v44 = vsel %vm806_vm6, inf, %v704_v59  ;;  %v710_v26 = vsub.f32 %v8449_v16, %v646_v8  ;;  %v8615_v32 = vsel %vm816_vm9, inf, %v714_v13 }
 0x11d   : > { %v722_v25 = vsub.f32 %v8449_v16, %v658_v14  ;;  %v659_v29 = vmul.f32 2.0, %v511_v22  ;;  %v8576_v14 = vsel %vm822_vm8, inf, %v720_v58  ;;  %v700_v22 = vsub.f32 %v8449_v16, %v636_v46  ;;  %13806 = vst [vmem:[#allocation8_spill] sm:$0xff] %v8594_v44 }
 0x11e   : > { %v8532_v33 = vpop.f32.mrf.mxu0  ;;  %v966_v58 = vmin.f32 %v8576_v14, %v8562_v55  ;;  %v642_v46 = vmul.f32 2.0, %v8427_v51  ;;  %v8623_v51 = vsub.f32 %v8454_v21, %v637_v48  ;;  %v8650_v23 = vsel %vm812_vm13, inf, %v710_v26 }
 0x11f   : > { %v8543_v61 = vsub.f32 %v8454_v21, %v659_v29  ;;  %961 = vmin.xlane.f32.xlu1 %v960_v30  ;;  %v8547_v5 = vsel %vm824_vm7, inf, %v722_v25  ;;  %v8597_v30 = vsub.f32 %v8454_v21, %v651_v43  ;;  %v628_v43 = vmul.f32 2.0, %v8397_v35  ;;  %13810 = vst [vmem:[#allocation12_spill] sm:$0xff] %v8650_v23 }
 0x120   : > { %v517_v6 = vpop.f32.mrf.mxu0  ;;  %13807 = vst [vmem:[#allocation9_spill] sm:$0xff] %v8623_v51  ;;  %v8631_v35 = vsel %vm802_vm11, inf, %v700_v22  ;;  %v706_v48 = vsub.f32 %v8449_v16, %v642_v46  ;;  %v776_v22 = vadd.s32 152, %v8443_v11 }
 0x121   : > { %v661_v7 = vmul.f32 2.0, %v517_v6  ;;  %v969_v50 = vmin.f32 %v8547_v5, %v8543_v61  ;;  %v696_v6 = vsub.f32 %v8449_v16, %v632_v18  ;;  %13808 = vst [vmem:[#allocation10_spill] sm:$0xff] %v8631_v35  ;;  %v957_v13 = vmin.f32 %v8615_v32, %v8597_v30 }
 0x122   : > { %v8572_v15 = vpop.f32.mrf.mxu0  ;;  %v638_v18 = vmul.f32 2.0, %v8417_v45  ;;  %v692_v57 = vsub.f32 %v8449_v16, %v628_v43  ;;  %v777_v45 = vadd.s32 160, %v8443_v11  ;;  %v951_v43 = vmin.f32 %v8650_v23, %v8634_v40 }
 0x123   : > { %v725_v25 = vsub.f32 %v8454_v21, %v661_v7  ;;  %955 = vmin.xlane.f32.xlu1 %v954_v9  ;;  %970 = vmin.xlane.f32.xlu0 %v969_v50  ;;  %v643_v9 = vmul.f32 2.0, %v8431_v54  ;;  %v942_v50 = vmin.f32 %v8594_v44, %v8586_v60  ;;  %v8666_v46 = vsel %vm798_vm14, inf, %v696_v6 }
 0x124   : > { %v523_v29 = vpop.f32.mrf.mxu0  ;;  %13812 = vst [vmem:[#allocation14_spill] sm:$0xff] %v8666_v46  ;;  %v8684_v24 = vsel %vm808_vm15, inf, %v706_v48  ;;  %vm833_vm4 = vcmp.eq.s32.totalorder %v776_v22, %v8489_v1  ;;  %vm835_vm6 = vcmp.eq.s32.totalorder %v777_v45, %v8489_v1 }
 0x125   : > { %v663_v31 = vmul.f32 2.0, %v523_v29  ;;  %v8606_v62 = vsel %vm827_vm10, inf, %v725_v25  ;;  %v629_v29 = vmul.f32 2.0, %v8399_v36  ;;  %v8669_v36 = vsub.f32 %v8454_v21, %v643_v9  ;;  %13814 = vst [vmem:[#allocation16_spill] sm:$0xff] %v8684_v24 }
 0x126   : > { %v8610_v59 = vpop.f32.mrf.mxu0 }
 0x127   : > { %v727_v7 = vsub.f32 %v8454_v21, %v663_v31  ;;  %949 = vmin.xlane.f32.xlu1 %v948_v39  ;;  %967 = vmin.xlane.f32.xlu0 %v966_v58  ;;  %v8658_v39 = vsub.f32 %v8454_v21, %v633_v2  ;;  %v639_v31 = vmul.f32 2.0, %v8421_v47  ;;  %v936_v58 = vmin.f32 %v8631_v35, %v8623_v51 }
 0x128   : > { %v529_v49 = vpop.f32.mrf.mxu0  ;;  %13813 = vst [vmem:[#allocation15_spill] sm:$0xff] %v8669_v36  ;;  %v634_v47 = vmul.f32 2.0, %v8409_v41  ;;  %v760_v41 = vadd.s32 24, %v8443_v11  ;;  %v8693_v17 = vsub.f32 %v8454_v21, %v629_v29  ;;  %v788_v35 = vadd.s32 248, %v8443_v11 }
 0x129   : > { %v665_v8 = vmul.f32 2.0, %v529_v49  ;;  %v8641_v54 = vsel %vm829_vm12, inf, %v727_v7  ;;  %13811 = vst [vmem:[#allocation13_spill] sm:$0xff] %v8658_v39  ;;  %v702_v7 = vsub.f32 %v8449_v16, %v638_v18  ;;  %v8704_v28 = vsub.f32 %v8454_v21, %v639_v31 }
 0x12a   : > { %v8645_v25 = vpop.f32.mrf.mxu0  ;;  %13815 = vst [vmem:[#allocation17_spill] sm:$0xff] %v8693_v17  ;;  %v945_v18 = vmin.f32 %v8684_v24, %v8669_v36  ;;  %v698_v22 = vsub.f32 %v8449_v16, %v634_v47  ;;  %vm800_vm7 = vcmp.eq.s32.totalorder %v760_v41, %v8451_v19  ;;  %v758_v31 = vadd.s32 8, %v8443_v11 }
 0x12b   : > { %v729_v12 = vsub.f32 %v8454_v21, %v665_v8  ;;  %943 = vmin.xlane.f32.xlu1 %v942_v50  ;;  %958 = vmin.xlane.f32.xlu0 %v957_v13  ;;  %v930_v50 = vmin.f32 %v8666_v46, %v8658_v39  ;;  %v8701_v8 = vsel %vm794_vm2, inf, %v692_v57  ;;  %13817 = vst [vmem:[#allocation19_spill] sm:$0xff] %v8704_v28  ;;  %v778_v57 = vadd.s32 168, %v8443_v11 }
 0x12c   : > { %v535_v56 = vpop.f32.mrf.mxu0  ;;  %13816 = vst [vmem:[#allocation18_spill] sm:$0xff] %v8701_v8  ;;  %v924_v37 = vmin.f32 %v8701_v8, %v8693_v17  ;;  %v694_v41 = vsub.f32 %v8449_v16, %v630_v42  ;;  %vm796_vm9 = vcmp.eq.s32.totalorder %v758_v31, %v8451_v19  ;;  %v786_v24 = vadd.s32 232, %v8443_v11 }
 0x12d   : > { %v667_v26 = vmul.f32 2.0, %v535_v56  ;;  %v8675_v2 = vsel %vm831_vm3, inf, %v729_v12  ;;  %v8714_v12 = vsel %vm804_vm5, inf, %v702_v7  ;;  %vm837_vm8 = vcmp.eq.s32.totalorder %v778_v57, %v8489_v1 }
 0x12e   : > { %v8679_v49 = vpop.f32.mrf.mxu0  ;;  %13818 = vst [vmem:[#allocation20_spill] sm:$0xff] %v8714_v12  ;;  %v939_v7 = vmin.f32 %v8714_v12, %v8704_v28  ;;  %vm857_vm12 = vcmp.eq.s32.totalorder %v788_v35, %v8489_v1  ;;  %vm853_vm13 = vcmp.eq.s32.totalorder %v786_v24, %v8489_v1 }
 0x12f   : > { %v731_v6 = vsub.f32 %v8454_v21, %v667_v26  ;;  %937 = vmin.xlane.f32.xlu1 %v936_v58  ;;  %952 = vmin.xlane.f32.xlu0 %v951_v43  ;;  %v631_v58 = vmul.f32 2.0, %v8403_v38  ;;  %v8724_v43 = vsub.f32 %v8454_v21, %v635_v27  ;;  %v8735_v38 = vsel %vm800_vm7, inf, %v698_v22 }
 0x130   : > { %v541_v9 = vpop.f32.mrf.mxu0  ;;  %13820 = vst [vmem:[#allocation22_spill] sm:$0xff] %v8735_v38 }
 0x131   : > { %v669_v13 = vmul.f32 2.0, %v541_v9  ;;  %v8708_v48 = vsel %vm833_vm4, inf, %v731_v6  ;;  %13819 = vst [vmem:[#allocation21_spill] sm:$0xff] %v8724_v43  ;;  %v8742_v45 = vsub.f32 %v8454_v21, %v631_v58  ;;  %v933_v42 = vmin.f32 %v8735_v38, %v8724_v43 }
 0x132   : > { %v8712_v29 = vpop.f32.mrf.mxu0 }
 0x133   : > { %v733_v56 = vsub.f32 %v8454_v21, %v669_v13  ;;  %931 = vmin.xlane.f32.xlu1 %v930_v50  ;;  %946 = vmin.xlane.f32.xlu0 %v945_v18  ;;  %v779_v50 = vadd.s32 176, %v8443_v11  ;;  %13821 = vst [vmem:[#allocation23_spill] sm:$0xff] %v8742_v45 }
 0x134   : > { %v547_v26 = vpop.f32.mrf.mxu0 }
 0x135   : > { %v671_v47 = vmul.f32 2.0, %v547_v26  ;;  %v8730_v6 = vsel %vm835_vm6, inf, %v733_v56  ;;  %v8750_v26 = vsel %vm796_vm9, inf, %v694_v41  ;;  %vm839_vm10 = vcmp.eq.s32.totalorder %v779_v50, %v8489_v1 }
 0x136   : > { %v8733_v9 = vpop.f32.mrf.mxu0  ;;  %13822 = vst [vmem:[#allocation24_spill] sm:$0xff] %v8750_v26  ;;  %v927_v58 = vmin.f32 %v8750_v26, %v8742_v45 }
 0x137   : > { %v735_v27 = vsub.f32 %v8454_v21, %v671_v47  ;;  %925 = vmin.xlane.f32.xlu1 %v924_v37  ;;  %940 = vmin.xlane.f32.xlu0 %v939_v7 }
 0x138   : > { %v553_v13 = vpop.f32.mrf.mxu0 }
 0x139   : > { %v673_v18 = vmul.f32 2.0, %v553_v13  ;;  %v8746_v22 = vsel %vm837_vm8, inf, %v735_v27 }
 0x13a   : > { %v8748_v56 = vpop.f32.mrf.mxu0 }
 0x13b   : > { %v737_v57 = vsub.f32 %v8454_v21, %v673_v18  ;;  %934 = vmin.xlane.f32.xlu0 %v933_v42 }
 0x13c   : > { %v8754_v31 = vpop.f32.mrf.mxu0 }
 0x13d   : > { %v8758_v37 = vsel %vm839_vm10, inf, %v737_v57  ;;  %v787_v57 = vadd.s32 240, %v8443_v11 }
 0x13e   : > { %v8760_v47 = vpop.f32.mrf.mxu0 }
 0x13f   : > { %928 = vmin.xlane.f32.xlu0 %v927_v58  ;;  %vm855_vm11 = vcmp.eq.s32.totalorder %v787_v57, %v8489_v1 }
 0x140   : > { %v8762_v7 = vpop.f32.mrf.mxu0 }
 0x142   : > { %v8764_v27 = vpop.f32.mrf.mxu0 }
 0x144   : > { %v571_v41 = vpop.f32.mrf.mxu0 }
 0x146   : > { %v575_v13 = vpop.f32.mrf.mxu0 }
 0x148   : > { %v577_v50 = vpop.f32.mrf.mxu0 }
 0x14a   : > { %v581_v0 = vpop.f32.mrf.mxu0 }
 0x14c   : > { %v583_v18 = vpop.f32.mrf.mxu0 }
 0x14d   : > { %v683_v35 = vmul.f32 2.0, %v583_v18 }
 0x14e   : > { %v587_v42 = vpop.f32.mrf.mxu0 }
 0x150   : > { %v589_v17 = vpop.f32.mrf.mxu0 }
 0x152   : > { %v593_v8 = vpop.f32.mrf.mxu0 }
 0x153   : > { %v686_v57 = vmul.f32 2.0, %v593_v8 }
 0x154   : > { %v595_v39 = vpop.f32.mrf.mxu0 }
 0x155   : > { %v687_v28 = vmul.f32 2.0, %v595_v39  ;;  %v8794_v8 = vsub.f32 %v8449_v16, %v686_v57 }
 0x156   : > { %v599_v46 = vpop.f32.mrf.mxu0 }
 0x157   : > { %v688_v43 = vmul.f32 2.0, %v599_v46  ;;  %v751_v39 = vsub.f32 %v8454_v21, %v687_v28 }
 0x158   : > { %v601_v38 = vpop.f32.mrf.mxu0 }
 0x159   : > { %v689_v51 = vmul.f32 2.0, %v601_v38  ;;  %v8771_v60 = vsub.f32 %v8449_v16, %v688_v43  ;;  %v685_v38 = vmul.f32 2.0, %v589_v17  ;;  %v8791_v28 = vsel %vm853_vm13, inf, %v751_v39 }
 0x15a   : > { %v605_v58 = vpop.f32.mrf.mxu0  ;;  %v1011_v24 = vmin.f32 %v8794_v8, %v8791_v28 }
 0x15b   : > { %v753_v12 = vsub.f32 %v8454_v21, %v689_v51  ;;  %v690_v44 = vmul.f32 2.0, %v605_v58  ;;  %v749_v17 = vsub.f32 %v8454_v21, %v685_v38  ;;  %v682_v38 = vmul.f32 2.0, %v581_v0 }
 0x15c   : > { %v607_v36 = vpop.f32.mrf.mxu0  ;;  %v782_v0 = vadd.s32 200, %v8443_v11 }
 0x15d   : > { %v691_v45 = vmul.f32 2.0, %v607_v36  ;;  %v8774_v26 = vsel %vm855_vm11, inf, %v753_v12  ;;  %v8782_v43 = vsub.f32 %v8449_v16, %v690_v44  ;;  %v785_v36 = vadd.s32 224, %v8443_v11 }
 0x15e   : > { %v1014_v46 = vmin.f32 %v8771_v60, %v8774_v26  ;;  %v784_v44 = vadd.s32 216, %v8443_v11  ;;  %vm845_vm3 = vcmp.eq.s32.totalorder %v782_v0, %v8489_v1 }
 0x15f   : > { %v755_v51 = vsub.f32 %v8454_v21, %v691_v45  ;;  %v684_v45 = vmul.f32 2.0, %v587_v42  ;;  %vm851_vm14 = vcmp.eq.s32.totalorder %v785_v36, %v8489_v1  ;;  %v783_v42 = vadd.s32 208, %v8443_v11 }
 0x160   : > { %1015 = vmin.xlane.f32.xlu1 %v1014_v46  ;;  %v681_v46 = vmul.f32 2.0, %v577_v50  ;;  %v8801_v18 = vsel %vm851_vm14, inf, %v749_v17  ;;  %vm849_vm15 = vcmp.eq.s32.totalorder %v784_v44, %v8489_v1  ;;  %v679_v36 = vmul.f32 2.0, %v571_v41 }
 0x161   : > { %v8786_v12 = vsel %vm857_vm12, inf, %v755_v51  ;;  %v747_v51 = vsub.f32 %v8454_v21, %v683_v35  ;;  %v8804_v39 = vsub.f32 %v8449_v16, %v684_v45  ;;  %v680_v35 = vmul.f32 2.0, %v575_v13 }
 0x162   : > { %v1017_v58 = vmin.f32 %v8782_v43, %v8786_v12  ;;  %v8814_v17 = vsub.f32 %v8449_v16, %v682_v38  ;;  %vm847_vm2 = vcmp.eq.s32.totalorder %v783_v42, %v8489_v1  ;;  %v677_v44 = vmul.f32 2.0, %v8762_v7 }
 0x163   : > { %v1008_v57 = vmin.f32 %v8804_v39, %v8801_v18  ;;  %v8811_v50 = vsel %vm849_vm15, inf, %v747_v51  ;;  %v743_v41 = vsub.f32 %v8454_v21, %v679_v36  ;;  %v8826_v13 = vsub.f32 %v8449_v16, %v680_v35 }
 0x164   : > { %1018 = vmin.xlane.f32.xlu0 %v1017_v58  ;;  %v745_v58 = vsub.f32 %v8454_v21, %v681_v46  ;;  %v1005_v45 = vmin.f32 %v8814_v17, %v8811_v50  ;;  %v678_v46 = vmul.f32 2.0, %v8764_v27  ;;  %v781_v51 = vadd.s32 192, %v8443_v11 }
 0x165   : > { %v675_v42 = vmul.f32 2.0, %v8754_v31  ;;  %v741_v7 = vsub.f32 %v8454_v21, %v677_v44  ;;  %v676_v36 = vmul.f32 2.0, %v8760_v47 }
 0x166   : > { %v8838_v27 = vsub.f32 %v8449_v16, %v678_v46  ;;  %vm843_vm4 = vcmp.eq.s32.totalorder %v781_v51, %v8489_v1 }
 0x167   : > { %v739_v0 = vsub.f32 %v8454_v21, %v675_v42  ;;  %v8845_v31 = vsel %vm843_vm4, inf, %v741_v7  ;;  %v8849_v44 = vsub.f32 %v8449_v16, %v676_v36  ;;  %v668_v42 = vmul.f32 2.0, %v8679_v49 }
 0x168   : > { %1012 = vmin.xlane.f32.xlu0 %v1011_v24  ;;  %v8822_v24 = vsel %vm847_vm2, inf, %v745_v58  ;;  %v780_v58 = vadd.s32 184, %v8443_v11  ;;  %v672_v11 = vmul.f32 2.0, %v8733_v9  ;;  %v666_v36 = vmul.f32 2.0, %v8645_v25 }
 0x169   : > { %v1002_v38 = vmin.f32 %v8826_v13, %v8822_v24  ;;  %v996_v47 = vmin.f32 %v8849_v44, %v8845_v31 }
 0x16a   : > { %vm841_vm5 = vcmp.eq.s32.totalorder %v780_v58, %v8489_v1  ;;  %v8864_v51 = vsub.f32 %v8449_v16, %v672_v11  ;;  %v8882_v49 = vsub.f32 %v8449_v16, %v666_v36  ;;  %v660_v11 = vmul.f32 2.0, %v8532_v33 }
 0x16b   : > { %v8907_v33 = vcvt.s32.f32 %v8489_v1 }
 0x16c   : > { %1009 = vmin.xlane.f32.xlu0 %v1008_v57  ;;  %v8834_v57 = vsel %vm845_vm3, inf, %v743_v41  ;;  %v8854_v41 = vsel %vm841_vm5, inf, %v739_v0  ;;  %v981_v0 = vmin.f32 %v8882_v49, %v8708_v48 }
 0x16d   : > { %v999_v35 = vmin.f32 %v8838_v27, %v8834_v57 }
 0x170   : > { %1006 = vmin.xlane.f32.xlu0 %v1005_v45  ;;  %v674_v45 = vmul.f32 2.0, %v8748_v56  ;;  %v670_v56 = vmul.f32 2.0, %v8712_v29  ;;  %v8876_v29 = vsub.f32 %v8449_v16, %v668_v42 }
 0x172   : > { %v8858_v46 = vsub.f32 %v8449_v16, %v674_v45  ;;  %v8870_v9 = vsub.f32 %v8449_v16, %v670_v56  ;;  %v984_v58 = vmin.f32 %v8876_v29, %v8730_v6  ;;  %v662_v45 = vmul.f32 2.0, %v8572_v15 }
 0x173   : > { %v8899_v56 = vsub.f32 %v8449_v16, %v660_v11 }
 0x174   : > { %1003 = vmin.xlane.f32.xlu0 %v1002_v38  ;;  %v993_v21 = vmin.f32 %v8858_v46, %v8854_v41  ;;  %v990_v38 = vmin.f32 %v8864_v51, %v8758_v37  ;;  %v987_v7 = vmin.f32 %v8870_v9, %v8746_v22 }
 0x175   : > { %v972_v15 = vmin.f32 %v8899_v56, %v8606_v62 }
 0x178   : > { %1000 = vmin.xlane.f32.xlu0 %v999_v35  ;;  %v664_v35 = vmul.f32 2.0, %v8610_v59  ;;  %v8894_v59 = vsub.f32 %v8449_v16, %v662_v45 }
 0x17a   : > { %v8888_v25 = vsub.f32 %v8449_v16, %v664_v35 }
 0x17c   : > { %997 = vmin.xlane.f32.xlu0 %v996_v47  ;;  %v978_v47 = vmin.f32 %v8888_v25, %v8675_v2 }
 0x180   : > { %994 = vmin.xlane.f32.xlu0 %v993_v21  ;;  %v975_v21 = vmin.f32 %v8894_v59, %v8641_v54 }
 0x184   : > { %991 = vmin.xlane.f32.xlu0 %v990_v38  ;;  %v8904_v38 = vcvt.s32.f32 %v8451_v19 }
 0x188   : > { %988 = vmin.xlane.f32.xlu0 %v987_v7 }
 0x18c   : > { %985 = vmin.xlane.f32.xlu0 %v984_v58 }
 0x190   : > { %982 = vmin.xlane.f32.xlu0 %v981_v0 }
 0x194   : > { %979 = vmin.xlane.f32.xlu0 %v978_v47 }
 0x198   : > { %976 = vmin.xlane.f32.xlu0 %v975_v21 }
 0x19c   : > { %973 = vmin.xlane.f32.xlu0 %v972_v15 }
 0x1a4   : > { %v965_v42 = vpop.xlane.xlu1 %964 }
 0x1a5   : > { %vm1046_vm10 = vcmp.eq.f32.partialorder %v8484_v53, %v965_v42  ;;  %vm1047_vm11 = vcmp.eq.f32.partialorder %v8482_v52, %v965_v42 }
 0x1a6   : > { %v1110_v11 = vsel %vm1046_vm10, %v8904_v38, 256.0  ;;  %v1111_v21 = vsel %vm1047_vm11, %v8907_v33, 256.0 }
 0x1a7   : > { %v1187_v15 = vmin.f32 %v1110_v11, %v1111_v21 }
 0x1a8   : > { %v962_v19 = vpop.xlane.xlu1 %961 }
 0x1a9   : > { %vm1044_vm12 = vcmp.eq.f32.partialorder %v8508_v10, %v962_v19  ;;  %vm1045_vm13 = vcmp.eq.f32.partialorder %v8495_v4, %v962_v19 }
 0x1aa   : > { %v1108_v42 = vsel %vm1044_vm12, %v8904_v38, 256.0 }
 0x1ac   : > { %v971_v7 = vpop.xlane.xlu0 %970 }
 0x1ad   : > { %vm1050_vm6 = vcmp.eq.f32.partialorder %v8547_v5, %v971_v7  ;;  %vm1051_vm7 = vcmp.eq.f32.partialorder %v8543_v61, %v971_v7 }
 0x1ae   : > { %v1114_v16 = vsel %vm1050_vm6, %v8904_v38, 256.0  ;;  %v1115_v36 = vsel %vm1051_vm7, %v8907_v33, 256.0 }
 0x1af   : > { %v1193_v58 = vmin.f32 %v1114_v16, %v1115_v36  ;;  %v1109_v16 = vsel %vm1045_vm13, %v8907_v33, 256.0  ;;  %v956_v36 = vpop.xlane.xlu1 %955 }
 0x1b0   : > { %v968_v35 = vpop.xlane.xlu0 %967  ;;  %vm1040_vm2 = vcmp.eq.f32.partialorder %v8536_v34, %v956_v36  ;;  %vm1041_vm3 = vcmp.eq.f32.partialorder %v8521_v20, %v956_v36 }
 0x1b1   : > { %1194 = vmin.xlane.f32.xlu1 %v1193_v58  ;;  %vm1048_vm8 = vcmp.eq.f32.partialorder %v8576_v14, %v968_v35  ;;  %vm1049_vm9 = vcmp.eq.f32.partialorder %v8562_v55, %v968_v35  ;;  %v1184_v58 = vmin.f32 %v1108_v42, %v1109_v16  ;;  %v1104_v11 = vsel %vm1040_vm2, %v8904_v38, 256.0 }
 0x1b2   : > { %v1112_v1 = vsel %vm1048_vm8, %v8904_v38, 256.0  ;;  %v1113_v0 = vsel %vm1049_vm9, %v8907_v33, 256.0  ;;  %v1105_v21 = vsel %vm1041_vm3, %v8907_v33, 256.0 }
 0x1b3   : > { %v1190_v45 = vmin.f32 %v1112_v1, %v1113_v0 }
 0x1b4   : > { %v959_v47 = vpop.xlane.xlu0 %958 }
 0x1b5   : > { %1191 = vmin.xlane.f32.xlu1 %v1190_v45  ;;  %vm1042_vm14 = vcmp.eq.f32.partialorder %v8615_v32, %v959_v47  ;;  %vm1043_vm15 = vcmp.eq.f32.partialorder %v8597_v30, %v959_v47  ;;  %v950_v47 = vpop.xlane.xlu1 %949 }
 0x1b6   : > { %v1106_v1 = vsel %vm1042_vm14, %v8904_v38, 256.0  ;;  %v1107_v0 = vsel %vm1043_vm15, %v8907_v33, 256.0  ;;  %vm1036_vm6 = vcmp.eq.f32.partialorder %v8559_v3, %v950_v47  ;;  %vm1037_vm7 = vcmp.eq.f32.partialorder %v8553_v63, %v950_v47 }
 0x1b7   : > { %v1181_v19 = vmin.f32 %v1106_v1, %v1107_v0  ;;  %v1100_v0 = vsel %vm1036_vm6, %v8904_v38, 256.0 }
 0x1b8   : > { %v953_v7 = vpop.xlane.xlu0 %952 }
 0x1b9   : > { %1188 = vmin.xlane.f32.xlu1 %v1187_v15  ;;  %vm1038_vm4 = vcmp.eq.f32.partialorder %v8650_v23, %v953_v7  ;;  %vm1039_vm5 = vcmp.eq.f32.partialorder %v8634_v40, %v953_v7  ;;  %v1178_v15 = vmin.f32 %v1104_v11, %v1105_v21  ;;  %v13823_v7 = vld [vmem:[#allocation24_spill] sm:$0xff]  ;;  %v13824_v11 = vld [vmem:[#allocation23_spill] sm:$0xff] }
 0x1ba   : > { %v1102_v16 = vsel %vm1038_vm4, %v8904_v38, 256.0  ;;  %v13825_v21 = vld [vmem:[#allocation16_spill] sm:$0xff]  ;;  %v13826_v40 = vld [vmem:[#allocation15_spill] sm:$0xff] }
 0x1bc   : > { %v947_v35 = vpop.xlane.xlu0 %946 }
 0x1bd   : > { %1185 = vmin.xlane.f32.xlu1 %v1184_v58  ;;  %v1103_v58 = vsel %vm1039_vm5, %v8907_v33, 256.0  ;;  %vm1034_vm10 = vcmp.eq.f32.partialorder %v13825_v21, %v947_v35  ;;  %vm1035_vm11 = vcmp.eq.f32.partialorder %v13826_v40, %v947_v35 }
 0x1be   : > { %v1175_v36 = vmin.f32 %v1102_v16, %v1103_v58  ;;  %v1098_v63 = vsel %vm1034_vm10, %v8904_v38, 256.0  ;;  %v1099_v23 = vsel %vm1035_vm11, %v8907_v33, 256.0 }
 0x1bf   : > { %v1169_v21 = vmin.f32 %v1098_v63, %v1099_v23 }
 0x1c0   : > { %v941_v45 = vpop.xlane.xlu0 %940 }
 0x1c1   : > { %1182 = vmin.xlane.f32.xlu1 %v1181_v19  ;;  %v1101_v19 = vsel %vm1037_vm7, %v8907_v33, 256.0 }
 0x1c2   : > { %v1172_v16 = vmin.f32 %v1100_v0, %v1101_v19  ;;  %v13830_v0 = vld [vmem:[#allocation19_spill] sm:$0xff] }
 0x1c3   : > { %vm1031_vm15 = vcmp.eq.f32.partialorder %v13830_v0, %v941_v45 }
 0x1c4   : > { %v935_v42 = vpop.xlane.xlu0 %934 }
 0x1c5   : > { %1179 = vmin.xlane.f32.xlu1 %v1178_v15  ;;  %v944_v15 = vpop.xlane.xlu1 %943 }
 0x1c8   : > { %v929_v1 = vpop.xlane.xlu0 %928 }
 0x1c9   : > { %1176 = vmin.xlane.f32.xlu1 %v1175_v36  ;;  %vm1022_vm8 = vcmp.eq.f32.partialorder %v13823_v7, %v929_v1  ;;  %vm1023_vm9 = vcmp.eq.f32.partialorder %v13824_v11, %v929_v1  ;;  %v13827_v36 = vld [vmem:[#allocation8_spill] sm:$0xff]  ;;  %v13828_v1 = vld [vmem:[#allocation7_spill] sm:$0xff] }
 0x1ca   : > { %v1086_v3 = vsel %vm1022_vm8, %v8904_v38, 256.0  ;;  %v1087_v47 = vsel %vm1023_vm9, %v8907_v33, 256.0  ;;  %vm1032_vm12 = vcmp.eq.f32.partialorder %v13827_v36, %v944_v15  ;;  %vm1033_vm13 = vcmp.eq.f32.partialorder %v13828_v1, %v944_v15  ;;  %v13829_v11 = vld [vmem:[#allocation20_spill] sm:$0xff]  ;;  %v13832_v15 = vld [vmem:[#allocation9_spill] sm:$0xff] }
 0x1cb   : > { %v1151_v58 = vmin.f32 %v1086_v3, %v1087_v47  ;;  %v1096_v35 = vsel %vm1032_vm12, %v8904_v38, 256.0  ;;  %v1097_v40 = vsel %vm1033_vm13, %v8907_v33, 256.0  ;;  %vm1030_vm14 = vcmp.eq.f32.partialorder %v13829_v11, %v941_v45  ;;  %v938_v3 = vpop.xlane.xlu1 %937  ;;  %v13833_v11 = vld [vmem:[#allocation22_spill] sm:$0xff]  ;;  %v13834_v45 = vld [vmem:[#allocation21_spill] sm:$0xff] }
 0x1cc   : > { %v1166_v19 = vmin.f32 %v1096_v35, %v1097_v40  ;;  %v1094_v47 = vsel %vm1030_vm14, %v8904_v38, 256.0  ;;  %vm1029_vm3 = vcmp.eq.f32.partialorder %v13832_v15, %v938_v3  ;;  %vm1026_vm4 = vcmp.eq.f32.partialorder %v13833_v11, %v935_v42  ;;  %v13837_v11 = vld [vmem:[#allocation18_spill] sm:$0xff] }
 0x1cd   : > { %1173 = vmin.xlane.f32.xlu1 %v1172_v16  ;;  %1152 = vmin.xlane.f32.xlu0 %v1151_v58  ;;  %v1095_v16 = vsel %vm1031_vm15, %v8907_v33, 256.0  ;;  %v13831_v58 = vld [vmem:[#allocation10_spill] sm:$0xff]  ;;  %vm1027_vm5 = vcmp.eq.f32.partialorder %v13834_v45, %v935_v42  ;;  %v1090_v35 = vsel %vm1026_vm4, %v8904_v38, 256.0  ;;  %v13838_v42 = vld [vmem:[#allocation17_spill] sm:$0xff] }
 0x1ce   : > { %vm1028_vm2 = vcmp.eq.f32.partialorder %v13831_v58, %v938_v3  ;;  %v1163_v63 = vmin.f32 %v1094_v47, %v1095_v16  ;;  %v13835_v58 = vld [vmem:[#allocation14_spill] sm:$0xff]  ;;  %v13836_v3 = vld [vmem:[#allocation13_spill] sm:$0xff] }
 0x1cf   : > { %v932_v23 = vpop.xlane.xlu1 %931  ;;  %v1092_v1 = vsel %vm1028_vm2, %v8904_v38, 256.0 }
 0x1d0   : > { %vm1024_vm6 = vcmp.eq.f32.partialorder %v13835_v58, %v932_v23  ;;  %vm1025_vm7 = vcmp.eq.f32.partialorder %v13836_v3, %v932_v23 }
 0x1d1   : > { %1170 = vmin.xlane.f32.xlu1 %v1169_v21  ;;  %v1093_v21 = vsel %vm1029_vm3, %v8907_v33, 256.0  ;;  %v1088_v15 = vsel %vm1024_vm6, %v8904_v38, 256.0 }
 0x1d2   : > { %v1160_v40 = vmin.f32 %v1092_v1, %v1093_v21 }
 0x1d3   : > { %v926_v47 = vpop.xlane.xlu1 %925 }
 0x1d4   : > { %vm1020_vm8 = vcmp.eq.f32.partialorder %v13837_v11, %v926_v47  ;;  %vm1021_vm9 = vcmp.eq.f32.partialorder %v13838_v42, %v926_v47 }
 0x1d5   : > { %1167 = vmin.xlane.f32.xlu1 %v1166_v19  ;;  %v1091_v19 = vsel %vm1027_vm5, %v8907_v33, 256.0  ;;  %v1084_v21 = vsel %vm1020_vm8, %v8904_v38, 256.0 }
 0x1d6   : > { %v1157_v16 = vmin.f32 %v1090_v35, %v1091_v19 }
 0x1d9   : > { %1164 = vmin.xlane.f32.xlu1 %v1163_v63  ;;  %v1089_v63 = vsel %vm1025_vm7, %v8907_v33, 256.0 }
 0x1da   : > { %v1154_v1 = vmin.f32 %v1088_v15, %v1089_v63 }
 0x1dd   : > { %1161 = vmin.xlane.f32.xlu1 %v1160_v40  ;;  %v1085_v40 = vsel %vm1021_vm9, %v8907_v33, 256.0 }
 0x1de   : > { %v1148_v58 = vmin.f32 %v1084_v21, %v1085_v40 }
 0x1e1   : > { %1158 = vmin.xlane.f32.xlu1 %v1157_v16 }
 0x1e5   : > { %1155 = vmin.xlane.f32.xlu1 %v1154_v1 }
 0x1e9   : > { %1149 = vmin.xlane.f32.xlu1 %v1148_v58  ;;  %v1016_v23 = vpop.xlane.xlu1 %1015 }
 0x1ea   : > { %vm1080_vm10 = vcmp.eq.f32.partialorder %v8771_v60, %v1016_v23  ;;  %vm1081_vm11 = vcmp.eq.f32.partialorder %v8774_v26, %v1016_v23 }
 0x1eb   : > { %v1144_v35 = vsel %vm1080_vm10, %v8904_v38, 256.0  ;;  %v1145_v19 = vsel %vm1081_vm11, %v8907_v33, 256.0 }
 0x1ec   : > { %v1238_v16 = vmin.f32 %v1144_v35, %v1145_v19 }
 0x1ed   : > { %v1019_v11 = vpop.xlane.xlu0 %1018 }
 0x1ee   : > { %1239 = vmin.xlane.f32.xlu1 %v1238_v16  ;;  %vm1082_vm12 = vcmp.eq.f32.partialorder %v8782_v43, %v1019_v11  ;;  %vm1083_vm13 = vcmp.eq.f32.partialorder %v8786_v12, %v1019_v11 }
 0x1ef   : > { %v1146_v15 = vsel %vm1082_vm12, %v8904_v38, 256.0  ;;  %v1147_v58 = vsel %vm1083_vm13, %v8907_v33, 256.0 }
 0x1f0   : > { %v1241_v47 = vmin.f32 %v1146_v15, %v1147_v58 }
 0x1f1   : > { %v1013_v63 = vpop.xlane.xlu0 %1012 }
 0x1f2   : > { %1242 = vmin.xlane.f32.xlu0 %v1241_v47  ;;  %vm1078_vm14 = vcmp.eq.f32.partialorder %v8794_v8, %v1013_v63  ;;  %vm1079_vm15 = vcmp.eq.f32.partialorder %v8791_v28, %v1013_v63 }
 0x1f3   : > { %v1142_v1 = vsel %vm1078_vm14, %v8904_v38, 256.0  ;;  %v1143_v21 = vsel %vm1079_vm15, %v8907_v33, 256.0 }
 0x1f4   : > { %v1235_v40 = vmin.f32 %v1142_v1, %v1143_v21 }
 0x1f5   : > { %v1010_v23 = vpop.xlane.xlu0 %1009 }
 0x1f6   : > { %1236 = vmin.xlane.f32.xlu0 %v1235_v40  ;;  %vm1076_vm2 = vcmp.eq.f32.partialorder %v8804_v39, %v1010_v23  ;;  %vm1077_vm3 = vcmp.eq.f32.partialorder %v8801_v18, %v1010_v23 }
 0x1f7   : > { %v1140_v11 = vsel %vm1076_vm2, %v8904_v38, 256.0  ;;  %v1141_v35 = vsel %vm1077_vm3, %v8907_v33, 256.0 }
 0x1f8   : > { %v1232_v19 = vmin.f32 %v1140_v11, %v1141_v35 }
 0x1f9   : > { %v1007_v16 = vpop.xlane.xlu0 %1006 }
 0x1fa   : > { %1233 = vmin.xlane.f32.xlu0 %v1232_v19  ;;  %vm1074_vm4 = vcmp.eq.f32.partialorder %v8814_v17, %v1007_v16  ;;  %vm1075_vm5 = vcmp.eq.f32.partialorder %v8811_v50, %v1007_v16 }
 0x1fb   : > { %v1138_v15 = vsel %vm1074_vm4, %v8904_v38, 256.0  ;;  %v1139_v58 = vsel %vm1075_vm5, %v8907_v33, 256.0 }
 0x1fc   : > { %v1229_v47 = vmin.f32 %v1138_v15, %v1139_v58 }
 0x1fd   : > { %v1004_v63 = vpop.xlane.xlu0 %1003 }
 0x1fe   : > { %1230 = vmin.xlane.f32.xlu0 %v1229_v47  ;;  %vm1072_vm6 = vcmp.eq.f32.partialorder %v8826_v13, %v1004_v63  ;;  %vm1073_vm7 = vcmp.eq.f32.partialorder %v8822_v24, %v1004_v63 }
 0x1ff   : > { %v1136_v1 = vsel %vm1072_vm6, %v8904_v38, 256.0  ;;  %v1137_v21 = vsel %vm1073_vm7, %v8907_v33, 256.0 }
 0x200   : > { %v1226_v40 = vmin.f32 %v1136_v1, %v1137_v21 }
 0x201   : > { %v1001_v23 = vpop.xlane.xlu0 %1000 }
 0x202   : > { %1227 = vmin.xlane.f32.xlu0 %v1226_v40  ;;  %vm1070_vm8 = vcmp.eq.f32.partialorder %v8838_v27, %v1001_v23  ;;  %vm1071_vm9 = vcmp.eq.f32.partialorder %v8834_v57, %v1001_v23 }
 0x203   : > { %v1134_v11 = vsel %vm1070_vm8, %v8904_v38, 256.0  ;;  %v1135_v35 = vsel %vm1071_vm9, %v8907_v33, 256.0 }
 0x204   : > { %v1223_v19 = vmin.f32 %v1134_v11, %v1135_v35 }
 0x205   : > { %v998_v16 = vpop.xlane.xlu0 %997 }
 0x206   : > { %1224 = vmin.xlane.f32.xlu0 %v1223_v19  ;;  %vm1068_vm10 = vcmp.eq.f32.partialorder %v8849_v44, %v998_v16  ;;  %vm1069_vm11 = vcmp.eq.f32.partialorder %v8845_v31, %v998_v16 }
 0x207   : > { %v1132_v15 = vsel %vm1068_vm10, %v8904_v38, 256.0  ;;  %v1133_v58 = vsel %vm1069_vm11, %v8907_v33, 256.0 }
 0x208   : > { %v1220_v47 = vmin.f32 %v1132_v15, %v1133_v58 }
 0x209   : > { %v995_v63 = vpop.xlane.xlu0 %994 }
 0x20a   : > { %1221 = vmin.xlane.f32.xlu0 %v1220_v47  ;;  %vm1066_vm12 = vcmp.eq.f32.partialorder %v8858_v46, %v995_v63  ;;  %vm1067_vm13 = vcmp.eq.f32.partialorder %v8854_v41, %v995_v63 }
 0x20b   : > { %v1130_v1 = vsel %vm1066_vm12, %v8904_v38, 256.0  ;;  %v1131_v21 = vsel %vm1067_vm13, %v8907_v33, 256.0 }
 0x20c   : > { %v1217_v40 = vmin.f32 %v1130_v1, %v1131_v21 }
 0x20d   : > { %v992_v23 = vpop.xlane.xlu0 %991 }
 0x20e   : > { %1218 = vmin.xlane.f32.xlu0 %v1217_v40  ;;  %vm1064_vm14 = vcmp.eq.f32.partialorder %v8864_v51, %v992_v23  ;;  %vm1065_vm15 = vcmp.eq.f32.partialorder %v8758_v37, %v992_v23 }
 0x20f   : > { %v1128_v11 = vsel %vm1064_vm14, %v8904_v38, 256.0  ;;  %v1129_v35 = vsel %vm1065_vm15, %v8907_v33, 256.0 }
 0x210   : > { %v1214_v19 = vmin.f32 %v1128_v11, %v1129_v35 }
 0x211   : > { %v989_v16 = vpop.xlane.xlu0 %988 }
 0x212   : > { %1215 = vmin.xlane.f32.xlu0 %v1214_v19  ;;  %vm1062_vm2 = vcmp.eq.f32.partialorder %v8870_v9, %v989_v16  ;;  %vm1063_vm3 = vcmp.eq.f32.partialorder %v8746_v22, %v989_v16 }
 0x213   : > { %v1126_v15 = vsel %vm1062_vm2, %v8904_v38, 256.0  ;;  %v1127_v58 = vsel %vm1063_vm3, %v8907_v33, 256.0 }
 0x214   : > { %v1211_v47 = vmin.f32 %v1126_v15, %v1127_v58 }
 0x215   : > { %v986_v63 = vpop.xlane.xlu0 %985 }
 0x216   : > { %1212 = vmin.xlane.f32.xlu0 %v1211_v47  ;;  %vm1060_vm4 = vcmp.eq.f32.partialorder %v8876_v29, %v986_v63  ;;  %vm1061_vm5 = vcmp.eq.f32.partialorder %v8730_v6, %v986_v63 }
 0x217   : > { %v1124_v1 = vsel %vm1060_vm4, %v8904_v38, 256.0  ;;  %v1125_v21 = vsel %vm1061_vm5, %v8907_v33, 256.0 }
 0x218   : > { %v1208_v40 = vmin.f32 %v1124_v1, %v1125_v21 }
 0x219   : > { %v983_v23 = vpop.xlane.xlu0 %982 }
 0x21a   : > { %1209 = vmin.xlane.f32.xlu0 %v1208_v40  ;;  %vm1058_vm6 = vcmp.eq.f32.partialorder %v8882_v49, %v983_v23  ;;  %vm1059_vm7 = vcmp.eq.f32.partialorder %v8708_v48, %v983_v23 }
 0x21b   : > { %v1122_v11 = vsel %vm1058_vm6, %v8904_v38, 256.0  ;;  %v1123_v35 = vsel %vm1059_vm7, %v8907_v33, 256.0 }
 0x21c   : > { %v1205_v19 = vmin.f32 %v1122_v11, %v1123_v35 }
 0x21d   : > { %v980_v16 = vpop.xlane.xlu0 %979 }
 0x21e   : > { %1206 = vmin.xlane.f32.xlu0 %v1205_v19  ;;  %vm1056_vm8 = vcmp.eq.f32.partialorder %v8888_v25, %v980_v16  ;;  %vm1057_vm9 = vcmp.eq.f32.partialorder %v8675_v2, %v980_v16 }
 0x21f   : > { %v1120_v15 = vsel %vm1056_vm8, %v8904_v38, 256.0  ;;  %v1121_v58 = vsel %vm1057_vm9, %v8907_v33, 256.0 }
 0x220   : > { %v1202_v47 = vmin.f32 %v1120_v15, %v1121_v58  ;;  %v13570_v15 = vmov 1.0  }
 0x221   : > { %v977_v63 = vpop.xlane.xlu0 %976 }
 0x222   : > { %1203 = vmin.xlane.f32.xlu0 %v1202_v47  ;;  %vm1054_vm10 = vcmp.eq.f32.partialorder %v8894_v59, %v977_v63  ;;  %vm1055_vm11 = vcmp.eq.f32.partialorder %v8641_v54, %v977_v63 }
 0x223   : > { %v1118_v1 = vsel %vm1054_vm10, %v8904_v38, 256.0  ;;  %v1119_v21 = vsel %vm1055_vm11, %v8907_v33, 256.0 }
 0x224   : > { %v1199_v40 = vmin.f32 %v1118_v1, %v1119_v21 }
 0x225   : > { %v974_v23 = vpop.xlane.xlu0 %973 }
 0x226   : > { %1200 = vmin.xlane.f32.xlu0 %v1199_v40  ;;  %vm1052_vm12 = vcmp.eq.f32.partialorder %v8899_v56, %v974_v23  ;;  %vm1053_vm13 = vcmp.eq.f32.partialorder %v8606_v62, %v974_v23 }
 0x227   : > { %v1116_v11 = vsel %vm1052_vm12, %v8904_v38, 256.0  ;;  %v1117_v35 = vsel %vm1053_vm13, %v8907_v33, 256.0 }
 0x228   : > { %v1196_v19 = vmin.f32 %v1116_v11, %v1117_v35 }
 0x22a   : > { %1197 = vmin.xlane.f32.xlu0 %v1196_v19 }
 0x23a   : > { %v1195_v16 = vpop.xlane.xlu1 %1194 }
 0x23b   : > { %vm1275_vm14 = vcmp.eq.f32.partialorder %v8907_v33, %v1195_v16  ;;  %vm1274_vm15 = vcmp.eq.f32.partialorder %v8904_v38, %v1195_v16 }
 0x23c   : > { %7001 = vmatprep.subr.msk.mxu1 %vm1275_vm14, %v13570_v15  ;;  %v9041_v58 = vsel %vm1275_vm14, inf, %v8543_v61  ;;  %v9044_v47 = vsel %vm1274_vm15, inf, %v8547_v5 }
 0x23d   : > { %7002 = vmatpush1.xpose.msk.msra.mxu1 %vm1274_vm15, %v13570_v15  ;;  %v1623_v63 = vmin.f32 %v9044_v47, %v9041_v58 }
 0x23e   : > { %v1192_v1 = vpop.xlane.xlu1 %1191 }
 0x23f   : > { %1624 = vmin.xlane.f32.xlu1 %v1623_v63  ;;  %vm1273_vm2 = vcmp.eq.f32.partialorder %v8907_v33, %v1192_v1  ;;  %vm1272_vm3 = vcmp.eq.f32.partialorder %v8904_v38, %v1192_v1 }
 0x240   : > { %7003 = vmatprep.subr.msk.mxu1 %vm1273_vm2, %v13570_v15  ;;  %v9053_v21 = vsel %vm1272_vm3, inf, %v8576_v14  ;;  %v9056_v61 = vsel %vm1273_vm2, inf, %v8562_v55 }
 0x241   : > { %7004 = vmatpush1.xpose.msk.msra.mxu1 %vm1272_vm3, %v13570_v15  ;;  %v1620_v5 = vmin.f32 %v9053_v21, %v9056_v61 }
 0x242   : > { %v1189_v40 = vpop.xlane.xlu1 %1188 }
 0x243   : > { %1621 = vmin.xlane.f32.xlu1 %v1620_v5  ;;  %vm1271_vm4 = vcmp.eq.f32.partialorder %v8907_v33, %v1189_v40  ;;  %vm1270_vm5 = vcmp.eq.f32.partialorder %v8904_v38, %v1189_v40  ;;  %v13842_v40 = vld [vmem:[#allocation12_spill] sm:$0xff] }
 0x244   : > { %7005 = vmatprep.subr.msk.mxu1 %vm1271_vm4, %v13570_v15  ;;  %v9065_v23 = vsel %vm1270_vm5, inf, %v8484_v53  ;;  %v9068_v14 = vsel %vm1271_vm4, inf, %v8482_v52 }
 0x245   : > { %7006 = vmatpush1.xpose.msk.msra.mxu1 %vm1270_vm5, %v13570_v15  ;;  %v1617_v55 = vmin.f32 %v9065_v23, %v9068_v14 }
 0x246   : > { %v1186_v11 = vpop.xlane.xlu1 %1185 }
 0x247   : > { %1618 = vmin.xlane.f32.xlu1 %v1617_v55  ;;  %vm1269_vm6 = vcmp.eq.f32.partialorder %v8907_v33, %v1186_v11  ;;  %vm1268_vm7 = vcmp.eq.f32.partialorder %v8904_v38, %v1186_v11 }
 0x248   : > { %7007 = vmatprep.subr.msk.mxu1 %vm1269_vm6, %v13570_v15  ;;  %v9077_v35 = vsel %vm1268_vm7, inf, %v8508_v10  ;;  %v9080_v53 = vsel %vm1269_vm6, inf, %v8495_v4 }
 0x249   : > { %7008 = vmatpush1.xpose.msk.msra.mxu1 %vm1268_vm7, %v13570_v15  ;;  %v1614_v52 = vmin.f32 %v9077_v35, %v9080_v53 }
 0x24a   : > { %v1183_v19 = vpop.xlane.xlu1 %1182 }
 0x24b   : > { %1615 = vmin.xlane.f32.xlu1 %v1614_v52  ;;  %vm1267_vm8 = vcmp.eq.f32.partialorder %v8907_v33, %v1183_v19  ;;  %vm1266_vm9 = vcmp.eq.f32.partialorder %v8904_v38, %v1183_v19 }
 0x24c   : > { %7009 = vmatprep.subr.msk.mxu1 %vm1267_vm8, %v13570_v15  ;;  %v9089_v16 = vsel %vm1266_vm9, inf, %v8615_v32  ;;  %v9092_v10 = vsel %vm1267_vm8, inf, %v8597_v30 }
 0x24d   : > { %13839 = vst [vmem:[#allocation24_spill] sm:$0xff] %v9089_v16  ;;  %13840 = vst [vmem:[#allocation8_spill] sm:$0xff] %v9092_v10  ;;  %7010 = vmatpush1.xpose.msk.msra.mxu1 %vm1266_vm9, %v13570_v15  ;;  %v1611_v4 = vmin.f32 %v9089_v16, %v9092_v10 }
 0x24e   : > { %v1180_v63 = vpop.xlane.xlu1 %1179 }
 0x24f   : > { %1612 = vmin.xlane.f32.xlu1 %v1611_v4  ;;  %vm1265_vm10 = vcmp.eq.f32.partialorder %v8907_v33, %v1180_v63  ;;  %vm1264_vm11 = vcmp.eq.f32.partialorder %v8904_v38, %v1180_v63  ;;  %v13846_v4 = vld [vmem:[#allocation6_spill] sm:$0xff] }
 0x250   : > { %7011 = vmatprep.subr.msk.mxu1 %vm1265_vm10, %v13570_v15  ;;  %v9101_v1 = vsel %vm1264_vm11, inf, %v8536_v34  ;;  %v9104_v32 = vsel %vm1265_vm10, inf, %v8521_v20  ;;  %v13844_v34 = vld [vmem:[#allocation11_spill] sm:$0xff] }
 0x251   : > { %13841 = vst [vmem:[#allocation19_spill] sm:$0xff] %v9101_v1  ;;  %7012 = vmatpush1.xpose.msk.msra.mxu1 %vm1264_vm11, %v13570_v15  ;;  %v1608_v30 = vmin.f32 %v9101_v1, %v9104_v32 }
 0x252   : > { %v1177_v5 = vpop.xlane.xlu1 %1176 }
 0x253   : > { %1609 = vmin.xlane.f32.xlu1 %v1608_v30  ;;  %vm1263_vm12 = vcmp.eq.f32.partialorder %v8907_v33, %v1177_v5  ;;  %vm1262_vm13 = vcmp.eq.f32.partialorder %v8904_v38, %v1177_v5  ;;  %v13848_v30 = vld [vmem:[#allocation5_spill] sm:$0xff] }
 0x254   : > { %7013 = vmatprep.subr.msk.mxu1 %vm1263_vm12, %v13570_v15  ;;  %v9113_v55 = vsel %vm1262_vm13, inf, %v13842_v40  ;;  %v9116_v11 = vsel %vm1263_vm12, inf, %v13844_v34  ;;  %v13851_v34 = vld [vmem:[#allocation23_spill] sm:$0xff] }
 0x255   : > { %13843 = vst [vmem:[#allocation21_spill] sm:$0xff] %v9113_v55  ;;  %13845 = vst [vmem:[#allocation13_spill] sm:$0xff] %v9116_v11  ;;  %7014 = vmatpush1.xpose.msk.msra.mxu1 %vm1262_vm13, %v13570_v15  ;;  %v1605_v20 = vmin.f32 %v9113_v55, %v9116_v11  ;;  %v13854_v11 = vld [vmem:[#allocation15_spill] sm:$0xff] }
 0x256   : > { %v1174_v52 = vpop.xlane.xlu1 %1173  ;;  %v9121_v19 = vpop.xlane.xlu0 %1152 }
 0x257   : > { %vm1246_vm14 = vcmp.eq.f32.partialorder %v8904_v38, %v9121_v19  ;;  %vm1247_vm15 = vcmp.eq.f32.partialorder %v8907_v33, %v9121_v19  ;;  %1606 = vmin.xlane.f32.xlu1 %v1605_v20  ;;  %vm1261_vm2 = vcmp.eq.f32.partialorder %v8907_v33, %v1174_v52  ;;  %vm1260_vm3 = vcmp.eq.f32.partialorder %v8904_v38, %v1174_v52 }
 0x258   : > { %7015 = vmatprep.subr.msk.mxu1 %vm1261_vm2, %v13570_v15  ;;  %v9131_v63 = vsel %vm1260_vm3, inf, %v13846_v4  ;;  %v9134_v5 = vsel %vm1261_vm2, inf, %v13848_v30  ;;  %v9140_v40 = vsel %vm1246_vm14, inf, %v13823_v7  ;;  %v9146_v20 = vsel %vm1247_vm15, inf, %v13851_v34  ;;  %v13853_v7 = vld [vmem:[#allocation16_spill] sm:$0xff] }
 0x259   : > { %13847 = vst [vmem:[#allocation17_spill] sm:$0xff] %v9131_v63  ;;  %13849 = vst [vmem:[#allocation12_spill] sm:$0xff] %v9134_v5  ;;  %7016 = vmatpush1.xpose.msk.msra.mxu1 %vm1260_vm3, %v13570_v15  ;;  %v1602_v52 = vmin.f32 %v9131_v63, %v9134_v5  ;;  %v1581_v4 = vmin.f32 %v9140_v40, %v9146_v20 }
 0x25a   : > { %13850 = vst [vmem:[#allocation11_spill] sm:$0xff] %v9140_v40  ;;  %13852 = vst [vmem:[#allocation6_spill] sm:$0xff] %v9146_v20  ;;  %v1171_v30 = vpop.xlane.xlu1 %1170 }
 0x25b   : > { %1603 = vmin.xlane.f32.xlu1 %v1602_v52  ;;  %1582 = vmin.xlane.f32.xlu0 %v1581_v4  ;;  %vm1259_vm4 = vcmp.eq.f32.partialorder %v8907_v33, %v1171_v30  ;;  %vm1258_vm5 = vcmp.eq.f32.partialorder %v8904_v38, %v1171_v30  ;;  %v13856_v4 = vld [vmem:[#allocation7_spill] sm:$0xff] }
 0x25c   : > { %7017 = vmatprep.subr.msk.mxu1 %vm1259_vm4, %v13570_v15  ;;  %v9157_v34 = vsel %vm1258_vm5, inf, %v13853_v7  ;;  %v9160_v55 = vsel %vm1259_vm4, inf, %v13854_v11 }
 0x25d   : > { %7018 = vmatpush1.xpose.msk.msra.mxu1 %vm1258_vm5, %v13570_v15  ;;  %v1599_v5 = vmin.f32 %v9157_v34, %v9160_v55 }
 0x25e   : > { %v1168_v63 = vpop.xlane.xlu1 %1167 }
 0x25f   : > { %1600 = vmin.xlane.f32.xlu1 %v1599_v5  ;;  %vm1257_vm6 = vcmp.eq.f32.partialorder %v8907_v33, %v1168_v63  ;;  %vm1256_vm7 = vcmp.eq.f32.partialorder %v8904_v38, %v1168_v63  ;;  %v13858_v63 = vld [vmem:[#allocation20_spill] sm:$0xff] }
 0x260   : > { %7019 = vmatprep.subr.msk.mxu1 %vm1257_vm6, %v13570_v15  ;;  %v9169_v52 = vsel %vm1256_vm7, inf, %v13827_v36  ;;  %v9172_v30 = vsel %vm1257_vm6, inf, %v13856_v4 }
 0x261   : > { %13855 = vst [vmem:[#allocation5_spill] sm:$0xff] %v9169_v52  ;;  %13857 = vst [vmem:[#allocation23_spill] sm:$0xff] %v9172_v30  ;;  %7020 = vmatpush1.xpose.msk.msra.mxu1 %vm1256_vm7, %v13570_v15  ;;  %v1596_v11 = vmin.f32 %v9169_v52, %v9172_v30 }
 0x262   : > { %v1165_v7 = vpop.xlane.xlu1 %1164 }
 0x263   : > { %1597 = vmin.xlane.f32.xlu1 %v1596_v11  ;;  %vm1255_vm8 = vcmp.eq.f32.partialorder %v8907_v33, %v1165_v7  ;;  %vm1254_vm9 = vcmp.eq.f32.partialorder %v8904_v38, %v1165_v7  ;;  %v13861_v11 = vld [vmem:[#allocation10_spill] sm:$0xff] }
 0x264   : > { %7021 = vmatprep.subr.msk.mxu1 %vm1255_vm8, %v13570_v15  ;;  %v9181_v5 = vsel %vm1254_vm9, inf, %v13858_v63  ;;  %v9184_v36 = vsel %vm1255_vm8, inf, %v13830_v0  ;;  %v13863_v63 = vld [vmem:[#allocation9_spill] sm:$0xff] }
 0x265   : > { %13859 = vst [vmem:[#allocation16_spill] sm:$0xff] %v9181_v5  ;;  %13860 = vst [vmem:[#allocation15_spill] sm:$0xff] %v9184_v36  ;;  %7022 = vmatpush1.xpose.msk.msra.mxu1 %vm1254_vm9, %v13570_v15  ;;  %v1593_v4 = vmin.f32 %v9181_v5, %v9184_v36 }
 0x266   : > { %v1162_v30 = vpop.xlane.xlu1 %1161 }
 0x267   : > { %1594 = vmin.xlane.f32.xlu1 %v1593_v4  ;;  %vm1253_vm10 = vcmp.eq.f32.partialorder %v8907_v33, %v1162_v30  ;;  %vm1252_vm11 = vcmp.eq.f32.partialorder %v8904_v38, %v1162_v30  ;;  %v13865_v30 = vld [vmem:[#allocation22_spill] sm:$0xff] }
 0x268   : > { %7023 = vmatprep.subr.msk.mxu1 %vm1253_vm10, %v13570_v15  ;;  %v9193_v7 = vsel %vm1252_vm11, inf, %v13861_v11  ;;  %v9196_v52 = vsel %vm1253_vm10, inf, %v13863_v63 }
 0x269   : > { %13862 = vst [vmem:[#allocation7_spill] sm:$0xff] %v9193_v7  ;;  %13864 = vst [vmem:[#allocation20_spill] sm:$0xff] %v9196_v52  ;;  %7024 = vmatpush1.xpose.msk.msra.mxu1 %vm1252_vm11, %v13570_v15  ;;  %v1590_v0 = vmin.f32 %v9193_v7, %v9196_v52 }
 0x26a   : > { %v1159_v36 = vpop.xlane.xlu1 %1158 }
 0x26b   : > { %1591 = vmin.xlane.f32.xlu1 %v1590_v0  ;;  %vm1251_vm12 = vcmp.eq.f32.partialorder %v8907_v33, %v1159_v36  ;;  %vm1250_vm13 = vcmp.eq.f32.partialorder %v8904_v38, %v1159_v36  ;;  %v13867_v36 = vld [vmem:[#allocation14_spill] sm:$0xff] }
 0x26c   : > { %7025 = vmatprep.subr.msk.mxu1 %vm1251_vm12, %v13570_v15  ;;  %v9205_v4 = vsel %vm1250_vm13, inf, %v13865_v30  ;;  %v9208_v11 = vsel %vm1251_vm12, inf, %v13834_v45 }
 0x26d   : > { %13866 = vst [vmem:[#allocation10_spill] sm:$0xff] %v9208_v11  ;;  %7026 = vmatpush1.xpose.msk.msra.mxu1 %vm1250_vm13, %v13570_v15  ;;  %v1587_v63 = vmin.f32 %v9205_v4, %v9208_v11 }
 0x26e   : > { %v1156_v52 = vpop.xlane.xlu1 %1155 }
 0x26f   : > { %1588 = vmin.xlane.f32.xlu1 %v1587_v63  ;;  %vm1249_vm2 = vcmp.eq.f32.partialorder %v8907_v33, %v1156_v52  ;;  %vm1248_vm3 = vcmp.eq.f32.partialorder %v8904_v38, %v1156_v52  ;;  %v13868_v52 = vld [vmem:[#allocation18_spill] sm:$0xff] }
 0x270   : > { %7027 = vmatprep.subr.msk.mxu1 %vm1249_vm2, %v13570_v15  ;;  %v9217_v0 = vsel %vm1248_vm3, inf, %v13867_v36  ;;  %v9220_v30 = vsel %vm1249_vm2, inf, %v13836_v3 }
 0x271   : > { %7028 = vmatpush1.xpose.msk.msra.mxu1 %vm1248_vm3, %v13570_v15  ;;  %v1584_v45 = vmin.f32 %v9217_v0, %v9220_v30 }
 0x272   : > { %v1150_v11 = vpop.xlane.xlu1 %1149  ;;  %7029 = vmatprep.subr.msk.mxu1 %vm1247_vm15, %v13570_v15 }
 0x273   : > { %vm1244_vm4 = vcmp.eq.f32.partialorder %v8904_v38, %v1150_v11  ;;  %1585 = vmin.xlane.f32.xlu1 %v1584_v45  ;;  %vm1245_vm5 = vcmp.eq.f32.partialorder %v8907_v33, %v1150_v11 }
 0x274   : > { %v9232_v63 = vsel %vm1244_vm4, inf, %v13868_v52  ;;  %v9235_v3 = vsel %vm1245_vm5, inf, %v13838_v42 }
 0x275   : > { %7030 = vmatpush1.xpose.msk.msra.mxu1 %vm1246_vm14, %v13570_v15  ;;  %v1578_v36 = vmin.f32 %v9232_v63, %v9235_v3 }
 0x276   : > { %7031 = vmatprep.subr.msk.mxu1 %vm1245_vm5, %v13570_v15 }
 0x277   : > { %1579 = vmin.xlane.f32.xlu1 %v1578_v36  ;;  %v1240_v45 = vpop.xlane.xlu1 %1239 }
 0x278   : > { %vm1304_vm15 = vcmp.eq.f32.partialorder %v8904_v38, %v1240_v45  ;;  %vm1305_vm6 = vcmp.eq.f32.partialorder %v8907_v33, %v1240_v45 }
 0x279   : > { %7032 = vmatpush1.xpose.msk.msra.mxu1 %vm1244_vm4, %v13570_v15  ;;  %v9250_v42 = vsel %vm1304_vm15, inf, %v8771_v60  ;;  %v9253_v19 = vsel %vm1305_vm6, inf, %v8774_v26 }
 0x27a   : > { %v1668_v11 = vmin.f32 %v9250_v42, %v9253_v19 }
 0x27b   : > { %v1243_v52 = vpop.xlane.xlu0 %1242 }
 0x27c   : > { %1669 = vmin.xlane.f32.xlu1 %v1668_v11  ;;  %vm1307_vm14 = vcmp.eq.f32.partialorder %v8907_v33, %v1243_v52  ;;  %vm1306_vm7 = vcmp.eq.f32.partialorder %v8904_v38, %v1243_v52 }
 0x27d   : > { %7033 = vmatprep.subr.msk.mxu1 %vm1307_vm14, %v13570_v15  ;;  %v9261_v36 = vsel %vm1306_vm7, inf, %v8782_v43  ;;  %v9264_v60 = vsel %vm1307_vm14, inf, %v8786_v12 }
 0x27e   : > { %13869 = vst [vmem:[#allocation9_spill] sm:$0xff] %v9261_v36  ;;  %13870 = vst [vmem:[#allocation22_spill] sm:$0xff] %v9264_v60  ;;  %7034 = vmatpush2.xpose.msk.msra.mxu1 %vm1306_vm7, %v13570_v15  ;;  %v1671_v26 = vmin.f32 %v9261_v36, %v9264_v60 }
 0x27f   : > { %7035 = vmatprep.subr.msk.mxu1 %vm1305_vm6, %v13570_v15  ;;  %v1237_v11 = vpop.xlane.xlu0 %1236 }
 0x280   : > { %vm1302_vm8 = vcmp.eq.f32.partialorder %v8904_v38, %v1237_v11  ;;  %1672 = vmin.xlane.f32.xlu0 %v1671_v26  ;;  %vm1303_vm9 = vcmp.eq.f32.partialorder %v8907_v33, %v1237_v11 }
 0x281   : > { %v9273_v52 = vsel %vm1302_vm8, inf, %v8794_v8  ;;  %v9276_v43 = vsel %vm1303_vm9, inf, %v8791_v28 }
 0x282   : > { %7036 = vmatpush2.xpose.msk.msra.mxu1 %vm1304_vm15, %v13570_v15  ;;  %v1665_v12 = vmin.f32 %v9273_v52, %v9276_v43 }
 0x283   : > { %7037 = vmatprep.subr.msk.mxu1 %vm1303_vm9, %v13570_v15  ;;  %v1234_v60 = vpop.xlane.xlu0 %1233 }
 0x284   : > { %vm1300_vm10 = vcmp.eq.f32.partialorder %v8904_v38, %v1234_v60  ;;  %1666 = vmin.xlane.f32.xlu0 %v1665_v12  ;;  %vm1301_vm11 = vcmp.eq.f32.partialorder %v8907_v33, %v1234_v60 }
 0x285   : > { %v9287_v8 = vsel %vm1300_vm10, inf, %v8804_v39  ;;  %v9290_v28 = vsel %vm1301_vm11, inf, %v8801_v18 }
 0x286   : > { %7038 = vmatpush2.xpose.msk.msra.mxu1 %vm1302_vm8, %v13570_v15  ;;  %v1662_v45 = vmin.f32 %v9287_v8, %v9290_v28 }
 0x287   : > { %7039 = vmatprep.subr.msk.mxu1 %vm1301_vm11, %v13570_v15  ;;  %v1231_v26 = vpop.xlane.xlu0 %1230 }
 0x288   : > { %vm1298_vm12 = vcmp.eq.f32.partialorder %v8904_v38, %v1231_v26  ;;  %1663 = vmin.xlane.f32.xlu0 %v1662_v45  ;;  %vm1299_vm13 = vcmp.eq.f32.partialorder %v8907_v33, %v1231_v26 }
 0x289   : > { %v9299_v60 = vsel %vm1298_vm12, inf, %v8814_v17  ;;  %v9302_v39 = vsel %vm1299_vm13, inf, %v8811_v50 }
 0x28a   : > { %7040 = vmatpush2.xpose.msk.msra.mxu1 %vm1300_vm10, %v13570_v15  ;;  %v1659_v18 = vmin.f32 %v9299_v60, %v9302_v39 }
 0x28b   : > { %7041 = vmatprep.subr.msk.mxu1 %vm1299_vm13, %v13570_v15  ;;  %v1228_v11 = vpop.xlane.xlu0 %1227 }
 0x28c   : > { %vm1296_vm2 = vcmp.eq.f32.partialorder %v8904_v38, %v1228_v11  ;;  %1660 = vmin.xlane.f32.xlu0 %v1659_v18  ;;  %vm1297_vm3 = vcmp.eq.f32.partialorder %v8907_v33, %v1228_v11 }
 0x28d   : > { %v9311_v12 = vsel %vm1296_vm2, inf, %v8826_v13  ;;  %v9314_v17 = vsel %vm1297_vm3, inf, %v8822_v24 }
 0x28e   : > { %7042 = vmatpush2.xpose.msk.msra.mxu1 %vm1298_vm12, %v13570_v15  ;;  %v1656_v50 = vmin.f32 %v9311_v12, %v9314_v17 }
 0x28f   : > { %7043 = vmatprep.subr.msk.mxu1 %vm1297_vm3, %v13570_v15  ;;  %v1225_v45 = vpop.xlane.xlu0 %1224 }
 0x290   : > { %vm1294_vm4 = vcmp.eq.f32.partialorder %v8904_v38, %v1225_v45  ;;  %1657 = vmin.xlane.f32.xlu0 %v1656_v50  ;;  %vm1295_vm5 = vcmp.eq.f32.partialorder %v8907_v33, %v1225_v45 }
 0x291   : > { %v9323_v26 = vsel %vm1294_vm4, inf, %v8838_v27  ;;  %v9326_v13 = vsel %vm1295_vm5, inf, %v8834_v57 }
 0x292   : > { %7044 = vmatpush2.xpose.msk.msra.mxu1 %vm1296_vm2, %v13570_v15  ;;  %v1653_v24 = vmin.f32 %v9323_v26, %v9326_v13 }
 0x293   : > { %7045 = vmatprep.subr.msk.mxu1 %vm1295_vm5, %v13570_v15  ;;  %v1222_v18 = vpop.xlane.xlu0 %1221 }
 0x294   : > { %vm1292_vm15 = vcmp.eq.f32.partialorder %v8904_v38, %v1222_v18  ;;  %1654 = vmin.xlane.f32.xlu0 %v1653_v24  ;;  %vm1293_vm6 = vcmp.eq.f32.partialorder %v8907_v33, %v1222_v18 }
 0x295   : > { %v9335_v11 = vsel %vm1292_vm15, inf, %v8849_v44  ;;  %v9338_v27 = vsel %vm1293_vm6, inf, %v8845_v31 }
 0x296   : > { %7046 = vmatpush2.xpose.msk.msra.mxu1 %vm1294_vm4, %v13570_v15  ;;  %v1650_v57 = vmin.f32 %v9335_v11, %v9338_v27 }
 0x297   : > { %7047 = vmatprep.subr.msk.mxu1 %vm1293_vm6, %v13570_v15  ;;  %v1219_v50 = vpop.xlane.xlu0 %1218 }
 0x298   : > { %vm1290_vm14 = vcmp.eq.f32.partialorder %v8904_v38, %v1219_v50  ;;  %1651 = vmin.xlane.f32.xlu0 %v1650_v57  ;;  %vm1291_vm7 = vcmp.eq.f32.partialorder %v8907_v33, %v1219_v50 }
 0x299   : > { %v9347_v45 = vsel %vm1290_vm14, inf, %v8858_v46  ;;  %v9350_v44 = vsel %vm1291_vm7, inf, %v8854_v41 }
 0x29a   : > { %7048 = vmatpush2.xpose.msk.msra.mxu1 %vm1292_vm15, %v13570_v15  ;;  %v1647_v31 = vmin.f32 %v9347_v45, %v9350_v44 }
 0x29b   : > { %7049 = vmatprep.subr.msk.mxu1 %vm1291_vm7, %v13570_v15  ;;  %v1216_v24 = vpop.xlane.xlu0 %1215 }
 0x29c   : > { %vm1288_vm8 = vcmp.eq.f32.partialorder %v8904_v38, %v1216_v24  ;;  %1648 = vmin.xlane.f32.xlu0 %v1647_v31  ;;  %vm1289_vm9 = vcmp.eq.f32.partialorder %v8907_v33, %v1216_v24 }
 0x29d   : > { %v9359_v18 = vsel %vm1288_vm8, inf, %v8864_v51  ;;  %v9362_v46 = vsel %vm1289_vm9, inf, %v8758_v37 }
 0x29e   : > { %7050 = vmatpush2.xpose.msk.msra.mxu1 %vm1290_vm14, %v13570_v15  ;;  %v1644_v41 = vmin.f32 %v9359_v18, %v9362_v46 }
 0x29f   : > { %7051 = vmatprep.subr.msk.mxu1 %vm1289_vm9, %v13570_v15  ;;  %v1213_v57 = vpop.xlane.xlu0 %1212 }
 0x2a0   : > { %vm1286_vm10 = vcmp.eq.f32.partialorder %v8904_v38, %v1213_v57  ;;  %1645 = vmin.xlane.f32.xlu0 %v1644_v41  ;;  %vm1287_vm11 = vcmp.eq.f32.partialorder %v8907_v33, %v1213_v57 }
 0x2a1   : > { %v9371_v50 = vsel %vm1286_vm10, inf, %v8870_v9  ;;  %v9374_v51 = vsel %vm1287_vm11, inf, %v8746_v22 }
 0x2a2   : > { %7052 = vmatpush2.xpose.msk.msra.mxu1 %vm1288_vm8, %v13570_v15  ;;  %v1641_v37 = vmin.f32 %v9371_v50, %v9374_v51 }
 0x2a3   : > { %7053 = vmatprep.subr.msk.mxu1 %vm1287_vm11, %v13570_v15  ;;  %v1210_v31 = vpop.xlane.xlu0 %1209 }
 0x2a4   : > { %vm1284_vm12 = vcmp.eq.f32.partialorder %v8904_v38, %v1210_v31  ;;  %1642 = vmin.xlane.f32.xlu0 %v1641_v37  ;;  %vm1285_vm13 = vcmp.eq.f32.partialorder %v8907_v33, %v1210_v31 }
 0x2a5   : > { %v9383_v24 = vsel %vm1284_vm12, inf, %v8876_v29  ;;  %v9386_v9 = vsel %vm1285_vm13, inf, %v8730_v6 }
 0x2a6   : > { %7054 = vmatpush2.xpose.msk.msra.mxu1 %vm1286_vm10, %v13570_v15  ;;  %v1638_v22 = vmin.f32 %v9383_v24, %v9386_v9 }
 0x2a7   : > { %7055 = vmatprep.subr.msk.mxu1 %vm1285_vm13, %v13570_v15  ;;  %v1207_v41 = vpop.xlane.xlu0 %1206 }
 0x2a8   : > { %vm1282_vm2 = vcmp.eq.f32.partialorder %v8904_v38, %v1207_v41  ;;  %1639 = vmin.xlane.f32.xlu0 %v1638_v22  ;;  %vm1283_vm3 = vcmp.eq.f32.partialorder %v8907_v33, %v1207_v41 }
 0x2a9   : > { %v9395_v57 = vsel %vm1282_vm2, inf, %v8882_v49  ;;  %v9398_v29 = vsel %vm1283_vm3, inf, %v8708_v48 }
 0x2aa   : > { %7056 = vmatpush2.xpose.msk.msra.mxu1 %vm1284_vm12, %v13570_v15  ;;  %v1635_v6 = vmin.f32 %v9395_v57, %v9398_v29 }
 0x2ab   : > { %7057 = vmatprep.subr.msk.mxu1 %vm1283_vm3, %v13570_v15  ;;  %v1204_v37 = vpop.xlane.xlu0 %1203 }
 0x2ac   : > { %vm1280_vm4 = vcmp.eq.f32.partialorder %v8904_v38, %v1204_v37  ;;  %1636 = vmin.xlane.f32.xlu0 %v1635_v6  ;;  %vm1281_vm5 = vcmp.eq.f32.partialorder %v8907_v33, %v1204_v37 }
 0x2ad   : > { %v9407_v31 = vsel %vm1280_vm4, inf, %v8888_v25  ;;  %v9410_v49 = vsel %vm1281_vm5, inf, %v8675_v2 }
 0x2ae   : > { %7058 = vmatpush2.xpose.msk.msra.mxu1 %vm1282_vm2, %v13570_v15  ;;  %v1632_v48 = vmin.f32 %v9407_v31, %v9410_v49 }
 0x2af   : > { %7059 = vmatprep.subr.msk.mxu1 %vm1281_vm5, %v13570_v15  ;;  %v1201_v22 = vpop.xlane.xlu0 %1200 }
 0x2b0   : > { %vm1278_vm15 = vcmp.eq.f32.partialorder %v8904_v38, %v1201_v22  ;;  %1633 = vmin.xlane.f32.xlu0 %v1632_v48  ;;  %vm1279_vm6 = vcmp.eq.f32.partialorder %v8907_v33, %v1201_v22 }
 0x2b1   : > { %v9419_v41 = vsel %vm1278_vm15, inf, %v8894_v59  ;;  %v9422_v25 = vsel %vm1279_vm6, inf, %v8641_v54 }
 0x2b2   : > { %13871 = vst [vmem:[#allocation14_spill] sm:$0xff] %v9419_v41  ;;  %7060 = vmatpush2.xpose.msk.msra.mxu1 %vm1280_vm4, %v13570_v15  ;;  %v1629_v2 = vmin.f32 %v9419_v41, %v9422_v25 }
 0x2b3   : > { %7061 = vmatprep.subr.msk.mxu1 %vm1279_vm6, %v13570_v15  ;;  %v1198_v6 = vpop.xlane.xlu0 %1197 }
 0x2b4   : > { %vm1276_vm14 = vcmp.eq.f32.partialorder %v8904_v38, %v1198_v6  ;;  %1630 = vmin.xlane.f32.xlu0 %v1629_v2  ;;  %vm1277_vm7 = vcmp.eq.f32.partialorder %v8907_v33, %v1198_v6 }
 0x2b5   : > { %v9431_v37 = vsel %vm1276_vm14, inf, %v8899_v56  ;;  %v9434_v59 = vsel %vm1277_vm7, inf, %v8606_v62 }
 0x2b6   : > { %13872 = vst [vmem:[#allocation18_spill] sm:$0xff] %v9434_v59  ;;  %7062 = vmatpush2.xpose.msk.msra.mxu1 %vm1278_vm15, %v13570_v15  ;;  %v1626_v54 = vmin.f32 %v9431_v37, %v9434_v59 }
 0x2b7   : > { %7063 = vmatprep.subr.msk.mxu1 %vm1277_vm7, %v13570_v15 }
 0x2b8   : > { %1627 = vmin.xlane.f32.xlu0 %v1626_v54 }
 0x2ba   : > { %7064 = vmatpush2.xpose.msk.msra.mxu1 %vm1276_vm14, %v13570_v15 }
 0x2c8   : > { %v1625_v48 = vpop.xlane.xlu1 %1624 }
 0x2c9   : > { %vm1704_vm8 = vcmp.eq.f32.partialorder %v9044_v47, %v1625_v48  ;;  %vm1705_vm9 = vcmp.eq.f32.partialorder %v9041_v58, %v1625_v48 }
 0x2ca   : > { %v1768_v56 = vsel %vm1704_vm8, %v8904_v38, 256.0  ;;  %v1769_v62 = vsel %vm1705_vm9, %v8907_v33, 256.0 }
 0x2cb   : > { %v1847_v22 = vmin.f32 %v1768_v56, %v1769_v62 }
 0x2cc   : > { %v1622_v2 = vpop.xlane.xlu1 %1621 }
 0x2cd   : > { %1848 = vmin.xlane.f32.xlu1 %v1847_v22  ;;  %vm1702_vm10 = vcmp.eq.f32.partialorder %v9053_v21, %v1622_v2  ;;  %vm1703_vm11 = vcmp.eq.f32.partialorder %v9056_v61, %v1622_v2 }
 0x2ce   : > { %v1766_v6 = vsel %vm1702_vm10, %v8904_v38, 256.0  ;;  %v1767_v54 = vsel %vm1703_vm11, %v8907_v33, 256.0 }
 0x2cf   : > { %v1844_v15 = vmin.f32 %v1766_v6, %v1767_v54 }
 0x2d0   : > { %v1619_v59 = vpop.xlane.xlu1 %1618 }
 0x2d1   : > { %1845 = vmin.xlane.f32.xlu1 %v1844_v15  ;;  %vm1700_vm12 = vcmp.eq.f32.partialorder %v9065_v23, %v1619_v59  ;;  %vm1701_vm13 = vcmp.eq.f32.partialorder %v9068_v14, %v1619_v59 }
 0x2d2   : > { %v1764_v48 = vsel %vm1700_vm12, %v8904_v38, 256.0  ;;  %v1765_v56 = vsel %vm1701_vm13, %v8907_v33, 256.0 }
 0x2d3   : > { %v1841_v62 = vmin.f32 %v1764_v48, %v1765_v56 }
 0x2d4   : > { %v1616_v22 = vpop.xlane.xlu1 %1615 }
 0x2d5   : > { %1842 = vmin.xlane.f32.xlu1 %v1841_v62  ;;  %vm1698_vm2 = vcmp.eq.f32.partialorder %v9077_v35, %v1616_v22  ;;  %vm1699_vm3 = vcmp.eq.f32.partialorder %v9080_v53, %v1616_v22 }
 0x2d6   : > { %v1762_v2 = vsel %vm1698_vm2, %v8904_v38, 256.0  ;;  %v1763_v6 = vsel %vm1699_vm3, %v8907_v33, 256.0 }
 0x2d7   : > { %v1838_v15 = vmin.f32 %v1762_v2, %v1763_v6 }
 0x2d8   : > { %v1613_v54 = vpop.xlane.xlu1 %1612 }
 0x2d9   : > { %1839 = vmin.xlane.f32.xlu1 %v1838_v15  ;;  %vm1696_vm4 = vcmp.eq.f32.partialorder %v9089_v16, %v1613_v54  ;;  %vm1697_vm5 = vcmp.eq.f32.partialorder %v9092_v10, %v1613_v54  ;;  %v13873_v16 = vld [vmem:[#allocation21_spill] sm:$0xff] }
 0x2da   : > { %v1760_v59 = vsel %vm1696_vm4, %v8904_v38, 256.0  ;;  %v1761_v48 = vsel %vm1697_vm5, %v8907_v33, 256.0  ;;  %v13874_v54 = vld [vmem:[#allocation13_spill] sm:$0xff] }
 0x2db   : > { %v1835_v56 = vmin.f32 %v1760_v59, %v1761_v48 }
 0x2dc   : > { %v1610_v62 = vpop.xlane.xlu1 %1609 }
 0x2dd   : > { %1836 = vmin.xlane.f32.xlu1 %v1835_v56  ;;  %vm1694_vm15 = vcmp.eq.f32.partialorder %v9101_v1, %v1610_v62  ;;  %vm1695_vm6 = vcmp.eq.f32.partialorder %v9104_v32, %v1610_v62  ;;  %v13875_v62 = vld [vmem:[#allocation17_spill] sm:$0xff] }
 0x2de   : > { %v1758_v22 = vsel %vm1694_vm15, %v8904_v38, 256.0  ;;  %v1759_v2 = vsel %vm1695_vm6, %v8907_v33, 256.0 }
 0x2df   : > { %v1832_v6 = vmin.f32 %v1758_v22, %v1759_v2  ;;  %v13876_v22 = vld [vmem:[#allocation12_spill] sm:$0xff] }
 0x2e0   : > { %v1607_v15 = vpop.xlane.xlu1 %1606 }
 0x2e1   : > { %1833 = vmin.xlane.f32.xlu1 %v1832_v6  ;;  %vm1692_vm14 = vcmp.eq.f32.partialorder %v13873_v16, %v1607_v15  ;;  %vm1693_vm7 = vcmp.eq.f32.partialorder %v13874_v54, %v1607_v15 }
 0x2e2   : > { %v1756_v10 = vsel %vm1692_vm14, %v8904_v38, 256.0  ;;  %v1757_v59 = vsel %vm1693_vm7, %v8907_v33, 256.0 }
 0x2e3   : > { %v1829_v48 = vmin.f32 %v1756_v10, %v1757_v59 }
 0x2e4   : > { %v1604_v56 = vpop.xlane.xlu1 %1603  ;;  %v1583_v1 = vpop.xlane.xlu0 %1582 }
 0x2e5   : > { %vm1676_vm8 = vcmp.eq.f32.partialorder %v9140_v40, %v1583_v1  ;;  %vm1677_vm9 = vcmp.eq.f32.partialorder %v9146_v20, %v1583_v1  ;;  %1830 = vmin.xlane.f32.xlu1 %v1829_v48  ;;  %vm1690_vm10 = vcmp.eq.f32.partialorder %v13875_v62, %v1604_v56  ;;  %vm1691_vm11 = vcmp.eq.f32.partialorder %v13876_v22, %v1604_v56  ;;  %v13877_v20 = vld [vmem:[#allocation5_spill] sm:$0xff]  ;;  %v13878_v40 = vld [vmem:[#allocation23_spill] sm:$0xff] }
 0x2e6   : > { %v1740_v2 = vsel %vm1676_vm8, %v8904_v38, 256.0  ;;  %v1741_v6 = vsel %vm1677_vm9, %v8907_v33, 256.0  ;;  %v1754_v15 = vsel %vm1690_vm10, %v8904_v38, 256.0  ;;  %v1755_v54 = vsel %vm1691_vm11, %v8907_v33, 256.0 }
 0x2e7   : > { %v1826_v10 = vmin.f32 %v1754_v15, %v1755_v54  ;;  %v1805_v59 = vmin.f32 %v1740_v2, %v1741_v6 }
 0x2e8   : > { %v1601_v16 = vpop.xlane.xlu1 %1600 }
 0x2e9   : > { %vm1688_vm12 = vcmp.eq.f32.partialorder %v9157_v34, %v1601_v16  ;;  %vm1689_vm13 = vcmp.eq.f32.partialorder %v9160_v55, %v1601_v16  ;;  %1827 = vmin.xlane.f32.xlu1 %v1826_v10  ;;  %1806 = vmin.xlane.f32.xlu0 %v1805_v59  ;;  %v13879_v16 = vld [vmem:[#allocation15_spill] sm:$0xff] }
 0x2ea   : > { %v1752_v1 = vsel %vm1688_vm12, %v8904_v38, 256.0  ;;  %v1753_v48 = vsel %vm1689_vm13, %v8907_v33, 256.0 }
 0x2eb   : > { %v1823_v56 = vmin.f32 %v1752_v1, %v1753_v48 }
 0x2ec   : > { %v1598_v22 = vpop.xlane.xlu1 %1597 }
 0x2ed   : > { %vm1686_vm2 = vcmp.eq.f32.partialorder %v13877_v20, %v1598_v22  ;;  %vm1687_vm3 = vcmp.eq.f32.partialorder %v13878_v40, %v1598_v22  ;;  %1824 = vmin.xlane.f32.xlu1 %v1823_v56  ;;  %v13880_v22 = vld [vmem:[#allocation20_spill] sm:$0xff] }
 0x2ee   : > { %v1750_v54 = vsel %vm1686_vm2, %v8904_v38, 256.0  ;;  %v1751_v2 = vsel %vm1687_vm3, %v8907_v33, 256.0 }
 0x2ef   : > { %v1820_v6 = vmin.f32 %v1750_v54, %v1751_v2 }
 0x2f0   : > { %v1595_v15 = vpop.xlane.xlu1 %1594 }
 0x2f1   : > { %vm1684_vm4 = vcmp.eq.f32.partialorder %v9181_v5, %v1595_v15  ;;  %vm1685_vm5 = vcmp.eq.f32.partialorder %v13879_v16, %v1595_v15  ;;  %1821 = vmin.xlane.f32.xlu1 %v1820_v6  ;;  %v13881_v6 = vld [vmem:[#allocation10_spill] sm:$0xff] }
 0x2f2   : > { %v1748_v10 = vsel %vm1684_vm4, %v8904_v38, 256.0  ;;  %v1749_v59 = vsel %vm1685_vm5, %v8907_v33, 256.0 }
 0x2f3   : > { %v1817_v1 = vmin.f32 %v1748_v10, %v1749_v59 }
 0x2f4   : > { %v1592_v48 = vpop.xlane.xlu1 %1591 }
 0x2f5   : > { %vm1682_vm15 = vcmp.eq.f32.partialorder %v9193_v7, %v1592_v48  ;;  %vm1683_vm6 = vcmp.eq.f32.partialorder %v13880_v22, %v1592_v48  ;;  %1818 = vmin.xlane.f32.xlu1 %v1817_v1 }
 0x2f6   : > { %v1746_v56 = vsel %vm1682_vm15, %v8904_v38, 256.0  ;;  %v1747_v54 = vsel %vm1683_vm6, %v8907_v33, 256.0 }
 0x2f7   : > { %v1814_v2 = vmin.f32 %v1746_v56, %v1747_v54 }
 0x2f8   : > { %v1589_v5 = vpop.xlane.xlu1 %1588 }
 0x2f9   : > { %vm1680_vm14 = vcmp.eq.f32.partialorder %v9205_v4, %v1589_v5  ;;  %vm1681_vm7 = vcmp.eq.f32.partialorder %v13881_v6, %v1589_v5  ;;  %1815 = vmin.xlane.f32.xlu1 %v1814_v2 }
 0x2fa   : > { %v1744_v15 = vsel %vm1680_vm14, %v8904_v38, 256.0  ;;  %v1745_v10 = vsel %vm1681_vm7, %v8907_v33, 256.0 }
 0x2fb   : > { %v1811_v59 = vmin.f32 %v1744_v15, %v1745_v10 }
 0x2fc   : > { %v1586_v7 = vpop.xlane.xlu1 %1585 }
 0x2fd   : > { %vm1678_vm8 = vcmp.eq.f32.partialorder %v9217_v0, %v1586_v7  ;;  %vm1679_vm9 = vcmp.eq.f32.partialorder %v9220_v30, %v1586_v7  ;;  %1812 = vmin.xlane.f32.xlu1 %v1811_v59 }
 0x2fe   : > { %v1742_v1 = vsel %vm1678_vm8, %v8904_v38, 256.0  ;;  %v1743_v48 = vsel %vm1679_vm9, %v8907_v33, 256.0 }
 0x2ff   : > { %v1808_v56 = vmin.f32 %v1742_v1, %v1743_v48 }
 0x300   : > { %v1580_v54 = vpop.xlane.xlu1 %1579 }
 0x301   : > { %vm1674_vm10 = vcmp.eq.f32.partialorder %v9232_v63, %v1580_v54  ;;  %vm1675_vm11 = vcmp.eq.f32.partialorder %v9235_v3, %v1580_v54  ;;  %1809 = vmin.xlane.f32.xlu1 %v1808_v56  ;;  %v13882_v56 = vld [vmem:[#allocation22_spill] sm:$0xff] }
 0x302   : > { %v1738_v5 = vsel %vm1674_vm10, %v8904_v38, 256.0  ;;  %v1739_v2 = vsel %vm1675_vm11, %v8907_v33, 256.0 }
 0x303   : > { %v1802_v15 = vmin.f32 %v1738_v5, %v1739_v2 }
 0x305   : > { %1803 = vmin.xlane.f32.xlu1 %v1802_v15  ;;  %v1670_v10 = vpop.xlane.xlu1 %1669 }
 0x306   : > { %vm1734_vm12 = vcmp.eq.f32.partialorder %v9250_v42, %v1670_v10  ;;  %vm1735_vm13 = vcmp.eq.f32.partialorder %v9253_v19, %v1670_v10 }
 0x307   : > { %v1798_v7 = vsel %vm1734_vm12, %v8904_v38, 256.0  ;;  %v1799_v59 = vsel %vm1735_vm13, %v8907_v33, 256.0 }
 0x308   : > { %v1892_v1 = vmin.f32 %v1798_v7, %v1799_v59 }
 0x309   : > { %v1673_v48 = vpop.xlane.xlu0 %1672 }
 0x30a   : > { %vm1736_vm2 = vcmp.eq.f32.partialorder %v9261_v36, %v1673_v48  ;;  %vm1737_vm3 = vcmp.eq.f32.partialorder %v13882_v56, %v1673_v48  ;;  %1893 = vmin.xlane.f32.xlu1 %v1892_v1 }
 0x30b   : > { %v1800_v54 = vsel %vm1736_vm2, %v8904_v38, 256.0  ;;  %v1801_v5 = vsel %vm1737_vm3, %v8907_v33, 256.0 }
 0x30c   : > { %v1895_v2 = vmin.f32 %v1800_v54, %v1801_v5 }
 0x30d   : > { %v1667_v15 = vpop.xlane.xlu0 %1666 }
 0x30e   : > { %vm1732_vm4 = vcmp.eq.f32.partialorder %v9273_v52, %v1667_v15  ;;  %vm1733_vm5 = vcmp.eq.f32.partialorder %v9276_v43, %v1667_v15  ;;  %1896 = vmin.xlane.f32.xlu0 %v1895_v2 }
 0x30f   : > { %v1796_v10 = vsel %vm1732_vm4, %v8904_v38, 256.0  ;;  %v1797_v7 = vsel %vm1733_vm5, %v8907_v33, 256.0 }
 0x310   : > { %v1889_v59 = vmin.f32 %v1796_v10, %v1797_v7 }
 0x311   : > { %v1664_v36 = vpop.xlane.xlu0 %1663 }
 0x312   : > { %vm1730_vm15 = vcmp.eq.f32.partialorder %v9287_v8, %v1664_v36  ;;  %vm1731_vm6 = vcmp.eq.f32.partialorder %v9290_v28, %v1664_v36  ;;  %1890 = vmin.xlane.f32.xlu0 %v1889_v59 }
 0x313   : > { %v1794_v1 = vsel %vm1730_vm15, %v8904_v38, 256.0  ;;  %v1795_v48 = vsel %vm1731_vm6, %v8907_v33, 256.0 }
 0x314   : > { %v1886_v54 = vmin.f32 %v1794_v1, %v1795_v48 }
 0x315   : > { %v1661_v5 = vpop.xlane.xlu0 %1660 }
 0x316   : > { %vm1728_vm14 = vcmp.eq.f32.partialorder %v9299_v60, %v1661_v5  ;;  %vm1729_vm7 = vcmp.eq.f32.partialorder %v9302_v39, %v1661_v5  ;;  %1887 = vmin.xlane.f32.xlu0 %v1886_v54 }
 0x317   : > { %v1792_v2 = vsel %vm1728_vm14, %v8904_v38, 256.0  ;;  %v1793_v15 = vsel %vm1729_vm7, %v8907_v33, 256.0 }
 0x318   : > { %v1883_v10 = vmin.f32 %v1792_v2, %v1793_v15 }
 0x319   : > { %v1658_v7 = vpop.xlane.xlu0 %1657 }
 0x31a   : > { %vm1726_vm8 = vcmp.eq.f32.partialorder %v9311_v12, %v1658_v7  ;;  %vm1727_vm9 = vcmp.eq.f32.partialorder %v9314_v17, %v1658_v7  ;;  %1884 = vmin.xlane.f32.xlu0 %v1883_v10 }
 0x31b   : > { %v1790_v36 = vsel %vm1726_vm8, %v8904_v38, 256.0  ;;  %v1791_v59 = vsel %vm1727_vm9, %v8907_v33, 256.0 }
 0x31c   : > { %v1880_v1 = vmin.f32 %v1790_v36, %v1791_v59 }
 0x31d   : > { %v1655_v48 = vpop.xlane.xlu0 %1654 }
 0x31e   : > { %vm1724_vm10 = vcmp.eq.f32.partialorder %v9323_v26, %v1655_v48  ;;  %vm1725_vm11 = vcmp.eq.f32.partialorder %v9326_v13, %v1655_v48  ;;  %1881 = vmin.xlane.f32.xlu0 %v1880_v1 }
 0x31f   : > { %v1788_v54 = vsel %vm1724_vm10, %v8904_v38, 256.0  ;;  %v1789_v5 = vsel %vm1725_vm11, %v8907_v33, 256.0 }
 0x320   : > { %v1877_v2 = vmin.f32 %v1788_v54, %v1789_v5 }
 0x321   : > { %v1652_v15 = vpop.xlane.xlu0 %1651 }
 0x322   : > { %vm1722_vm12 = vcmp.eq.f32.partialorder %v9335_v11, %v1652_v15  ;;  %vm1723_vm13 = vcmp.eq.f32.partialorder %v9338_v27, %v1652_v15  ;;  %1878 = vmin.xlane.f32.xlu0 %v1877_v2 }
 0x323   : > { %v1786_v10 = vsel %vm1722_vm12, %v8904_v38, 256.0  ;;  %v1787_v7 = vsel %vm1723_vm13, %v8907_v33, 256.0 }
 0x324   : > { %v1874_v36 = vmin.f32 %v1786_v10, %v1787_v7 }
 0x325   : > { %v1649_v59 = vpop.xlane.xlu0 %1648 }
 0x326   : > { %vm1720_vm2 = vcmp.eq.f32.partialorder %v9347_v45, %v1649_v59  ;;  %vm1721_vm3 = vcmp.eq.f32.partialorder %v9350_v44, %v1649_v59  ;;  %1875 = vmin.xlane.f32.xlu0 %v1874_v36 }
 0x327   : > { %v1784_v1 = vsel %vm1720_vm2, %v8904_v38, 256.0  ;;  %v1785_v48 = vsel %vm1721_vm3, %v8907_v33, 256.0 }
 0x328   : > { %v1871_v54 = vmin.f32 %v1784_v1, %v1785_v48 }
 0x329   : > { %v1646_v5 = vpop.xlane.xlu0 %1645 }
 0x32a   : > { %vm1718_vm4 = vcmp.eq.f32.partialorder %v9359_v18, %v1646_v5  ;;  %vm1719_vm5 = vcmp.eq.f32.partialorder %v9362_v46, %v1646_v5  ;;  %1872 = vmin.xlane.f32.xlu0 %v1871_v54 }
 0x32b   : > { %v1782_v2 = vsel %vm1718_vm4, %v8904_v38, 256.0  ;;  %v1783_v15 = vsel %vm1719_vm5, %v8907_v33, 256.0 }
 0x32c   : > { %v1868_v10 = vmin.f32 %v1782_v2, %v1783_v15 }
 0x32d   : > { %v1643_v7 = vpop.xlane.xlu0 %1642 }
 0x32e   : > { %vm1716_vm15 = vcmp.eq.f32.partialorder %v9371_v50, %v1643_v7  ;;  %vm1717_vm6 = vcmp.eq.f32.partialorder %v9374_v51, %v1643_v7  ;;  %1869 = vmin.xlane.f32.xlu0 %v1868_v10 }
 0x32f   : > { %v1780_v36 = vsel %vm1716_vm15, %v8904_v38, 256.0  ;;  %v1781_v59 = vsel %vm1717_vm6, %v8907_v33, 256.0 }
 0x330   : > { %v1865_v1 = vmin.f32 %v1780_v36, %v1781_v59 }
 0x331   : > { %v1640_v48 = vpop.xlane.xlu0 %1639 }
 0x332   : > { %vm1714_vm14 = vcmp.eq.f32.partialorder %v9383_v24, %v1640_v48  ;;  %vm1715_vm7 = vcmp.eq.f32.partialorder %v9386_v9, %v1640_v48  ;;  %1866 = vmin.xlane.f32.xlu0 %v1865_v1 }
 0x333   : > { %v1778_v54 = vsel %vm1714_vm14, %v8904_v38, 256.0  ;;  %v1779_v5 = vsel %vm1715_vm7, %v8907_v33, 256.0 }
 0x334   : > { %v1862_v2 = vmin.f32 %v1778_v54, %v1779_v5 }
 0x335   : > { %v1637_v15 = vpop.xlane.xlu0 %1636 }
 0x336   : > { %vm1712_vm8 = vcmp.eq.f32.partialorder %v9395_v57, %v1637_v15  ;;  %vm1713_vm9 = vcmp.eq.f32.partialorder %v9398_v29, %v1637_v15  ;;  %1863 = vmin.xlane.f32.xlu0 %v1862_v2 }
 0x337   : > { %v1776_v10 = vsel %vm1712_vm8, %v8904_v38, 256.0  ;;  %v1777_v7 = vsel %vm1713_vm9, %v8907_v33, 256.0 }
 0x338   : > { %v1859_v36 = vmin.f32 %v1776_v10, %v1777_v7 }
 0x339   : > { %v1634_v59 = vpop.xlane.xlu0 %1633 }
 0x33a   : > { %vm1710_vm10 = vcmp.eq.f32.partialorder %v9407_v31, %v1634_v59  ;;  %vm1711_vm11 = vcmp.eq.f32.partialorder %v9410_v49, %v1634_v59  ;;  %1860 = vmin.xlane.f32.xlu0 %v1859_v36  ;;  %v13883_v36 = vld [vmem:[#allocation18_spill] sm:$0xff] }
 0x33b   : > { %v1774_v1 = vsel %vm1710_vm10, %v8904_v38, 256.0  ;;  %v1775_v48 = vsel %vm1711_vm11, %v8907_v33, 256.0 }
 0x33c   : > { %v1856_v54 = vmin.f32 %v1774_v1, %v1775_v48 }
 0x33d   : > { %v1631_v5 = vpop.xlane.xlu0 %1630 }
 0x33e   : > { %vm1708_vm12 = vcmp.eq.f32.partialorder %v9419_v41, %v1631_v5  ;;  %vm1709_vm13 = vcmp.eq.f32.partialorder %v9422_v25, %v1631_v5  ;;  %1857 = vmin.xlane.f32.xlu0 %v1856_v54  ;;  %v13885_v5 = vmov 1.0  }
 0x33f   : > { %v1772_v2 = vsel %vm1708_vm12, %v8904_v38, 256.0  ;;  %v1773_v15 = vsel %vm1709_vm13, %v8907_v33, 256.0 }
 0x340   : > { %v1853_v10 = vmin.f32 %v1772_v2, %v1773_v15 }
 0x341   : > { %v1628_v7 = vpop.xlane.xlu0 %1627 }
 0x342   : > { %vm1706_vm2 = vcmp.eq.f32.partialorder %v9431_v37, %v1628_v7  ;;  %vm1707_vm3 = vcmp.eq.f32.partialorder %v13883_v36, %v1628_v7  ;;  %1854 = vmin.xlane.f32.xlu0 %v1853_v10 }
 0x343   : > { %v1770_v59 = vsel %vm1706_vm2, %v8904_v38, 256.0  ;;  %v1771_v1 = vsel %vm1707_vm3, %v8907_v33, 256.0 }
 0x344   : > { %v1850_v48 = vmin.f32 %v1770_v59, %v1771_v1 }
 0x346   : > { %1851 = vmin.xlane.f32.xlu0 %v1850_v48 }
 0x356   : > { %v1849_v41 = vpop.xlane.xlu1 %1848 }
 0x357   : > { %vm1928_vm4 = vcmp.eq.f32.partialorder %v8904_v38, %v1849_v41  ;;  %vm1929_vm5 = vcmp.eq.f32.partialorder %v8907_v33, %v1849_v41 }
 0x358   : > { %v9572_v54 = vsel %vm1928_vm4, inf, %v9044_v47  ;;  %7129 = vmatprep.subr.msk.mxu0 %vm1929_vm5, %v13885_v5  ;;  %v9576_v2 = vsel %vm1929_vm5, inf, %v9041_v58 }
 0x359   : > { %13884 = vst [vmem:[#allocation17_spill] sm:$0xff] %v9572_v54  ;;  %13886 = vst [vmem:[#allocation5_spill] sm:$0xff] %v9576_v2  ;;  %7130 = vmatpush1.xpose.msk.msra.mxu0 %vm1928_vm4, %v13885_v5  ;;  %v2274_v15 = vmin.f32 %v9572_v54, %v9576_v2 }
 0x35a   : > { %v1846_v10 = vpop.xlane.xlu1 %1845 }
 0x35b   : > { %vm1926_vm15 = vcmp.eq.f32.partialorder %v8904_v38, %v1846_v10  ;;  %2275 = vmin.xlane.f32.xlu1 %v2274_v15  ;;  %vm1927_vm6 = vcmp.eq.f32.partialorder %v8907_v33, %v1846_v10  ;;  %v13891_v10 = vld [vmem:[#allocation24_spill] sm:$0xff] }
 0x35c   : > { %v9584_v41 = vsel %vm1926_vm15, inf, %v9053_v21  ;;  %7131 = vmatprep.subr.msk.mxu0 %vm1927_vm6, %v13885_v5  ;;  %v9588_v47 = vsel %vm1927_vm6, inf, %v9056_v61 }
 0x35d   : > { %13887 = vst [vmem:[#allocation23_spill] sm:$0xff] %v9584_v41  ;;  %13888 = vst [vmem:[#allocation15_spill] sm:$0xff] %v9588_v47  ;;  %7132 = vmatpush1.xpose.msk.msra.mxu0 %vm1926_vm15, %v13885_v5  ;;  %v2271_v58 = vmin.f32 %v9584_v41, %v9588_v47 }
 0x35e   : > { %v1843_v7 = vpop.xlane.xlu1 %1842 }
 0x35f   : > { %vm1924_vm14 = vcmp.eq.f32.partialorder %v8904_v38, %v1843_v7  ;;  %2272 = vmin.xlane.f32.xlu1 %v2271_v58  ;;  %vm1925_vm7 = vcmp.eq.f32.partialorder %v8907_v33, %v1843_v7 }
 0x360   : > { %v9596_v59 = vsel %vm1924_vm14, inf, %v9065_v23  ;;  %7133 = vmatprep.subr.msk.mxu0 %vm1925_vm7, %v13885_v5  ;;  %v9600_v21 = vsel %vm1925_vm7, inf, %v9068_v14 }
 0x361   : > { %7134 = vmatpush1.xpose.msk.msra.mxu0 %vm1924_vm14, %v13885_v5  ;;  %v2268_v61 = vmin.f32 %v9596_v59, %v9600_v21 }
 0x362   : > { %v1840_v1 = vpop.xlane.xlu1 %1839 }
 0x363   : > { %vm1922_vm8 = vcmp.eq.f32.partialorder %v8904_v38, %v1840_v1  ;;  %2269 = vmin.xlane.f32.xlu1 %v2268_v61  ;;  %vm1923_vm9 = vcmp.eq.f32.partialorder %v8907_v33, %v1840_v1  ;;  %v13895_v1 = vld [vmem:[#allocation19_spill] sm:$0xff] }
 0x364   : > { %v9608_v48 = vsel %vm1922_vm8, inf, %v9077_v35  ;;  %7135 = vmatprep.subr.msk.mxu0 %vm1923_vm9, %v13885_v5  ;;  %v9612_v23 = vsel %vm1923_vm9, inf, %v9080_v53  ;;  %v13893_v35 = vld [vmem:[#allocation8_spill] sm:$0xff] }
 0x365   : > { %13889 = vst [vmem:[#allocation20_spill] sm:$0xff] %v9608_v48  ;;  %13890 = vst [vmem:[#allocation10_spill] sm:$0xff] %v9612_v23  ;;  %7136 = vmatpush1.xpose.msk.msra.mxu0 %vm1922_vm8, %v13885_v5  ;;  %v2265_v14 = vmin.f32 %v9608_v48, %v9612_v23 }
 0x366   : > { %v1837_v15 = vpop.xlane.xlu1 %1836 }
 0x367   : > { %vm1920_vm10 = vcmp.eq.f32.partialorder %v8904_v38, %v1837_v15  ;;  %2266 = vmin.xlane.f32.xlu1 %v2265_v14  ;;  %vm1921_vm11 = vcmp.eq.f32.partialorder %v8907_v33, %v1837_v15 }
 0x368   : > { %v9620_v58 = vsel %vm1920_vm10, inf, %v13891_v10  ;;  %7137 = vmatprep.subr.msk.mxu0 %vm1921_vm11, %v13885_v5  ;;  %v9624_v7 = vsel %vm1921_vm11, inf, %v13893_v35 }
 0x369   : > { %13892 = vst [vmem:[#allocation22_spill] sm:$0xff] %v9620_v58  ;;  %13894 = vst [vmem:[#allocation18_spill] sm:$0xff] %v9624_v7  ;;  %7138 = vmatpush1.xpose.msk.msra.mxu0 %vm1920_vm10, %v13885_v5  ;;  %v2262_v53 = vmin.f32 %v9620_v58, %v9624_v7 }
 0x36a   : > { %v1834_v61 = vpop.xlane.xlu1 %1833 }
 0x36b   : > { %vm1918_vm12 = vcmp.eq.f32.partialorder %v8904_v38, %v1834_v61  ;;  %2263 = vmin.xlane.f32.xlu1 %v2262_v53  ;;  %vm1919_vm13 = vcmp.eq.f32.partialorder %v8907_v33, %v1834_v61  ;;  %v13898_v53 = vld [vmem:[#allocation21_spill] sm:$0xff] }
 0x36c   : > { %v9632_v14 = vsel %vm1918_vm12, inf, %v13895_v1  ;;  %7139 = vmatprep.subr.msk.mxu0 %vm1919_vm13, %v13885_v5  ;;  %v9636_v15 = vsel %vm1919_vm13, inf, %v9104_v32  ;;  %v13900_v1 = vld [vmem:[#allocation13_spill] sm:$0xff] }
 0x36d   : > { %13896 = vst [vmem:[#allocation24_spill] sm:$0xff] %v9632_v14  ;;  %13897 = vst [vmem:[#allocation8_spill] sm:$0xff] %v9636_v15  ;;  %7140 = vmatpush1.xpose.msk.msra.mxu0 %vm1918_vm12, %v13885_v5  ;;  %v2259_v10 = vmin.f32 %v9632_v14, %v9636_v15 }
 0x36e   : > { %v1831_v35 = vpop.xlane.xlu1 %1830 }
 0x36f   : > { %vm1916_vm2 = vcmp.eq.f32.partialorder %v8904_v38, %v1831_v35  ;;  %2260 = vmin.xlane.f32.xlu1 %v2259_v10  ;;  %vm1917_vm3 = vcmp.eq.f32.partialorder %v8907_v33, %v1831_v35  ;;  %v13902_v35 = vld [vmem:[#allocation11_spill] sm:$0xff] }
 0x370   : > { %v9644_v61 = vsel %vm1916_vm2, inf, %v13898_v53  ;;  %7141 = vmatprep.subr.msk.mxu0 %vm1917_vm3, %v13885_v5  ;;  %v9648_v7 = vsel %vm1917_vm3, inf, %v13900_v1  ;;  %v13904_v1 = vld [vmem:[#allocation6_spill] sm:$0xff] }
 0x371   : > { %13899 = vst [vmem:[#allocation19_spill] sm:$0xff] %v9644_v61  ;;  %13901 = vst [vmem:[#allocation21_spill] sm:$0xff] %v9648_v7  ;;  %7142 = vmatpush1.xpose.msk.msra.mxu0 %vm1916_vm2, %v13885_v5  ;;  %v2256_v32 = vmin.f32 %v9644_v61, %v9648_v7 }
 0x372   : > { %v1828_v15 = vpop.xlane.xlu1 %1827  ;;  %v9653_v14 = vpop.xlane.xlu0 %1806 }
 0x373   : > { %vm1914_vm4 = vcmp.eq.f32.partialorder %v8904_v38, %v1828_v15  ;;  %vm1900_vm5 = vcmp.eq.f32.partialorder %v8904_v38, %v9653_v14  ;;  %vm1901_vm15 = vcmp.eq.f32.partialorder %v8907_v33, %v9653_v14  ;;  %2257 = vmin.xlane.f32.xlu1 %v2256_v32  ;;  %vm1915_vm6 = vcmp.eq.f32.partialorder %v8907_v33, %v1828_v15  ;;  %v13906_v32 = vld [vmem:[#allocation12_spill] sm:$0xff] }
 0x374   : > { %v9662_v10 = vsel %vm1914_vm4, inf, %v13875_v62  ;;  %v9668_v53 = vsel %vm1900_vm5, inf, %v13902_v35  ;;  %v9674_v7 = vsel %vm1901_vm15, inf, %v13904_v1  ;;  %7143 = vmatprep.subr.msk.mxu0 %vm1915_vm6, %v13885_v5  ;;  %v9678_v61 = vsel %vm1915_vm6, inf, %v13906_v32 }
 0x375   : > { %13903 = vst [vmem:[#allocation13_spill] sm:$0xff] %v9668_v53  ;;  %13905 = vst [vmem:[#allocation11_spill] sm:$0xff] %v9674_v7  ;;  %7144 = vmatpush1.xpose.msk.msra.mxu0 %vm1914_vm4, %v13885_v5  ;;  %v2253_v62 = vmin.f32 %v9662_v10, %v9678_v61  ;;  %v2232_v15 = vmin.f32 %v9668_v53, %v9674_v7 }
 0x376   : > { %13907 = vst [vmem:[#allocation6_spill] sm:$0xff] %v9678_v61  ;;  %v1825_v35 = vpop.xlane.xlu1 %1824 }
 0x377   : > { %vm1912_vm14 = vcmp.eq.f32.partialorder %v8904_v38, %v1825_v35  ;;  %2254 = vmin.xlane.f32.xlu1 %v2253_v62  ;;  %2233 = vmin.xlane.f32.xlu0 %v2232_v15  ;;  %vm1913_vm7 = vcmp.eq.f32.partialorder %v8907_v33, %v1825_v35 }
 0x378   : > { %v9688_v1 = vsel %vm1912_vm14, inf, %v9157_v34  ;;  %7145 = vmatprep.subr.msk.mxu0 %vm1913_vm7, %v13885_v5  ;;  %v9692_v32 = vsel %vm1913_vm7, inf, %v9160_v55 }
 0x379   : > { %7146 = vmatpush1.xpose.msk.msra.mxu0 %vm1912_vm14, %v13885_v5  ;;  %v2250_v7 = vmin.f32 %v9688_v1, %v9692_v32 }
 0x37a   : > { %v1822_v53 = vpop.xlane.xlu1 %1821 }
 0x37b   : > { %vm1910_vm8 = vcmp.eq.f32.partialorder %v8904_v38, %v1822_v53  ;;  %2251 = vmin.xlane.f32.xlu1 %v2250_v7  ;;  %vm1911_vm9 = vcmp.eq.f32.partialorder %v8907_v33, %v1822_v53  ;;  %v13908_v7 = vld [vmem:[#allocation16_spill] sm:$0xff] }
 0x37c   : > { %v9700_v62 = vsel %vm1910_vm8, inf, %v13877_v20  ;;  %7147 = vmatprep.subr.msk.mxu0 %vm1911_vm9, %v13885_v5  ;;  %v9704_v34 = vsel %vm1911_vm9, inf, %v13878_v40 }
 0x37d   : > { %7148 = vmatpush1.xpose.msk.msra.mxu0 %vm1910_vm8, %v13885_v5  ;;  %v2247_v55 = vmin.f32 %v9700_v62, %v9704_v34 }
 0x37e   : > { %v1819_v15 = vpop.xlane.xlu1 %1818 }
 0x37f   : > { %vm1908_vm10 = vcmp.eq.f32.partialorder %v8904_v38, %v1819_v15  ;;  %2248 = vmin.xlane.f32.xlu1 %v2247_v55  ;;  %vm1909_vm11 = vcmp.eq.f32.partialorder %v8907_v33, %v1819_v15  ;;  %v13910_v55 = vld [vmem:[#allocation7_spill] sm:$0xff] }
 0x380   : > { %v9712_v53 = vsel %vm1908_vm10, inf, %v13908_v7  ;;  %7149 = vmatprep.subr.msk.mxu0 %vm1909_vm11, %v13885_v5  ;;  %v9716_v20 = vsel %vm1909_vm11, inf, %v13879_v16 }
 0x381   : > { %13909 = vst [vmem:[#allocation12_spill] sm:$0xff] %v9716_v20  ;;  %7150 = vmatpush1.xpose.msk.msra.mxu0 %vm1908_vm10, %v13885_v5  ;;  %v2244_v40 = vmin.f32 %v9712_v53, %v9716_v20 }
 0x382   : > { %v1816_v35 = vpop.xlane.xlu1 %1815 }
 0x383   : > { %vm1906_vm12 = vcmp.eq.f32.partialorder %v8904_v38, %v1816_v35  ;;  %2245 = vmin.xlane.f32.xlu1 %v2244_v40  ;;  %vm1907_vm13 = vcmp.eq.f32.partialorder %v8907_v33, %v1816_v35 }
 0x384   : > { %v9724_v15 = vsel %vm1906_vm12, inf, %v13910_v55  ;;  %7151 = vmatprep.subr.msk.mxu0 %vm1907_vm13, %v13885_v5  ;;  %v9728_v7 = vsel %vm1907_vm13, inf, %v13880_v22 }
 0x385   : > { %7152 = vmatpush1.xpose.msk.msra.mxu0 %vm1906_vm12, %v13885_v5  ;;  %v2241_v16 = vmin.f32 %v9724_v15, %v9728_v7 }
 0x386   : > { %v1813_v20 = vpop.xlane.xlu1 %1812 }
 0x387   : > { %vm1904_vm2 = vcmp.eq.f32.partialorder %v8904_v38, %v1813_v20  ;;  %2242 = vmin.xlane.f32.xlu1 %v2241_v16  ;;  %vm1905_vm3 = vcmp.eq.f32.partialorder %v8907_v33, %v1813_v20 }
 0x388   : > { %v9736_v40 = vsel %vm1904_vm2, inf, %v9205_v4  ;;  %7153 = vmatprep.subr.msk.mxu0 %vm1905_vm3, %v13885_v5  ;;  %v9740_v35 = vsel %vm1905_vm3, inf, %v13881_v6 }
 0x389   : > { %7154 = vmatpush1.xpose.msk.msra.mxu0 %vm1904_vm2, %v13885_v5  ;;  %v2238_v22 = vmin.f32 %v9736_v40, %v9740_v35 }
 0x38a   : > { %v1810_v55 = vpop.xlane.xlu1 %1809 }
 0x38b   : > { %vm1902_vm4 = vcmp.eq.f32.partialorder %v8904_v38, %v1810_v55  ;;  %2239 = vmin.xlane.f32.xlu1 %v2238_v22  ;;  %vm1903_vm6 = vcmp.eq.f32.partialorder %v8907_v33, %v1810_v55 }
 0x38c   : > { %v9748_v20 = vsel %vm1902_vm4, inf, %v9217_v0  ;;  %7155 = vmatprep.subr.msk.mxu0 %vm1903_vm6, %v13885_v5  ;;  %v9752_v4 = vsel %vm1903_vm6, inf, %v9220_v30 }
 0x38d   : > { %7156 = vmatpush1.xpose.msk.msra.mxu0 %vm1902_vm4, %v13885_v5  ;;  %v2235_v6 = vmin.f32 %v9748_v20, %v9752_v4 }
 0x38e   : > { %v1804_v16 = vpop.xlane.xlu1 %1803  ;;  %7157 = vmatprep.subr.msk.mxu0 %vm1901_vm15, %v13885_v5 }
 0x38f   : > { %vm1898_vm14 = vcmp.eq.f32.partialorder %v8904_v38, %v1804_v16  ;;  %2236 = vmin.xlane.f32.xlu1 %v2235_v6  ;;  %vm1899_vm7 = vcmp.eq.f32.partialorder %v8907_v33, %v1804_v16  ;;  %v13913_v16 = vld [vmem:[#allocation9_spill] sm:$0xff] }
 0x390   : > { %v9764_v0 = vsel %vm1898_vm14, inf, %v9232_v63  ;;  %v9767_v30 = vsel %vm1899_vm7, inf, %v9235_v3 }
 0x391   : > { %13911 = vst [vmem:[#allocation16_spill] sm:$0xff] %v9764_v0  ;;  %7158 = vmatpush1.xpose.msk.msra.mxu0 %vm1900_vm5, %v13885_v5  ;;  %v2229_v22 = vmin.f32 %v9764_v0, %v9767_v30 }
 0x392   : > { %7159 = vmatprep.subr.msk.mxu0 %vm1899_vm7, %v13885_v5 }
 0x393   : > { %2230 = vmin.xlane.f32.xlu1 %v2229_v22  ;;  %v1894_v55 = vpop.xlane.xlu1 %1893 }
 0x394   : > { %vm1958_vm15 = vcmp.eq.f32.partialorder %v8904_v38, %v1894_v55  ;;  %vm1959_vm8 = vcmp.eq.f32.partialorder %v8907_v33, %v1894_v55 }
 0x395   : > { %v9781_v63 = vsel %vm1958_vm15, inf, %v9250_v42  ;;  %v9784_v3 = vsel %vm1959_vm8, inf, %v9253_v19  ;;  %7160 = vmatpush1.xpose.msk.msra.mxu0 %vm1898_vm14, %v13885_v5 }
 0x396   : > { %13912 = vst [vmem:[#allocation7_spill] sm:$0xff] %v9784_v3  ;;  %v2319_v14 = vmin.f32 %v9781_v63, %v9784_v3 }
 0x397   : > { %v1897_v6 = vpop.xlane.xlu0 %1896 }
 0x398   : > { %vm1960_vm5 = vcmp.eq.f32.partialorder %v8904_v38, %v1897_v6  ;;  %2320 = vmin.xlane.f32.xlu1 %v2319_v14  ;;  %vm1961_vm9 = vcmp.eq.f32.partialorder %v8907_v33, %v1897_v6 }
 0x399   : > { %v9792_v22 = vsel %vm1960_vm5, inf, %v13913_v16  ;;  %7161 = vmatprep.subr.msk.mxu0 %vm1961_vm9, %v13885_v5  ;;  %v9796_v42 = vsel %vm1961_vm9, inf, %v13882_v56 }
 0x39a   : > { %7162 = vmatpush2.xpose.msk.msra.mxu0 %vm1960_vm5, %v13885_v5  ;;  %v2322_v19 = vmin.f32 %v9792_v22, %v9796_v42 }
 0x39b   : > { %7163 = vmatprep.subr.msk.mxu0 %vm1959_vm8, %v13885_v5  ;;  %v1891_v3 = vpop.xlane.xlu0 %1890 }
 0x39c   : > { %vm1956_vm10 = vcmp.eq.f32.partialorder %v8904_v38, %v1891_v3  ;;  %2323 = vmin.xlane.f32.xlu0 %v2322_v19  ;;  %vm1957_vm11 = vcmp.eq.f32.partialorder %v8907_v33, %v1891_v3 }
 0x39d   : > { %v9805_v14 = vsel %vm1956_vm10, inf, %v9273_v52  ;;  %v9808_v6 = vsel %vm1957_vm11, inf, %v9276_v43 }
 0x39e   : > { %7164 = vmatpush2.xpose.msk.msra.mxu0 %vm1958_vm15, %v13885_v5  ;;  %v2316_v56 = vmin.f32 %v9805_v14, %v9808_v6 }
 0x39f   : > { %7165 = vmatprep.subr.msk.mxu0 %vm1957_vm11, %v13885_v5  ;;  %v1888_v16 = vpop.xlane.xlu0 %1887 }
 0x3a0   : > { %vm1954_vm12 = vcmp.eq.f32.partialorder %v8904_v38, %v1888_v16  ;;  %2317 = vmin.xlane.f32.xlu0 %v2316_v56  ;;  %vm1955_vm13 = vcmp.eq.f32.partialorder %v8907_v33, %v1888_v16 }
 0x3a1   : > { %v9819_v52 = vsel %vm1954_vm12, inf, %v9287_v8  ;;  %v9822_v43 = vsel %vm1955_vm13, inf, %v9290_v28 }
 0x3a2   : > { %7166 = vmatpush2.xpose.msk.msra.mxu0 %vm1956_vm10, %v13885_v5  ;;  %v2313_v55 = vmin.f32 %v9819_v52, %v9822_v43 }
 0x3a3   : > { %7167 = vmatprep.subr.msk.mxu0 %vm1955_vm13, %v13885_v5  ;;  %v1885_v3 = vpop.xlane.xlu0 %1884 }
 0x3a4   : > { %vm1952_vm2 = vcmp.eq.f32.partialorder %v8904_v38, %v1885_v3  ;;  %2314 = vmin.xlane.f32.xlu0 %v2313_v55  ;;  %vm1953_vm3 = vcmp.eq.f32.partialorder %v8907_v33, %v1885_v3 }
 0x3a5   : > { %v9831_v19 = vsel %vm1952_vm2, inf, %v9299_v60  ;;  %v9834_v8 = vsel %vm1953_vm3, inf, %v9302_v39 }
 0x3a6   : > { %7168 = vmatpush2.xpose.msk.msra.mxu0 %vm1954_vm12, %v13885_v5  ;;  %v2310_v28 = vmin.f32 %v9831_v19, %v9834_v8 }
 0x3a7   : > { %7169 = vmatprep.subr.msk.mxu0 %vm1953_vm3, %v13885_v5  ;;  %v1882_v56 = vpop.xlane.xlu0 %1881 }
 0x3a8   : > { %vm1950_vm4 = vcmp.eq.f32.partialorder %v8904_v38, %v1882_v56  ;;  %2311 = vmin.xlane.f32.xlu0 %v2310_v28  ;;  %vm1951_vm6 = vcmp.eq.f32.partialorder %v8907_v33, %v1882_v56 }
 0x3a9   : > { %v9843_v16 = vsel %vm1950_vm4, inf, %v9311_v12  ;;  %v9846_v60 = vsel %vm1951_vm6, inf, %v9314_v17 }
 0x3aa   : > { %7170 = vmatpush2.xpose.msk.msra.mxu0 %vm1952_vm2, %v13885_v5  ;;  %v2307_v39 = vmin.f32 %v9843_v16, %v9846_v60 }
 0x3ab   : > { %7171 = vmatprep.subr.msk.mxu0 %vm1951_vm6, %v13885_v5  ;;  %v1879_v55 = vpop.xlane.xlu0 %1878 }
 0x3ac   : > { %vm1948_vm14 = vcmp.eq.f32.partialorder %v8904_v38, %v1879_v55  ;;  %2308 = vmin.xlane.f32.xlu0 %v2307_v39  ;;  %vm1949_vm7 = vcmp.eq.f32.partialorder %v8907_v33, %v1879_v55 }
 0x3ad   : > { %v9855_v3 = vsel %vm1948_vm14, inf, %v9323_v26  ;;  %v9858_v12 = vsel %vm1949_vm7, inf, %v9326_v13 }
 0x3ae   : > { %7172 = vmatpush2.xpose.msk.msra.mxu0 %vm1950_vm4, %v13885_v5  ;;  %v2304_v17 = vmin.f32 %v9855_v3, %v9858_v12 }
 0x3af   : > { %7173 = vmatprep.subr.msk.mxu0 %vm1949_vm7, %v13885_v5  ;;  %v1876_v28 = vpop.xlane.xlu0 %1875 }
 0x3b0   : > { %vm1946_vm15 = vcmp.eq.f32.partialorder %v8904_v38, %v1876_v28  ;;  %2305 = vmin.xlane.f32.xlu0 %v2304_v17  ;;  %vm1947_vm8 = vcmp.eq.f32.partialorder %v8907_v33, %v1876_v28 }
 0x3b1   : > { %v9867_v56 = vsel %vm1946_vm15, inf, %v9335_v11  ;;  %v9870_v26 = vsel %vm1947_vm8, inf, %v9338_v27 }
 0x3b2   : > { %7174 = vmatpush2.xpose.msk.msra.mxu0 %vm1948_vm14, %v13885_v5  ;;  %v2301_v13 = vmin.f32 %v9867_v56, %v9870_v26 }
 0x3b3   : > { %7175 = vmatprep.subr.msk.mxu0 %vm1947_vm8, %v13885_v5  ;;  %v1873_v39 = vpop.xlane.xlu0 %1872 }
 0x3b4   : > { %vm1944_vm5 = vcmp.eq.f32.partialorder %v8904_v38, %v1873_v39  ;;  %2302 = vmin.xlane.f32.xlu0 %v2301_v13  ;;  %vm1945_vm9 = vcmp.eq.f32.partialorder %v8907_v33, %v1873_v39 }
 0x3b5   : > { %v9879_v55 = vsel %vm1944_vm5, inf, %v9347_v45  ;;  %v9882_v11 = vsel %vm1945_vm9, inf, %v9350_v44 }
 0x3b6   : > { %7176 = vmatpush2.xpose.msk.msra.mxu0 %vm1946_vm15, %v13885_v5  ;;  %v2298_v27 = vmin.f32 %v9879_v55, %v9882_v11 }
 0x3b7   : > { %7177 = vmatprep.subr.msk.mxu0 %vm1945_vm9, %v13885_v5  ;;  %v1870_v17 = vpop.xlane.xlu0 %1869 }
 0x3b8   : > { %vm1942_vm10 = vcmp.eq.f32.partialorder %v8904_v38, %v1870_v17  ;;  %2299 = vmin.xlane.f32.xlu0 %v2298_v27  ;;  %vm1943_vm11 = vcmp.eq.f32.partialorder %v8907_v33, %v1870_v17 }
 0x3b9   : > { %v9891_v28 = vsel %vm1942_vm10, inf, %v9359_v18  ;;  %v9894_v45 = vsel %vm1943_vm11, inf, %v9362_v46 }
 0x3ba   : > { %7178 = vmatpush2.xpose.msk.msra.mxu0 %vm1944_vm5, %v13885_v5  ;;  %v2295_v44 = vmin.f32 %v9891_v28, %v9894_v45 }
 0x3bb   : > { %7179 = vmatprep.subr.msk.mxu0 %vm1943_vm11, %v13885_v5  ;;  %v1867_v13 = vpop.xlane.xlu0 %1866 }
 0x3bc   : > { %vm1940_vm12 = vcmp.eq.f32.partialorder %v8904_v38, %v1867_v13  ;;  %2296 = vmin.xlane.f32.xlu0 %v2295_v44  ;;  %vm1941_vm13 = vcmp.eq.f32.partialorder %v8907_v33, %v1867_v13 }
 0x3bd   : > { %v9903_v39 = vsel %vm1940_vm12, inf, %v9371_v50  ;;  %v9906_v18 = vsel %vm1941_vm13, inf, %v9374_v51 }
 0x3be   : > { %7180 = vmatpush2.xpose.msk.msra.mxu0 %vm1942_vm10, %v13885_v5  ;;  %v2292_v46 = vmin.f32 %v9903_v39, %v9906_v18 }
 0x3bf   : > { %7181 = vmatprep.subr.msk.mxu0 %vm1941_vm13, %v13885_v5  ;;  %v1864_v27 = vpop.xlane.xlu0 %1863 }
 0x3c0   : > { %vm1938_vm2 = vcmp.eq.f32.partialorder %v8904_v38, %v1864_v27  ;;  %2293 = vmin.xlane.f32.xlu0 %v2292_v46  ;;  %vm1939_vm3 = vcmp.eq.f32.partialorder %v8907_v33, %v1864_v27 }
 0x3c1   : > { %v9915_v17 = vsel %vm1938_vm2, inf, %v9383_v24  ;;  %v9918_v50 = vsel %vm1939_vm3, inf, %v9386_v9 }
 0x3c2   : > { %7182 = vmatpush2.xpose.msk.msra.mxu0 %vm1940_vm12, %v13885_v5  ;;  %v2289_v51 = vmin.f32 %v9915_v17, %v9918_v50 }
 0x3c3   : > { %7183 = vmatprep.subr.msk.mxu0 %vm1939_vm3, %v13885_v5  ;;  %v1861_v44 = vpop.xlane.xlu0 %1860 }
 0x3c4   : > { %vm1936_vm4 = vcmp.eq.f32.partialorder %v8904_v38, %v1861_v44  ;;  %2290 = vmin.xlane.f32.xlu0 %v2289_v51  ;;  %vm1937_vm6 = vcmp.eq.f32.partialorder %v8907_v33, %v1861_v44  ;;  %v13914_v44 = vld [vmem:[#allocation14_spill] sm:$0xff] }
 0x3c5   : > { %v9927_v13 = vsel %vm1936_vm4, inf, %v9395_v57  ;;  %v9930_v24 = vsel %vm1937_vm6, inf, %v9398_v29 }
 0x3c6   : > { %7184 = vmatpush2.xpose.msk.msra.mxu0 %vm1938_vm2, %v13885_v5  ;;  %v2286_v9 = vmin.f32 %v9927_v13, %v9930_v24 }
 0x3c7   : > { %7185 = vmatprep.subr.msk.mxu0 %vm1937_vm6, %v13885_v5  ;;  %v1858_v46 = vpop.xlane.xlu0 %1857 }
 0x3c8   : > { %vm1934_vm14 = vcmp.eq.f32.partialorder %v8904_v38, %v1858_v46  ;;  %2287 = vmin.xlane.f32.xlu0 %v2286_v9  ;;  %vm1935_vm7 = vcmp.eq.f32.partialorder %v8907_v33, %v1858_v46 }
 0x3c9   : > { %v9939_v27 = vsel %vm1934_vm14, inf, %v9407_v31  ;;  %v9942_v57 = vsel %vm1935_vm7, inf, %v9410_v49 }
 0x3ca   : > { %7186 = vmatpush2.xpose.msk.msra.mxu0 %vm1936_vm4, %v13885_v5  ;;  %v2283_v29 = vmin.f32 %v9939_v27, %v9942_v57 }
 0x3cb   : > { %7187 = vmatprep.subr.msk.mxu0 %vm1935_vm7, %v13885_v5  ;;  %v1855_v51 = vpop.xlane.xlu0 %1854 }
 0x3cc   : > { %vm1932_vm15 = vcmp.eq.f32.partialorder %v8904_v38, %v1855_v51  ;;  %2284 = vmin.xlane.f32.xlu0 %v2283_v29  ;;  %vm1933_vm8 = vcmp.eq.f32.partialorder %v8907_v33, %v1855_v51 }
 0x3cd   : > { %v9951_v9 = vsel %vm1932_vm15, inf, %v13914_v44  ;;  %v9954_v31 = vsel %vm1933_vm8, inf, %v9422_v25 }
 0x3ce   : > { %7188 = vmatpush2.xpose.msk.msra.mxu0 %vm1934_vm14, %v13885_v5  ;;  %v2280_v49 = vmin.f32 %v9951_v9, %v9954_v31 }
 0x3cf   : > { %7189 = vmatprep.subr.msk.mxu0 %vm1933_vm8, %v13885_v5  ;;  %v1852_v46 = vpop.xlane.xlu0 %1851 }
 0x3d0   : > { %vm1930_vm5 = vcmp.eq.f32.partialorder %v8904_v38, %v1852_v46  ;;  %2281 = vmin.xlane.f32.xlu0 %v2280_v49  ;;  %vm1931_vm9 = vcmp.eq.f32.partialorder %v8907_v33, %v1852_v46 }
 0x3d1   : > { %v9963_v29 = vsel %vm1930_vm5, inf, %v9431_v37  ;;  %v9966_v51 = vsel %vm1931_vm9, inf, %v13883_v36 }
 0x3d2   : > { %13915 = vst [vmem:[#allocation9_spill] sm:$0xff] %v9963_v29  ;;  %7190 = vmatpush2.xpose.msk.msra.mxu0 %vm1932_vm15, %v13885_v5  ;;  %v2277_v25 = vmin.f32 %v9963_v29, %v9966_v51 }
 0x3d3   : > { %7191 = vmatprep.subr.msk.mxu0 %vm1931_vm9, %v13885_v5 }
 0x3d4   : > { %2278 = vmin.xlane.f32.xlu0 %v2277_v25 }
 0x3d6   : > { %7192 = vmatpush2.xpose.msk.msra.mxu0 %vm1930_vm5, %v13885_v5 }
 0x3e4   : > { %v2276_v44 = vpop.xlane.xlu1 %2275 }
 0x3e5   : > { %vm2355_vm10 = vcmp.eq.f32.partialorder %v9572_v54, %v2276_v44  ;;  %vm2356_vm11 = vcmp.eq.f32.partialorder %v9576_v2, %v2276_v44  ;;  %v922_v44 = vld [vmem:[%s13510_s2] sm:$0xff] }
 0x3e6   : > { %v2419_v37 = vsel %vm2355_vm10, %v8904_v38, 256.0  ;;  %v2420_v36 = vsel %vm2356_vm11, %v8907_v33, 256.0 }
 0x3e7   : > { %v2498_v49 = vmin.f32 %v2419_v37, %v2420_v36  ;;  %v8142_v37 = vld [vmem:[%s8287_s6] sm:$0xff]  ;;  %s8143_s6 = scalar_lea.vmem %s6824_s27, 128 }
 0x3e8   : > { %v2273_v46 = vpop.xlane.xlu1 %2272  ;;  %v9987_v36 = vadd.f32 %v8142_v37, %v922_v44  ;;  %v13918_v37 = vld [vmem:[#allocation18_spill] sm:$0xff]  ;;  %p8144_p11 = scmp.ne.s32.totalorder %s6824_s27, %s8143_s6  ;;  %p8151_p1 = scmp.lt.s32.totalorder %s8149_s19, %s8143_s6 }
 0x3e9   : > { %vm2353_vm12 = vcmp.eq.f32.partialorder %v9584_v41, %v2273_v46  ;;  %vm2354_vm13 = vcmp.eq.f32.partialorder %v9588_v47, %v2273_v46  ;;  %2499 = vmin.xlane.f32.xlu1 %v2498_v49 }
 0x3ea   : > { %v2417_v25 = vsel %vm2353_vm12, %v8904_v38, 256.0  ;;  %v2418_v5 = vsel %vm2354_vm13, %v8907_v33, 256.0  ;;  %13916 = vst [vmem:[#allocation14_spill] sm:$0xff] %v9987_v36  ;;  %p8145_p12 = pnand %p8144_p11, %p8271_p5  ;;  %p8152_p2 = por %p8151_p1, %p8150_p0 }
 0x3eb   : > { %v2495_v2 = vmin.f32 %v2417_v25, %v2418_v5 }
 0x3ec   : > { %v2270_v54 = vpop.xlane.xlu1 %2269  ;;  %p8146_p13 = pneg %p8145_p12 }
 0x3ed   : > { %vm2351_vm2 = vcmp.eq.f32.partialorder %v9596_v59, %v2270_v54  ;;  %vm2352_vm3 = vcmp.eq.f32.partialorder %v9600_v21, %v2270_v54  ;;  %2496 = vmin.xlane.f32.xlu1 %v2495_v2  ;;  %v9997_v54 = vcombine.high %v9987_v36, %v9987_v36 }
 0x3ee   : > { %v2415_v49 = vsel %vm2351_vm2, %v8904_v38, 256.0  ;;  %v2416_v46 = vsel %vm2352_vm3, %v8907_v33, 256.0  ;;  %p8153_p3 = pnand %p8152_p2, %p8146_p13 }
 0x3ef   : > { %v2492_v47 = vmin.f32 %v2415_v49, %v2416_v46  ;;  %13917 = vst [vmem:[#allocation25_spill] sm:$0xff] %v9997_v54  ;;  %1503 = vmatprep.mubr.f32.mxu1 %v9997_v54  ;;  %2154 = vmatprep.mubr.f32.mxu0 %v9997_v54 }
 0x3f0   : > { %v2267_v41 = vpop.xlane.xlu1 %2266  ;;  %1504 = vmatmul.mubr.f32.vlgmr.msra.gmra.mxu1 %v9987_v36  ;;  %2155 = vmatmul.mubr.f32.vlgmr.msra.gmra.mxu0 %v9987_v36  ;;  %v13922_v36 = vld [vmem:[#allocation21_spill] sm:$0xff] }
 0x3f1   : > { %vm2349_vm4 = vcmp.eq.f32.partialorder %v9608_v48, %v2267_v41  ;;  %vm2350_vm6 = vcmp.eq.f32.partialorder %v9612_v23, %v2267_v41  ;;  %2493 = vmin.xlane.f32.xlu1 %v2492_v47  ;;  %2805 = vmatprep.mubr.f32.mxu1 %v9997_v54  ;;  %v13921_v23 = vld [vmem:[#allocation19_spill] sm:$0xff] }
 0x3f2   : > { %v2413_v5 = vsel %vm2349_vm4, %v8904_v38, 256.0  ;;  %v2414_v25 = vsel %vm2350_vm6, %v8907_v33, 256.0  ;;  %3456 = vmatprep.mubr.f32.mxu0 %v9997_v54 }
 0x3f3   : > { %v2489_v2 = vmin.f32 %v2413_v5, %v2414_v25  ;;  %v13919_v5 = vld [vmem:[#allocation24_spill] sm:$0xff] }
 0x3f4   : > { %v2264_v44 = vpop.xlane.xlu1 %2263  ;;  %v13920_v25 = vld [vmem:[#allocation8_spill] sm:$0xff] }
 0x3f5   : > { %vm2347_vm14 = vcmp.eq.f32.partialorder %v9620_v58, %v2264_v44  ;;  %vm2348_vm7 = vcmp.eq.f32.partialorder %v13918_v37, %v2264_v44  ;;  %2490 = vmin.xlane.f32.xlu1 %v2489_v2 }
 0x3f6   : > { %v2411_v41 = vsel %vm2347_vm14, %v8904_v38, 256.0  ;;  %v2412_v47 = vsel %vm2348_vm7, %v8907_v33, 256.0 }
 0x3f7   : > { %v2486_v49 = vmin.f32 %v2411_v41, %v2412_v47 }
 0x3f8   : > { %v2261_v46 = vpop.xlane.xlu1 %2260 }
 0x3f9   : > { %vm2345_vm15 = vcmp.eq.f32.partialorder %v13919_v5, %v2261_v46  ;;  %vm2346_vm8 = vcmp.eq.f32.partialorder %v13920_v25, %v2261_v46  ;;  %2487 = vmin.xlane.f32.xlu1 %v2486_v49  ;;  %v13923_v49 = vld [vmem:[#allocation13_spill] sm:$0xff]  ;;  %v13924_v46 = vld [vmem:[#allocation11_spill] sm:$0xff] }
 0x3fa   : > { %v2409_v2 = vsel %vm2345_vm15, %v8904_v38, 256.0  ;;  %v2410_v44 = vsel %vm2346_vm8, %v8907_v33, 256.0 }
 0x3fb   : > { %v2483_v37 = vmin.f32 %v2409_v2, %v2410_v44 }
 0x3fc   : > { %v2258_v58 = vpop.xlane.xlu1 %2257 }
 0x3fd   : > { %vm2343_vm5 = vcmp.eq.f32.partialorder %v13921_v23, %v2258_v58  ;;  %vm2344_vm9 = vcmp.eq.f32.partialorder %v13922_v36, %v2258_v58  ;;  %2484 = vmin.xlane.f32.xlu1 %v2483_v37 }
 0x3fe   : > { %v2407_v41 = vsel %vm2343_vm5, %v8904_v38, 256.0  ;;  %v2408_v47 = vsel %vm2344_vm9, %v8907_v33, 256.0 }
 0x3ff   : > { %v2480_v54 = vmin.f32 %v2407_v41, %v2408_v47 }
 0x400   : > { %v2255_v5 = vpop.xlane.xlu1 %2254  ;;  %v2234_v48 = vpop.xlane.xlu0 %2233 }
 0x401   : > { %vm2341_vm10 = vcmp.eq.f32.partialorder %v9662_v10, %v2255_v5  ;;  %vm2342_vm11 = vcmp.eq.f32.partialorder %v9678_v61, %v2255_v5  ;;  %vm2327_vm12 = vcmp.eq.f32.partialorder %v13923_v49, %v2234_v48  ;;  %vm2328_vm13 = vcmp.eq.f32.partialorder %v13924_v46, %v2234_v48  ;;  %2481 = vmin.xlane.f32.xlu1 %v2480_v54 }
 0x402   : > { %v2405_v2 = vsel %vm2341_vm10, %v8904_v38, 256.0  ;;  %v2406_v58 = vsel %vm2342_vm11, %v8907_v33, 256.0  ;;  %v2391_v37 = vsel %vm2327_vm12, %v8904_v38, 256.0  ;;  %v2392_v44 = vsel %vm2328_vm13, %v8907_v33, 256.0 }
 0x403   : > { %v2477_v41 = vmin.f32 %v2405_v2, %v2406_v58  ;;  %v2456_v47 = vmin.f32 %v2391_v37, %v2392_v44 }
 0x404   : > { %v2252_v36 = vpop.xlane.xlu1 %2251 }
 0x405   : > { %vm2339_vm2 = vcmp.eq.f32.partialorder %v9688_v1, %v2252_v36  ;;  %vm2340_vm3 = vcmp.eq.f32.partialorder %v9692_v32, %v2252_v36  ;;  %2478 = vmin.xlane.f32.xlu1 %v2477_v41  ;;  %2457 = vmin.xlane.f32.xlu0 %v2456_v47  ;;  %v13925_v36 = vld [vmem:[#allocation12_spill] sm:$0xff] }
 0x406   : > { %v2403_v48 = vsel %vm2339_vm2, %v8904_v38, 256.0  ;;  %v2404_v54 = vsel %vm2340_vm3, %v8907_v33, 256.0 }
 0x407   : > { %v2474_v5 = vmin.f32 %v2403_v48, %v2404_v54 }
 0x408   : > { %v2249_v61 = vpop.xlane.xlu1 %2248 }
 0x409   : > { %vm2337_vm4 = vcmp.eq.f32.partialorder %v9700_v62, %v2249_v61  ;;  %vm2338_vm6 = vcmp.eq.f32.partialorder %v9704_v34, %v2249_v61  ;;  %2475 = vmin.xlane.f32.xlu1 %v2474_v5 }
 0x40a   : > { %v2401_v2 = vsel %vm2337_vm4, %v8904_v38, 256.0  ;;  %v2402_v58 = vsel %vm2338_vm6, %v8907_v33, 256.0 }
 0x40b   : > { %v2471_v37 = vmin.f32 %v2401_v2, %v2402_v58 }
 0x40c   : > { %v2246_v44 = vpop.xlane.xlu1 %2245 }
 0x40d   : > { %vm2335_vm14 = vcmp.eq.f32.partialorder %v9712_v53, %v2246_v44  ;;  %vm2336_vm7 = vcmp.eq.f32.partialorder %v13925_v36, %v2246_v44  ;;  %2472 = vmin.xlane.f32.xlu1 %v2471_v37 }
 0x40e   : > { %v2399_v41 = vsel %vm2335_vm14, %v8904_v38, 256.0  ;;  %v2400_v47 = vsel %vm2336_vm7, %v8907_v33, 256.0 }
 0x40f   : > { %v2468_v48 = vmin.f32 %v2399_v41, %v2400_v47 }
 0x410   : > { %v2243_v54 = vpop.xlane.xlu1 %2242 }
 0x411   : > { %vm2333_vm15 = vcmp.eq.f32.partialorder %v9724_v15, %v2243_v54  ;;  %vm2334_vm8 = vcmp.eq.f32.partialorder %v9728_v7, %v2243_v54  ;;  %2469 = vmin.xlane.f32.xlu1 %v2468_v48 }
 0x412   : > { %v2397_v61 = vsel %vm2333_vm15, %v8904_v38, 256.0  ;;  %v2398_v5 = vsel %vm2334_vm8, %v8907_v33, 256.0 }
 0x413   : > { %v2465_v2 = vmin.f32 %v2397_v61, %v2398_v5 }
 0x414   : > { %v2240_v58 = vpop.xlane.xlu1 %2239 }
 0x415   : > { %vm2331_vm5 = vcmp.eq.f32.partialorder %v9736_v40, %v2240_v58  ;;  %vm2332_vm9 = vcmp.eq.f32.partialorder %v9740_v35, %v2240_v58  ;;  %2466 = vmin.xlane.f32.xlu1 %v2465_v2 }
 0x416   : > { %v2395_v37 = vsel %vm2331_vm5, %v8904_v38, 256.0  ;;  %v2396_v44 = vsel %vm2332_vm9, %v8907_v33, 256.0 }
 0x417   : > { %v2462_v41 = vmin.f32 %v2395_v37, %v2396_v44 }
 0x418   : > { %v2237_v47 = vpop.xlane.xlu1 %2236 }
 0x419   : > { %vm2329_vm10 = vcmp.eq.f32.partialorder %v9748_v20, %v2237_v47  ;;  %vm2330_vm11 = vcmp.eq.f32.partialorder %v9752_v4, %v2237_v47  ;;  %2463 = vmin.xlane.f32.xlu1 %v2462_v41  ;;  %v13926_v41 = vld [vmem:[#allocation7_spill] sm:$0xff] }
 0x41a   : > { %v2393_v48 = vsel %vm2329_vm10, %v8904_v38, 256.0  ;;  %v2394_v54 = vsel %vm2330_vm11, %v8907_v33, 256.0 }
 0x41b   : > { %v2459_v61 = vmin.f32 %v2393_v48, %v2394_v54 }
 0x41c   : > { %v2231_v5 = vpop.xlane.xlu1 %2230 }
 0x41d   : > { %vm2325_vm12 = vcmp.eq.f32.partialorder %v9764_v0, %v2231_v5  ;;  %vm2326_vm13 = vcmp.eq.f32.partialorder %v9767_v30, %v2231_v5  ;;  %2460 = vmin.xlane.f32.xlu1 %v2459_v61 }
 0x41e   : > { %v2389_v2 = vsel %vm2325_vm12, %v8904_v38, 256.0  ;;  %v2390_v58 = vsel %vm2326_vm13, %v8907_v33, 256.0 }
 0x41f   : > { %v2453_v37 = vmin.f32 %v2389_v2, %v2390_v58 }
 0x421   : > { %2454 = vmin.xlane.f32.xlu1 %v2453_v37  ;;  %v2321_v44 = vpop.xlane.xlu1 %2320 }
 0x422   : > { %vm2385_vm2 = vcmp.eq.f32.partialorder %v9781_v63, %v2321_v44  ;;  %vm2386_vm3 = vcmp.eq.f32.partialorder %v13926_v41, %v2321_v44 }
 0x423   : > { %v2449_v47 = vsel %vm2385_vm2, %v8904_v38, 256.0  ;;  %v2450_v48 = vsel %vm2386_vm3, %v8907_v33, 256.0 }
 0x424   : > { %v2543_v54 = vmin.f32 %v2449_v47, %v2450_v48 }
 0x425   : > { %v2324_v0 = vpop.xlane.xlu0 %2323 }
 0x426   : > { %vm2387_vm4 = vcmp.eq.f32.partialorder %v9792_v22, %v2324_v0  ;;  %vm2388_vm6 = vcmp.eq.f32.partialorder %v9796_v42, %v2324_v0  ;;  %2544 = vmin.xlane.f32.xlu1 %v2543_v54 }
 0x427   : > { %v2451_v61 = vsel %vm2387_vm4, %v8904_v38, 256.0  ;;  %v2452_v5 = vsel %vm2388_vm6, %v8907_v33, 256.0 }
 0x428   : > { %v2546_v2 = vmin.f32 %v2451_v61, %v2452_v5 }
 0x429   : > { %v2318_v58 = vpop.xlane.xlu0 %2317 }
 0x42a   : > { %vm2383_vm14 = vcmp.eq.f32.partialorder %v9805_v14, %v2318_v58  ;;  %vm2384_vm7 = vcmp.eq.f32.partialorder %v9808_v6, %v2318_v58  ;;  %2547 = vmin.xlane.f32.xlu0 %v2546_v2 }
 0x42b   : > { %v2447_v37 = vsel %vm2383_vm14, %v8904_v38, 256.0  ;;  %v2448_v44 = vsel %vm2384_vm7, %v8907_v33, 256.0 }
 0x42c   : > { %v2540_v47 = vmin.f32 %v2447_v37, %v2448_v44 }
 0x42d   : > { %v2315_v48 = vpop.xlane.xlu0 %2314 }
 0x42e   : > { %vm2381_vm15 = vcmp.eq.f32.partialorder %v9819_v52, %v2315_v48  ;;  %vm2382_vm8 = vcmp.eq.f32.partialorder %v9822_v43, %v2315_v48  ;;  %2541 = vmin.xlane.f32.xlu0 %v2540_v47 }
 0x42f   : > { %v2445_v0 = vsel %vm2381_vm15, %v8904_v38, 256.0  ;;  %v2446_v54 = vsel %vm2382_vm8, %v8907_v33, 256.0 }
 0x430   : > { %v2537_v61 = vmin.f32 %v2445_v0, %v2446_v54 }
 0x431   : > { %v2312_v5 = vpop.xlane.xlu0 %2311 }
 0x432   : > { %vm2379_vm5 = vcmp.eq.f32.partialorder %v9831_v19, %v2312_v5  ;;  %vm2380_vm9 = vcmp.eq.f32.partialorder %v9834_v8, %v2312_v5  ;;  %2538 = vmin.xlane.f32.xlu0 %v2537_v61 }
 0x433   : > { %v2443_v2 = vsel %vm2379_vm5, %v8904_v38, 256.0  ;;  %v2444_v58 = vsel %vm2380_vm9, %v8907_v33, 256.0 }
 0x434   : > { %v2534_v37 = vmin.f32 %v2443_v2, %v2444_v58 }
 0x435   : > { %v2309_v44 = vpop.xlane.xlu0 %2308 }
 0x436   : > { %vm2377_vm10 = vcmp.eq.f32.partialorder %v9843_v16, %v2309_v44  ;;  %vm2378_vm11 = vcmp.eq.f32.partialorder %v9846_v60, %v2309_v44  ;;  %2535 = vmin.xlane.f32.xlu0 %v2534_v37 }
 0x437   : > { %v2441_v47 = vsel %vm2377_vm10, %v8904_v38, 256.0  ;;  %v2442_v48 = vsel %vm2378_vm11, %v8907_v33, 256.0 }
 0x438   : > { %v2531_v0 = vmin.f32 %v2441_v47, %v2442_v48 }
 0x439   : > { %v2306_v54 = vpop.xlane.xlu0 %2305 }
 0x43a   : > { %vm2375_vm12 = vcmp.eq.f32.partialorder %v9855_v3, %v2306_v54  ;;  %vm2376_vm13 = vcmp.eq.f32.partialorder %v9858_v12, %v2306_v54  ;;  %2532 = vmin.xlane.f32.xlu0 %v2531_v0 }
 0x43b   : > { %v2439_v61 = vsel %vm2375_vm12, %v8904_v38, 256.0  ;;  %v2440_v5 = vsel %vm2376_vm13, %v8907_v33, 256.0 }
 0x43c   : > { %v2528_v2 = vmin.f32 %v2439_v61, %v2440_v5 }
 0x43d   : > { %v2303_v58 = vpop.xlane.xlu0 %2302 }
 0x43e   : > { %vm2373_vm2 = vcmp.eq.f32.partialorder %v9867_v56, %v2303_v58  ;;  %vm2374_vm3 = vcmp.eq.f32.partialorder %v9870_v26, %v2303_v58  ;;  %2529 = vmin.xlane.f32.xlu0 %v2528_v2 }
 0x43f   : > { %v2437_v37 = vsel %vm2373_vm2, %v8904_v38, 256.0  ;;  %v2438_v44 = vsel %vm2374_vm3, %v8907_v33, 256.0 }
 0x440   : > { %v2525_v47 = vmin.f32 %v2437_v37, %v2438_v44 }
 0x441   : > { %v2300_v48 = vpop.xlane.xlu0 %2299 }
 0x442   : > { %vm2371_vm4 = vcmp.eq.f32.partialorder %v9879_v55, %v2300_v48  ;;  %vm2372_vm6 = vcmp.eq.f32.partialorder %v9882_v11, %v2300_v48  ;;  %2526 = vmin.xlane.f32.xlu0 %v2525_v47 }
 0x443   : > { %v2435_v0 = vsel %vm2371_vm4, %v8904_v38, 256.0  ;;  %v2436_v54 = vsel %vm2372_vm6, %v8907_v33, 256.0 }
 0x444   : > { %v2522_v61 = vmin.f32 %v2435_v0, %v2436_v54 }
 0x445   : > { %v2297_v5 = vpop.xlane.xlu0 %2296 }
 0x446   : > { %vm2369_vm14 = vcmp.eq.f32.partialorder %v9891_v28, %v2297_v5  ;;  %vm2370_vm7 = vcmp.eq.f32.partialorder %v9894_v45, %v2297_v5  ;;  %2523 = vmin.xlane.f32.xlu0 %v2522_v61 }
 0x447   : > { %v2433_v2 = vsel %vm2369_vm14, %v8904_v38, 256.0  ;;  %v2434_v58 = vsel %vm2370_vm7, %v8907_v33, 256.0 }
 0x448   : > { %v2519_v37 = vmin.f32 %v2433_v2, %v2434_v58 }
 0x449   : > { %v2294_v44 = vpop.xlane.xlu0 %2293 }
 0x44a   : > { %vm2367_vm15 = vcmp.eq.f32.partialorder %v9903_v39, %v2294_v44  ;;  %vm2368_vm8 = vcmp.eq.f32.partialorder %v9906_v18, %v2294_v44  ;;  %2520 = vmin.xlane.f32.xlu0 %v2519_v37 }
 0x44b   : > { %v2431_v47 = vsel %vm2367_vm15, %v8904_v38, 256.0  ;;  %v2432_v48 = vsel %vm2368_vm8, %v8907_v33, 256.0 }
 0x44c   : > { %v2516_v0 = vmin.f32 %v2431_v47, %v2432_v48 }
 0x44d   : > { %v2291_v54 = vpop.xlane.xlu0 %2290 }
 0x44e   : > { %vm2365_vm5 = vcmp.eq.f32.partialorder %v9915_v17, %v2291_v54  ;;  %vm2366_vm9 = vcmp.eq.f32.partialorder %v9918_v50, %v2291_v54  ;;  %2517 = vmin.xlane.f32.xlu0 %v2516_v0 }
 0x44f   : > { %v2429_v61 = vsel %vm2365_vm5, %v8904_v38, 256.0  ;;  %v2430_v5 = vsel %vm2366_vm9, %v8907_v33, 256.0 }
 0x450   : > { %v2513_v2 = vmin.f32 %v2429_v61, %v2430_v5 }
 0x451   : > { %v2288_v58 = vpop.xlane.xlu0 %2287 }
 0x452   : > { %vm2363_vm10 = vcmp.eq.f32.partialorder %v9927_v13, %v2288_v58  ;;  %vm2364_vm11 = vcmp.eq.f32.partialorder %v9930_v24, %v2288_v58  ;;  %2514 = vmin.xlane.f32.xlu0 %v2513_v2 }
 0x453   : > { %v2427_v37 = vsel %vm2363_vm10, %v8904_v38, 256.0  ;;  %v2428_v44 = vsel %vm2364_vm11, %v8907_v33, 256.0 }
 0x454   : > { %v2510_v47 = vmin.f32 %v2427_v37, %v2428_v44 }
 0x455   : > { %v2285_v48 = vpop.xlane.xlu0 %2284 }
 0x456   : > { %vm2361_vm12 = vcmp.eq.f32.partialorder %v9939_v27, %v2285_v48  ;;  %vm2362_vm13 = vcmp.eq.f32.partialorder %v9942_v57, %v2285_v48  ;;  %2511 = vmin.xlane.f32.xlu0 %v2510_v47 }
 0x457   : > { %v2425_v0 = vsel %vm2361_vm12, %v8904_v38, 256.0  ;;  %v2426_v54 = vsel %vm2362_vm13, %v8907_v33, 256.0 }
 0x458   : > { %v2507_v61 = vmin.f32 %v2425_v0, %v2426_v54 }
 0x459   : > { %v2282_v5 = vpop.xlane.xlu0 %2281 }
 0x45a   : > { %vm2359_vm2 = vcmp.eq.f32.partialorder %v9951_v9, %v2282_v5  ;;  %vm2360_vm3 = vcmp.eq.f32.partialorder %v9954_v31, %v2282_v5  ;;  %2508 = vmin.xlane.f32.xlu0 %v2507_v61  ;;  %v13927_v61 = vld [vmem:[#allocation17_spill] sm:$0xff] }
 0x45b   : > { %v2423_v2 = vsel %vm2359_vm2, %v8904_v38, 256.0  ;;  %v2424_v58 = vsel %vm2360_vm3, %v8907_v33, 256.0 }
 0x45c   : > { %v2504_v37 = vmin.f32 %v2423_v2, %v2424_v58  ;;  %v13929_v2 = vmov 1.0   ;;  %v13930_v58 = vld [vmem:[#allocation5_spill] sm:$0xff] }
 0x45d   : > { %v2279_v44 = vpop.xlane.xlu0 %2278 }
 0x45e   : > { %vm2357_vm4 = vcmp.eq.f32.partialorder %v9963_v29, %v2279_v44  ;;  %vm2358_vm6 = vcmp.eq.f32.partialorder %v9966_v51, %v2279_v44  ;;  %2505 = vmin.xlane.f32.xlu0 %v2504_v37 }
 0x45f   : > { %v2421_v47 = vsel %vm2357_vm4, %v8904_v38, 256.0  ;;  %v2422_v48 = vsel %vm2358_vm6, %v8907_v33, 256.0 }
 0x460   : > { %v2501_v0 = vmin.f32 %v2421_v47, %v2422_v48  ;;  %v13932_v47 = vld [vmem:[#allocation23_spill] sm:$0xff] }
 0x462   : > { %2502 = vmin.xlane.f32.xlu0 %v2501_v0  ;;  %v13934_v0 = vld [vmem:[#allocation15_spill] sm:$0xff] }
 0x472   : > { %v2500_v54 = vpop.xlane.xlu1 %2499 }
 0x473   : > { %vm2579_vm14 = vcmp.eq.f32.partialorder %v8904_v38, %v2500_v54  ;;  %vm2580_vm7 = vcmp.eq.f32.partialorder %v8907_v33, %v2500_v54 }
 0x474   : > { %v10120_v5 = vsel %vm2579_vm14, inf, %v13927_v61  ;;  %7257 = vmatprep.subr.msk.mxu1 %vm2580_vm7, %v13929_v2  ;;  %v10124_v29 = vsel %vm2580_vm7, inf, %v13930_v58 }
 0x475   : > { %13928 = vst [vmem:[#allocation8_spill] sm:$0xff] %v10120_v5  ;;  %13931 = vst [vmem:[#allocation19_spill] sm:$0xff] %v10124_v29  ;;  %7258 = vmatpush1.xpose.msk.msra.mxu1 %vm2579_vm14, %v13929_v2  ;;  %v2925_v37 = vmin.f32 %v10120_v5, %v10124_v29 }
 0x476   : > { %v2497_v44 = vpop.xlane.xlu1 %2496 }
 0x477   : > { %vm2577_vm15 = vcmp.eq.f32.partialorder %v8904_v38, %v2497_v44  ;;  %2926 = vmin.xlane.f32.xlu1 %v2925_v37  ;;  %vm2578_vm8 = vcmp.eq.f32.partialorder %v8907_v33, %v2497_v44 }
 0x478   : > { %v10132_v48 = vsel %vm2577_vm15, inf, %v13932_v47  ;;  %7259 = vmatprep.subr.msk.mxu1 %vm2578_vm8, %v13929_v2  ;;  %v10136_v54 = vsel %vm2578_vm8, inf, %v13934_v0 }
 0x479   : > { %13933 = vst [vmem:[#allocation13_spill] sm:$0xff] %v10132_v48  ;;  %13935 = vst [vmem:[#allocation11_spill] sm:$0xff] %v10136_v54  ;;  %7260 = vmatpush1.xpose.msk.msra.mxu1 %vm2577_vm15, %v13929_v2  ;;  %v2922_v61 = vmin.f32 %v10132_v48, %v10136_v54 }
 0x47a   : > { %v2494_v58 = vpop.xlane.xlu1 %2493 }
 0x47b   : > { %vm2575_vm5 = vcmp.eq.f32.partialorder %v8904_v38, %v2494_v58  ;;  %2923 = vmin.xlane.f32.xlu1 %v2922_v61  ;;  %vm2576_vm9 = vcmp.eq.f32.partialorder %v8907_v33, %v2494_v58  ;;  %v13938_v61 = vld [vmem:[#allocation20_spill] sm:$0xff] }
 0x47c   : > { %v10144_v37 = vsel %vm2575_vm5, inf, %v9596_v59  ;;  %7261 = vmatprep.subr.msk.mxu1 %vm2576_vm9, %v13929_v2  ;;  %v10148_v44 = vsel %vm2576_vm9, inf, %v9600_v21  ;;  %v13940_v59 = vld [vmem:[#allocation10_spill] sm:$0xff] }
 0x47d   : > { %13936 = vst [vmem:[#allocation12_spill] sm:$0xff] %v10144_v37  ;;  %13937 = vst [vmem:[#allocation7_spill] sm:$0xff] %v10148_v44  ;;  %7262 = vmatpush1.xpose.msk.msra.mxu1 %vm2575_vm5, %v13929_v2  ;;  %v2919_v47 = vmin.f32 %v10144_v37, %v10148_v44 }
 0x47e   : > { %v2491_v0 = vpop.xlane.xlu1 %2490 }
 0x47f   : > { %vm2573_vm10 = vcmp.eq.f32.partialorder %v8904_v38, %v2491_v0  ;;  %2920 = vmin.xlane.f32.xlu1 %v2919_v47  ;;  %vm2574_vm11 = vcmp.eq.f32.partialorder %v8907_v33, %v2491_v0  ;;  %v13942_v47 = vld [vmem:[#allocation22_spill] sm:$0xff] }
 0x480   : > { %v10156_v58 = vsel %vm2573_vm10, inf, %v13938_v61  ;;  %7263 = vmatprep.subr.msk.mxu1 %vm2574_vm11, %v13929_v2  ;;  %v10160_v54 = vsel %vm2574_vm11, inf, %v13940_v59  ;;  %v13944_v61 = vld [vmem:[#allocation18_spill] sm:$0xff] }
 0x481   : > { %13939 = vst [vmem:[#allocation17_spill] sm:$0xff] %v10156_v58  ;;  %13941 = vst [vmem:[#allocation5_spill] sm:$0xff] %v10160_v54  ;;  %7264 = vmatpush1.xpose.msk.msra.mxu1 %vm2573_vm10, %v13929_v2  ;;  %v2916_v21 = vmin.f32 %v10156_v58, %v10160_v54 }
 0x482   : > { %v2488_v44 = vpop.xlane.xlu1 %2487 }
 0x483   : > { %vm2571_vm12 = vcmp.eq.f32.partialorder %v8904_v38, %v2488_v44  ;;  %2917 = vmin.xlane.f32.xlu1 %v2916_v21  ;;  %vm2572_vm13 = vcmp.eq.f32.partialorder %v8907_v33, %v2488_v44  ;;  %v13946_v44 = vld [vmem:[#allocation24_spill] sm:$0xff] }
 0x484   : > { %v10168_v0 = vsel %vm2571_vm12, inf, %v13942_v47  ;;  %7265 = vmatprep.subr.msk.mxu1 %vm2572_vm13, %v13929_v2  ;;  %v10172_v37 = vsel %vm2572_vm13, inf, %v13944_v61 }
 0x485   : > { %13943 = vst [vmem:[#allocation23_spill] sm:$0xff] %v10168_v0  ;;  %13945 = vst [vmem:[#allocation15_spill] sm:$0xff] %v10172_v37  ;;  %7266 = vmatpush1.xpose.msk.msra.mxu1 %vm2571_vm12, %v13929_v2  ;;  %v2913_v59 = vmin.f32 %v10168_v0, %v10172_v37 }
 0x486   : > { %v2485_v54 = vpop.xlane.xlu1 %2484 }
 0x487   : > { %vm2569_vm2 = vcmp.eq.f32.partialorder %v8904_v38, %v2485_v54  ;;  %2914 = vmin.xlane.f32.xlu1 %v2913_v59  ;;  %vm2570_vm3 = vcmp.eq.f32.partialorder %v8907_v33, %v2485_v54  ;;  %v13949_v59 = vld [vmem:[#allocation21_spill] sm:$0xff] }
 0x488   : > { %v10180_v21 = vsel %vm2569_vm2, inf, %v13946_v44  ;;  %7267 = vmatprep.subr.msk.mxu1 %vm2570_vm3, %v13929_v2  ;;  %v10184_v47 = vsel %vm2570_vm3, inf, %v13920_v25 }
 0x489   : > { %13947 = vst [vmem:[#allocation20_spill] sm:$0xff] %v10180_v21  ;;  %13948 = vst [vmem:[#allocation10_spill] sm:$0xff] %v10184_v47  ;;  %7268 = vmatpush1.xpose.msk.msra.mxu1 %vm2569_vm2, %v13929_v2  ;;  %v2910_v61 = vmin.f32 %v10180_v21, %v10184_v47 }
 0x48a   : > { %v2482_v37 = vpop.xlane.xlu1 %2481 }
 0x48b   : > { %vm2567_vm4 = vcmp.eq.f32.partialorder %v8904_v38, %v2482_v37  ;;  %2911 = vmin.xlane.f32.xlu1 %v2910_v61  ;;  %vm2568_vm6 = vcmp.eq.f32.partialorder %v8907_v33, %v2482_v37 }
 0x48c   : > { %v10192_v54 = vsel %vm2567_vm4, inf, %v13921_v23  ;;  %7269 = vmatprep.subr.msk.mxu1 %vm2568_vm6, %v13929_v2  ;;  %v10196_v44 = vsel %vm2568_vm6, inf, %v13949_v59  ;;  %v13953_v59 = vld [vmem:[#allocation6_spill] sm:$0xff] }
 0x48d   : > { %13950 = vst [vmem:[#allocation22_spill] sm:$0xff] %v10196_v44  ;;  %7270 = vmatpush1.xpose.msk.msra.mxu1 %vm2567_vm4, %v13929_v2  ;;  %v2907_v25 = vmin.f32 %v10192_v54, %v10196_v44 }
 0x48e   : > { %v2479_v47 = vpop.xlane.xlu1 %2478  ;;  %v10201_v21 = vpop.xlane.xlu0 %2457 }
 0x48f   : > { %vm2565_vm14 = vcmp.eq.f32.partialorder %v8904_v38, %v2479_v47  ;;  %vm2551_vm7 = vcmp.eq.f32.partialorder %v8904_v38, %v10201_v21  ;;  %vm2552_vm15 = vcmp.eq.f32.partialorder %v8907_v33, %v10201_v21  ;;  %2908 = vmin.xlane.f32.xlu1 %v2907_v25  ;;  %vm2566_vm8 = vcmp.eq.f32.partialorder %v8907_v33, %v2479_v47 }
 0x490   : > { %v10210_v23 = vsel %vm2565_vm14, inf, %v9662_v10  ;;  %v10216_v37 = vsel %vm2551_vm7, inf, %v13923_v49  ;;  %v10222_v61 = vsel %vm2552_vm15, inf, %v13924_v46  ;;  %7271 = vmatprep.subr.msk.mxu1 %vm2566_vm8, %v13929_v2  ;;  %v10226_v25 = vsel %vm2566_vm8, inf, %v13953_v59 }
 0x491   : > { %13951 = vst [vmem:[#allocation18_spill] sm:$0xff] %v10216_v37  ;;  %13952 = vst [vmem:[#allocation24_spill] sm:$0xff] %v10222_v61  ;;  %7272 = vmatpush1.xpose.msk.msra.mxu1 %vm2565_vm14, %v13929_v2  ;;  %v2904_v10 = vmin.f32 %v10210_v23, %v10226_v25  ;;  %v2883_v49 = vmin.f32 %v10216_v37, %v10222_v61 }
 0x492   : > { %13954 = vst [vmem:[#allocation21_spill] sm:$0xff] %v10226_v25  ;;  %v2476_v47 = vpop.xlane.xlu1 %2475 }
 0x493   : > { %vm2563_vm5 = vcmp.eq.f32.partialorder %v8904_v38, %v2476_v47  ;;  %2905 = vmin.xlane.f32.xlu1 %v2904_v10  ;;  %2884 = vmin.xlane.f32.xlu0 %v2883_v49  ;;  %vm2564_vm9 = vcmp.eq.f32.partialorder %v8907_v33, %v2476_v47 }
 0x494   : > { %v10236_v46 = vsel %vm2563_vm5, inf, %v9688_v1  ;;  %7273 = vmatprep.subr.msk.mxu1 %vm2564_vm9, %v13929_v2  ;;  %v10240_v59 = vsel %vm2564_vm9, inf, %v9692_v32 }
 0x495   : > { %7274 = vmatpush1.xpose.msk.msra.mxu1 %vm2563_vm5, %v13929_v2  ;;  %v2901_v61 = vmin.f32 %v10236_v46, %v10240_v59 }
 0x496   : > { %v2473_v37 = vpop.xlane.xlu1 %2472 }
 0x497   : > { %vm2561_vm10 = vcmp.eq.f32.partialorder %v8904_v38, %v2473_v37  ;;  %2902 = vmin.xlane.f32.xlu1 %v2901_v61  ;;  %vm2562_vm11 = vcmp.eq.f32.partialorder %v8907_v33, %v2473_v37 }
 0x498   : > { %v10248_v10 = vsel %vm2561_vm10, inf, %v9700_v62  ;;  %7275 = vmatprep.subr.msk.mxu1 %vm2562_vm11, %v13929_v2  ;;  %v10252_v1 = vsel %vm2562_vm11, inf, %v9704_v34 }
 0x499   : > { %7276 = vmatpush1.xpose.msk.msra.mxu1 %vm2561_vm10, %v13929_v2  ;;  %v2898_v32 = vmin.f32 %v10248_v10, %v10252_v1 }
 0x49a   : > { %v2470_v49 = vpop.xlane.xlu1 %2469 }
 0x49b   : > { %vm2559_vm12 = vcmp.eq.f32.partialorder %v8904_v38, %v2470_v49  ;;  %2899 = vmin.xlane.f32.xlu1 %v2898_v32  ;;  %vm2560_vm13 = vcmp.eq.f32.partialorder %v8907_v33, %v2470_v49 }
 0x49c   : > { %v10260_v37 = vsel %vm2559_vm12, inf, %v9712_v53  ;;  %7277 = vmatprep.subr.msk.mxu1 %vm2560_vm13, %v13929_v2  ;;  %v10264_v62 = vsel %vm2560_vm13, inf, %v13925_v36 }
 0x49d   : > { %7278 = vmatpush1.xpose.msk.msra.mxu1 %vm2559_vm12, %v13929_v2  ;;  %v2895_v34 = vmin.f32 %v10260_v37, %v10264_v62 }
 0x49e   : > { %v2467_v61 = vpop.xlane.xlu1 %2466 }
 0x49f   : > { %vm2557_vm2 = vcmp.eq.f32.partialorder %v8904_v38, %v2467_v61  ;;  %2896 = vmin.xlane.f32.xlu1 %v2895_v34  ;;  %vm2558_vm3 = vcmp.eq.f32.partialorder %v8907_v33, %v2467_v61 }
 0x4a0   : > { %v10272_v47 = vsel %vm2557_vm2, inf, %v9724_v15  ;;  %7279 = vmatprep.subr.msk.mxu1 %vm2558_vm3, %v13929_v2  ;;  %v10276_v53 = vsel %vm2558_vm3, inf, %v9728_v7 }
 0x4a1   : > { %7280 = vmatpush1.xpose.msk.msra.mxu1 %vm2557_vm2, %v13929_v2  ;;  %v2892_v36 = vmin.f32 %v10272_v47, %v10276_v53 }
 0x4a2   : > { %v2464_v32 = vpop.xlane.xlu1 %2463 }
 0x4a3   : > { %vm2555_vm4 = vcmp.eq.f32.partialorder %v8904_v38, %v2464_v32  ;;  %2893 = vmin.xlane.f32.xlu1 %v2892_v36  ;;  %vm2556_vm6 = vcmp.eq.f32.partialorder %v8907_v33, %v2464_v32 }
 0x4a4   : > { %v10284_v49 = vsel %vm2555_vm4, inf, %v9736_v40  ;;  %7281 = vmatprep.subr.msk.mxu1 %vm2556_vm6, %v13929_v2  ;;  %v10288_v15 = vsel %vm2556_vm6, inf, %v9740_v35 }
 0x4a5   : > { %7282 = vmatpush1.xpose.msk.msra.mxu1 %vm2555_vm4, %v13929_v2  ;;  %v2889_v7 = vmin.f32 %v10284_v49, %v10288_v15 }
 0x4a6   : > { %v2461_v34 = vpop.xlane.xlu1 %2460 }
 0x4a7   : > { %vm2553_vm14 = vcmp.eq.f32.partialorder %v8904_v38, %v2461_v34  ;;  %2890 = vmin.xlane.f32.xlu1 %v2889_v7  ;;  %vm2554_vm8 = vcmp.eq.f32.partialorder %v8907_v33, %v2461_v34 }
 0x4a8   : > { %v10296_v61 = vsel %vm2553_vm14, inf, %v9748_v20  ;;  %7283 = vmatprep.subr.msk.mxu1 %vm2554_vm8, %v13929_v2  ;;  %v10300_v40 = vsel %vm2554_vm8, inf, %v9752_v4  ;;  %v13955_v20 = vld [vmem:[#allocation16_spill] sm:$0xff] }
 0x4a9   : > { %7284 = vmatpush1.xpose.msk.msra.mxu1 %vm2553_vm14, %v13929_v2  ;;  %v2886_v35 = vmin.f32 %v10296_v61, %v10300_v40 }
 0x4aa   : > { %v2455_v36 = vpop.xlane.xlu1 %2454  ;;  %7285 = vmatprep.subr.msk.mxu1 %vm2552_vm15, %v13929_v2 }
 0x4ab   : > { %vm2549_vm5 = vcmp.eq.f32.partialorder %v8904_v38, %v2455_v36  ;;  %2887 = vmin.xlane.f32.xlu1 %v2886_v35  ;;  %vm2550_vm9 = vcmp.eq.f32.partialorder %v8907_v33, %v2455_v36 }
 0x4ac   : > { %v10312_v32 = vsel %vm2549_vm5, inf, %v13955_v20  ;;  %v10315_v4 = vsel %vm2550_vm9, inf, %v9767_v30 }
 0x4ad   : > { %7286 = vmatpush1.xpose.msk.msra.mxu1 %vm2551_vm7, %v13929_v2  ;;  %v2880_v7 = vmin.f32 %v10312_v32, %v10315_v4 }
 0x4ae   : > { %7287 = vmatprep.subr.msk.mxu1 %vm2550_vm9, %v13929_v2 }
 0x4af   : > { %2881 = vmin.xlane.f32.xlu1 %v2880_v7  ;;  %v2545_v34 = vpop.xlane.xlu1 %2544 }
 0x4b0   : > { %vm2609_vm15 = vcmp.eq.f32.partialorder %v8904_v38, %v2545_v34  ;;  %vm2610_vm10 = vcmp.eq.f32.partialorder %v8907_v33, %v2545_v34 }
 0x4b1   : > { %v10329_v30 = vsel %vm2609_vm15, inf, %v9781_v63  ;;  %v10332_v35 = vsel %vm2610_vm10, inf, %v13926_v41  ;;  %7288 = vmatpush1.xpose.msk.msra.mxu1 %vm2549_vm5, %v13929_v2 }
 0x4b2   : > { %v2970_v21 = vmin.f32 %v10329_v30, %v10332_v35 }
 0x4b3   : > { %v2548_v36 = vpop.xlane.xlu0 %2547 }
 0x4b4   : > { %vm2611_vm7 = vcmp.eq.f32.partialorder %v8904_v38, %v2548_v36  ;;  %2971 = vmin.xlane.f32.xlu1 %v2970_v21  ;;  %vm2612_vm11 = vcmp.eq.f32.partialorder %v8907_v33, %v2548_v36 }
 0x4b5   : > { %v10340_v20 = vsel %vm2611_vm7, inf, %v9792_v22  ;;  %7289 = vmatprep.subr.msk.mxu1 %vm2612_vm11, %v13929_v2  ;;  %v10344_v63 = vsel %vm2612_vm11, inf, %v9796_v42 }
 0x4b6   : > { %7290 = vmatpush2.xpose.msk.msra.mxu1 %vm2611_vm7, %v13929_v2  ;;  %v2973_v41 = vmin.f32 %v10340_v20, %v10344_v63 }
 0x4b7   : > { %7291 = vmatprep.subr.msk.mxu1 %vm2610_vm10, %v13929_v2  ;;  %v2542_v7 = vpop.xlane.xlu0 %2541 }
 0x4b8   : > { %vm2607_vm12 = vcmp.eq.f32.partialorder %v8904_v38, %v2542_v7  ;;  %2974 = vmin.xlane.f32.xlu0 %v2973_v41  ;;  %vm2608_vm13 = vcmp.eq.f32.partialorder %v8907_v33, %v2542_v7 }
 0x4b9   : > { %v10353_v22 = vsel %vm2607_vm12, inf, %v9805_v14  ;;  %v10356_v21 = vsel %vm2608_vm13, inf, %v9808_v6 }
 0x4ba   : > { %7292 = vmatpush2.xpose.msk.msra.mxu1 %vm2609_vm15, %v13929_v2  ;;  %v2967_v42 = vmin.f32 %v10353_v22, %v10356_v21 }
 0x4bb   : > { %7293 = vmatprep.subr.msk.mxu1 %vm2608_vm13, %v13929_v2  ;;  %v2539_v36 = vpop.xlane.xlu0 %2538 }
 0x4bc   : > { %vm2605_vm2 = vcmp.eq.f32.partialorder %v8904_v38, %v2539_v36  ;;  %2968 = vmin.xlane.f32.xlu0 %v2967_v42  ;;  %vm2606_vm3 = vcmp.eq.f32.partialorder %v8907_v33, %v2539_v36 }
 0x4bd   : > { %v10367_v14 = vsel %vm2605_vm2, inf, %v9819_v52  ;;  %v10370_v6 = vsel %vm2606_vm3, inf, %v9822_v43 }
 0x4be   : > { %7294 = vmatpush2.xpose.msk.msra.mxu1 %vm2607_vm12, %v13929_v2  ;;  %v2964_v34 = vmin.f32 %v10367_v14, %v10370_v6 }
 0x4bf   : > { %7295 = vmatprep.subr.msk.mxu1 %vm2606_vm3, %v13929_v2  ;;  %v2536_v41 = vpop.xlane.xlu0 %2535 }
 0x4c0   : > { %vm2603_vm4 = vcmp.eq.f32.partialorder %v8904_v38, %v2536_v41  ;;  %2965 = vmin.xlane.f32.xlu0 %v2964_v34  ;;  %vm2604_vm6 = vcmp.eq.f32.partialorder %v8907_v33, %v2536_v41 }
 0x4c1   : > { %v10379_v7 = vsel %vm2603_vm4, inf, %v9831_v19  ;;  %v10382_v52 = vsel %vm2604_vm6, inf, %v9834_v8 }
 0x4c2   : > { %7296 = vmatpush2.xpose.msk.msra.mxu1 %vm2605_vm2, %v13929_v2  ;;  %v2961_v43 = vmin.f32 %v10379_v7, %v10382_v52 }
 0x4c3   : > { %7297 = vmatprep.subr.msk.mxu1 %vm2604_vm6, %v13929_v2  ;;  %v2533_v42 = vpop.xlane.xlu0 %2532 }
 0x4c4   : > { %vm2601_vm14 = vcmp.eq.f32.partialorder %v8904_v38, %v2533_v42  ;;  %2962 = vmin.xlane.f32.xlu0 %v2961_v43  ;;  %vm2602_vm8 = vcmp.eq.f32.partialorder %v8907_v33, %v2533_v42 }
 0x4c5   : > { %v10391_v36 = vsel %vm2601_vm14, inf, %v9843_v16  ;;  %v10394_v19 = vsel %vm2602_vm8, inf, %v9846_v60 }
 0x4c6   : > { %7298 = vmatpush2.xpose.msk.msra.mxu1 %vm2603_vm4, %v13929_v2  ;;  %v2958_v8 = vmin.f32 %v10391_v36, %v10394_v19 }
 0x4c7   : > { %7299 = vmatprep.subr.msk.mxu1 %vm2602_vm8, %v13929_v2  ;;  %v2530_v34 = vpop.xlane.xlu0 %2529 }
 0x4c8   : > { %vm2599_vm5 = vcmp.eq.f32.partialorder %v8904_v38, %v2530_v34  ;;  %2959 = vmin.xlane.f32.xlu0 %v2958_v8  ;;  %vm2600_vm9 = vcmp.eq.f32.partialorder %v8907_v33, %v2530_v34 }
 0x4c9   : > { %v10403_v41 = vsel %vm2599_vm5, inf, %v9855_v3  ;;  %v10406_v16 = vsel %vm2600_vm9, inf, %v9858_v12 }
 0x4ca   : > { %7300 = vmatpush2.xpose.msk.msra.mxu1 %vm2601_vm14, %v13929_v2  ;;  %v2955_v60 = vmin.f32 %v10403_v41, %v10406_v16 }
 0x4cb   : > { %7301 = vmatprep.subr.msk.mxu1 %vm2600_vm9, %v13929_v2  ;;  %v2527_v43 = vpop.xlane.xlu0 %2526 }
 0x4cc   : > { %vm2597_vm15 = vcmp.eq.f32.partialorder %v8904_v38, %v2527_v43  ;;  %2956 = vmin.xlane.f32.xlu0 %v2955_v60  ;;  %vm2598_vm10 = vcmp.eq.f32.partialorder %v8907_v33, %v2527_v43 }
 0x4cd   : > { %v10415_v42 = vsel %vm2597_vm15, inf, %v9867_v56  ;;  %v10418_v3 = vsel %vm2598_vm10, inf, %v9870_v26 }
 0x4ce   : > { %7302 = vmatpush2.xpose.msk.msra.mxu1 %vm2599_vm5, %v13929_v2  ;;  %v2952_v12 = vmin.f32 %v10415_v42, %v10418_v3 }
 0x4cf   : > { %7303 = vmatprep.subr.msk.mxu1 %vm2598_vm10, %v13929_v2  ;;  %v2524_v8 = vpop.xlane.xlu0 %2523 }
 0x4d0   : > { %vm2595_vm7 = vcmp.eq.f32.partialorder %v8904_v38, %v2524_v8  ;;  %2953 = vmin.xlane.f32.xlu0 %v2952_v12  ;;  %vm2596_vm11 = vcmp.eq.f32.partialorder %v8907_v33, %v2524_v8 }
 0x4d1   : > { %v10427_v34 = vsel %vm2595_vm7, inf, %v9879_v55  ;;  %v10430_v56 = vsel %vm2596_vm11, inf, %v9882_v11 }
 0x4d2   : > { %7304 = vmatpush2.xpose.msk.msra.mxu1 %vm2597_vm15, %v13929_v2  ;;  %v2949_v26 = vmin.f32 %v10427_v34, %v10430_v56 }
 0x4d3   : > { %7305 = vmatprep.subr.msk.mxu1 %vm2596_vm11, %v13929_v2  ;;  %v2521_v60 = vpop.xlane.xlu0 %2520 }
 0x4d4   : > { %vm2593_vm12 = vcmp.eq.f32.partialorder %v8904_v38, %v2521_v60  ;;  %2950 = vmin.xlane.f32.xlu0 %v2949_v26  ;;  %vm2594_vm13 = vcmp.eq.f32.partialorder %v8907_v33, %v2521_v60 }
 0x4d5   : > { %v10439_v43 = vsel %vm2593_vm12, inf, %v9891_v28  ;;  %v10442_v55 = vsel %vm2594_vm13, inf, %v9894_v45 }
 0x4d6   : > { %7306 = vmatpush2.xpose.msk.msra.mxu1 %vm2595_vm7, %v13929_v2  ;;  %v2946_v11 = vmin.f32 %v10439_v43, %v10442_v55 }
 0x4d7   : > { %7307 = vmatprep.subr.msk.mxu1 %vm2594_vm13, %v13929_v2  ;;  %v2518_v12 = vpop.xlane.xlu0 %2517 }
 0x4d8   : > { %vm2591_vm2 = vcmp.eq.f32.partialorder %v8904_v38, %v2518_v12  ;;  %2947 = vmin.xlane.f32.xlu0 %v2946_v11  ;;  %vm2592_vm3 = vcmp.eq.f32.partialorder %v8907_v33, %v2518_v12 }
 0x4d9   : > { %v10451_v8 = vsel %vm2591_vm2, inf, %v9903_v39  ;;  %v10454_v28 = vsel %vm2592_vm3, inf, %v9906_v18 }
 0x4da   : > { %7308 = vmatpush2.xpose.msk.msra.mxu1 %vm2593_vm12, %v13929_v2  ;;  %v2943_v45 = vmin.f32 %v10451_v8, %v10454_v28 }
 0x4db   : > { %7309 = vmatprep.subr.msk.mxu1 %vm2592_vm3, %v13929_v2  ;;  %v2515_v26 = vpop.xlane.xlu0 %2514 }
 0x4dc   : > { %vm2589_vm4 = vcmp.eq.f32.partialorder %v8904_v38, %v2515_v26  ;;  %2944 = vmin.xlane.f32.xlu0 %v2943_v45  ;;  %vm2590_vm6 = vcmp.eq.f32.partialorder %v8907_v33, %v2515_v26 }
 0x4dd   : > { %v10463_v60 = vsel %vm2589_vm4, inf, %v9915_v17  ;;  %v10466_v39 = vsel %vm2590_vm6, inf, %v9918_v50 }
 0x4de   : > { %7310 = vmatpush2.xpose.msk.msra.mxu1 %vm2591_vm2, %v13929_v2  ;;  %v2940_v18 = vmin.f32 %v10463_v60, %v10466_v39 }
 0x4df   : > { %7311 = vmatprep.subr.msk.mxu1 %vm2590_vm6, %v13929_v2  ;;  %v2512_v11 = vpop.xlane.xlu0 %2511 }
 0x4e0   : > { %vm2587_vm14 = vcmp.eq.f32.partialorder %v8904_v38, %v2512_v11  ;;  %2941 = vmin.xlane.f32.xlu0 %v2940_v18  ;;  %vm2588_vm8 = vcmp.eq.f32.partialorder %v8907_v33, %v2512_v11 }
 0x4e1   : > { %v10475_v12 = vsel %vm2587_vm14, inf, %v9927_v13  ;;  %v10478_v17 = vsel %vm2588_vm8, inf, %v9930_v24 }
 0x4e2   : > { %7312 = vmatpush2.xpose.msk.msra.mxu1 %vm2589_vm4, %v13929_v2  ;;  %v2937_v50 = vmin.f32 %v10475_v12, %v10478_v17 }
 0x4e3   : > { %7313 = vmatprep.subr.msk.mxu1 %vm2588_vm8, %v13929_v2  ;;  %v2509_v45 = vpop.xlane.xlu0 %2508 }
 0x4e4   : > { %vm2585_vm5 = vcmp.eq.f32.partialorder %v8904_v38, %v2509_v45  ;;  %2938 = vmin.xlane.f32.xlu0 %v2937_v50  ;;  %vm2586_vm9 = vcmp.eq.f32.partialorder %v8907_v33, %v2509_v45  ;;  %v13959_v45 = vld [vmem:[#allocation9_spill] sm:$0xff] }
 0x4e5   : > { %v10487_v26 = vsel %vm2585_vm5, inf, %v9939_v27  ;;  %v10490_v13 = vsel %vm2586_vm9, inf, %v9942_v57 }
 0x4e6   : > { %13956 = vst [vmem:[#allocation6_spill] sm:$0xff] %v10487_v26  ;;  %7314 = vmatpush2.xpose.msk.msra.mxu1 %vm2587_vm14, %v13929_v2  ;;  %v2934_v24 = vmin.f32 %v10487_v26, %v10490_v13 }
 0x4e7   : > { %7315 = vmatprep.subr.msk.mxu1 %vm2586_vm9, %v13929_v2  ;;  %v2506_v18 = vpop.xlane.xlu0 %2505 }
 0x4e8   : > { %vm2583_vm15 = vcmp.eq.f32.partialorder %v8904_v38, %v2506_v18  ;;  %2935 = vmin.xlane.f32.xlu0 %v2934_v24  ;;  %vm2584_vm10 = vcmp.eq.f32.partialorder %v8907_v33, %v2506_v18  ;;  %v13962_v18 = vld [vmem:[#allocation14_spill] sm:$0xff] }
 0x4e9   : > { %v10499_v11 = vsel %vm2583_vm15, inf, %v9951_v9  ;;  %v10502_v27 = vsel %vm2584_vm10, inf, %v9954_v31 }
 0x4ea   : > { %13957 = vst [vmem:[#allocation16_spill] sm:$0xff] %v10499_v11  ;;  %13958 = vst [vmem:[#allocation26_spill] sm:$0xff] %v10502_v27  ;;  %7316 = vmatpush2.xpose.msk.msra.mxu1 %vm2585_vm5, %v13929_v2  ;;  %v2931_v57 = vmin.f32 %v10499_v11, %v10502_v27 }
 0x4eb   : > { %7317 = vmatprep.subr.msk.mxu1 %vm2584_vm10, %v13929_v2  ;;  %v2503_v50 = vpop.xlane.xlu0 %2502 }
 0x4ec   : > { %vm2581_vm7 = vcmp.eq.f32.partialorder %v8904_v38, %v2503_v50  ;;  %2932 = vmin.xlane.f32.xlu0 %v2931_v57  ;;  %vm2582_vm11 = vcmp.eq.f32.partialorder %v8907_v33, %v2503_v50  ;;  %v13963_v57 = vld [vmem:[#allocation25_spill] sm:$0xff] }
 0x4ed   : > { %v10511_v24 = vsel %vm2581_vm7, inf, %v13959_v45  ;;  %v10514_v9 = vsel %vm2582_vm11, inf, %v9966_v51 }
 0x4ee   : > { %13960 = vst [vmem:[#allocation9_spill] sm:$0xff] %v10511_v24  ;;  %13961 = vst [vmem:[#allocation27_spill] sm:$0xff] %v10514_v9  ;;  %7318 = vmatpush2.xpose.msk.msra.mxu1 %vm2583_vm15, %v13929_v2  ;;  %v2928_v31 = vmin.f32 %v10511_v24, %v10514_v9 }
 0x4ef   : > { %7319 = vmatprep.subr.msk.mxu1 %vm2582_vm11, %v13929_v2 }
 0x4f0   : > { %2929 = vmin.xlane.f32.xlu0 %v2928_v31  ;;  %v13964_v31 = vld [vmem:[#allocation11_spill] sm:$0xff] }
 0x4f2   : > { %7320 = vmatpush2.xpose.msk.msra.mxu1 %vm2581_vm7, %v13929_v2 }
 0x4f5   : > { %2806 = vmatmul.mubr.f32.vlgmr.msra.gmra.mxu1 %v13962_v18 }
 0x4f6   : > { %4107 = vmatprep.mubr.f32.mxu1 %v13963_v57 }
 0x500   : > { %v2927_v50 = vpop.xlane.xlu1 %2926 }
 0x501   : > { %vm3006_vm12 = vcmp.eq.f32.partialorder %v10120_v5, %v2927_v50  ;;  %vm3007_vm13 = vcmp.eq.f32.partialorder %v10124_v29, %v2927_v50  ;;  %v13965_v5 = vld [vmem:[#allocation12_spill] sm:$0xff]  ;;  %v13966_v50 = vld [vmem:[#allocation7_spill] sm:$0xff] }
 0x502   : > { %v3070_v51 = vsel %vm3006_vm12, %v8904_v38, 256.0  ;;  %v3071_v45 = vsel %vm3007_vm13, %v8907_v33, 256.0 }
 0x503   : > { %v3149_v27 = vmin.f32 %v3070_v51, %v3071_v45 }
 0x504   : > { %v2924_v9 = vpop.xlane.xlu1 %2923 }
 0x505   : > { %vm3004_vm2 = vcmp.eq.f32.partialorder %v10132_v48, %v2924_v9  ;;  %vm3005_vm3 = vcmp.eq.f32.partialorder %v13964_v31, %v2924_v9  ;;  %3150 = vmin.xlane.f32.xlu1 %v3149_v27  ;;  %v13967_v27 = vld [vmem:[#allocation5_spill] sm:$0xff] }
 0x506   : > { %v3068_v18 = vsel %vm3004_vm2, %v8904_v38, 256.0  ;;  %v3069_v57 = vsel %vm3005_vm3, %v8907_v33, 256.0 }
 0x507   : > { %v3146_v2 = vmin.f32 %v3068_v18, %v3069_v57 }
 0x508   : > { %v2921_v24 = vpop.xlane.xlu1 %2920 }
 0x509   : > { %vm3002_vm4 = vcmp.eq.f32.partialorder %v13965_v5, %v2921_v24  ;;  %vm3003_vm6 = vcmp.eq.f32.partialorder %v13966_v50, %v2921_v24  ;;  %3147 = vmin.xlane.f32.xlu1 %v3146_v2  ;;  %v13968_v2 = vld [vmem:[#allocation15_spill] sm:$0xff]  ;;  %v13969_v50 = vld [vmem:[#allocation20_spill] sm:$0xff] }
 0x50a   : > { %v3066_v29 = vsel %vm3002_vm4, %v8904_v38, 256.0  ;;  %v3067_v51 = vsel %vm3003_vm6, %v8907_v33, 256.0 }
 0x50b   : > { %v3143_v45 = vmin.f32 %v3066_v29, %v3067_v51 }
 0x50c   : > { %v2918_v48 = vpop.xlane.xlu1 %2917 }
 0x50d   : > { %vm3000_vm14 = vcmp.eq.f32.partialorder %v10156_v58, %v2918_v48  ;;  %vm3001_vm8 = vcmp.eq.f32.partialorder %v13967_v27, %v2918_v48  ;;  %3144 = vmin.xlane.f32.xlu1 %v3143_v45  ;;  %v13970_v48 = vld [vmem:[#allocation10_spill] sm:$0xff] }
 0x50e   : > { %v3064_v9 = vsel %vm3000_vm14, %v8904_v38, 256.0  ;;  %v3065_v18 = vsel %vm3001_vm8, %v8907_v33, 256.0 }
 0x50f   : > { %v3140_v57 = vmin.f32 %v3064_v9, %v3065_v18 }
 0x510   : > { %v2915_v5 = vpop.xlane.xlu1 %2914 }
 0x511   : > { %vm2998_vm5 = vcmp.eq.f32.partialorder %v10168_v0, %v2915_v5  ;;  %vm2999_vm9 = vcmp.eq.f32.partialorder %v13968_v2, %v2915_v5  ;;  %3141 = vmin.xlane.f32.xlu1 %v3140_v57 }
 0x512   : > { %v3062_v24 = vsel %vm2998_vm5, %v8904_v38, 256.0  ;;  %v3063_v29 = vsel %vm2999_vm9, %v8907_v33, 256.0 }
 0x513   : > { %v3137_v51 = vmin.f32 %v3062_v24, %v3063_v29 }
 0x514   : > { %v2912_v58 = vpop.xlane.xlu1 %2911 }
 0x515   : > { %vm2996_vm15 = vcmp.eq.f32.partialorder %v13969_v50, %v2912_v58  ;;  %vm2997_vm10 = vcmp.eq.f32.partialorder %v13970_v48, %v2912_v58  ;;  %3138 = vmin.xlane.f32.xlu1 %v3137_v51  ;;  %v13971_v58 = vld [vmem:[#allocation18_spill] sm:$0xff]  ;;  %v13972_v51 = vld [vmem:[#allocation24_spill] sm:$0xff] }
 0x516   : > { %v3060_v45 = vsel %vm2996_vm15, %v8904_v38, 256.0  ;;  %v3061_v9 = vsel %vm2997_vm10, %v8907_v33, 256.0 }
 0x517   : > { %v3134_v18 = vmin.f32 %v3060_v45, %v3061_v9 }
 0x518   : > { %v2909_v0 = vpop.xlane.xlu1 %2908 }
 0x519   : > { %vm2994_vm7 = vcmp.eq.f32.partialorder %v10192_v54, %v2909_v0  ;;  %vm2995_vm11 = vcmp.eq.f32.partialorder %v10196_v44, %v2909_v0  ;;  %3135 = vmin.xlane.f32.xlu1 %v3134_v18 }
 0x51a   : > { %v3058_v5 = vsel %vm2994_vm7, %v8904_v38, 256.0  ;;  %v3059_v57 = vsel %vm2995_vm11, %v8907_v33, 256.0 }
 0x51b   : > { %v3131_v24 = vmin.f32 %v3058_v5, %v3059_v57 }
 0x51c   : > { %v2906_v29 = vpop.xlane.xlu1 %2905  ;;  %v2885_v50 = vpop.xlane.xlu0 %2884 }
 0x51d   : > { %vm2992_vm12 = vcmp.eq.f32.partialorder %v10210_v23, %v2906_v29  ;;  %vm2993_vm13 = vcmp.eq.f32.partialorder %v10226_v25, %v2906_v29  ;;  %vm2978_vm2 = vcmp.eq.f32.partialorder %v13971_v58, %v2885_v50  ;;  %vm2979_vm3 = vcmp.eq.f32.partialorder %v13972_v51, %v2885_v50  ;;  %3132 = vmin.xlane.f32.xlu1 %v3131_v24 }
 0x51e   : > { %v3056_v45 = vsel %vm2992_vm12, %v8904_v38, 256.0  ;;  %v3057_v0 = vsel %vm2993_vm13, %v8907_v33, 256.0  ;;  %v3042_v9 = vsel %vm2978_vm2, %v8904_v38, 256.0  ;;  %v3043_v18 = vsel %vm2979_vm3, %v8907_v33, 256.0 }
 0x51f   : > { %v3128_v5 = vmin.f32 %v3056_v45, %v3057_v0  ;;  %v3107_v57 = vmin.f32 %v3042_v9, %v3043_v18 }
 0x520   : > { %v2903_v44 = vpop.xlane.xlu1 %2902 }
 0x521   : > { %vm2990_vm4 = vcmp.eq.f32.partialorder %v10236_v46, %v2903_v44  ;;  %vm2991_vm6 = vcmp.eq.f32.partialorder %v10240_v59, %v2903_v44  ;;  %3129 = vmin.xlane.f32.xlu1 %v3128_v5  ;;  %3108 = vmin.xlane.f32.xlu0 %v3107_v57 }
 0x522   : > { %v3054_v50 = vsel %vm2990_vm4, %v8904_v38, 256.0  ;;  %v3055_v24 = vsel %vm2991_vm6, %v8907_v33, 256.0 }
 0x523   : > { %v3125_v29 = vmin.f32 %v3054_v50, %v3055_v24 }
 0x524   : > { %v2900_v25 = vpop.xlane.xlu1 %2899 }
 0x525   : > { %vm2988_vm14 = vcmp.eq.f32.partialorder %v10248_v10, %v2900_v25  ;;  %vm2989_vm8 = vcmp.eq.f32.partialorder %v10252_v1, %v2900_v25  ;;  %3126 = vmin.xlane.f32.xlu1 %v3125_v29 }
 0x526   : > { %v3052_v45 = vsel %vm2988_vm14, %v8904_v38, 256.0  ;;  %v3053_v0 = vsel %vm2989_vm8, %v8907_v33, 256.0 }
 0x527   : > { %v3122_v9 = vmin.f32 %v3052_v45, %v3053_v0 }
 0x528   : > { %v2897_v18 = vpop.xlane.xlu1 %2896 }
 0x529   : > { %vm2986_vm5 = vcmp.eq.f32.partialorder %v10260_v37, %v2897_v18  ;;  %vm2987_vm9 = vcmp.eq.f32.partialorder %v10264_v62, %v2897_v18  ;;  %3123 = vmin.xlane.f32.xlu1 %v3122_v9 }
 0x52a   : > { %v3050_v44 = vsel %vm2986_vm5, %v8904_v38, 256.0  ;;  %v3051_v5 = vsel %vm2987_vm9, %v8907_v33, 256.0 }
 0x52b   : > { %v3119_v57 = vmin.f32 %v3050_v44, %v3051_v5 }
 0x52c   : > { %v2894_v50 = vpop.xlane.xlu1 %2893 }
 0x52d   : > { %vm2984_vm15 = vcmp.eq.f32.partialorder %v10272_v47, %v2894_v50  ;;  %vm2985_vm10 = vcmp.eq.f32.partialorder %v10276_v53, %v2894_v50  ;;  %3120 = vmin.xlane.f32.xlu1 %v3119_v57 }
 0x52e   : > { %v3048_v25 = vsel %vm2984_vm15, %v8904_v38, 256.0  ;;  %v3049_v24 = vsel %vm2985_vm10, %v8907_v33, 256.0 }
 0x52f   : > { %v3116_v29 = vmin.f32 %v3048_v25, %v3049_v24 }
 0x530   : > { %v2891_v45 = vpop.xlane.xlu1 %2890 }
 0x531   : > { %vm2982_vm7 = vcmp.eq.f32.partialorder %v10284_v49, %v2891_v45  ;;  %vm2983_vm11 = vcmp.eq.f32.partialorder %v10288_v15, %v2891_v45  ;;  %3117 = vmin.xlane.f32.xlu1 %v3116_v29 }
 0x532   : > { %v3046_v0 = vsel %vm2982_vm7, %v8904_v38, 256.0  ;;  %v3047_v9 = vsel %vm2983_vm11, %v8907_v33, 256.0 }
 0x533   : > { %v3113_v18 = vmin.f32 %v3046_v0, %v3047_v9 }
 0x534   : > { %v2888_v44 = vpop.xlane.xlu1 %2887 }
 0x535   : > { %vm2980_vm12 = vcmp.eq.f32.partialorder %v10296_v61, %v2888_v44  ;;  %vm2981_vm13 = vcmp.eq.f32.partialorder %v10300_v40, %v2888_v44  ;;  %3114 = vmin.xlane.f32.xlu1 %v3113_v18 }
 0x536   : > { %v3044_v5 = vsel %vm2980_vm12, %v8904_v38, 256.0  ;;  %v3045_v57 = vsel %vm2981_vm13, %v8907_v33, 256.0 }
 0x537   : > { %v3110_v50 = vmin.f32 %v3044_v5, %v3045_v57 }
 0x538   : > { %v2882_v25 = vpop.xlane.xlu1 %2881 }
 0x539   : > { %vm2976_vm2 = vcmp.eq.f32.partialorder %v10312_v32, %v2882_v25  ;;  %vm2977_vm3 = vcmp.eq.f32.partialorder %v10315_v4, %v2882_v25  ;;  %3111 = vmin.xlane.f32.xlu1 %v3110_v50 }
 0x53a   : > { %v3040_v24 = vsel %vm2976_vm2, %v8904_v38, 256.0  ;;  %v3041_v29 = vsel %vm2977_vm3, %v8907_v33, 256.0 }
 0x53b   : > { %v3104_v45 = vmin.f32 %v3040_v24, %v3041_v29 }
 0x53d   : > { %3105 = vmin.xlane.f32.xlu1 %v3104_v45  ;;  %v2972_v0 = vpop.xlane.xlu1 %2971 }
 0x53e   : > { %vm3036_vm4 = vcmp.eq.f32.partialorder %v10329_v30, %v2972_v0  ;;  %vm3037_vm6 = vcmp.eq.f32.partialorder %v10332_v35, %v2972_v0 }
 0x53f   : > { %v3100_v9 = vsel %vm3036_vm4, %v8904_v38, 256.0  ;;  %v3101_v18 = vsel %vm3037_vm6, %v8907_v33, 256.0 }
 0x540   : > { %v3194_v44 = vmin.f32 %v3100_v9, %v3101_v18 }
 0x541   : > { %v2975_v5 = vpop.xlane.xlu0 %2974 }
 0x542   : > { %vm3038_vm14 = vcmp.eq.f32.partialorder %v10340_v20, %v2975_v5  ;;  %vm3039_vm8 = vcmp.eq.f32.partialorder %v10344_v63, %v2975_v5  ;;  %3195 = vmin.xlane.f32.xlu1 %v3194_v44 }
 0x543   : > { %v3102_v57 = vsel %vm3038_vm14, %v8904_v38, 256.0  ;;  %v3103_v50 = vsel %vm3039_vm8, %v8907_v33, 256.0 }
 0x544   : > { %v3197_v25 = vmin.f32 %v3102_v57, %v3103_v50 }
 0x545   : > { %v2969_v24 = vpop.xlane.xlu0 %2968 }
 0x546   : > { %vm3034_vm5 = vcmp.eq.f32.partialorder %v10353_v22, %v2969_v24  ;;  %vm3035_vm9 = vcmp.eq.f32.partialorder %v10356_v21, %v2969_v24  ;;  %3198 = vmin.xlane.f32.xlu0 %v3197_v25 }
 0x547   : > { %v3098_v29 = vsel %vm3034_vm5, %v8904_v38, 256.0  ;;  %v3099_v45 = vsel %vm3035_vm9, %v8907_v33, 256.0 }
 0x548   : > { %v3191_v0 = vmin.f32 %v3098_v29, %v3099_v45 }
 0x549   : > { %v2966_v9 = vpop.xlane.xlu0 %2965 }
 0x54a   : > { %vm3032_vm15 = vcmp.eq.f32.partialorder %v10367_v14, %v2966_v9  ;;  %vm3033_vm10 = vcmp.eq.f32.partialorder %v10370_v6, %v2966_v9  ;;  %3192 = vmin.xlane.f32.xlu0 %v3191_v0 }
 0x54b   : > { %v3096_v18 = vsel %vm3032_vm15, %v8904_v38, 256.0  ;;  %v3097_v44 = vsel %vm3033_vm10, %v8907_v33, 256.0 }
 0x54c   : > { %v3188_v5 = vmin.f32 %v3096_v18, %v3097_v44 }
 0x54d   : > { %v2963_v57 = vpop.xlane.xlu0 %2962 }
 0x54e   : > { %vm3030_vm7 = vcmp.eq.f32.partialorder %v10379_v7, %v2963_v57  ;;  %vm3031_vm11 = vcmp.eq.f32.partialorder %v10382_v52, %v2963_v57  ;;  %3189 = vmin.xlane.f32.xlu0 %v3188_v5 }
 0x54f   : > { %v3094_v50 = vsel %vm3030_vm7, %v8904_v38, 256.0  ;;  %v3095_v25 = vsel %vm3031_vm11, %v8907_v33, 256.0 }
 0x550   : > { %v3185_v24 = vmin.f32 %v3094_v50, %v3095_v25 }
 0x551   : > { %v2960_v29 = vpop.xlane.xlu0 %2959 }
 0x552   : > { %vm3028_vm12 = vcmp.eq.f32.partialorder %v10391_v36, %v2960_v29  ;;  %vm3029_vm13 = vcmp.eq.f32.partialorder %v10394_v19, %v2960_v29  ;;  %3186 = vmin.xlane.f32.xlu0 %v3185_v24 }
 0x553   : > { %v3092_v45 = vsel %vm3028_vm12, %v8904_v38, 256.0  ;;  %v3093_v0 = vsel %vm3029_vm13, %v8907_v33, 256.0 }
 0x554   : > { %v3182_v9 = vmin.f32 %v3092_v45, %v3093_v0 }
 0x555   : > { %v2957_v18 = vpop.xlane.xlu0 %2956 }
 0x556   : > { %vm3026_vm2 = vcmp.eq.f32.partialorder %v10403_v41, %v2957_v18  ;;  %vm3027_vm3 = vcmp.eq.f32.partialorder %v10406_v16, %v2957_v18  ;;  %3183 = vmin.xlane.f32.xlu0 %v3182_v9 }
 0x557   : > { %v3090_v44 = vsel %vm3026_vm2, %v8904_v38, 256.0  ;;  %v3091_v5 = vsel %vm3027_vm3, %v8907_v33, 256.0 }
 0x558   : > { %v3179_v57 = vmin.f32 %v3090_v44, %v3091_v5 }
 0x559   : > { %v2954_v50 = vpop.xlane.xlu0 %2953 }
 0x55a   : > { %vm3024_vm4 = vcmp.eq.f32.partialorder %v10415_v42, %v2954_v50  ;;  %vm3025_vm6 = vcmp.eq.f32.partialorder %v10418_v3, %v2954_v50  ;;  %3180 = vmin.xlane.f32.xlu0 %v3179_v57 }
 0x55b   : > { %v3088_v25 = vsel %vm3024_vm4, %v8904_v38, 256.0  ;;  %v3089_v24 = vsel %vm3025_vm6, %v8907_v33, 256.0 }
 0x55c   : > { %v3176_v29 = vmin.f32 %v3088_v25, %v3089_v24 }
 0x55d   : > { %v2951_v45 = vpop.xlane.xlu0 %2950 }
 0x55e   : > { %vm3022_vm14 = vcmp.eq.f32.partialorder %v10427_v34, %v2951_v45  ;;  %vm3023_vm8 = vcmp.eq.f32.partialorder %v10430_v56, %v2951_v45  ;;  %3177 = vmin.xlane.f32.xlu0 %v3176_v29 }
 0x55f   : > { %v3086_v0 = vsel %vm3022_vm14, %v8904_v38, 256.0  ;;  %v3087_v9 = vsel %vm3023_vm8, %v8907_v33, 256.0 }
 0x560   : > { %v3173_v18 = vmin.f32 %v3086_v0, %v3087_v9 }
 0x561   : > { %v2948_v44 = vpop.xlane.xlu0 %2947 }
 0x562   : > { %vm3020_vm5 = vcmp.eq.f32.partialorder %v10439_v43, %v2948_v44  ;;  %vm3021_vm9 = vcmp.eq.f32.partialorder %v10442_v55, %v2948_v44  ;;  %3174 = vmin.xlane.f32.xlu0 %v3173_v18 }
 0x563   : > { %v3084_v5 = vsel %vm3020_vm5, %v8904_v38, 256.0  ;;  %v3085_v57 = vsel %vm3021_vm9, %v8907_v33, 256.0 }
 0x564   : > { %v3170_v50 = vmin.f32 %v3084_v5, %v3085_v57 }
 0x565   : > { %v2945_v25 = vpop.xlane.xlu0 %2944 }
 0x566   : > { %vm3018_vm15 = vcmp.eq.f32.partialorder %v10451_v8, %v2945_v25  ;;  %vm3019_vm10 = vcmp.eq.f32.partialorder %v10454_v28, %v2945_v25  ;;  %3171 = vmin.xlane.f32.xlu0 %v3170_v50 }
 0x567   : > { %v3082_v24 = vsel %vm3018_vm15, %v8904_v38, 256.0  ;;  %v3083_v29 = vsel %vm3019_vm10, %v8907_v33, 256.0 }
 0x568   : > { %v3167_v45 = vmin.f32 %v3082_v24, %v3083_v29 }
 0x569   : > { %v2942_v0 = vpop.xlane.xlu0 %2941 }
 0x56a   : > { %vm3016_vm7 = vcmp.eq.f32.partialorder %v10463_v60, %v2942_v0  ;;  %vm3017_vm11 = vcmp.eq.f32.partialorder %v10466_v39, %v2942_v0  ;;  %3168 = vmin.xlane.f32.xlu0 %v3167_v45 }
 0x56b   : > { %v3080_v9 = vsel %vm3016_vm7, %v8904_v38, 256.0  ;;  %v3081_v18 = vsel %vm3017_vm11, %v8907_v33, 256.0 }
 0x56c   : > { %v3164_v44 = vmin.f32 %v3080_v9, %v3081_v18  ;;  %v13973_v18 = vld [vmem:[#allocation26_spill] sm:$0xff] }
 0x56d   : > { %v2939_v5 = vpop.xlane.xlu0 %2938 }
 0x56e   : > { %vm3014_vm12 = vcmp.eq.f32.partialorder %v10475_v12, %v2939_v5  ;;  %vm3015_vm13 = vcmp.eq.f32.partialorder %v10478_v17, %v2939_v5  ;;  %3165 = vmin.xlane.f32.xlu0 %v3164_v44 }
 0x56f   : > { %v3078_v57 = vsel %vm3014_vm12, %v8904_v38, 256.0  ;;  %v3079_v50 = vsel %vm3015_vm13, %v8907_v33, 256.0 }
 0x570   : > { %v3161_v25 = vmin.f32 %v3078_v57, %v3079_v50 }
 0x571   : > { %v2936_v24 = vpop.xlane.xlu0 %2935 }
 0x572   : > { %vm3012_vm2 = vcmp.eq.f32.partialorder %v10487_v26, %v2936_v24  ;;  %vm3013_vm3 = vcmp.eq.f32.partialorder %v10490_v13, %v2936_v24  ;;  %3162 = vmin.xlane.f32.xlu0 %v3161_v25  ;;  %v13974_v26 = vld [vmem:[#allocation9_spill] sm:$0xff]  ;;  %v13975_v25 = vld [vmem:[#allocation27_spill] sm:$0xff] }
 0x573   : > { %v3076_v29 = vsel %vm3012_vm2, %v8904_v38, 256.0  ;;  %v3077_v45 = vsel %vm3013_vm3, %v8907_v33, 256.0 }
 0x574   : > { %v3158_v0 = vmin.f32 %v3076_v29, %v3077_v45 }
 0x575   : > { %v2933_v9 = vpop.xlane.xlu0 %2932 }
 0x576   : > { %vm3010_vm4 = vcmp.eq.f32.partialorder %v10499_v11, %v2933_v9  ;;  %vm3011_vm6 = vcmp.eq.f32.partialorder %v13973_v18, %v2933_v9  ;;  %3159 = vmin.xlane.f32.xlu0 %v3158_v0  ;;  %v13976_v0 = vld [vmem:[#allocation8_spill] sm:$0xff] }
 0x577   : > { %v3074_v44 = vsel %vm3010_vm4, %v8904_v38, 256.0  ;;  %v3075_v5 = vsel %vm3011_vm6, %v8907_v33, 256.0 }
 0x578   : > { %v3155_v57 = vmin.f32 %v3074_v44, %v3075_v5  ;;  %v13977_v44 = vmov 1.0   ;;  %v13978_v5 = vld [vmem:[#allocation19_spill] sm:$0xff] }
 0x579   : > { %v2930_v50 = vpop.xlane.xlu0 %2929 }
 0x57a   : > { %vm3008_vm14 = vcmp.eq.f32.partialorder %v13974_v26, %v2930_v50  ;;  %vm3009_vm8 = vcmp.eq.f32.partialorder %v13975_v25, %v2930_v50  ;;  %3156 = vmin.xlane.f32.xlu0 %v3155_v57 }
 0x57b   : > { %v3072_v24 = vsel %vm3008_vm14, %v8904_v38, 256.0  ;;  %v3073_v29 = vsel %vm3009_vm8, %v8907_v33, 256.0 }
 0x57c   : > { %v3152_v45 = vmin.f32 %v3072_v24, %v3073_v29 }
 0x57e   : > { %3153 = vmin.xlane.f32.xlu0 %v3152_v45 }
 0x58e   : > { %v3151_v11 = vpop.xlane.xlu1 %3150 }
 0x58f   : > { %vm3230_vm5 = vcmp.eq.f32.partialorder %v8904_v38, %v3151_v11  ;;  %vm3231_vm9 = vcmp.eq.f32.partialorder %v8907_v33, %v3151_v11  ;;  %v13980_v11 = vld [vmem:[#allocation13_spill] sm:$0xff] }
 0x590   : > { %v10654_v9 = vsel %vm3230_vm5, inf, %v13976_v0  ;;  %7385 = vmatprep.subr.msk.mxu0 %vm3231_vm9, %v13977_v44  ;;  %v10658_v26 = vsel %vm3231_vm9, inf, %v13978_v5  ;;  %v13983_v5 = vld [vmem:[#allocation12_spill] sm:$0xff] }
 0x591   : > { %13979 = vst [vmem:[#allocation11_spill] sm:$0xff] %v10658_v26  ;;  %7386 = vmatpush1.xpose.msk.msra.mxu0 %vm3230_vm5, %v13977_v44  ;;  %v3576_v57 = vmin.f32 %v10654_v9, %v10658_v26 }
 0x592   : > { %v3148_v50 = vpop.xlane.xlu1 %3147 }
 0x593   : > { %vm3228_vm15 = vcmp.eq.f32.partialorder %v8904_v38, %v3148_v50  ;;  %3577 = vmin.xlane.f32.xlu1 %v3576_v57  ;;  %vm3229_vm10 = vcmp.eq.f32.partialorder %v8907_v33, %v3148_v50  ;;  %v13985_v50 = vld [vmem:[#allocation7_spill] sm:$0xff] }
 0x594   : > { %v10666_v24 = vsel %vm3228_vm15, inf, %v13980_v11  ;;  %7387 = vmatprep.subr.msk.mxu0 %vm3229_vm10, %v13977_v44  ;;  %v10670_v29 = vsel %vm3229_vm10, inf, %v13964_v31 }
 0x595   : > { %13981 = vst [vmem:[#allocation5_spill] sm:$0xff] %v10666_v24  ;;  %13982 = vst [vmem:[#allocation15_spill] sm:$0xff] %v10670_v29  ;;  %7388 = vmatpush1.xpose.msk.msra.mxu0 %vm3228_vm15, %v13977_v44  ;;  %v3573_v45 = vmin.f32 %v10666_v24, %v10670_v29 }
 0x596   : > { %v3145_v0 = vpop.xlane.xlu1 %3144 }
 0x597   : > { %vm3226_vm7 = vcmp.eq.f32.partialorder %v8904_v38, %v3145_v0  ;;  %3574 = vmin.xlane.f32.xlu1 %v3573_v45  ;;  %vm3227_vm11 = vcmp.eq.f32.partialorder %v8907_v33, %v3145_v0  ;;  %v13987_v45 = vld [vmem:[#allocation17_spill] sm:$0xff] }
 0x598   : > { %v10678_v57 = vsel %vm3226_vm7, inf, %v13983_v5  ;;  %7389 = vmatprep.subr.msk.mxu0 %vm3227_vm11, %v13977_v44  ;;  %v10682_v11 = vsel %vm3227_vm11, inf, %v13985_v50 }
 0x599   : > { %13984 = vst [vmem:[#allocation10_spill] sm:$0xff] %v10678_v57  ;;  %13986 = vst [vmem:[#allocation18_spill] sm:$0xff] %v10682_v11  ;;  %7390 = vmatpush1.xpose.msk.msra.mxu0 %vm3226_vm7, %v13977_v44  ;;  %v3570_v31 = vmin.f32 %v10678_v57, %v10682_v11 }
 0x59a   : > { %v3142_v29 = vpop.xlane.xlu1 %3141 }
 0x59b   : > { %vm3224_vm12 = vcmp.eq.f32.partialorder %v8904_v38, %v3142_v29  ;;  %3571 = vmin.xlane.f32.xlu1 %v3570_v31  ;;  %vm3225_vm13 = vcmp.eq.f32.partialorder %v8907_v33, %v3142_v29  ;;  %v13990_v29 = vld [vmem:[#allocation23_spill] sm:$0xff] }
 0x59c   : > { %v10690_v0 = vsel %vm3224_vm12, inf, %v13987_v45  ;;  %7391 = vmatprep.subr.msk.mxu0 %vm3225_vm13, %v13977_v44  ;;  %v10694_v5 = vsel %vm3225_vm13, inf, %v13967_v27 }
 0x59d   : > { %13988 = vst [vmem:[#allocation24_spill] sm:$0xff] %v10690_v0  ;;  %13989 = vst [vmem:[#allocation26_spill] sm:$0xff] %v10694_v5  ;;  %7392 = vmatpush1.xpose.msk.msra.mxu0 %vm3224_vm12, %v13977_v44  ;;  %v3567_v50 = vmin.f32 %v10690_v0, %v10694_v5 }
 0x59e   : > { %v3139_v11 = vpop.xlane.xlu1 %3138 }
 0x59f   : > { %vm3222_vm2 = vcmp.eq.f32.partialorder %v8904_v38, %v3139_v11  ;;  %3568 = vmin.xlane.f32.xlu1 %v3567_v50  ;;  %vm3223_vm3 = vcmp.eq.f32.partialorder %v8907_v33, %v3139_v11  ;;  %v13993_v11 = vld [vmem:[#allocation20_spill] sm:$0xff] }
 0x5a0   : > { %v10702_v31 = vsel %vm3222_vm2, inf, %v13990_v29  ;;  %7393 = vmatprep.subr.msk.mxu0 %vm3223_vm3, %v13977_v44  ;;  %v10706_v45 = vsel %vm3223_vm3, inf, %v13968_v2 }
 0x5a1   : > { %13991 = vst [vmem:[#allocation27_spill] sm:$0xff] %v10702_v31  ;;  %13992 = vst [vmem:[#allocation8_spill] sm:$0xff] %v10706_v45  ;;  %7394 = vmatpush1.xpose.msk.msra.mxu0 %vm3222_vm2, %v13977_v44  ;;  %v3564_v27 = vmin.f32 %v10702_v31, %v10706_v45 }
 0x5a2   : > { %v3136_v5 = vpop.xlane.xlu1 %3135 }
 0x5a3   : > { %vm3220_vm4 = vcmp.eq.f32.partialorder %v8904_v38, %v3136_v5  ;;  %3565 = vmin.xlane.f32.xlu1 %v3564_v27  ;;  %vm3221_vm6 = vcmp.eq.f32.partialorder %v8907_v33, %v3136_v5  ;;  %v13996_v27 = vld [vmem:[#allocation22_spill] sm:$0xff] }
 0x5a4   : > { %v10714_v50 = vsel %vm3220_vm4, inf, %v13993_v11  ;;  %7395 = vmatprep.subr.msk.mxu0 %vm3221_vm6, %v13977_v44  ;;  %v10718_v29 = vsel %vm3221_vm6, inf, %v13970_v48 }
 0x5a5   : > { %13994 = vst [vmem:[#allocation19_spill] sm:$0xff] %v10714_v50  ;;  %13995 = vst [vmem:[#allocation13_spill] sm:$0xff] %v10718_v29  ;;  %7396 = vmatpush1.xpose.msk.msra.mxu0 %vm3220_vm4, %v13977_v44  ;;  %v3561_v2 = vmin.f32 %v10714_v50, %v10718_v29 }
 0x5a6   : > { %v3133_v45 = vpop.xlane.xlu1 %3132 }
 0x5a7   : > { %vm3218_vm14 = vcmp.eq.f32.partialorder %v8904_v38, %v3133_v45  ;;  %3562 = vmin.xlane.f32.xlu1 %v3561_v2  ;;  %vm3219_vm8 = vcmp.eq.f32.partialorder %v8907_v33, %v3133_v45 }
 0x5a8   : > { %v10726_v5 = vsel %vm3218_vm14, inf, %v10192_v54  ;;  %7397 = vmatprep.subr.msk.mxu0 %vm3219_vm8, %v13977_v44  ;;  %v10730_v11 = vsel %vm3219_vm8, inf, %v13996_v27  ;;  %v14000_v27 = vld [vmem:[#allocation21_spill] sm:$0xff] }
 0x5a9   : > { %13997 = vst [vmem:[#allocation12_spill] sm:$0xff] %v10730_v11  ;;  %7398 = vmatpush1.xpose.msk.msra.mxu0 %vm3218_vm14, %v13977_v44  ;;  %v3558_v48 = vmin.f32 %v10726_v5, %v10730_v11 }
 0x5aa   : > { %v3130_v29 = vpop.xlane.xlu1 %3129  ;;  %v10735_v50 = vpop.xlane.xlu0 %3108 }
 0x5ab   : > { %vm3216_vm5 = vcmp.eq.f32.partialorder %v8904_v38, %v3130_v29  ;;  %vm3202_vm9 = vcmp.eq.f32.partialorder %v8904_v38, %v10735_v50  ;;  %vm3203_vm15 = vcmp.eq.f32.partialorder %v8907_v33, %v10735_v50  ;;  %3559 = vmin.xlane.f32.xlu1 %v3558_v48  ;;  %vm3217_vm10 = vcmp.eq.f32.partialorder %v8907_v33, %v3130_v29 }
 0x5ac   : > { %v10744_v54 = vsel %vm3216_vm5, inf, %v10210_v23  ;;  %v10750_v45 = vsel %vm3202_vm9, inf, %v13971_v58  ;;  %v10756_v2 = vsel %vm3203_vm15, inf, %v13972_v51  ;;  %7399 = vmatprep.subr.msk.mxu0 %vm3217_vm10, %v13977_v44  ;;  %v10760_v48 = vsel %vm3217_vm10, inf, %v14000_v27 }
 0x5ad   : > { %13998 = vst [vmem:[#allocation7_spill] sm:$0xff] %v10750_v45  ;;  %13999 = vst [vmem:[#allocation17_spill] sm:$0xff] %v10756_v2  ;;  %7400 = vmatpush1.xpose.msk.msra.mxu0 %vm3216_vm5, %v13977_v44  ;;  %v3555_v23 = vmin.f32 %v10744_v54, %v10760_v48  ;;  %v3534_v58 = vmin.f32 %v10750_v45, %v10756_v2 }
 0x5ae   : > { %14001 = vst [vmem:[#allocation23_spill] sm:$0xff] %v10760_v48  ;;  %v3127_v29 = vpop.xlane.xlu1 %3126 }
 0x5af   : > { %vm3214_vm7 = vcmp.eq.f32.partialorder %v8904_v38, %v3127_v29  ;;  %3556 = vmin.xlane.f32.xlu1 %v3555_v23  ;;  %3535 = vmin.xlane.f32.xlu0 %v3534_v58  ;;  %vm3215_vm11 = vcmp.eq.f32.partialorder %v8907_v33, %v3127_v29 }
 0x5b0   : > { %v10770_v51 = vsel %vm3214_vm7, inf, %v10236_v46  ;;  %7401 = vmatprep.subr.msk.mxu0 %vm3215_vm11, %v13977_v44  ;;  %v10774_v27 = vsel %vm3215_vm11, inf, %v10240_v59 }
 0x5b1   : > { %7402 = vmatpush1.xpose.msk.msra.mxu0 %vm3214_vm7, %v13977_v44  ;;  %v3552_v2 = vmin.f32 %v10770_v51, %v10774_v27 }
 0x5b2   : > { %v3124_v45 = vpop.xlane.xlu1 %3123 }
 0x5b3   : > { %vm3212_vm12 = vcmp.eq.f32.partialorder %v8904_v38, %v3124_v45  ;;  %3553 = vmin.xlane.f32.xlu1 %v3552_v2  ;;  %vm3213_vm13 = vcmp.eq.f32.partialorder %v8907_v33, %v3124_v45 }
 0x5b4   : > { %v10782_v23 = vsel %vm3212_vm12, inf, %v10248_v10  ;;  %7403 = vmatprep.subr.msk.mxu0 %vm3213_vm13, %v13977_v44  ;;  %v10786_v46 = vsel %vm3213_vm13, inf, %v10252_v1 }
 0x5b5   : > { %7404 = vmatpush1.xpose.msk.msra.mxu0 %vm3212_vm12, %v13977_v44  ;;  %v3549_v59 = vmin.f32 %v10782_v23, %v10786_v46 }
 0x5b6   : > { %v3121_v58 = vpop.xlane.xlu1 %3120 }
 0x5b7   : > { %vm3210_vm2 = vcmp.eq.f32.partialorder %v8904_v38, %v3121_v58  ;;  %3550 = vmin.xlane.f32.xlu1 %v3549_v59  ;;  %vm3211_vm3 = vcmp.eq.f32.partialorder %v8907_v33, %v3121_v58 }
 0x5b8   : > { %v10794_v45 = vsel %vm3210_vm2, inf, %v10260_v37  ;;  %7405 = vmatprep.subr.msk.mxu0 %vm3211_vm3, %v13977_v44  ;;  %v10798_v10 = vsel %vm3211_vm3, inf, %v10264_v62 }
 0x5b9   : > { %7406 = vmatpush1.xpose.msk.msra.mxu0 %vm3210_vm2, %v13977_v44  ;;  %v3546_v1 = vmin.f32 %v10794_v45, %v10798_v10 }
 0x5ba   : > { %v3118_v2 = vpop.xlane.xlu1 %3117 }
 0x5bb   : > { %vm3208_vm4 = vcmp.eq.f32.partialorder %v8904_v38, %v3118_v2  ;;  %3547 = vmin.xlane.f32.xlu1 %v3546_v1  ;;  %vm3209_vm6 = vcmp.eq.f32.partialorder %v8907_v33, %v3118_v2 }
 0x5bc   : > { %v10806_v29 = vsel %vm3208_vm4, inf, %v10272_v47  ;;  %7407 = vmatprep.subr.msk.mxu0 %vm3209_vm6, %v13977_v44  ;;  %v10810_v37 = vsel %vm3209_vm6, inf, %v10276_v53 }
 0x5bd   : > { %7408 = vmatpush1.xpose.msk.msra.mxu0 %vm3208_vm4, %v13977_v44  ;;  %v3543_v62 = vmin.f32 %v10806_v29, %v10810_v37 }
 0x5be   : > { %v3115_v59 = vpop.xlane.xlu1 %3114 }
 0x5bf   : > { %vm3206_vm14 = vcmp.eq.f32.partialorder %v8904_v38, %v3115_v59  ;;  %3544 = vmin.xlane.f32.xlu1 %v3543_v62  ;;  %vm3207_vm8 = vcmp.eq.f32.partialorder %v8907_v33, %v3115_v59 }
 0x5c0   : > { %v10818_v58 = vsel %vm3206_vm14, inf, %v10284_v49  ;;  %7409 = vmatprep.subr.msk.mxu0 %vm3207_vm8, %v13977_v44  ;;  %v10822_v47 = vsel %vm3207_vm8, inf, %v10288_v15 }
 0x5c1   : > { %7410 = vmatpush1.xpose.msk.msra.mxu0 %vm3206_vm14, %v13977_v44  ;;  %v3540_v53 = vmin.f32 %v10818_v58, %v10822_v47 }
 0x5c2   : > { %v3112_v1 = vpop.xlane.xlu1 %3111 }
 0x5c3   : > { %vm3204_vm5 = vcmp.eq.f32.partialorder %v8904_v38, %v3112_v1  ;;  %3541 = vmin.xlane.f32.xlu1 %v3540_v53  ;;  %vm3205_vm10 = vcmp.eq.f32.partialorder %v8907_v33, %v3112_v1 }
 0x5c4   : > { %v10830_v2 = vsel %vm3204_vm5, inf, %v10296_v61  ;;  %7411 = vmatprep.subr.msk.mxu0 %vm3205_vm10, %v13977_v44  ;;  %v10834_v49 = vsel %vm3205_vm10, inf, %v10300_v40 }
 0x5c5   : > { %7412 = vmatpush1.xpose.msk.msra.mxu0 %vm3204_vm5, %v13977_v44  ;;  %v3537_v15 = vmin.f32 %v10830_v2, %v10834_v49 }
 0x5c6   : > { %v3106_v62 = vpop.xlane.xlu1 %3105  ;;  %7413 = vmatprep.subr.msk.mxu0 %vm3203_vm15, %v13977_v44 }
 0x5c7   : > { %vm3200_vm7 = vcmp.eq.f32.partialorder %v8904_v38, %v3106_v62  ;;  %3538 = vmin.xlane.f32.xlu1 %v3537_v15  ;;  %vm3201_vm11 = vcmp.eq.f32.partialorder %v8907_v33, %v3106_v62 }
 0x5c8   : > { %v10846_v61 = vsel %vm3200_vm7, inf, %v10312_v32  ;;  %v10849_v40 = vsel %vm3201_vm11, inf, %v10315_v4 }
 0x5c9   : > { %7414 = vmatpush1.xpose.msk.msra.mxu0 %vm3202_vm9, %v13977_v44  ;;  %v3531_v59 = vmin.f32 %v10846_v61, %v10849_v40 }
 0x5ca   : > { %7415 = vmatprep.subr.msk.mxu0 %vm3201_vm11, %v13977_v44 }
 0x5cb   : > { %3532 = vmin.xlane.f32.xlu1 %v3531_v59  ;;  %v3196_v53 = vpop.xlane.xlu1 %3195 }
 0x5cc   : > { %vm3260_vm15 = vcmp.eq.f32.partialorder %v8904_v38, %v3196_v53  ;;  %vm3261_vm12 = vcmp.eq.f32.partialorder %v8907_v33, %v3196_v53 }
 0x5cd   : > { %v10863_v32 = vsel %vm3260_vm15, inf, %v10329_v30  ;;  %v10866_v4 = vsel %vm3261_vm12, inf, %v10332_v35  ;;  %7416 = vmatpush1.xpose.msk.msra.mxu0 %vm3200_vm7, %v13977_v44 }
 0x5ce   : > { %v3621_v50 = vmin.f32 %v10863_v32, %v10866_v4 }
 0x5cf   : > { %v3199_v1 = vpop.xlane.xlu0 %3198 }
 0x5d0   : > { %vm3262_vm9 = vcmp.eq.f32.partialorder %v8904_v38, %v3199_v1  ;;  %3622 = vmin.xlane.f32.xlu1 %v3621_v50  ;;  %vm3263_vm13 = vcmp.eq.f32.partialorder %v8907_v33, %v3199_v1 }
 0x5d1   : > { %v10874_v15 = vsel %vm3262_vm9, inf, %v10340_v20  ;;  %7417 = vmatprep.subr.msk.mxu0 %vm3263_vm13, %v13977_v44  ;;  %v10878_v30 = vsel %vm3263_vm13, inf, %v10344_v63 }
 0x5d2   : > { %7418 = vmatpush2.xpose.msk.msra.mxu0 %vm3262_vm9, %v13977_v44  ;;  %v3624_v35 = vmin.f32 %v10874_v15, %v10878_v30 }
 0x5d3   : > { %7419 = vmatprep.subr.msk.mxu0 %vm3261_vm12, %v13977_v44  ;;  %v3193_v62 = vpop.xlane.xlu0 %3192 }
 0x5d4   : > { %vm3258_vm2 = vcmp.eq.f32.partialorder %v8904_v38, %v3193_v62  ;;  %3625 = vmin.xlane.f32.xlu0 %v3624_v35  ;;  %vm3259_vm3 = vcmp.eq.f32.partialorder %v8907_v33, %v3193_v62 }
 0x5d5   : > { %v10887_v20 = vsel %vm3258_vm2, inf, %v10353_v22  ;;  %v10890_v59 = vsel %vm3259_vm3, inf, %v10356_v21 }
 0x5d6   : > { %7420 = vmatpush2.xpose.msk.msra.mxu0 %vm3260_vm15, %v13977_v44  ;;  %v3618_v63 = vmin.f32 %v10887_v20, %v10890_v59 }
 0x5d7   : > { %7421 = vmatprep.subr.msk.mxu0 %vm3259_vm3, %v13977_v44  ;;  %v3190_v50 = vpop.xlane.xlu0 %3189 }
 0x5d8   : > { %vm3256_vm4 = vcmp.eq.f32.partialorder %v8904_v38, %v3190_v50  ;;  %3619 = vmin.xlane.f32.xlu0 %v3618_v63  ;;  %vm3257_vm6 = vcmp.eq.f32.partialorder %v8907_v33, %v3190_v50 }
 0x5d9   : > { %v10901_v22 = vsel %vm3256_vm4, inf, %v10367_v14  ;;  %v10904_v21 = vsel %vm3257_vm6, inf, %v10370_v6 }
 0x5da   : > { %7422 = vmatpush2.xpose.msk.msra.mxu0 %vm3258_vm2, %v13977_v44  ;;  %v3615_v53 = vmin.f32 %v10901_v22, %v10904_v21 }
 0x5db   : > { %7423 = vmatprep.subr.msk.mxu0 %vm3257_vm6, %v13977_v44  ;;  %v3187_v1 = vpop.xlane.xlu0 %3186 }
 0x5dc   : > { %vm3254_vm14 = vcmp.eq.f32.partialorder %v8904_v38, %v3187_v1  ;;  %3616 = vmin.xlane.f32.xlu0 %v3615_v53  ;;  %vm3255_vm8 = vcmp.eq.f32.partialorder %v8907_v33, %v3187_v1 }
 0x5dd   : > { %v10913_v35 = vsel %vm3254_vm14, inf, %v10379_v7  ;;  %v10916_v14 = vsel %vm3255_vm8, inf, %v10382_v52 }
 0x5de   : > { %7424 = vmatpush2.xpose.msk.msra.mxu0 %vm3256_vm4, %v13977_v44  ;;  %v3612_v6 = vmin.f32 %v10913_v35, %v10916_v14 }
 0x5df   : > { %7425 = vmatprep.subr.msk.mxu0 %vm3255_vm8, %v13977_v44  ;;  %v3184_v62 = vpop.xlane.xlu0 %3183 }
 0x5e0   : > { %vm3252_vm5 = vcmp.eq.f32.partialorder %v8904_v38, %v3184_v62  ;;  %3613 = vmin.xlane.f32.xlu0 %v3612_v6  ;;  %vm3253_vm10 = vcmp.eq.f32.partialorder %v8907_v33, %v3184_v62 }
 0x5e1   : > { %v10925_v63 = vsel %vm3252_vm5, inf, %v10391_v36  ;;  %v10928_v7 = vsel %vm3253_vm10, inf, %v10394_v19 }
 0x5e2   : > { %7426 = vmatpush2.xpose.msk.msra.mxu0 %vm3254_vm14, %v13977_v44  ;;  %v3609_v52 = vmin.f32 %v10925_v63, %v10928_v7 }
 0x5e3   : > { %7427 = vmatprep.subr.msk.mxu0 %vm3253_vm10, %v13977_v44  ;;  %v3181_v50 = vpop.xlane.xlu0 %3180 }
 0x5e4   : > { %vm3250_vm7 = vcmp.eq.f32.partialorder %v8904_v38, %v3181_v50  ;;  %3610 = vmin.xlane.f32.xlu0 %v3609_v52  ;;  %vm3251_vm11 = vcmp.eq.f32.partialorder %v8907_v33, %v3181_v50 }
 0x5e5   : > { %v10937_v53 = vsel %vm3250_vm7, inf, %v10403_v41  ;;  %v10940_v36 = vsel %vm3251_vm11, inf, %v10406_v16 }
 0x5e6   : > { %7428 = vmatpush2.xpose.msk.msra.mxu0 %vm3252_vm5, %v13977_v44  ;;  %v3606_v19 = vmin.f32 %v10937_v53, %v10940_v36 }
 0x5e7   : > { %7429 = vmatprep.subr.msk.mxu0 %vm3251_vm11, %v13977_v44  ;;  %v3178_v1 = vpop.xlane.xlu0 %3177 }
 0x5e8   : > { %vm3248_vm15 = vcmp.eq.f32.partialorder %v8904_v38, %v3178_v1  ;;  %3607 = vmin.xlane.f32.xlu0 %v3606_v19  ;;  %vm3249_vm12 = vcmp.eq.f32.partialorder %v8907_v33, %v3178_v1 }
 0x5e9   : > { %v10949_v6 = vsel %vm3248_vm15, inf, %v10415_v42  ;;  %v10952_v41 = vsel %vm3249_vm12, inf, %v10418_v3 }
 0x5ea   : > { %7430 = vmatpush2.xpose.msk.msra.mxu0 %vm3250_vm7, %v13977_v44  ;;  %v3603_v16 = vmin.f32 %v10949_v6, %v10952_v41 }
 0x5eb   : > { %7431 = vmatprep.subr.msk.mxu0 %vm3249_vm12, %v13977_v44  ;;  %v3175_v62 = vpop.xlane.xlu0 %3174 }
 0x5ec   : > { %vm3246_vm9 = vcmp.eq.f32.partialorder %v8904_v38, %v3175_v62  ;;  %3604 = vmin.xlane.f32.xlu0 %v3603_v16  ;;  %vm3247_vm13 = vcmp.eq.f32.partialorder %v8907_v33, %v3175_v62 }
 0x5ed   : > { %v10961_v52 = vsel %vm3246_vm9, inf, %v10427_v34  ;;  %v10964_v42 = vsel %vm3247_vm13, inf, %v10430_v56 }
 0x5ee   : > { %7432 = vmatpush2.xpose.msk.msra.mxu0 %vm3248_vm15, %v13977_v44  ;;  %v3600_v3 = vmin.f32 %v10961_v52, %v10964_v42 }
 0x5ef   : > { %7433 = vmatprep.subr.msk.mxu0 %vm3247_vm13, %v13977_v44  ;;  %v3172_v50 = vpop.xlane.xlu0 %3171 }
 0x5f0   : > { %vm3244_vm2 = vcmp.eq.f32.partialorder %v8904_v38, %v3172_v50  ;;  %3601 = vmin.xlane.f32.xlu0 %v3600_v3  ;;  %vm3245_vm3 = vcmp.eq.f32.partialorder %v8907_v33, %v3172_v50 }
 0x5f1   : > { %v10973_v19 = vsel %vm3244_vm2, inf, %v10439_v43  ;;  %v10976_v34 = vsel %vm3245_vm3, inf, %v10442_v55 }
 0x5f2   : > { %7434 = vmatpush2.xpose.msk.msra.mxu0 %vm3246_vm9, %v13977_v44  ;;  %v3597_v56 = vmin.f32 %v10973_v19, %v10976_v34 }
 0x5f3   : > { %7435 = vmatprep.subr.msk.mxu0 %vm3245_vm3, %v13977_v44  ;;  %v3169_v1 = vpop.xlane.xlu0 %3168 }
 0x5f4   : > { %vm3242_vm4 = vcmp.eq.f32.partialorder %v8904_v38, %v3169_v1  ;;  %3598 = vmin.xlane.f32.xlu0 %v3597_v56  ;;  %vm3243_vm6 = vcmp.eq.f32.partialorder %v8907_v33, %v3169_v1 }
 0x5f5   : > { %v10985_v16 = vsel %vm3242_vm4, inf, %v10451_v8  ;;  %v10988_v43 = vsel %vm3243_vm6, inf, %v10454_v28 }
 0x5f6   : > { %7436 = vmatpush2.xpose.msk.msra.mxu0 %vm3244_vm2, %v13977_v44  ;;  %v3594_v55 = vmin.f32 %v10985_v16, %v10988_v43 }
 0x5f7   : > { %7437 = vmatprep.subr.msk.mxu0 %vm3243_vm6, %v13977_v44  ;;  %v3166_v62 = vpop.xlane.xlu0 %3165 }
 0x5f8   : > { %vm3240_vm14 = vcmp.eq.f32.partialorder %v8904_v38, %v3166_v62  ;;  %3595 = vmin.xlane.f32.xlu0 %v3594_v55  ;;  %vm3241_vm8 = vcmp.eq.f32.partialorder %v8907_v33, %v3166_v62  ;;  %v14003_v55 = vld [vmem:[#allocation6_spill] sm:$0xff] }
 0x5f9   : > { %v10997_v3 = vsel %vm3240_vm14, inf, %v10463_v60  ;;  %v11000_v8 = vsel %vm3241_vm8, inf, %v10466_v39 }
 0x5fa   : > { %7438 = vmatpush2.xpose.msk.msra.mxu0 %vm3242_vm4, %v13977_v44  ;;  %v3591_v28 = vmin.f32 %v10997_v3, %v11000_v8 }
 0x5fb   : > { %7439 = vmatprep.subr.msk.mxu0 %vm3241_vm8, %v13977_v44  ;;  %v3163_v50 = vpop.xlane.xlu0 %3162 }
 0x5fc   : > { %vm3238_vm5 = vcmp.eq.f32.partialorder %v8904_v38, %v3163_v50  ;;  %3592 = vmin.xlane.f32.xlu0 %v3591_v28  ;;  %vm3239_vm10 = vcmp.eq.f32.partialorder %v8907_v33, %v3163_v50  ;;  %v14005_v50 = vld [vmem:[#allocation16_spill] sm:$0xff] }
 0x5fd   : > { %v11009_v56 = vsel %vm3238_vm5, inf, %v10475_v12  ;;  %v11012_v60 = vsel %vm3239_vm10, inf, %v10478_v17 }
 0x5fe   : > { %14002 = vst [vmem:[#allocation20_spill] sm:$0xff] %v11012_v60  ;;  %7440 = vmatpush2.xpose.msk.msra.mxu0 %vm3240_vm14, %v13977_v44  ;;  %v3588_v39 = vmin.f32 %v11009_v56, %v11012_v60 }
 0x5ff   : > { %7441 = vmatprep.subr.msk.mxu0 %vm3239_vm10, %v13977_v44  ;;  %v3160_v1 = vpop.xlane.xlu0 %3159 }
 0x600   : > { %vm3236_vm7 = vcmp.eq.f32.partialorder %v8904_v38, %v3160_v1  ;;  %3589 = vmin.xlane.f32.xlu0 %v3588_v39  ;;  %vm3237_vm11 = vcmp.eq.f32.partialorder %v8907_v33, %v3160_v1 }
 0x601   : > { %v11021_v62 = vsel %vm3236_vm7, inf, %v14003_v55  ;;  %v11024_v12 = vsel %vm3237_vm11, inf, %v10490_v13 }
 0x602   : > { %14004 = vst [vmem:[#allocation22_spill] sm:$0xff] %v11021_v62  ;;  %7442 = vmatpush2.xpose.msk.msra.mxu0 %vm3238_vm5, %v13977_v44  ;;  %v3585_v17 = vmin.f32 %v11021_v62, %v11024_v12 }
 0x603   : > { %7443 = vmatprep.subr.msk.mxu0 %vm3237_vm11, %v13977_v44  ;;  %v3157_v28 = vpop.xlane.xlu0 %3156 }
 0x604   : > { %vm3234_vm15 = vcmp.eq.f32.partialorder %v8904_v38, %v3157_v28  ;;  %3586 = vmin.xlane.f32.xlu0 %v3585_v17  ;;  %vm3235_vm12 = vcmp.eq.f32.partialorder %v8907_v33, %v3157_v28  ;;  %v14008_v17 = vld [vmem:[#allocation9_spill] sm:$0xff] }
 0x605   : > { %v11033_v39 = vsel %vm3234_vm15, inf, %v14005_v50  ;;  %v11036_v1 = vsel %vm3235_vm12, inf, %v13973_v18 }
 0x606   : > { %14006 = vst [vmem:[#allocation21_spill] sm:$0xff] %v11033_v39  ;;  %14007 = vst [vmem:[#allocation6_spill] sm:$0xff] %v11036_v1  ;;  %7444 = vmatpush2.xpose.msk.msra.mxu0 %vm3236_vm7, %v13977_v44  ;;  %v3582_v13 = vmin.f32 %v11033_v39, %v11036_v1  ;;  %v14011_v1 = vld [vmem:[#allocation14_spill] sm:$0xff] }
 0x607   : > { %7445 = vmatprep.subr.msk.mxu0 %vm3235_vm12, %v13977_v44  ;;  %v3154_v55 = vpop.xlane.xlu0 %3153 }
 0x608   : > { %vm3232_vm9 = vcmp.eq.f32.partialorder %v8904_v38, %v3154_v55  ;;  %3583 = vmin.xlane.f32.xlu0 %v3582_v13  ;;  %vm3233_vm13 = vcmp.eq.f32.partialorder %v8907_v33, %v3154_v55  ;;  %v14012_v13 = vld [vmem:[#allocation25_spill] sm:$0xff] }
 0x609   : > { %v11045_v28 = vsel %vm3232_vm9, inf, %v14008_v17  ;;  %v11048_v50 = vsel %vm3233_vm13, inf, %v13975_v25 }
 0x60a   : > { %14009 = vst [vmem:[#allocation16_spill] sm:$0xff] %v11045_v28  ;;  %14010 = vst [vmem:[#allocation9_spill] sm:$0xff] %v11048_v50  ;;  %7446 = vmatpush2.xpose.msk.msra.mxu0 %vm3234_vm15, %v13977_v44  ;;  %v3579_v18 = vmin.f32 %v11045_v28, %v11048_v50 }
 0x60b   : > { %7447 = vmatprep.subr.msk.mxu0 %vm3233_vm13, %v13977_v44 }
 0x60c   : > { %3580 = vmin.xlane.f32.xlu0 %v3579_v18  ;;  %v14013_v18 = vld [vmem:[#allocation15_spill] sm:$0xff] }
 0x60e   : > { %7448 = vmatpush2.xpose.msk.msra.mxu0 %vm3232_vm9, %v13977_v44 }
 0x611   : > { %3457 = vmatmul.mubr.f32.vlgmr.msra.gmra.mxu0 %v14011_v1 }
 0x612   : > { %4758 = vmatprep.mubr.f32.mxu0 %v14012_v13 }
 0x61c   : > { %v3578_v55 = vpop.xlane.xlu1 %3577 }
 0x61d   : > { %vm3657_vm2 = vcmp.eq.f32.partialorder %v10654_v9, %v3578_v55  ;;  %vm3658_vm3 = vcmp.eq.f32.partialorder %v10658_v26, %v3578_v55  ;;  %v14014_v55 = vld [vmem:[#allocation18_spill] sm:$0xff] }
 0x61e   : > { %v3721_v25 = vsel %vm3657_vm2, %v8904_v38, 256.0  ;;  %v3722_v17 = vsel %vm3658_vm3, %v8907_v33, 256.0 }
 0x61f   : > { %v3800_v39 = vmin.f32 %v3721_v25, %v3722_v17 }
 0x620   : > { %v3575_v50 = vpop.xlane.xlu1 %3574 }
 0x621   : > { %vm3655_vm4 = vcmp.eq.f32.partialorder %v10666_v24, %v3575_v50  ;;  %vm3656_vm6 = vcmp.eq.f32.partialorder %v14013_v18, %v3575_v50  ;;  %3801 = vmin.xlane.f32.xlu1 %v3800_v39  ;;  %v14015_v39 = vld [vmem:[#allocation26_spill] sm:$0xff] }
 0x622   : > { %v3719_v1 = vsel %vm3655_vm4, %v8904_v38, 256.0  ;;  %v3720_v13 = vsel %vm3656_vm6, %v8907_v33, 256.0 }
 0x623   : > { %v3797_v44 = vmin.f32 %v3719_v1, %v3720_v13 }
 0x624   : > { %v3572_v28 = vpop.xlane.xlu1 %3571 }
 0x625   : > { %vm3653_vm14 = vcmp.eq.f32.partialorder %v10678_v57, %v3572_v28  ;;  %vm3654_vm8 = vcmp.eq.f32.partialorder %v14014_v55, %v3572_v28  ;;  %3798 = vmin.xlane.f32.xlu1 %v3797_v44  ;;  %v14016_v44 = vld [vmem:[#allocation8_spill] sm:$0xff]  ;;  %v14017_v55 = vld [vmem:[#allocation19_spill] sm:$0xff] }
 0x626   : > { %v3717_v26 = vsel %vm3653_vm14, %v8904_v38, 256.0  ;;  %v3718_v25 = vsel %vm3654_vm8, %v8907_v33, 256.0 }
 0x627   : > { %v3794_v17 = vmin.f32 %v3717_v26, %v3718_v25 }
 0x628   : > { %v3569_v24 = vpop.xlane.xlu1 %3568 }
 0x629   : > { %vm3651_vm5 = vcmp.eq.f32.partialorder %v10690_v0, %v3569_v24  ;;  %vm3652_vm10 = vcmp.eq.f32.partialorder %v14015_v39, %v3569_v24  ;;  %3795 = vmin.xlane.f32.xlu1 %v3794_v17  ;;  %v14018_v24 = vld [vmem:[#allocation13_spill] sm:$0xff] }
 0x62a   : > { %v3715_v50 = vsel %vm3651_vm5, %v8904_v38, 256.0  ;;  %v3716_v1 = vsel %vm3652_vm10, %v8907_v33, 256.0 }
 0x62b   : > { %v3791_v13 = vmin.f32 %v3715_v50, %v3716_v1 }
 0x62c   : > { %v3566_v57 = vpop.xlane.xlu1 %3565 }
 0x62d   : > { %vm3649_vm7 = vcmp.eq.f32.partialorder %v10702_v31, %v3566_v57  ;;  %vm3650_vm11 = vcmp.eq.f32.partialorder %v14016_v44, %v3566_v57  ;;  %3792 = vmin.xlane.f32.xlu1 %v3791_v13 }
 0x62e   : > { %v3713_v28 = vsel %vm3649_vm7, %v8904_v38, 256.0  ;;  %v3714_v26 = vsel %vm3650_vm11, %v8907_v33, 256.0 }
 0x62f   : > { %v3788_v25 = vmin.f32 %v3713_v28, %v3714_v26 }
 0x630   : > { %v3563_v0 = vpop.xlane.xlu1 %3562 }
 0x631   : > { %vm3647_vm15 = vcmp.eq.f32.partialorder %v14017_v55, %v3563_v0  ;;  %vm3648_vm12 = vcmp.eq.f32.partialorder %v14018_v24, %v3563_v0  ;;  %3789 = vmin.xlane.f32.xlu1 %v3788_v25  ;;  %v14019_v0 = vld [vmem:[#allocation7_spill] sm:$0xff]  ;;  %v14020_v25 = vld [vmem:[#allocation17_spill] sm:$0xff] }
 0x632   : > { %v3711_v17 = vsel %vm3647_vm15, %v8904_v38, 256.0  ;;  %v3712_v50 = vsel %vm3648_vm12, %v8907_v33, 256.0 }
 0x633   : > { %v3785_v1 = vmin.f32 %v3711_v17, %v3712_v50 }
 0x634   : > { %v3560_v31 = vpop.xlane.xlu1 %3559 }
 0x635   : > { %vm3645_vm9 = vcmp.eq.f32.partialorder %v10726_v5, %v3560_v31  ;;  %vm3646_vm13 = vcmp.eq.f32.partialorder %v10730_v11, %v3560_v31  ;;  %3786 = vmin.xlane.f32.xlu1 %v3785_v1 }
 0x636   : > { %v3709_v57 = vsel %vm3645_vm9, %v8904_v38, 256.0  ;;  %v3710_v13 = vsel %vm3646_vm13, %v8907_v33, 256.0 }
 0x637   : > { %v3782_v28 = vmin.f32 %v3709_v57, %v3710_v13 }
 0x638   : > { %v3557_v26 = vpop.xlane.xlu1 %3556  ;;  %v3536_v55 = vpop.xlane.xlu0 %3535 }
 0x639   : > { %vm3643_vm2 = vcmp.eq.f32.partialorder %v10744_v54, %v3557_v26  ;;  %vm3644_vm3 = vcmp.eq.f32.partialorder %v10760_v48, %v3557_v26  ;;  %vm3629_vm4 = vcmp.eq.f32.partialorder %v14019_v0, %v3536_v55  ;;  %vm3630_vm6 = vcmp.eq.f32.partialorder %v14020_v25, %v3536_v55  ;;  %3783 = vmin.xlane.f32.xlu1 %v3782_v28 }
 0x63a   : > { %v3707_v17 = vsel %vm3643_vm2, %v8904_v38, 256.0  ;;  %v3708_v31 = vsel %vm3644_vm3, %v8907_v33, 256.0  ;;  %v3693_v50 = vsel %vm3629_vm4, %v8904_v38, 256.0  ;;  %v3694_v1 = vsel %vm3630_vm6, %v8907_v33, 256.0 }
 0x63b   : > { %v3779_v57 = vmin.f32 %v3707_v17, %v3708_v31  ;;  %v3758_v13 = vmin.f32 %v3693_v50, %v3694_v1 }
 0x63c   : > { %v3554_v11 = vpop.xlane.xlu1 %3553 }
 0x63d   : > { %vm3641_vm14 = vcmp.eq.f32.partialorder %v10770_v51, %v3554_v11  ;;  %vm3642_vm8 = vcmp.eq.f32.partialorder %v10774_v27, %v3554_v11  ;;  %3780 = vmin.xlane.f32.xlu1 %v3779_v57  ;;  %3759 = vmin.xlane.f32.xlu0 %v3758_v13 }
 0x63e   : > { %v3705_v55 = vsel %vm3641_vm14, %v8904_v38, 256.0  ;;  %v3706_v28 = vsel %vm3642_vm8, %v8907_v33, 256.0 }
 0x63f   : > { %v3776_v26 = vmin.f32 %v3705_v55, %v3706_v28 }
 0x640   : > { %v3551_v48 = vpop.xlane.xlu1 %3550 }
 0x641   : > { %vm3639_vm5 = vcmp.eq.f32.partialorder %v10782_v23, %v3551_v48  ;;  %vm3640_vm10 = vcmp.eq.f32.partialorder %v10786_v46, %v3551_v48  ;;  %3777 = vmin.xlane.f32.xlu1 %v3776_v26 }
 0x642   : > { %v3703_v17 = vsel %vm3639_vm5, %v8904_v38, 256.0  ;;  %v3704_v31 = vsel %vm3640_vm10, %v8907_v33, 256.0 }
 0x643   : > { %v3773_v50 = vmin.f32 %v3703_v17, %v3704_v31 }
 0x644   : > { %v3548_v1 = vpop.xlane.xlu1 %3547 }
 0x645   : > { %vm3637_vm7 = vcmp.eq.f32.partialorder %v10794_v45, %v3548_v1  ;;  %vm3638_vm11 = vcmp.eq.f32.partialorder %v10798_v10, %v3548_v1  ;;  %3774 = vmin.xlane.f32.xlu1 %v3773_v50 }
 0x646   : > { %v3701_v11 = vsel %vm3637_vm7, %v8904_v38, 256.0  ;;  %v3702_v57 = vsel %vm3638_vm11, %v8907_v33, 256.0 }
 0x647   : > { %v3770_v13 = vmin.f32 %v3701_v11, %v3702_v57 }
 0x648   : > { %v3545_v55 = vpop.xlane.xlu1 %3544 }
 0x649   : > { %vm3635_vm15 = vcmp.eq.f32.partialorder %v10806_v29, %v3545_v55  ;;  %vm3636_vm12 = vcmp.eq.f32.partialorder %v10810_v37, %v3545_v55  ;;  %3771 = vmin.xlane.f32.xlu1 %v3770_v13 }
 0x64a   : > { %v3699_v48 = vsel %vm3635_vm15, %v8904_v38, 256.0  ;;  %v3700_v28 = vsel %vm3636_vm12, %v8907_v33, 256.0 }
 0x64b   : > { %v3767_v26 = vmin.f32 %v3699_v48, %v3700_v28 }
 0x64c   : > { %v3542_v17 = vpop.xlane.xlu1 %3541 }
 0x64d   : > { %vm3633_vm9 = vcmp.eq.f32.partialorder %v10818_v58, %v3542_v17  ;;  %vm3634_vm13 = vcmp.eq.f32.partialorder %v10822_v47, %v3542_v17  ;;  %3768 = vmin.xlane.f32.xlu1 %v3767_v26 }
 0x64e   : > { %v3697_v31 = vsel %vm3633_vm9, %v8904_v38, 256.0  ;;  %v3698_v50 = vsel %vm3634_vm13, %v8907_v33, 256.0 }
 0x64f   : > { %v3764_v1 = vmin.f32 %v3697_v31, %v3698_v50 }
 0x650   : > { %v3539_v11 = vpop.xlane.xlu1 %3538 }
 0x651   : > { %vm3631_vm2 = vcmp.eq.f32.partialorder %v10830_v2, %v3539_v11  ;;  %vm3632_vm3 = vcmp.eq.f32.partialorder %v10834_v49, %v3539_v11  ;;  %3765 = vmin.xlane.f32.xlu1 %v3764_v1 }
 0x652   : > { %v3695_v57 = vsel %vm3631_vm2, %v8904_v38, 256.0  ;;  %v3696_v13 = vsel %vm3632_vm3, %v8907_v33, 256.0 }
 0x653   : > { %v3761_v55 = vmin.f32 %v3695_v57, %v3696_v13 }
 0x654   : > { %v3533_v48 = vpop.xlane.xlu1 %3532 }
 0x655   : > { %vm3627_vm4 = vcmp.eq.f32.partialorder %v10846_v61, %v3533_v48  ;;  %vm3628_vm6 = vcmp.eq.f32.partialorder %v10849_v40, %v3533_v48  ;;  %3762 = vmin.xlane.f32.xlu1 %v3761_v55 }
 0x656   : > { %v3691_v28 = vsel %vm3627_vm4, %v8904_v38, 256.0  ;;  %v3692_v26 = vsel %vm3628_vm6, %v8907_v33, 256.0 }
 0x657   : > { %v3755_v17 = vmin.f32 %v3691_v28, %v3692_v26 }
 0x659   : > { %3756 = vmin.xlane.f32.xlu1 %v3755_v17  ;;  %v3623_v31 = vpop.xlane.xlu1 %3622 }
 0x65a   : > { %vm3687_vm14 = vcmp.eq.f32.partialorder %v10863_v32, %v3623_v31  ;;  %vm3688_vm8 = vcmp.eq.f32.partialorder %v10866_v4, %v3623_v31 }
 0x65b   : > { %v3751_v50 = vsel %vm3687_vm14, %v8904_v38, 256.0  ;;  %v3752_v1 = vsel %vm3688_vm8, %v8907_v33, 256.0 }
 0x65c   : > { %v3845_v11 = vmin.f32 %v3751_v50, %v3752_v1 }
 0x65d   : > { %v3626_v57 = vpop.xlane.xlu0 %3625 }
 0x65e   : > { %vm3689_vm5 = vcmp.eq.f32.partialorder %v10874_v15, %v3626_v57  ;;  %vm3690_vm10 = vcmp.eq.f32.partialorder %v10878_v30, %v3626_v57  ;;  %3846 = vmin.xlane.f32.xlu1 %v3845_v11 }
 0x65f   : > { %v3753_v13 = vsel %vm3689_vm5, %v8904_v38, 256.0  ;;  %v3754_v55 = vsel %vm3690_vm10, %v8907_v33, 256.0 }
 0x660   : > { %v3848_v48 = vmin.f32 %v3753_v13, %v3754_v55 }
 0x661   : > { %v3620_v28 = vpop.xlane.xlu0 %3619 }
 0x662   : > { %vm3685_vm7 = vcmp.eq.f32.partialorder %v10887_v20, %v3620_v28  ;;  %vm3686_vm11 = vcmp.eq.f32.partialorder %v10890_v59, %v3620_v28  ;;  %3849 = vmin.xlane.f32.xlu0 %v3848_v48 }
 0x663   : > { %v3749_v26 = vsel %vm3685_vm7, %v8904_v38, 256.0  ;;  %v3750_v17 = vsel %vm3686_vm11, %v8907_v33, 256.0 }
 0x664   : > { %v3842_v31 = vmin.f32 %v3749_v26, %v3750_v17 }
 0x665   : > { %v3617_v50 = vpop.xlane.xlu0 %3616 }
 0x666   : > { %vm3683_vm15 = vcmp.eq.f32.partialorder %v10901_v22, %v3617_v50  ;;  %vm3684_vm12 = vcmp.eq.f32.partialorder %v10904_v21, %v3617_v50  ;;  %3843 = vmin.xlane.f32.xlu0 %v3842_v31 }
 0x667   : > { %v3747_v1 = vsel %vm3683_vm15, %v8904_v38, 256.0  ;;  %v3748_v11 = vsel %vm3684_vm12, %v8907_v33, 256.0 }
 0x668   : > { %v3839_v57 = vmin.f32 %v3747_v1, %v3748_v11 }
 0x669   : > { %v3614_v13 = vpop.xlane.xlu0 %3613 }
 0x66a   : > { %vm3681_vm9 = vcmp.eq.f32.partialorder %v10913_v35, %v3614_v13  ;;  %vm3682_vm13 = vcmp.eq.f32.partialorder %v10916_v14, %v3614_v13  ;;  %3840 = vmin.xlane.f32.xlu0 %v3839_v57 }
 0x66b   : > { %v3745_v55 = vsel %vm3681_vm9, %v8904_v38, 256.0  ;;  %v3746_v48 = vsel %vm3682_vm13, %v8907_v33, 256.0 }
 0x66c   : > { %v3836_v28 = vmin.f32 %v3745_v55, %v3746_v48 }
 0x66d   : > { %v3611_v26 = vpop.xlane.xlu0 %3610 }
 0x66e   : > { %vm3679_vm2 = vcmp.eq.f32.partialorder %v10925_v63, %v3611_v26  ;;  %vm3680_vm3 = vcmp.eq.f32.partialorder %v10928_v7, %v3611_v26  ;;  %3837 = vmin.xlane.f32.xlu0 %v3836_v28 }
 0x66f   : > { %v3743_v17 = vsel %vm3679_vm2, %v8904_v38, 256.0  ;;  %v3744_v31 = vsel %vm3680_vm3, %v8907_v33, 256.0 }
 0x670   : > { %v3833_v50 = vmin.f32 %v3743_v17, %v3744_v31 }
 0x671   : > { %v3608_v1 = vpop.xlane.xlu0 %3607 }
 0x672   : > { %vm3677_vm4 = vcmp.eq.f32.partialorder %v10937_v53, %v3608_v1  ;;  %vm3678_vm6 = vcmp.eq.f32.partialorder %v10940_v36, %v3608_v1  ;;  %3834 = vmin.xlane.f32.xlu0 %v3833_v50 }
 0x673   : > { %v3741_v11 = vsel %vm3677_vm4, %v8904_v38, 256.0  ;;  %v3742_v57 = vsel %vm3678_vm6, %v8907_v33, 256.0 }
 0x674   : > { %v3830_v13 = vmin.f32 %v3741_v11, %v3742_v57 }
 0x675   : > { %v3605_v55 = vpop.xlane.xlu0 %3604 }
 0x676   : > { %vm3675_vm14 = vcmp.eq.f32.partialorder %v10949_v6, %v3605_v55  ;;  %vm3676_vm8 = vcmp.eq.f32.partialorder %v10952_v41, %v3605_v55  ;;  %3831 = vmin.xlane.f32.xlu0 %v3830_v13 }
 0x677   : > { %v3739_v48 = vsel %vm3675_vm14, %v8904_v38, 256.0  ;;  %v3740_v28 = vsel %vm3676_vm8, %v8907_v33, 256.0 }
 0x678   : > { %v3827_v26 = vmin.f32 %v3739_v48, %v3740_v28 }
 0x679   : > { %v3602_v17 = vpop.xlane.xlu0 %3601 }
 0x67a   : > { %vm3673_vm5 = vcmp.eq.f32.partialorder %v10961_v52, %v3602_v17  ;;  %vm3674_vm10 = vcmp.eq.f32.partialorder %v10964_v42, %v3602_v17  ;;  %3828 = vmin.xlane.f32.xlu0 %v3827_v26 }
 0x67b   : > { %v3737_v31 = vsel %vm3673_vm5, %v8904_v38, 256.0  ;;  %v3738_v50 = vsel %vm3674_vm10, %v8907_v33, 256.0 }
 0x67c   : > { %v3824_v1 = vmin.f32 %v3737_v31, %v3738_v50 }
 0x67d   : > { %v3599_v11 = vpop.xlane.xlu0 %3598 }
 0x67e   : > { %vm3671_vm7 = vcmp.eq.f32.partialorder %v10973_v19, %v3599_v11  ;;  %vm3672_vm11 = vcmp.eq.f32.partialorder %v10976_v34, %v3599_v11  ;;  %3825 = vmin.xlane.f32.xlu0 %v3824_v1 }
 0x67f   : > { %v3735_v57 = vsel %vm3671_vm7, %v8904_v38, 256.0  ;;  %v3736_v13 = vsel %vm3672_vm11, %v8907_v33, 256.0 }
 0x680   : > { %v3821_v55 = vmin.f32 %v3735_v57, %v3736_v13 }
 0x681   : > { %v3596_v48 = vpop.xlane.xlu0 %3595 }
 0x682   : > { %vm3669_vm15 = vcmp.eq.f32.partialorder %v10985_v16, %v3596_v48  ;;  %vm3670_vm12 = vcmp.eq.f32.partialorder %v10988_v43, %v3596_v48  ;;  %3822 = vmin.xlane.f32.xlu0 %v3821_v55 }
 0x683   : > { %v3733_v28 = vsel %vm3669_vm15, %v8904_v38, 256.0  ;;  %v3734_v26 = vsel %vm3670_vm12, %v8907_v33, 256.0 }
 0x684   : > { %v3818_v17 = vmin.f32 %v3733_v28, %v3734_v26 }
 0x685   : > { %v3593_v31 = vpop.xlane.xlu0 %3592 }
 0x686   : > { %vm3667_vm9 = vcmp.eq.f32.partialorder %v10997_v3, %v3593_v31  ;;  %vm3668_vm13 = vcmp.eq.f32.partialorder %v11000_v8, %v3593_v31  ;;  %3819 = vmin.xlane.f32.xlu0 %v3818_v17 }
 0x687   : > { %v3731_v50 = vsel %vm3667_vm9, %v8904_v38, 256.0  ;;  %v3732_v1 = vsel %vm3668_vm13, %v8907_v33, 256.0 }
 0x688   : > { %v3815_v11 = vmin.f32 %v3731_v50, %v3732_v1  ;;  %v14021_v1 = vld [vmem:[#allocation21_spill] sm:$0xff] }
 0x689   : > { %v3590_v57 = vpop.xlane.xlu0 %3589 }
 0x68a   : > { %vm3665_vm2 = vcmp.eq.f32.partialorder %v11009_v56, %v3590_v57  ;;  %vm3666_vm3 = vcmp.eq.f32.partialorder %v11012_v60, %v3590_v57  ;;  %3816 = vmin.xlane.f32.xlu0 %v3815_v11  ;;  %v14022_v11 = vld [vmem:[#allocation6_spill] sm:$0xff]  ;;  %v14023_v60 = vld [vmem:[#allocation16_spill] sm:$0xff] }
 0x68b   : > { %v3729_v13 = vsel %vm3665_vm2, %v8904_v38, 256.0  ;;  %v3730_v55 = vsel %vm3666_vm3, %v8907_v33, 256.0 }
 0x68c   : > { %v3812_v48 = vmin.f32 %v3729_v13, %v3730_v55 }
 0x68d   : > { %v3587_v28 = vpop.xlane.xlu0 %3586 }
 0x68e   : > { %vm3663_vm4 = vcmp.eq.f32.partialorder %v11021_v62, %v3587_v28  ;;  %vm3664_vm6 = vcmp.eq.f32.partialorder %v11024_v12, %v3587_v28  ;;  %3813 = vmin.xlane.f32.xlu0 %v3812_v48  ;;  %v14024_v48 = vld [vmem:[#allocation9_spill] sm:$0xff] }
 0x68f   : > { %v3727_v26 = vsel %vm3663_vm4, %v8904_v38, 256.0  ;;  %v3728_v17 = vsel %vm3664_vm6, %v8907_v33, 256.0 }
 0x690   : > { %v3809_v31 = vmin.f32 %v3727_v26, %v3728_v17 }
 0x691   : > { %v3584_v50 = vpop.xlane.xlu0 %3583 }
 0x692   : > { %vm3661_vm14 = vcmp.eq.f32.partialorder %v14021_v1, %v3584_v50  ;;  %vm3662_vm8 = vcmp.eq.f32.partialorder %v14022_v11, %v3584_v50  ;;  %3810 = vmin.xlane.f32.xlu0 %v3809_v31  ;;  %v14025_v50 = vmov 1.0  }
 0x693   : > { %v3725_v57 = vsel %vm3661_vm14, %v8904_v38, 256.0  ;;  %v3726_v13 = vsel %vm3662_vm8, %v8907_v33, 256.0 }
 0x694   : > { %v3806_v55 = vmin.f32 %v3725_v57, %v3726_v13  ;;  %v14026_v57 = vld [vmem:[#allocation11_spill] sm:$0xff] }
 0x695   : > { %v3581_v62 = vpop.xlane.xlu0 %3580 }
 0x696   : > { %vm3659_vm5 = vcmp.eq.f32.partialorder %v14023_v60, %v3581_v62  ;;  %vm3660_vm10 = vcmp.eq.f32.partialorder %v14024_v48, %v3581_v62  ;;  %3807 = vmin.xlane.f32.xlu0 %v3806_v55 }
 0x697   : > { %v3723_v28 = vsel %vm3659_vm5, %v8904_v38, 256.0  ;;  %v3724_v26 = vsel %vm3660_vm10, %v8907_v33, 256.0 }
 0x698   : > { %v3803_v17 = vmin.f32 %v3723_v28, %v3724_v26 }
 0x69a   : > { %3804 = vmin.xlane.f32.xlu0 %v3803_v17 }
 0x6aa   : > { %v3802_v1 = vpop.xlane.xlu1 %3801 }
 0x6ab   : > { %vm3881_vm7 = vcmp.eq.f32.partialorder %v8904_v38, %v3802_v1  ;;  %vm3882_vm11 = vcmp.eq.f32.partialorder %v8907_v33, %v3802_v1  ;;  %v14028_v1 = vld [vmem:[#allocation5_spill] sm:$0xff] }
 0x6ac   : > { %v11188_v31 = vsel %vm3881_vm7, inf, %v10654_v9  ;;  %7513 = vmatprep.subr.msk.mxu1 %vm3882_vm11, %v14025_v50  ;;  %v11192_v13 = vsel %vm3882_vm11, inf, %v14026_v57  ;;  %v14031_v57 = vld [vmem:[#allocation10_spill] sm:$0xff] }
 0x6ad   : > { %14027 = vst [vmem:[#allocation15_spill] sm:$0xff] %v11192_v13  ;;  %7514 = vmatpush1.xpose.msk.msra.mxu1 %vm3881_vm7, %v14025_v50  ;;  %v4227_v62 = vmin.f32 %v11188_v31, %v11192_v13 }
 0x6ae   : > { %v3799_v55 = vpop.xlane.xlu1 %3798 }
 0x6af   : > { %vm3879_vm15 = vcmp.eq.f32.partialorder %v8904_v38, %v3799_v55  ;;  %4228 = vmin.xlane.f32.xlu1 %v4227_v62  ;;  %vm3880_vm12 = vcmp.eq.f32.partialorder %v8907_v33, %v3799_v55  ;;  %v14033_v55 = vld [vmem:[#allocation18_spill] sm:$0xff] }
 0x6b0   : > { %v11200_v28 = vsel %vm3879_vm15, inf, %v14028_v1  ;;  %7515 = vmatprep.subr.msk.mxu1 %vm3880_vm12, %v14025_v50  ;;  %v11204_v9 = vsel %vm3880_vm12, inf, %v14013_v18 }
 0x6b1   : > { %14029 = vst [vmem:[#allocation26_spill] sm:$0xff] %v11200_v28  ;;  %14030 = vst [vmem:[#allocation8_spill] sm:$0xff] %v11204_v9  ;;  %7516 = vmatpush1.xpose.msk.msra.mxu1 %vm3879_vm15, %v14025_v50  ;;  %v4224_v26 = vmin.f32 %v11200_v28, %v11204_v9 }
 0x6b2   : > { %v3796_v17 = vpop.xlane.xlu1 %3795 }
 0x6b3   : > { %vm3877_vm9 = vcmp.eq.f32.partialorder %v8904_v38, %v3796_v17  ;;  %4225 = vmin.xlane.f32.xlu1 %v4224_v26  ;;  %vm3878_vm13 = vcmp.eq.f32.partialorder %v8907_v33, %v3796_v17  ;;  %v14035_v26 = vld [vmem:[#allocation24_spill] sm:$0xff] }
 0x6b4   : > { %v11212_v62 = vsel %vm3877_vm9, inf, %v14031_v57  ;;  %7517 = vmatprep.subr.msk.mxu1 %vm3878_vm13, %v14025_v50  ;;  %v11216_v1 = vsel %vm3878_vm13, inf, %v14033_v55 }
 0x6b5   : > { %14032 = vst [vmem:[#allocation13_spill] sm:$0xff] %v11212_v62  ;;  %14034 = vst [vmem:[#allocation7_spill] sm:$0xff] %v11216_v1  ;;  %7518 = vmatpush1.xpose.msk.msra.mxu1 %vm3877_vm9, %v14025_v50  ;;  %v4221_v18 = vmin.f32 %v11212_v62, %v11216_v1 }
 0x6b6   : > { %v3793_v9 = vpop.xlane.xlu1 %3792 }
 0x6b7   : > { %vm3875_vm2 = vcmp.eq.f32.partialorder %v8904_v38, %v3793_v9  ;;  %4222 = vmin.xlane.f32.xlu1 %v4221_v18  ;;  %vm3876_vm3 = vcmp.eq.f32.partialorder %v8907_v33, %v3793_v9  ;;  %v14038_v9 = vld [vmem:[#allocation27_spill] sm:$0xff] }
 0x6b8   : > { %v11224_v17 = vsel %vm3875_vm2, inf, %v14035_v26  ;;  %7519 = vmatprep.subr.msk.mxu1 %vm3876_vm3, %v14025_v50  ;;  %v11228_v57 = vsel %vm3876_vm3, inf, %v14015_v39 }
 0x6b9   : > { %14036 = vst [vmem:[#allocation17_spill] sm:$0xff] %v11224_v17  ;;  %14037 = vst [vmem:[#allocation6_spill] sm:$0xff] %v11228_v57  ;;  %7520 = vmatpush1.xpose.msk.msra.mxu1 %vm3875_vm2, %v14025_v50  ;;  %v4218_v55 = vmin.f32 %v11224_v17, %v11228_v57 }
 0x6ba   : > { %v3790_v1 = vpop.xlane.xlu1 %3789 }
 0x6bb   : > { %vm3873_vm4 = vcmp.eq.f32.partialorder %v8904_v38, %v3790_v1  ;;  %4219 = vmin.xlane.f32.xlu1 %v4218_v55  ;;  %vm3874_vm6 = vcmp.eq.f32.partialorder %v8907_v33, %v3790_v1  ;;  %v14041_v1 = vld [vmem:[#allocation19_spill] sm:$0xff] }
 0x6bc   : > { %v11236_v18 = vsel %vm3873_vm4, inf, %v14038_v9  ;;  %7521 = vmatprep.subr.msk.mxu1 %vm3874_vm6, %v14025_v50  ;;  %v11240_v26 = vsel %vm3874_vm6, inf, %v14016_v44 }
 0x6bd   : > { %14039 = vst [vmem:[#allocation16_spill] sm:$0xff] %v11236_v18  ;;  %14040 = vst [vmem:[#allocation9_spill] sm:$0xff] %v11240_v26  ;;  %7522 = vmatpush1.xpose.msk.msra.mxu1 %vm3873_vm4, %v14025_v50  ;;  %v4215_v39 = vmin.f32 %v11236_v18, %v11240_v26 }
 0x6be   : > { %v3787_v57 = vpop.xlane.xlu1 %3786 }
 0x6bf   : > { %vm3871_vm14 = vcmp.eq.f32.partialorder %v8904_v38, %v3787_v57  ;;  %4216 = vmin.xlane.f32.xlu1 %v4215_v39  ;;  %vm3872_vm8 = vcmp.eq.f32.partialorder %v8907_v33, %v3787_v57  ;;  %v14044_v39 = vld [vmem:[#allocation12_spill] sm:$0xff] }
 0x6c0   : > { %v11248_v55 = vsel %vm3871_vm14, inf, %v14041_v1  ;;  %7523 = vmatprep.subr.msk.mxu1 %vm3872_vm8, %v14025_v50  ;;  %v11252_v9 = vsel %vm3872_vm8, inf, %v14018_v24 }
 0x6c1   : > { %14042 = vst [vmem:[#allocation11_spill] sm:$0xff] %v11248_v55  ;;  %14043 = vst [vmem:[#allocation5_spill] sm:$0xff] %v11252_v9  ;;  %7524 = vmatpush1.xpose.msk.msra.mxu1 %vm3871_vm14, %v14025_v50  ;;  %v4212_v44 = vmin.f32 %v11248_v55, %v11252_v9 }
 0x6c2   : > { %v3784_v26 = vpop.xlane.xlu1 %3783 }
 0x6c3   : > { %vm3869_vm5 = vcmp.eq.f32.partialorder %v8904_v38, %v3784_v26  ;;  %4213 = vmin.xlane.f32.xlu1 %v4212_v44  ;;  %vm3870_vm10 = vcmp.eq.f32.partialorder %v8907_v33, %v3784_v26 }
 0x6c4   : > { %v11260_v57 = vsel %vm3869_vm5, inf, %v10726_v5  ;;  %7525 = vmatprep.subr.msk.mxu1 %vm3870_vm10, %v14025_v50  ;;  %v11264_v1 = vsel %vm3870_vm10, inf, %v14044_v39  ;;  %v14048_v39 = vld [vmem:[#allocation23_spill] sm:$0xff] }
 0x6c5   : > { %14045 = vst [vmem:[#allocation10_spill] sm:$0xff] %v11264_v1  ;;  %7526 = vmatpush1.xpose.msk.msra.mxu1 %vm3869_vm5, %v14025_v50  ;;  %v4209_v24 = vmin.f32 %v11260_v57, %v11264_v1 }
 0x6c6   : > { %v3781_v9 = vpop.xlane.xlu1 %3780  ;;  %v11269_v55 = vpop.xlane.xlu0 %3759 }
 0x6c7   : > { %vm3867_vm7 = vcmp.eq.f32.partialorder %v8904_v38, %v3781_v9  ;;  %vm3853_vm11 = vcmp.eq.f32.partialorder %v8904_v38, %v11269_v55  ;;  %vm3854_vm15 = vcmp.eq.f32.partialorder %v8907_v33, %v11269_v55  ;;  %4210 = vmin.xlane.f32.xlu1 %v4209_v24  ;;  %vm3868_vm12 = vcmp.eq.f32.partialorder %v8907_v33, %v3781_v9 }
 0x6c8   : > { %v11278_v5 = vsel %vm3867_vm7, inf, %v10744_v54  ;;  %v11284_v26 = vsel %vm3853_vm11, inf, %v14019_v0  ;;  %v11290_v44 = vsel %vm3854_vm15, inf, %v14020_v25  ;;  %7527 = vmatprep.subr.msk.mxu1 %vm3868_vm12, %v14025_v50  ;;  %v11294_v24 = vsel %vm3868_vm12, inf, %v14048_v39 }
 0x6c9   : > { %14046 = vst [vmem:[#allocation18_spill] sm:$0xff] %v11284_v26  ;;  %14047 = vst [vmem:[#allocation24_spill] sm:$0xff] %v11290_v44  ;;  %7528 = vmatpush1.xpose.msk.msra.mxu1 %vm3867_vm7, %v14025_v50  ;;  %v4206_v54 = vmin.f32 %v11278_v5, %v11294_v24  ;;  %v4185_v0 = vmin.f32 %v11284_v26, %v11290_v44 }
 0x6ca   : > { %14049 = vst [vmem:[#allocation27_spill] sm:$0xff] %v11294_v24  ;;  %v3778_v9 = vpop.xlane.xlu1 %3777 }
 0x6cb   : > { %vm3865_vm9 = vcmp.eq.f32.partialorder %v8904_v38, %v3778_v9  ;;  %4207 = vmin.xlane.f32.xlu1 %v4206_v54  ;;  %4186 = vmin.xlane.f32.xlu0 %v4185_v0  ;;  %vm3866_vm13 = vcmp.eq.f32.partialorder %v8907_v33, %v3778_v9 }
 0x6cc   : > { %v11304_v25 = vsel %vm3865_vm9, inf, %v10770_v51  ;;  %7529 = vmatprep.subr.msk.mxu1 %vm3866_vm13, %v14025_v50  ;;  %v11308_v39 = vsel %vm3866_vm13, inf, %v10774_v27 }
 0x6cd   : > { %7530 = vmatpush1.xpose.msk.msra.mxu1 %vm3865_vm9, %v14025_v50  ;;  %v4203_v44 = vmin.f32 %v11304_v25, %v11308_v39 }
 0x6ce   : > { %v3775_v26 = vpop.xlane.xlu1 %3774 }
 0x6cf   : > { %vm3863_vm2 = vcmp.eq.f32.partialorder %v8904_v38, %v3775_v26  ;;  %4204 = vmin.xlane.f32.xlu1 %v4203_v44  ;;  %vm3864_vm3 = vcmp.eq.f32.partialorder %v8907_v33, %v3775_v26 }
 0x6d0   : > { %v11316_v54 = vsel %vm3863_vm2, inf, %v10782_v23  ;;  %7531 = vmatprep.subr.msk.mxu1 %vm3864_vm3, %v14025_v50  ;;  %v11320_v51 = vsel %vm3864_vm3, inf, %v10786_v46 }
 0x6d1   : > { %7532 = vmatpush1.xpose.msk.msra.mxu1 %vm3863_vm2, %v14025_v50  ;;  %v4200_v27 = vmin.f32 %v11316_v54, %v11320_v51 }
 0x6d2   : > { %v3772_v0 = vpop.xlane.xlu1 %3771 }
 0x6d3   : > { %vm3861_vm4 = vcmp.eq.f32.partialorder %v8904_v38, %v3772_v0  ;;  %4201 = vmin.xlane.f32.xlu1 %v4200_v27  ;;  %vm3862_vm6 = vcmp.eq.f32.partialorder %v8907_v33, %v3772_v0 }
 0x6d4   : > { %v11328_v26 = vsel %vm3861_vm4, inf, %v10794_v45  ;;  %7533 = vmatprep.subr.msk.mxu1 %vm3862_vm6, %v14025_v50  ;;  %v11332_v23 = vsel %vm3862_vm6, inf, %v10798_v10 }
 0x6d5   : > { %7534 = vmatpush1.xpose.msk.msra.mxu1 %vm3861_vm4, %v14025_v50  ;;  %v4197_v46 = vmin.f32 %v11328_v26, %v11332_v23 }
 0x6d6   : > { %v3769_v44 = vpop.xlane.xlu1 %3768 }
 0x6d7   : > { %vm3859_vm14 = vcmp.eq.f32.partialorder %v8904_v38, %v3769_v44  ;;  %4198 = vmin.xlane.f32.xlu1 %v4197_v46  ;;  %vm3860_vm8 = vcmp.eq.f32.partialorder %v8907_v33, %v3769_v44 }
 0x6d8   : > { %v11340_v9 = vsel %vm3859_vm14, inf, %v10806_v29  ;;  %7535 = vmatprep.subr.msk.mxu1 %vm3860_vm8, %v14025_v50  ;;  %v11344_v45 = vsel %vm3860_vm8, inf, %v10810_v37 }
 0x6d9   : > { %7536 = vmatpush1.xpose.msk.msra.mxu1 %vm3859_vm14, %v14025_v50  ;;  %v4194_v10 = vmin.f32 %v11340_v9, %v11344_v45 }
 0x6da   : > { %v3766_v27 = vpop.xlane.xlu1 %3765 }
 0x6db   : > { %vm3857_vm5 = vcmp.eq.f32.partialorder %v8904_v38, %v3766_v27  ;;  %4195 = vmin.xlane.f32.xlu1 %v4194_v10  ;;  %vm3858_vm10 = vcmp.eq.f32.partialorder %v8907_v33, %v3766_v27 }
 0x6dc   : > { %v11352_v0 = vsel %vm3857_vm5, inf, %v10818_v58  ;;  %7537 = vmatprep.subr.msk.mxu1 %vm3858_vm10, %v14025_v50  ;;  %v11356_v29 = vsel %vm3858_vm10, inf, %v10822_v47 }
 0x6dd   : > { %7538 = vmatpush1.xpose.msk.msra.mxu1 %vm3857_vm5, %v14025_v50  ;;  %v4191_v37 = vmin.f32 %v11352_v0, %v11356_v29 }
 0x6de   : > { %v3763_v46 = vpop.xlane.xlu1 %3762 }
 0x6df   : > { %vm3855_vm7 = vcmp.eq.f32.partialorder %v8904_v38, %v3763_v46  ;;  %4192 = vmin.xlane.f32.xlu1 %v4191_v37  ;;  %vm3856_vm12 = vcmp.eq.f32.partialorder %v8907_v33, %v3763_v46 }
 0x6e0   : > { %v11364_v44 = vsel %vm3855_vm7, inf, %v10830_v2  ;;  %7539 = vmatprep.subr.msk.mxu1 %vm3856_vm12, %v14025_v50  ;;  %v11368_v58 = vsel %vm3856_vm12, inf, %v10834_v49 }
 0x6e1   : > { %7540 = vmatpush1.xpose.msk.msra.mxu1 %vm3855_vm7, %v14025_v50  ;;  %v4188_v47 = vmin.f32 %v11364_v44, %v11368_v58 }
 0x6e2   : > { %v3757_v10 = vpop.xlane.xlu1 %3756  ;;  %7541 = vmatprep.subr.msk.mxu1 %vm3854_vm15, %v14025_v50 }
 0x6e3   : > { %vm3851_vm9 = vcmp.eq.f32.partialorder %v8904_v38, %v3757_v10  ;;  %4189 = vmin.xlane.f32.xlu1 %v4188_v47  ;;  %vm3852_vm13 = vcmp.eq.f32.partialorder %v8907_v33, %v3757_v10 }
 0x6e4   : > { %v11380_v2 = vsel %vm3851_vm9, inf, %v10846_v61  ;;  %v11383_v49 = vsel %vm3852_vm13, inf, %v10849_v40 }
 0x6e5   : > { %7542 = vmatpush1.xpose.msk.msra.mxu1 %vm3853_vm11, %v14025_v50  ;;  %v4182_v27 = vmin.f32 %v11380_v2, %v11383_v49 }
 0x6e6   : > { %7543 = vmatprep.subr.msk.mxu1 %vm3852_vm13, %v14025_v50 }
 0x6e7   : > { %4183 = vmin.xlane.f32.xlu1 %v4182_v27  ;;  %v3847_v37 = vpop.xlane.xlu1 %3846 }
 0x6e8   : > { %vm3911_vm15 = vcmp.eq.f32.partialorder %v8904_v38, %v3847_v37  ;;  %vm3912_vm2 = vcmp.eq.f32.partialorder %v8907_v33, %v3847_v37 }
 0x6e9   : > { %v11397_v61 = vsel %vm3911_vm15, inf, %v10863_v32  ;;  %v11400_v40 = vsel %vm3912_vm2, inf, %v10866_v4  ;;  %7544 = vmatpush1.xpose.msk.msra.mxu1 %vm3851_vm9, %v14025_v50 }
 0x6ea   : > { %v4272_v55 = vmin.f32 %v11397_v61, %v11400_v40 }
 0x6eb   : > { %v3850_v46 = vpop.xlane.xlu0 %3849 }
 0x6ec   : > { %vm3913_vm11 = vcmp.eq.f32.partialorder %v8904_v38, %v3850_v46  ;;  %4273 = vmin.xlane.f32.xlu1 %v4272_v55  ;;  %vm3914_vm3 = vcmp.eq.f32.partialorder %v8907_v33, %v3850_v46 }
 0x6ed   : > { %v11408_v47 = vsel %vm3913_vm11, inf, %v10874_v15  ;;  %7545 = vmatprep.subr.msk.mxu1 %vm3914_vm3, %v14025_v50  ;;  %v11412_v32 = vsel %vm3914_vm3, inf, %v10878_v30 }
 0x6ee   : > { %7546 = vmatpush2.xpose.msk.msra.mxu1 %vm3913_vm11, %v14025_v50  ;;  %v4275_v4 = vmin.f32 %v11408_v47, %v11412_v32 }
 0x6ef   : > { %7547 = vmatprep.subr.msk.mxu1 %vm3912_vm2, %v14025_v50  ;;  %v3844_v10 = vpop.xlane.xlu0 %3843 }
 0x6f0   : > { %vm3909_vm4 = vcmp.eq.f32.partialorder %v8904_v38, %v3844_v10  ;;  %4276 = vmin.xlane.f32.xlu0 %v4275_v4  ;;  %vm3910_vm6 = vcmp.eq.f32.partialorder %v8907_v33, %v3844_v10 }
 0x6f1   : > { %v11421_v15 = vsel %vm3909_vm4, inf, %v10887_v20  ;;  %v11424_v27 = vsel %vm3910_vm6, inf, %v10890_v59 }
 0x6f2   : > { %7548 = vmatpush2.xpose.msk.msra.mxu1 %vm3911_vm15, %v14025_v50  ;;  %v4269_v30 = vmin.f32 %v11421_v15, %v11424_v27 }
 0x6f3   : > { %7549 = vmatprep.subr.msk.mxu1 %vm3910_vm6, %v14025_v50  ;;  %v3841_v55 = vpop.xlane.xlu0 %3840 }
 0x6f4   : > { %vm3907_vm14 = vcmp.eq.f32.partialorder %v8904_v38, %v3841_v55  ;;  %4270 = vmin.xlane.f32.xlu0 %v4269_v30  ;;  %vm3908_vm8 = vcmp.eq.f32.partialorder %v8907_v33, %v3841_v55 }
 0x6f5   : > { %v11435_v20 = vsel %vm3907_vm14, inf, %v10901_v22  ;;  %v11438_v59 = vsel %vm3908_vm8, inf, %v10904_v21 }
 0x6f6   : > { %7550 = vmatpush2.xpose.msk.msra.mxu1 %vm3909_vm4, %v14025_v50  ;;  %v4266_v37 = vmin.f32 %v11435_v20, %v11438_v59 }
 0x6f7   : > { %7551 = vmatprep.subr.msk.mxu1 %vm3908_vm8, %v14025_v50  ;;  %v3838_v46 = vpop.xlane.xlu0 %3837 }
 0x6f8   : > { %vm3905_vm5 = vcmp.eq.f32.partialorder %v8904_v38, %v3838_v46  ;;  %4267 = vmin.xlane.f32.xlu0 %v4266_v37  ;;  %vm3906_vm10 = vcmp.eq.f32.partialorder %v8907_v33, %v3838_v46 }
 0x6f9   : > { %v11447_v4 = vsel %vm3905_vm5, inf, %v10913_v35  ;;  %v11450_v22 = vsel %vm3906_vm10, inf, %v10916_v14 }
 0x6fa   : > { %7552 = vmatpush2.xpose.msk.msra.mxu1 %vm3907_vm14, %v14025_v50  ;;  %v4263_v21 = vmin.f32 %v11447_v4, %v11450_v22 }
 0x6fb   : > { %7553 = vmatprep.subr.msk.mxu1 %vm3906_vm10, %v14025_v50  ;;  %v3835_v10 = vpop.xlane.xlu0 %3834 }
 0x6fc   : > { %vm3903_vm7 = vcmp.eq.f32.partialorder %v8904_v38, %v3835_v10  ;;  %4264 = vmin.xlane.f32.xlu0 %v4263_v21  ;;  %vm3904_vm12 = vcmp.eq.f32.partialorder %v8907_v33, %v3835_v10 }
 0x6fd   : > { %v11459_v30 = vsel %vm3903_vm7, inf, %v10925_v63  ;;  %v11462_v35 = vsel %vm3904_vm12, inf, %v10928_v7 }
 0x6fe   : > { %7554 = vmatpush2.xpose.msk.msra.mxu1 %vm3905_vm5, %v14025_v50  ;;  %v4260_v14 = vmin.f32 %v11459_v30, %v11462_v35 }
 0x6ff   : > { %7555 = vmatprep.subr.msk.mxu1 %vm3904_vm12, %v14025_v50  ;;  %v3832_v55 = vpop.xlane.xlu0 %3831 }
 0x700   : > { %vm3901_vm9 = vcmp.eq.f32.partialorder %v8904_v38, %v3832_v55  ;;  %4261 = vmin.xlane.f32.xlu0 %v4260_v14  ;;  %vm3902_vm13 = vcmp.eq.f32.partialorder %v8907_v33, %v3832_v55 }
 0x701   : > { %v11471_v37 = vsel %vm3901_vm9, inf, %v10937_v53  ;;  %v11474_v63 = vsel %vm3902_vm13, inf, %v10940_v36 }
 0x702   : > { %7556 = vmatpush2.xpose.msk.msra.mxu1 %vm3903_vm7, %v14025_v50  ;;  %v4257_v7 = vmin.f32 %v11471_v37, %v11474_v63 }
 0x703   : > { %7557 = vmatprep.subr.msk.mxu1 %vm3902_vm13, %v14025_v50  ;;  %v3829_v46 = vpop.xlane.xlu0 %3828 }
 0x704   : > { %vm3899_vm15 = vcmp.eq.f32.partialorder %v8904_v38, %v3829_v46  ;;  %4258 = vmin.xlane.f32.xlu0 %v4257_v7  ;;  %vm3900_vm2 = vcmp.eq.f32.partialorder %v8907_v33, %v3829_v46 }
 0x705   : > { %v11483_v21 = vsel %vm3899_vm15, inf, %v10949_v6  ;;  %v11486_v53 = vsel %vm3900_vm2, inf, %v10952_v41 }
 0x706   : > { %7558 = vmatpush2.xpose.msk.msra.mxu1 %vm3901_vm9, %v14025_v50  ;;  %v4254_v36 = vmin.f32 %v11483_v21, %v11486_v53 }
 0x707   : > { %7559 = vmatprep.subr.msk.mxu1 %vm3900_vm2, %v14025_v50  ;;  %v3826_v10 = vpop.xlane.xlu0 %3825 }
 0x708   : > { %vm3897_vm11 = vcmp.eq.f32.partialorder %v8904_v38, %v3826_v10  ;;  %4255 = vmin.xlane.f32.xlu0 %v4254_v36  ;;  %vm3898_vm3 = vcmp.eq.f32.partialorder %v8907_v33, %v3826_v10 }
 0x709   : > { %v11495_v14 = vsel %vm3897_vm11, inf, %v10961_v52  ;;  %v11498_v6 = vsel %vm3898_vm3, inf, %v10964_v42 }
 0x70a   : > { %7560 = vmatpush2.xpose.msk.msra.mxu1 %vm3899_vm15, %v14025_v50  ;;  %v4251_v41 = vmin.f32 %v11495_v14, %v11498_v6 }
 0x70b   : > { %7561 = vmatprep.subr.msk.mxu1 %vm3898_vm3, %v14025_v50  ;;  %v3823_v55 = vpop.xlane.xlu0 %3822 }
 0x70c   : > { %vm3895_vm4 = vcmp.eq.f32.partialorder %v8904_v38, %v3823_v55  ;;  %4252 = vmin.xlane.f32.xlu0 %v4251_v41  ;;  %vm3896_vm6 = vcmp.eq.f32.partialorder %v8907_v33, %v3823_v55 }
 0x70d   : > { %v11507_v7 = vsel %vm3895_vm4, inf, %v10973_v19  ;;  %v11510_v52 = vsel %vm3896_vm6, inf, %v10976_v34 }
 0x70e   : > { %7562 = vmatpush2.xpose.msk.msra.mxu1 %vm3897_vm11, %v14025_v50  ;;  %v4248_v42 = vmin.f32 %v11507_v7, %v11510_v52 }
 0x70f   : > { %7563 = vmatprep.subr.msk.mxu1 %vm3896_vm6, %v14025_v50  ;;  %v3820_v46 = vpop.xlane.xlu0 %3819 }
 0x710   : > { %vm3893_vm14 = vcmp.eq.f32.partialorder %v8904_v38, %v3820_v46  ;;  %4249 = vmin.xlane.f32.xlu0 %v4248_v42  ;;  %vm3894_vm8 = vcmp.eq.f32.partialorder %v8907_v33, %v3820_v46 }
 0x711   : > { %v11519_v36 = vsel %vm3893_vm14, inf, %v10985_v16  ;;  %v11522_v19 = vsel %vm3894_vm8, inf, %v10988_v43 }
 0x712   : > { %7564 = vmatpush2.xpose.msk.msra.mxu1 %vm3895_vm4, %v14025_v50  ;;  %v4245_v34 = vmin.f32 %v11519_v36, %v11522_v19 }
 0x713   : > { %7565 = vmatprep.subr.msk.mxu1 %vm3894_vm8, %v14025_v50  ;;  %v3817_v10 = vpop.xlane.xlu0 %3816 }
 0x714   : > { %vm3891_vm5 = vcmp.eq.f32.partialorder %v8904_v38, %v3817_v10  ;;  %4246 = vmin.xlane.f32.xlu0 %v4245_v34  ;;  %vm3892_vm10 = vcmp.eq.f32.partialorder %v8907_v33, %v3817_v10  ;;  %v14052_v10 = vld [vmem:[#allocation22_spill] sm:$0xff] }
 0x715   : > { %v11531_v41 = vsel %vm3891_vm5, inf, %v10997_v3  ;;  %v11534_v16 = vsel %vm3892_vm10, inf, %v11000_v8  ;;  %v14050_v3 = vld [vmem:[#allocation20_spill] sm:$0xff] }
 0x716   : > { %7566 = vmatpush2.xpose.msk.msra.mxu1 %vm3893_vm14, %v14025_v50  ;;  %v4242_v43 = vmin.f32 %v11531_v41, %v11534_v16 }
 0x717   : > { %7567 = vmatprep.subr.msk.mxu1 %vm3892_vm10, %v14025_v50  ;;  %v3814_v55 = vpop.xlane.xlu0 %3813 }
 0x718   : > { %vm3889_vm7 = vcmp.eq.f32.partialorder %v8904_v38, %v3814_v55  ;;  %4243 = vmin.xlane.f32.xlu0 %v4242_v43  ;;  %vm3890_vm12 = vcmp.eq.f32.partialorder %v8907_v33, %v3814_v55 }
 0x719   : > { %v11543_v42 = vsel %vm3889_vm7, inf, %v11009_v56  ;;  %v11546_v46 = vsel %vm3890_vm12, inf, %v14050_v3 }
 0x71a   : > { %14051 = vst [vmem:[#allocation19_spill] sm:$0xff] %v11546_v46  ;;  %7568 = vmatpush2.xpose.msk.msra.mxu1 %vm3891_vm5, %v14025_v50  ;;  %v4239_v8 = vmin.f32 %v11543_v42, %v11546_v46 }
 0x71b   : > { %7569 = vmatprep.subr.msk.mxu1 %vm3890_vm12, %v14025_v50  ;;  %v3811_v34 = vpop.xlane.xlu0 %3810 }
 0x71c   : > { %vm3887_vm9 = vcmp.eq.f32.partialorder %v8904_v38, %v3811_v34  ;;  %4240 = vmin.xlane.f32.xlu0 %v4239_v8  ;;  %vm3888_vm13 = vcmp.eq.f32.partialorder %v8907_v33, %v3811_v34  ;;  %v14055_v8 = vld [vmem:[#allocation21_spill] sm:$0xff] }
 0x71d   : > { %v11555_v43 = vsel %vm3887_vm9, inf, %v14052_v10  ;;  %v11558_v56 = vsel %vm3888_vm13, inf, %v11024_v12 }
 0x71e   : > { %14053 = vst [vmem:[#allocation12_spill] sm:$0xff] %v11555_v43  ;;  %14054 = vst [vmem:[#allocation23_spill] sm:$0xff] %v11558_v56  ;;  %7570 = vmatpush2.xpose.msk.msra.mxu1 %vm3889_vm7, %v14025_v50  ;;  %v4236_v55 = vmin.f32 %v11555_v43, %v11558_v56 }
 0x71f   : > { %7571 = vmatprep.subr.msk.mxu1 %vm3888_vm13, %v14025_v50  ;;  %v3808_v3 = vpop.xlane.xlu0 %3807 }
 0x720   : > { %vm3885_vm15 = vcmp.eq.f32.partialorder %v8904_v38, %v3808_v3  ;;  %4237 = vmin.xlane.f32.xlu0 %v4236_v55  ;;  %vm3886_vm2 = vcmp.eq.f32.partialorder %v8907_v33, %v3808_v3 }
 0x721   : > { %v11567_v34 = vsel %vm3885_vm15, inf, %v14055_v8  ;;  %v11570_v10 = vsel %vm3886_vm2, inf, %v14022_v11  ;;  %v14060_v8 = vld [vmem:[#allocation14_spill] sm:$0xff] }
 0x722   : > { %14056 = vst [vmem:[#allocation20_spill] sm:$0xff] %v11567_v34  ;;  %14057 = vst [vmem:[#allocation22_spill] sm:$0xff] %v11570_v10  ;;  %7572 = vmatpush2.xpose.msk.msra.mxu1 %vm3887_vm9, %v14025_v50  ;;  %v4233_v12 = vmin.f32 %v11567_v34, %v11570_v10 }
 0x723   : > { %7573 = vmatprep.subr.msk.mxu1 %vm3886_vm2, %v14025_v50  ;;  %v3805_v56 = vpop.xlane.xlu0 %3804 }
 0x724   : > { %vm3883_vm11 = vcmp.eq.f32.partialorder %v8904_v38, %v3805_v56  ;;  %4234 = vmin.xlane.f32.xlu0 %v4233_v12  ;;  %vm3884_vm3 = vcmp.eq.f32.partialorder %v8907_v33, %v3805_v56  ;;  %v14061_v12 = vld [vmem:[#allocation25_spill] sm:$0xff] }
 0x725   : > { %v11579_v55 = vsel %vm3883_vm11, inf, %v14023_v60  ;;  %v11582_v3 = vsel %vm3884_vm3, inf, %v14024_v48 }
 0x726   : > { %14058 = vst [vmem:[#allocation21_spill] sm:$0xff] %v11579_v55  ;;  %14059 = vst [vmem:[#allocation28_spill] sm:$0xff] %v11582_v3  ;;  %7574 = vmatpush2.xpose.msk.msra.mxu1 %vm3885_vm15, %v14025_v50  ;;  %v4230_v11 = vmin.f32 %v11579_v55, %v11582_v3 }
 0x727   : > { %7575 = vmatprep.subr.msk.mxu1 %vm3884_vm3, %v14025_v50 }
 0x728   : > { %4231 = vmin.xlane.f32.xlu0 %v4230_v11  ;;  %v14062_v11 = vld [vmem:[#allocation8_spill] sm:$0xff] }
 0x72a   : > { %7576 = vmatpush2.xpose.msk.msra.mxu1 %vm3883_vm11, %v14025_v50 }
 0x72d   : > { %4108 = vmatmul.mubr.f32.vlgmr.msra.gmra.mxu1 %v14060_v8 }
 0x72e   : > { %5409 = vmatprep.mubr.f32.mxu1 %v14061_v12 }
 0x738   : > { %v4229_v56 = vpop.xlane.xlu1 %4228 }
 0x739   : > { %vm4308_vm4 = vcmp.eq.f32.partialorder %v11188_v31, %v4229_v56  ;;  %vm4309_vm6 = vcmp.eq.f32.partialorder %v11192_v13, %v4229_v56  ;;  %v14063_v56 = vld [vmem:[#allocation7_spill] sm:$0xff] }
 0x73a   : > { %v4372_v60 = vsel %vm4308_vm4, %v8904_v38, 256.0  ;;  %v4373_v48 = vsel %vm4309_vm6, %v8907_v33, 256.0 }
 0x73b   : > { %v4451_v10 = vmin.f32 %v4372_v60, %v4373_v48 }
 0x73c   : > { %v4226_v3 = vpop.xlane.xlu1 %4225 }
 0x73d   : > { %vm4306_vm14 = vcmp.eq.f32.partialorder %v11200_v28, %v4226_v3  ;;  %vm4307_vm8 = vcmp.eq.f32.partialorder %v14062_v11, %v4226_v3  ;;  %4452 = vmin.xlane.f32.xlu1 %v4451_v10  ;;  %v14064_v10 = vld [vmem:[#allocation6_spill] sm:$0xff] }
 0x73e   : > { %v4370_v8 = vsel %vm4306_vm14, %v8904_v38, 256.0  ;;  %v4371_v12 = vsel %vm4307_vm8, %v8907_v33, 256.0 }
 0x73f   : > { %v4448_v50 = vmin.f32 %v4370_v8, %v4371_v12 }
 0x740   : > { %v4223_v55 = vpop.xlane.xlu1 %4222 }
 0x741   : > { %vm4304_vm5 = vcmp.eq.f32.partialorder %v11212_v62, %v4223_v55  ;;  %vm4305_vm10 = vcmp.eq.f32.partialorder %v14063_v56, %v4223_v55  ;;  %4449 = vmin.xlane.f32.xlu1 %v4448_v50  ;;  %v14065_v50 = vld [vmem:[#allocation9_spill] sm:$0xff]  ;;  %v14066_v56 = vld [vmem:[#allocation11_spill] sm:$0xff] }
 0x742   : > { %v4368_v13 = vsel %vm4304_vm5, %v8904_v38, 256.0  ;;  %v4369_v60 = vsel %vm4305_vm10, %v8907_v33, 256.0 }
 0x743   : > { %v4445_v48 = vmin.f32 %v4368_v13, %v4369_v60 }
 0x744   : > { %v4220_v28 = vpop.xlane.xlu1 %4219 }
 0x745   : > { %vm4302_vm7 = vcmp.eq.f32.partialorder %v11224_v17, %v4220_v28  ;;  %vm4303_vm12 = vcmp.eq.f32.partialorder %v14064_v10, %v4220_v28  ;;  %4446 = vmin.xlane.f32.xlu1 %v4445_v48  ;;  %v14067_v28 = vld [vmem:[#allocation5_spill] sm:$0xff] }
 0x746   : > { %v4366_v3 = vsel %vm4302_vm7, %v8904_v38, 256.0  ;;  %v4367_v8 = vsel %vm4303_vm12, %v8907_v33, 256.0 }
 0x747   : > { %v4442_v12 = vmin.f32 %v4366_v3, %v4367_v8 }
 0x748   : > { %v4217_v62 = vpop.xlane.xlu1 %4216 }
 0x749   : > { %vm4300_vm9 = vcmp.eq.f32.partialorder %v11236_v18, %v4217_v62  ;;  %vm4301_vm13 = vcmp.eq.f32.partialorder %v14065_v50, %v4217_v62  ;;  %4443 = vmin.xlane.f32.xlu1 %v4442_v12 }
 0x74a   : > { %v4364_v55 = vsel %vm4300_vm9, %v8904_v38, 256.0  ;;  %v4365_v13 = vsel %vm4301_vm13, %v8907_v33, 256.0 }
 0x74b   : > { %v4439_v60 = vmin.f32 %v4364_v55, %v4365_v13 }
 0x74c   : > { %v4214_v17 = vpop.xlane.xlu1 %4213 }
 0x74d   : > { %vm4298_vm15 = vcmp.eq.f32.partialorder %v14066_v56, %v4214_v17  ;;  %vm4299_vm2 = vcmp.eq.f32.partialorder %v14067_v28, %v4214_v17  ;;  %4440 = vmin.xlane.f32.xlu1 %v4439_v60  ;;  %v14068_v17 = vld [vmem:[#allocation18_spill] sm:$0xff]  ;;  %v14069_v60 = vld [vmem:[#allocation24_spill] sm:$0xff] }
 0x74e   : > { %v4362_v48 = vsel %vm4298_vm15, %v8904_v38, 256.0  ;;  %v4363_v3 = vsel %vm4299_vm2, %v8907_v33, 256.0 }
 0x74f   : > { %v4436_v8 = vmin.f32 %v4362_v48, %v4363_v3 }
 0x750   : > { %v4211_v18 = vpop.xlane.xlu1 %4210 }
 0x751   : > { %vm4296_vm11 = vcmp.eq.f32.partialorder %v11260_v57, %v4211_v18  ;;  %vm4297_vm3 = vcmp.eq.f32.partialorder %v11264_v1, %v4211_v18  ;;  %4437 = vmin.xlane.f32.xlu1 %v4436_v8 }
 0x752   : > { %v4360_v62 = vsel %vm4296_vm11, %v8904_v38, 256.0  ;;  %v4361_v12 = vsel %vm4297_vm3, %v8907_v33, 256.0 }
 0x753   : > { %v4433_v55 = vmin.f32 %v4360_v62, %v4361_v12 }
 0x754   : > { %v4208_v13 = vpop.xlane.xlu1 %4207  ;;  %v4187_v56 = vpop.xlane.xlu0 %4186 }
 0x755   : > { %vm4294_vm4 = vcmp.eq.f32.partialorder %v11278_v5, %v4208_v13  ;;  %vm4295_vm6 = vcmp.eq.f32.partialorder %v11294_v24, %v4208_v13  ;;  %vm4280_vm14 = vcmp.eq.f32.partialorder %v14068_v17, %v4187_v56  ;;  %vm4281_vm8 = vcmp.eq.f32.partialorder %v14069_v60, %v4187_v56  ;;  %4434 = vmin.xlane.f32.xlu1 %v4433_v55 }
 0x756   : > { %v4358_v48 = vsel %vm4294_vm4, %v8904_v38, 256.0  ;;  %v4359_v18 = vsel %vm4295_vm6, %v8907_v33, 256.0  ;;  %v4344_v3 = vsel %vm4280_vm14, %v8904_v38, 256.0  ;;  %v4345_v8 = vsel %vm4281_vm8, %v8907_v33, 256.0 }
 0x757   : > { %v4430_v62 = vmin.f32 %v4358_v48, %v4359_v18  ;;  %v4409_v12 = vmin.f32 %v4344_v3, %v4345_v8 }
 0x758   : > { %v4205_v1 = vpop.xlane.xlu1 %4204 }
 0x759   : > { %vm4292_vm5 = vcmp.eq.f32.partialorder %v11304_v25, %v4205_v1  ;;  %vm4293_vm10 = vcmp.eq.f32.partialorder %v11308_v39, %v4205_v1  ;;  %4431 = vmin.xlane.f32.xlu1 %v4430_v62  ;;  %4410 = vmin.xlane.f32.xlu0 %v4409_v12 }
 0x75a   : > { %v4356_v56 = vsel %vm4292_vm5, %v8904_v38, 256.0  ;;  %v4357_v55 = vsel %vm4293_vm10, %v8907_v33, 256.0 }
 0x75b   : > { %v4427_v13 = vmin.f32 %v4356_v56, %v4357_v55 }
 0x75c   : > { %v4202_v24 = vpop.xlane.xlu1 %4201 }
 0x75d   : > { %vm4290_vm7 = vcmp.eq.f32.partialorder %v11316_v54, %v4202_v24  ;;  %vm4291_vm12 = vcmp.eq.f32.partialorder %v11320_v51, %v4202_v24  ;;  %4428 = vmin.xlane.f32.xlu1 %v4427_v13 }
 0x75e   : > { %v4354_v48 = vsel %vm4290_vm7, %v8904_v38, 256.0  ;;  %v4355_v18 = vsel %vm4291_vm12, %v8907_v33, 256.0 }
 0x75f   : > { %v4424_v3 = vmin.f32 %v4354_v48, %v4355_v18 }
 0x760   : > { %v4199_v8 = vpop.xlane.xlu1 %4198 }
 0x761   : > { %vm4288_vm9 = vcmp.eq.f32.partialorder %v11328_v26, %v4199_v8  ;;  %vm4289_vm13 = vcmp.eq.f32.partialorder %v11332_v23, %v4199_v8  ;;  %4425 = vmin.xlane.f32.xlu1 %v4424_v3 }
 0x762   : > { %v4352_v1 = vsel %vm4288_vm9, %v8904_v38, 256.0  ;;  %v4353_v62 = vsel %vm4289_vm13, %v8907_v33, 256.0 }
 0x763   : > { %v4421_v12 = vmin.f32 %v4352_v1, %v4353_v62 }
 0x764   : > { %v4196_v56 = vpop.xlane.xlu1 %4195 }
 0x765   : > { %vm4286_vm15 = vcmp.eq.f32.partialorder %v11340_v9, %v4196_v56  ;;  %vm4287_vm2 = vcmp.eq.f32.partialorder %v11344_v45, %v4196_v56  ;;  %4422 = vmin.xlane.f32.xlu1 %v4421_v12 }
 0x766   : > { %v4350_v24 = vsel %vm4286_vm15, %v8904_v38, 256.0  ;;  %v4351_v55 = vsel %vm4287_vm2, %v8907_v33, 256.0 }
 0x767   : > { %v4418_v13 = vmin.f32 %v4350_v24, %v4351_v55 }
 0x768   : > { %v4193_v48 = vpop.xlane.xlu1 %4192 }
 0x769   : > { %vm4284_vm11 = vcmp.eq.f32.partialorder %v11352_v0, %v4193_v48  ;;  %vm4285_vm3 = vcmp.eq.f32.partialorder %v11356_v29, %v4193_v48  ;;  %4419 = vmin.xlane.f32.xlu1 %v4418_v13 }
 0x76a   : > { %v4348_v18 = vsel %vm4284_vm11, %v8904_v38, 256.0  ;;  %v4349_v3 = vsel %vm4285_vm3, %v8907_v33, 256.0 }
 0x76b   : > { %v4415_v8 = vmin.f32 %v4348_v18, %v4349_v3 }
 0x76c   : > { %v4190_v1 = vpop.xlane.xlu1 %4189 }
 0x76d   : > { %vm4282_vm4 = vcmp.eq.f32.partialorder %v11364_v44, %v4190_v1  ;;  %vm4283_vm6 = vcmp.eq.f32.partialorder %v11368_v58, %v4190_v1  ;;  %4416 = vmin.xlane.f32.xlu1 %v4415_v8 }
 0x76e   : > { %v4346_v62 = vsel %vm4282_vm4, %v8904_v38, 256.0  ;;  %v4347_v12 = vsel %vm4283_vm6, %v8907_v33, 256.0 }
 0x76f   : > { %v4412_v56 = vmin.f32 %v4346_v62, %v4347_v12 }
 0x770   : > { %v4184_v24 = vpop.xlane.xlu1 %4183 }
 0x771   : > { %vm4278_vm14 = vcmp.eq.f32.partialorder %v11380_v2, %v4184_v24  ;;  %vm4279_vm8 = vcmp.eq.f32.partialorder %v11383_v49, %v4184_v24  ;;  %4413 = vmin.xlane.f32.xlu1 %v4412_v56 }
 0x772   : > { %v4342_v55 = vsel %vm4278_vm14, %v8904_v38, 256.0  ;;  %v4343_v13 = vsel %vm4279_vm8, %v8907_v33, 256.0 }
 0x773   : > { %v4406_v48 = vmin.f32 %v4342_v55, %v4343_v13 }
 0x775   : > { %4407 = vmin.xlane.f32.xlu1 %v4406_v48  ;;  %v4274_v18 = vpop.xlane.xlu1 %4273 }
 0x776   : > { %vm4338_vm5 = vcmp.eq.f32.partialorder %v11397_v61, %v4274_v18  ;;  %vm4339_vm10 = vcmp.eq.f32.partialorder %v11400_v40, %v4274_v18 }
 0x777   : > { %v4402_v3 = vsel %vm4338_vm5, %v8904_v38, 256.0  ;;  %v4403_v8 = vsel %vm4339_vm10, %v8907_v33, 256.0 }
 0x778   : > { %v4496_v1 = vmin.f32 %v4402_v3, %v4403_v8 }
 0x779   : > { %v4277_v62 = vpop.xlane.xlu0 %4276 }
 0x77a   : > { %vm4340_vm7 = vcmp.eq.f32.partialorder %v11408_v47, %v4277_v62  ;;  %vm4341_vm12 = vcmp.eq.f32.partialorder %v11412_v32, %v4277_v62  ;;  %4497 = vmin.xlane.f32.xlu1 %v4496_v1 }
 0x77b   : > { %v4404_v12 = vsel %vm4340_vm7, %v8904_v38, 256.0  ;;  %v4405_v56 = vsel %vm4341_vm12, %v8907_v33, 256.0 }
 0x77c   : > { %v4499_v24 = vmin.f32 %v4404_v12, %v4405_v56 }
 0x77d   : > { %v4271_v55 = vpop.xlane.xlu0 %4270 }
 0x77e   : > { %vm4336_vm9 = vcmp.eq.f32.partialorder %v11421_v15, %v4271_v55  ;;  %vm4337_vm13 = vcmp.eq.f32.partialorder %v11424_v27, %v4271_v55  ;;  %4500 = vmin.xlane.f32.xlu0 %v4499_v24 }
 0x77f   : > { %v4400_v13 = vsel %vm4336_vm9, %v8904_v38, 256.0  ;;  %v4401_v48 = vsel %vm4337_vm13, %v8907_v33, 256.0 }
 0x780   : > { %v4493_v18 = vmin.f32 %v4400_v13, %v4401_v48 }
 0x781   : > { %v4268_v3 = vpop.xlane.xlu0 %4267 }
 0x782   : > { %vm4334_vm15 = vcmp.eq.f32.partialorder %v11435_v20, %v4268_v3  ;;  %vm4335_vm2 = vcmp.eq.f32.partialorder %v11438_v59, %v4268_v3  ;;  %4494 = vmin.xlane.f32.xlu0 %v4493_v18 }
 0x783   : > { %v4398_v8 = vsel %vm4334_vm15, %v8904_v38, 256.0  ;;  %v4399_v1 = vsel %vm4335_vm2, %v8907_v33, 256.0 }
 0x784   : > { %v4490_v62 = vmin.f32 %v4398_v8, %v4399_v1 }
 0x785   : > { %v4265_v12 = vpop.xlane.xlu0 %4264 }
 0x786   : > { %vm4332_vm11 = vcmp.eq.f32.partialorder %v11447_v4, %v4265_v12  ;;  %vm4333_vm3 = vcmp.eq.f32.partialorder %v11450_v22, %v4265_v12  ;;  %4491 = vmin.xlane.f32.xlu0 %v4490_v62 }
 0x787   : > { %v4396_v56 = vsel %vm4332_vm11, %v8904_v38, 256.0  ;;  %v4397_v24 = vsel %vm4333_vm3, %v8907_v33, 256.0 }
 0x788   : > { %v4487_v55 = vmin.f32 %v4396_v56, %v4397_v24 }
 0x789   : > { %v4262_v13 = vpop.xlane.xlu0 %4261 }
 0x78a   : > { %vm4330_vm4 = vcmp.eq.f32.partialorder %v11459_v30, %v4262_v13  ;;  %vm4331_vm6 = vcmp.eq.f32.partialorder %v11462_v35, %v4262_v13  ;;  %4488 = vmin.xlane.f32.xlu0 %v4487_v55 }
 0x78b   : > { %v4394_v48 = vsel %vm4330_vm4, %v8904_v38, 256.0  ;;  %v4395_v18 = vsel %vm4331_vm6, %v8907_v33, 256.0 }
 0x78c   : > { %v4484_v3 = vmin.f32 %v4394_v48, %v4395_v18 }
 0x78d   : > { %v4259_v8 = vpop.xlane.xlu0 %4258 }
 0x78e   : > { %vm4328_vm14 = vcmp.eq.f32.partialorder %v11471_v37, %v4259_v8  ;;  %vm4329_vm8 = vcmp.eq.f32.partialorder %v11474_v63, %v4259_v8  ;;  %4485 = vmin.xlane.f32.xlu0 %v4484_v3 }
 0x78f   : > { %v4392_v1 = vsel %vm4328_vm14, %v8904_v38, 256.0  ;;  %v4393_v62 = vsel %vm4329_vm8, %v8907_v33, 256.0 }
 0x790   : > { %v4481_v12 = vmin.f32 %v4392_v1, %v4393_v62 }
 0x791   : > { %v4256_v56 = vpop.xlane.xlu0 %4255 }
 0x792   : > { %vm4326_vm5 = vcmp.eq.f32.partialorder %v11483_v21, %v4256_v56  ;;  %vm4327_vm10 = vcmp.eq.f32.partialorder %v11486_v53, %v4256_v56  ;;  %4482 = vmin.xlane.f32.xlu0 %v4481_v12 }
 0x793   : > { %v4390_v24 = vsel %vm4326_vm5, %v8904_v38, 256.0  ;;  %v4391_v55 = vsel %vm4327_vm10, %v8907_v33, 256.0 }
 0x794   : > { %v4478_v13 = vmin.f32 %v4390_v24, %v4391_v55 }
 0x795   : > { %v4253_v48 = vpop.xlane.xlu0 %4252 }
 0x796   : > { %vm4324_vm7 = vcmp.eq.f32.partialorder %v11495_v14, %v4253_v48  ;;  %vm4325_vm12 = vcmp.eq.f32.partialorder %v11498_v6, %v4253_v48  ;;  %4479 = vmin.xlane.f32.xlu0 %v4478_v13 }
 0x797   : > { %v4388_v18 = vsel %vm4324_vm7, %v8904_v38, 256.0  ;;  %v4389_v3 = vsel %vm4325_vm12, %v8907_v33, 256.0 }
 0x798   : > { %v4475_v8 = vmin.f32 %v4388_v18, %v4389_v3 }
 0x799   : > { %v4250_v1 = vpop.xlane.xlu0 %4249 }
 0x79a   : > { %vm4322_vm9 = vcmp.eq.f32.partialorder %v11507_v7, %v4250_v1  ;;  %vm4323_vm13 = vcmp.eq.f32.partialorder %v11510_v52, %v4250_v1  ;;  %4476 = vmin.xlane.f32.xlu0 %v4475_v8 }
 0x79b   : > { %v4386_v62 = vsel %vm4322_vm9, %v8904_v38, 256.0  ;;  %v4387_v12 = vsel %vm4323_vm13, %v8907_v33, 256.0 }
 0x79c   : > { %v4472_v56 = vmin.f32 %v4386_v62, %v4387_v12 }
 0x79d   : > { %v4247_v24 = vpop.xlane.xlu0 %4246 }
 0x79e   : > { %vm4320_vm15 = vcmp.eq.f32.partialorder %v11519_v36, %v4247_v24  ;;  %vm4321_vm2 = vcmp.eq.f32.partialorder %v11522_v19, %v4247_v24  ;;  %4473 = vmin.xlane.f32.xlu0 %v4472_v56 }
 0x79f   : > { %v4384_v55 = vsel %vm4320_vm15, %v8904_v38, 256.0  ;;  %v4385_v13 = vsel %vm4321_vm2, %v8907_v33, 256.0 }
 0x7a0   : > { %v4469_v48 = vmin.f32 %v4384_v55, %v4385_v13  ;;  %v14070_v13 = vld [vmem:[#allocation23_spill] sm:$0xff] }
 0x7a1   : > { %v4244_v18 = vpop.xlane.xlu0 %4243 }
 0x7a2   : > { %vm4318_vm11 = vcmp.eq.f32.partialorder %v11531_v41, %v4244_v18  ;;  %vm4319_vm3 = vcmp.eq.f32.partialorder %v11534_v16, %v4244_v18  ;;  %4470 = vmin.xlane.f32.xlu0 %v4469_v48 }
 0x7a3   : > { %v4382_v3 = vsel %vm4318_vm11, %v8904_v38, 256.0  ;;  %v4383_v8 = vsel %vm4319_vm3, %v8907_v33, 256.0 }
 0x7a4   : > { %v4466_v1 = vmin.f32 %v4382_v3, %v4383_v8 }
 0x7a5   : > { %v4241_v62 = vpop.xlane.xlu0 %4240 }
 0x7a6   : > { %vm4316_vm4 = vcmp.eq.f32.partialorder %v11543_v42, %v4241_v62  ;;  %vm4317_vm6 = vcmp.eq.f32.partialorder %v11546_v46, %v4241_v62  ;;  %4467 = vmin.xlane.f32.xlu0 %v4466_v1  ;;  %v14071_v1 = vld [vmem:[#allocation22_spill] sm:$0xff]  ;;  %v14072_v46 = vld [vmem:[#allocation21_spill] sm:$0xff] }
 0x7a7   : > { %v4380_v12 = vsel %vm4316_vm4, %v8904_v38, 256.0  ;;  %v4381_v56 = vsel %vm4317_vm6, %v8907_v33, 256.0 }
 0x7a8   : > { %v4463_v24 = vmin.f32 %v4380_v12, %v4381_v56 }
 0x7a9   : > { %v4238_v55 = vpop.xlane.xlu0 %4237 }
 0x7aa   : > { %vm4314_vm14 = vcmp.eq.f32.partialorder %v11555_v43, %v4238_v55  ;;  %vm4315_vm8 = vcmp.eq.f32.partialorder %v14070_v13, %v4238_v55  ;;  %4464 = vmin.xlane.f32.xlu0 %v4463_v24  ;;  %v14073_v24 = vld [vmem:[#allocation28_spill] sm:$0xff] }
 0x7ab   : > { %v4378_v48 = vsel %vm4314_vm14, %v8904_v38, 256.0  ;;  %v4379_v18 = vsel %vm4315_vm8, %v8907_v33, 256.0 }
 0x7ac   : > { %v4460_v3 = vmin.f32 %v4378_v48, %v4379_v18 }
 0x7ad   : > { %v4235_v8 = vpop.xlane.xlu0 %4234 }
 0x7ae   : > { %vm4312_vm5 = vcmp.eq.f32.partialorder %v11567_v34, %v4235_v8  ;;  %vm4313_vm10 = vcmp.eq.f32.partialorder %v14071_v1, %v4235_v8  ;;  %4461 = vmin.xlane.f32.xlu0 %v4460_v3  ;;  %v14074_v8 = vmov 1.0  }
 0x7af   : > { %v4376_v62 = vsel %vm4312_vm5, %v8904_v38, 256.0  ;;  %v4377_v12 = vsel %vm4313_vm10, %v8907_v33, 256.0 }
 0x7b0   : > { %v4457_v56 = vmin.f32 %v4376_v62, %v4377_v12  ;;  %v14075_v62 = vld [vmem:[#allocation15_spill] sm:$0xff] }
 0x7b1   : > { %v4232_v43 = vpop.xlane.xlu0 %4231 }
 0x7b2   : > { %vm4310_vm7 = vcmp.eq.f32.partialorder %v14072_v46, %v4232_v43  ;;  %vm4311_vm12 = vcmp.eq.f32.partialorder %v14073_v24, %v4232_v43  ;;  %4458 = vmin.xlane.f32.xlu0 %v4457_v56 }
 0x7b3   : > { %v4374_v55 = vsel %vm4310_vm7, %v8904_v38, 256.0  ;;  %v4375_v48 = vsel %vm4311_vm12, %v8907_v33, 256.0 }
 0x7b4   : > { %v4454_v18 = vmin.f32 %v4374_v55, %v4375_v48 }
 0x7b6   : > { %4455 = vmin.xlane.f32.xlu0 %v4454_v18 }
 0x7c6   : > { %v4453_v34 = vpop.xlane.xlu1 %4452 }
 0x7c7   : > { %vm4532_vm9 = vcmp.eq.f32.partialorder %v8904_v38, %v4453_v34  ;;  %vm4533_vm13 = vcmp.eq.f32.partialorder %v8907_v33, %v4453_v34  ;;  %v14077_v34 = vld [vmem:[#allocation26_spill] sm:$0xff] }
 0x7c8   : > { %v11722_v3 = vsel %vm4532_vm9, inf, %v11188_v31  ;;  %7641 = vmatprep.subr.msk.mxu0 %vm4533_vm13, %v14074_v8  ;;  %v11726_v12 = vsel %vm4533_vm13, inf, %v14075_v62  ;;  %v14080_v62 = vld [vmem:[#allocation13_spill] sm:$0xff] }
 0x7c9   : > { %14076 = vst [vmem:[#allocation8_spill] sm:$0xff] %v11726_v12  ;;  %7642 = vmatpush1.xpose.msk.msra.mxu0 %vm4532_vm9, %v14074_v8  ;;  %v4878_v43 = vmin.f32 %v11722_v3, %v11726_v12 }
 0x7ca   : > { %v4450_v56 = vpop.xlane.xlu1 %4449 }
 0x7cb   : > { %vm4530_vm15 = vcmp.eq.f32.partialorder %v8904_v38, %v4450_v56  ;;  %4879 = vmin.xlane.f32.xlu1 %v4878_v43  ;;  %vm4531_vm2 = vcmp.eq.f32.partialorder %v8907_v33, %v4450_v56  ;;  %v14082_v56 = vld [vmem:[#allocation7_spill] sm:$0xff] }
 0x7cc   : > { %v11734_v55 = vsel %vm4530_vm15, inf, %v14077_v34  ;;  %7643 = vmatprep.subr.msk.mxu0 %vm4531_vm2, %v14074_v8  ;;  %v11738_v31 = vsel %vm4531_vm2, inf, %v14062_v11 }
 0x7cd   : > { %14078 = vst [vmem:[#allocation6_spill] sm:$0xff] %v11734_v55  ;;  %14079 = vst [vmem:[#allocation9_spill] sm:$0xff] %v11738_v31  ;;  %7644 = vmatpush1.xpose.msk.msra.mxu0 %vm4530_vm15, %v14074_v8  ;;  %v4875_v48 = vmin.f32 %v11734_v55, %v11738_v31 }
 0x7ce   : > { %v4447_v18 = vpop.xlane.xlu1 %4446 }
 0x7cf   : > { %vm4528_vm11 = vcmp.eq.f32.partialorder %v8904_v38, %v4447_v18  ;;  %4876 = vmin.xlane.f32.xlu1 %v4875_v48  ;;  %vm4529_vm3 = vcmp.eq.f32.partialorder %v8907_v33, %v4447_v18  ;;  %v14084_v48 = vld [vmem:[#allocation17_spill] sm:$0xff] }
 0x7d0   : > { %v11746_v43 = vsel %vm4528_vm11, inf, %v14080_v62  ;;  %7645 = vmatprep.subr.msk.mxu0 %vm4529_vm3, %v14074_v8  ;;  %v11750_v34 = vsel %vm4529_vm3, inf, %v14082_v56 }
 0x7d1   : > { %14081 = vst [vmem:[#allocation5_spill] sm:$0xff] %v11746_v43  ;;  %14083 = vst [vmem:[#allocation18_spill] sm:$0xff] %v11750_v34  ;;  %7646 = vmatpush1.xpose.msk.msra.mxu0 %vm4528_vm11, %v14074_v8  ;;  %v4872_v11 = vmin.f32 %v11746_v43, %v11750_v34 }
 0x7d2   : > { %v4444_v31 = vpop.xlane.xlu1 %4443 }
 0x7d3   : > { %vm4526_vm4 = vcmp.eq.f32.partialorder %v8904_v38, %v4444_v31  ;;  %4873 = vmin.xlane.f32.xlu1 %v4872_v11  ;;  %vm4527_vm6 = vcmp.eq.f32.partialorder %v8907_v33, %v4444_v31  ;;  %v14087_v31 = vld [vmem:[#allocation16_spill] sm:$0xff] }
 0x7d4   : > { %v11758_v18 = vsel %vm4526_vm4, inf, %v14084_v48  ;;  %7647 = vmatprep.subr.msk.mxu0 %vm4527_vm6, %v14074_v8  ;;  %v11762_v62 = vsel %vm4527_vm6, inf, %v14064_v10 }
 0x7d5   : > { %14085 = vst [vmem:[#allocation24_spill] sm:$0xff] %v11758_v18  ;;  %14086 = vst [vmem:[#allocation23_spill] sm:$0xff] %v11762_v62  ;;  %7648 = vmatpush1.xpose.msk.msra.mxu0 %vm4526_vm4, %v14074_v8  ;;  %v4869_v56 = vmin.f32 %v11758_v18, %v11762_v62 }
 0x7d6   : > { %v4441_v34 = vpop.xlane.xlu1 %4440 }
 0x7d7   : > { %vm4524_vm14 = vcmp.eq.f32.partialorder %v8904_v38, %v4441_v34  ;;  %4870 = vmin.xlane.f32.xlu1 %v4869_v56  ;;  %vm4525_vm8 = vcmp.eq.f32.partialorder %v8907_v33, %v4441_v34  ;;  %v14090_v34 = vld [vmem:[#allocation11_spill] sm:$0xff] }
 0x7d8   : > { %v11770_v11 = vsel %vm4524_vm14, inf, %v14087_v31  ;;  %7649 = vmatprep.subr.msk.mxu0 %vm4525_vm8, %v14074_v8  ;;  %v11774_v48 = vsel %vm4525_vm8, inf, %v14065_v50 }
 0x7d9   : > { %14088 = vst [vmem:[#allocation22_spill] sm:$0xff] %v11770_v11  ;;  %14089 = vst [vmem:[#allocation21_spill] sm:$0xff] %v11774_v48  ;;  %7650 = vmatpush1.xpose.msk.msra.mxu0 %vm4524_vm14, %v14074_v8  ;;  %v4866_v10 = vmin.f32 %v11770_v11, %v11774_v48 }
 0x7da   : > { %v4438_v62 = vpop.xlane.xlu1 %4437 }
 0x7db   : > { %vm4522_vm5 = vcmp.eq.f32.partialorder %v8904_v38, %v4438_v62  ;;  %4867 = vmin.xlane.f32.xlu1 %v4866_v10  ;;  %vm4523_vm10 = vcmp.eq.f32.partialorder %v8907_v33, %v4438_v62  ;;  %v14093_v10 = vld [vmem:[#allocation10_spill] sm:$0xff] }
 0x7dc   : > { %v11782_v56 = vsel %vm4522_vm5, inf, %v14090_v34  ;;  %7651 = vmatprep.subr.msk.mxu0 %vm4523_vm10, %v14074_v8  ;;  %v11786_v31 = vsel %vm4523_vm10, inf, %v14067_v28 }
 0x7dd   : > { %14091 = vst [vmem:[#allocation28_spill] sm:$0xff] %v11782_v56  ;;  %14092 = vst [vmem:[#allocation15_spill] sm:$0xff] %v11786_v31  ;;  %7652 = vmatpush1.xpose.msk.msra.mxu0 %vm4522_vm5, %v14074_v8  ;;  %v4863_v50 = vmin.f32 %v11782_v56, %v11786_v31 }
 0x7de   : > { %v4435_v48 = vpop.xlane.xlu1 %4434 }
 0x7df   : > { %vm4520_vm7 = vcmp.eq.f32.partialorder %v8904_v38, %v4435_v48  ;;  %4864 = vmin.xlane.f32.xlu1 %v4863_v50  ;;  %vm4521_vm12 = vcmp.eq.f32.partialorder %v8907_v33, %v4435_v48 }
 0x7e0   : > { %v11794_v62 = vsel %vm4520_vm7, inf, %v11260_v57  ;;  %7653 = vmatprep.subr.msk.mxu0 %vm4521_vm12, %v14074_v8  ;;  %v11798_v34 = vsel %vm4521_vm12, inf, %v14093_v10  ;;  %v14097_v10 = vld [vmem:[#allocation27_spill] sm:$0xff] }
 0x7e1   : > { %14094 = vst [vmem:[#allocation26_spill] sm:$0xff] %v11798_v34  ;;  %7654 = vmatpush1.xpose.msk.msra.mxu0 %vm4520_vm7, %v14074_v8  ;;  %v4860_v28 = vmin.f32 %v11794_v62, %v11798_v34 }
 0x7e2   : > { %v4432_v31 = vpop.xlane.xlu1 %4431  ;;  %v11803_v56 = vpop.xlane.xlu0 %4410 }
 0x7e3   : > { %vm4518_vm9 = vcmp.eq.f32.partialorder %v8904_v38, %v4432_v31  ;;  %vm4504_vm13 = vcmp.eq.f32.partialorder %v8904_v38, %v11803_v56  ;;  %vm4505_vm15 = vcmp.eq.f32.partialorder %v8907_v33, %v11803_v56  ;;  %4861 = vmin.xlane.f32.xlu1 %v4860_v28  ;;  %vm4519_vm2 = vcmp.eq.f32.partialorder %v8907_v33, %v4432_v31 }
 0x7e4   : > { %v11812_v57 = vsel %vm4518_vm9, inf, %v11278_v5  ;;  %v11818_v48 = vsel %vm4504_vm13, inf, %v14068_v17  ;;  %v11824_v50 = vsel %vm4505_vm15, inf, %v14069_v60  ;;  %7655 = vmatprep.subr.msk.mxu0 %vm4519_vm2, %v14074_v8  ;;  %v11828_v28 = vsel %vm4519_vm2, inf, %v14097_v10 }
 0x7e5   : > { %14095 = vst [vmem:[#allocation13_spill] sm:$0xff] %v11818_v48  ;;  %14096 = vst [vmem:[#allocation7_spill] sm:$0xff] %v11824_v50  ;;  %7656 = vmatpush1.xpose.msk.msra.mxu0 %vm4518_vm9, %v14074_v8  ;;  %v4857_v5 = vmin.f32 %v11812_v57, %v11828_v28  ;;  %v4836_v17 = vmin.f32 %v11818_v48, %v11824_v50 }
 0x7e6   : > { %14098 = vst [vmem:[#allocation17_spill] sm:$0xff] %v11828_v28  ;;  %v4429_v31 = vpop.xlane.xlu1 %4428 }
 0x7e7   : > { %vm4516_vm11 = vcmp.eq.f32.partialorder %v8904_v38, %v4429_v31  ;;  %4858 = vmin.xlane.f32.xlu1 %v4857_v5  ;;  %4837 = vmin.xlane.f32.xlu0 %v4836_v17  ;;  %vm4517_vm3 = vcmp.eq.f32.partialorder %v8907_v33, %v4429_v31 }
 0x7e8   : > { %v11838_v60 = vsel %vm4516_vm11, inf, %v11304_v25  ;;  %7657 = vmatprep.subr.msk.mxu0 %vm4517_vm3, %v14074_v8  ;;  %v11842_v10 = vsel %vm4517_vm3, inf, %v11308_v39 }
 0x7e9   : > { %7658 = vmatpush1.xpose.msk.msra.mxu0 %vm4516_vm11, %v14074_v8  ;;  %v4854_v50 = vmin.f32 %v11838_v60, %v11842_v10 }
 0x7ea   : > { %v4426_v48 = vpop.xlane.xlu1 %4425 }
 0x7eb   : > { %vm4514_vm4 = vcmp.eq.f32.partialorder %v8904_v38, %v4426_v48  ;;  %4855 = vmin.xlane.f32.xlu1 %v4854_v50  ;;  %vm4515_vm6 = vcmp.eq.f32.partialorder %v8907_v33, %v4426_v48 }
 0x7ec   : > { %v11850_v5 = vsel %vm4514_vm4, inf, %v11316_v54  ;;  %7659 = vmatprep.subr.msk.mxu0 %vm4515_vm6, %v14074_v8  ;;  %v11854_v25 = vsel %vm4515_vm6, inf, %v11320_v51 }
 0x7ed   : > { %7660 = vmatpush1.xpose.msk.msra.mxu0 %vm4514_vm4, %v14074_v8  ;;  %v4851_v39 = vmin.f32 %v11850_v5, %v11854_v25 }
 0x7ee   : > { %v4423_v17 = vpop.xlane.xlu1 %4422 }
 0x7ef   : > { %vm4512_vm14 = vcmp.eq.f32.partialorder %v8904_v38, %v4423_v17  ;;  %4852 = vmin.xlane.f32.xlu1 %v4851_v39  ;;  %vm4513_vm8 = vcmp.eq.f32.partialorder %v8907_v33, %v4423_v17 }
 0x7f0   : > { %v11862_v48 = vsel %vm4512_vm14, inf, %v11328_v26  ;;  %7661 = vmatprep.subr.msk.mxu0 %vm4513_vm8, %v14074_v8  ;;  %v11866_v54 = vsel %vm4513_vm8, inf, %v11332_v23 }
 0x7f1   : > { %7662 = vmatpush1.xpose.msk.msra.mxu0 %vm4512_vm14, %v14074_v8  ;;  %v4848_v51 = vmin.f32 %v11862_v48, %v11866_v54 }
 0x7f2   : > { %v4420_v50 = vpop.xlane.xlu1 %4419 }
 0x7f3   : > { %vm4510_vm5 = vcmp.eq.f32.partialorder %v8904_v38, %v4420_v50  ;;  %4849 = vmin.xlane.f32.xlu1 %v4848_v51  ;;  %vm4511_vm10 = vcmp.eq.f32.partialorder %v8907_v33, %v4420_v50 }
 0x7f4   : > { %v11874_v31 = vsel %vm4510_vm5, inf, %v11340_v9  ;;  %7663 = vmatprep.subr.msk.mxu0 %vm4511_vm10, %v14074_v8  ;;  %v11878_v26 = vsel %vm4511_vm10, inf, %v11344_v45 }
 0x7f5   : > { %7664 = vmatpush1.xpose.msk.msra.mxu0 %vm4510_vm5, %v14074_v8  ;;  %v4845_v23 = vmin.f32 %v11874_v31, %v11878_v26 }
 0x7f6   : > { %v4417_v39 = vpop.xlane.xlu1 %4416 }
 0x7f7   : > { %vm4508_vm7 = vcmp.eq.f32.partialorder %v8904_v38, %v4417_v39  ;;  %4846 = vmin.xlane.f32.xlu1 %v4845_v23  ;;  %vm4509_vm12 = vcmp.eq.f32.partialorder %v8907_v33, %v4417_v39 }
 0x7f8   : > { %v11886_v17 = vsel %vm4508_vm7, inf, %v11352_v0  ;;  %7665 = vmatprep.subr.msk.mxu0 %vm4509_vm12, %v14074_v8  ;;  %v11890_v9 = vsel %vm4509_vm12, inf, %v11356_v29 }
 0x7f9   : > { %7666 = vmatpush1.xpose.msk.msra.mxu0 %vm4508_vm7, %v14074_v8  ;;  %v4842_v45 = vmin.f32 %v11886_v17, %v11890_v9 }
 0x7fa   : > { %v4414_v51 = vpop.xlane.xlu1 %4413 }
 0x7fb   : > { %vm4506_vm9 = vcmp.eq.f32.partialorder %v8904_v38, %v4414_v51  ;;  %4843 = vmin.xlane.f32.xlu1 %v4842_v45  ;;  %vm4507_vm2 = vcmp.eq.f32.partialorder %v8907_v33, %v4414_v51 }
 0x7fc   : > { %v11898_v50 = vsel %vm4506_vm9, inf, %v11364_v44  ;;  %7667 = vmatprep.subr.msk.mxu0 %vm4507_vm2, %v14074_v8  ;;  %v11902_v0 = vsel %vm4507_vm2, inf, %v11368_v58 }
 0x7fd   : > { %7668 = vmatpush1.xpose.msk.msra.mxu0 %vm4506_vm9, %v14074_v8  ;;  %v4839_v29 = vmin.f32 %v11898_v50, %v11902_v0 }
 0x7fe   : > { %v4408_v23 = vpop.xlane.xlu1 %4407  ;;  %7669 = vmatprep.subr.msk.mxu0 %vm4505_vm15, %v14074_v8 }
 0x7ff   : > { %vm4502_vm11 = vcmp.eq.f32.partialorder %v8904_v38, %v4408_v23  ;;  %4840 = vmin.xlane.f32.xlu1 %v4839_v29  ;;  %vm4503_vm3 = vcmp.eq.f32.partialorder %v8907_v33, %v4408_v23 }
 0x800   : > { %v11914_v44 = vsel %vm4502_vm11, inf, %v11380_v2  ;;  %v11917_v58 = vsel %vm4503_vm3, inf, %v11383_v49 }
 0x801   : > { %7670 = vmatpush1.xpose.msk.msra.mxu0 %vm4504_vm13, %v14074_v8  ;;  %v4833_v39 = vmin.f32 %v11914_v44, %v11917_v58 }
 0x802   : > { %7671 = vmatprep.subr.msk.mxu0 %vm4503_vm3, %v14074_v8 }
 0x803   : > { %4834 = vmin.xlane.f32.xlu1 %v4833_v39  ;;  %v4498_v45 = vpop.xlane.xlu1 %4497 }
 0x804   : > { %vm4562_vm15 = vcmp.eq.f32.partialorder %v8904_v38, %v4498_v45  ;;  %vm4563_vm4 = vcmp.eq.f32.partialorder %v8907_v33, %v4498_v45 }
 0x805   : > { %v11931_v2 = vsel %vm4562_vm15, inf, %v11397_v61  ;;  %v11934_v49 = vsel %vm4563_vm4, inf, %v11400_v40  ;;  %7672 = vmatpush1.xpose.msk.msra.mxu0 %vm4502_vm11, %v14074_v8 }
 0x806   : > { %v4923_v56 = vmin.f32 %v11931_v2, %v11934_v49 }
 0x807   : > { %v4501_v51 = vpop.xlane.xlu0 %4500 }
 0x808   : > { %vm4564_vm13 = vcmp.eq.f32.partialorder %v8904_v38, %v4501_v51  ;;  %4924 = vmin.xlane.f32.xlu1 %v4923_v56  ;;  %vm4565_vm6 = vcmp.eq.f32.partialorder %v8907_v33, %v4501_v51 }
 0x809   : > { %v11942_v29 = vsel %vm4564_vm13, inf, %v11408_v47  ;;  %7673 = vmatprep.subr.msk.mxu0 %vm4565_vm6, %v14074_v8  ;;  %v11946_v61 = vsel %vm4565_vm6, inf, %v11412_v32 }
 0x80a   : > { %7674 = vmatpush2.xpose.msk.msra.mxu0 %vm4564_vm13, %v14074_v8  ;;  %v4926_v40 = vmin.f32 %v11942_v29, %v11946_v61 }
 0x80b   : > { %7675 = vmatprep.subr.msk.mxu0 %vm4563_vm4, %v14074_v8  ;;  %v4495_v23 = vpop.xlane.xlu0 %4494 }
 0x80c   : > { %vm4560_vm14 = vcmp.eq.f32.partialorder %v8904_v38, %v4495_v23  ;;  %4927 = vmin.xlane.f32.xlu0 %v4926_v40  ;;  %vm4561_vm8 = vcmp.eq.f32.partialorder %v8907_v33, %v4495_v23 }
 0x80d   : > { %v11955_v47 = vsel %vm4560_vm14, inf, %v11421_v15  ;;  %v11958_v39 = vsel %vm4561_vm8, inf, %v11424_v27 }
 0x80e   : > { %7676 = vmatpush2.xpose.msk.msra.mxu0 %vm4562_vm15, %v14074_v8  ;;  %v4920_v32 = vmin.f32 %v11955_v47, %v11958_v39 }
 0x80f   : > { %7677 = vmatprep.subr.msk.mxu0 %vm4561_vm8, %v14074_v8  ;;  %v4492_v56 = vpop.xlane.xlu0 %4491 }
 0x810   : > { %vm4558_vm5 = vcmp.eq.f32.partialorder %v8904_v38, %v4492_v56  ;;  %4921 = vmin.xlane.f32.xlu0 %v4920_v32  ;;  %vm4559_vm10 = vcmp.eq.f32.partialorder %v8907_v33, %v4492_v56 }
 0x811   : > { %v11969_v15 = vsel %vm4558_vm5, inf, %v11435_v20  ;;  %v11972_v27 = vsel %vm4559_vm10, inf, %v11438_v59 }
 0x812   : > { %7678 = vmatpush2.xpose.msk.msra.mxu0 %vm4560_vm14, %v14074_v8  ;;  %v4917_v45 = vmin.f32 %v11969_v15, %v11972_v27 }
 0x813   : > { %7679 = vmatprep.subr.msk.mxu0 %vm4559_vm10, %v14074_v8  ;;  %v4489_v51 = vpop.xlane.xlu0 %4488 }
 0x814   : > { %vm4556_vm7 = vcmp.eq.f32.partialorder %v8904_v38, %v4489_v51  ;;  %4918 = vmin.xlane.f32.xlu0 %v4917_v45  ;;  %vm4557_vm12 = vcmp.eq.f32.partialorder %v8907_v33, %v4489_v51 }
 0x815   : > { %v11981_v40 = vsel %vm4556_vm7, inf, %v11447_v4  ;;  %v11984_v20 = vsel %vm4557_vm12, inf, %v11450_v22 }
 0x816   : > { %7680 = vmatpush2.xpose.msk.msra.mxu0 %vm4558_vm5, %v14074_v8  ;;  %v4914_v59 = vmin.f32 %v11981_v40, %v11984_v20 }
 0x817   : > { %7681 = vmatprep.subr.msk.mxu0 %vm4557_vm12, %v14074_v8  ;;  %v4486_v23 = vpop.xlane.xlu0 %4485 }
 0x818   : > { %vm4554_vm9 = vcmp.eq.f32.partialorder %v8904_v38, %v4486_v23  ;;  %4915 = vmin.xlane.f32.xlu0 %v4914_v59  ;;  %vm4555_vm2 = vcmp.eq.f32.partialorder %v8907_v33, %v4486_v23 }
 0x819   : > { %v11993_v32 = vsel %vm4554_vm9, inf, %v11459_v30  ;;  %v11996_v4 = vsel %vm4555_vm2, inf, %v11462_v35 }
 0x81a   : > { %7682 = vmatpush2.xpose.msk.msra.mxu0 %vm4556_vm7, %v14074_v8  ;;  %v4911_v22 = vmin.f32 %v11993_v32, %v11996_v4 }
 0x81b   : > { %7683 = vmatprep.subr.msk.mxu0 %vm4555_vm2, %v14074_v8  ;;  %v4483_v56 = vpop.xlane.xlu0 %4482 }
 0x81c   : > { %vm4552_vm11 = vcmp.eq.f32.partialorder %v8904_v38, %v4483_v56  ;;  %4912 = vmin.xlane.f32.xlu0 %v4911_v22  ;;  %vm4553_vm3 = vcmp.eq.f32.partialorder %v8907_v33, %v4483_v56 }
 0x81d   : > { %v12005_v45 = vsel %vm4552_vm11, inf, %v11471_v37  ;;  %v12008_v30 = vsel %vm4553_vm3, inf, %v11474_v63 }
 0x81e   : > { %7684 = vmatpush2.xpose.msk.msra.mxu0 %vm4554_vm9, %v14074_v8  ;;  %v4908_v35 = vmin.f32 %v12005_v45, %v12008_v30 }
 0x81f   : > { %7685 = vmatprep.subr.msk.mxu0 %vm4553_vm3, %v14074_v8  ;;  %v4480_v51 = vpop.xlane.xlu0 %4479 }
 0x820   : > { %vm4550_vm15 = vcmp.eq.f32.partialorder %v8904_v38, %v4480_v51  ;;  %4909 = vmin.xlane.f32.xlu0 %v4908_v35  ;;  %vm4551_vm4 = vcmp.eq.f32.partialorder %v8907_v33, %v4480_v51 }
 0x821   : > { %v12017_v59 = vsel %vm4550_vm15, inf, %v11483_v21  ;;  %v12020_v37 = vsel %vm4551_vm4, inf, %v11486_v53 }
 0x822   : > { %7686 = vmatpush2.xpose.msk.msra.mxu0 %vm4552_vm11, %v14074_v8  ;;  %v4905_v63 = vmin.f32 %v12017_v59, %v12020_v37 }
 0x823   : > { %7687 = vmatprep.subr.msk.mxu0 %vm4551_vm4, %v14074_v8  ;;  %v4477_v23 = vpop.xlane.xlu0 %4476 }
 0x824   : > { %vm4548_vm13 = vcmp.eq.f32.partialorder %v8904_v38, %v4477_v23  ;;  %4906 = vmin.xlane.f32.xlu0 %v4905_v63  ;;  %vm4549_vm6 = vcmp.eq.f32.partialorder %v8907_v33, %v4477_v23 }
 0x825   : > { %v12029_v22 = vsel %vm4548_vm13, inf, %v11495_v14  ;;  %v12032_v21 = vsel %vm4549_vm6, inf, %v11498_v6 }
 0x826   : > { %7688 = vmatpush2.xpose.msk.msra.mxu0 %vm4550_vm15, %v14074_v8  ;;  %v4902_v53 = vmin.f32 %v12029_v22, %v12032_v21 }
 0x827   : > { %7689 = vmatprep.subr.msk.mxu0 %vm4549_vm6, %v14074_v8  ;;  %v4474_v56 = vpop.xlane.xlu0 %4473 }
 0x828   : > { %vm4546_vm14 = vcmp.eq.f32.partialorder %v8904_v38, %v4474_v56  ;;  %4903 = vmin.xlane.f32.xlu0 %v4902_v53  ;;  %vm4547_vm8 = vcmp.eq.f32.partialorder %v8907_v33, %v4474_v56 }
 0x829   : > { %v12041_v35 = vsel %vm4546_vm14, inf, %v11507_v7  ;;  %v12044_v14 = vsel %vm4547_vm8, inf, %v11510_v52 }
 0x82a   : > { %7690 = vmatpush2.xpose.msk.msra.mxu0 %vm4548_vm13, %v14074_v8  ;;  %v4899_v6 = vmin.f32 %v12041_v35, %v12044_v14 }
 0x82b   : > { %7691 = vmatprep.subr.msk.mxu0 %vm4547_vm8, %v14074_v8  ;;  %v4471_v51 = vpop.xlane.xlu0 %4470 }
 0x82c   : > { %vm4544_vm5 = vcmp.eq.f32.partialorder %v8904_v38, %v4471_v51  ;;  %4900 = vmin.xlane.f32.xlu0 %v4899_v6  ;;  %vm4545_vm10 = vcmp.eq.f32.partialorder %v8907_v33, %v4471_v51 }
 0x82d   : > { %v12053_v63 = vsel %vm4544_vm5, inf, %v11519_v36  ;;  %v12056_v7 = vsel %vm4545_vm10, inf, %v11522_v19 }
 0x82e   : > { %7692 = vmatpush2.xpose.msk.msra.mxu0 %vm4546_vm14, %v14074_v8  ;;  %v4896_v52 = vmin.f32 %v12053_v63, %v12056_v7 }
 0x82f   : > { %7693 = vmatprep.subr.msk.mxu0 %vm4545_vm10, %v14074_v8  ;;  %v4468_v23 = vpop.xlane.xlu0 %4467 }
 0x830   : > { %vm4542_vm7 = vcmp.eq.f32.partialorder %v8904_v38, %v4468_v23  ;;  %4897 = vmin.xlane.f32.xlu0 %v4896_v52  ;;  %vm4543_vm12 = vcmp.eq.f32.partialorder %v8907_v33, %v4468_v23  ;;  %v14101_v23 = vld [vmem:[#allocation12_spill] sm:$0xff] }
 0x831   : > { %v12065_v53 = vsel %vm4542_vm7, inf, %v11531_v41  ;;  %v12068_v36 = vsel %vm4543_vm12, inf, %v11534_v16  ;;  %v14099_v41 = vld [vmem:[#allocation19_spill] sm:$0xff] }
 0x832   : > { %7694 = vmatpush2.xpose.msk.msra.mxu0 %vm4544_vm5, %v14074_v8  ;;  %v4893_v19 = vmin.f32 %v12065_v53, %v12068_v36 }
 0x833   : > { %7695 = vmatprep.subr.msk.mxu0 %vm4543_vm12, %v14074_v8  ;;  %v4465_v56 = vpop.xlane.xlu0 %4464 }
 0x834   : > { %vm4540_vm9 = vcmp.eq.f32.partialorder %v8904_v38, %v4465_v56  ;;  %4894 = vmin.xlane.f32.xlu0 %v4893_v19  ;;  %vm4541_vm2 = vcmp.eq.f32.partialorder %v8907_v33, %v4465_v56 }
 0x835   : > { %v12077_v6 = vsel %vm4540_vm9, inf, %v11543_v42  ;;  %v12080_v51 = vsel %vm4541_vm2, inf, %v14099_v41 }
 0x836   : > { %14100 = vst [vmem:[#allocation16_spill] sm:$0xff] %v12080_v51  ;;  %7696 = vmatpush2.xpose.msk.msra.mxu0 %vm4542_vm7, %v14074_v8  ;;  %v4890_v16 = vmin.f32 %v12077_v6, %v12080_v51 }
 0x837   : > { %7697 = vmatprep.subr.msk.mxu0 %vm4541_vm2, %v14074_v8  ;;  %v4462_v52 = vpop.xlane.xlu0 %4461 }
 0x838   : > { %vm4538_vm11 = vcmp.eq.f32.partialorder %v8904_v38, %v4462_v52  ;;  %4891 = vmin.xlane.f32.xlu0 %v4890_v16  ;;  %vm4539_vm3 = vcmp.eq.f32.partialorder %v8907_v33, %v4462_v52  ;;  %v14104_v16 = vld [vmem:[#allocation20_spill] sm:$0xff] }
 0x839   : > { %v12089_v19 = vsel %vm4538_vm11, inf, %v14101_v23  ;;  %v12092_v42 = vsel %vm4539_vm3, inf, %v14070_v13 }
 0x83a   : > { %14102 = vst [vmem:[#allocation11_spill] sm:$0xff] %v12089_v19  ;;  %14103 = vst [vmem:[#allocation10_spill] sm:$0xff] %v12092_v42  ;;  %7698 = vmatpush2.xpose.msk.msra.mxu0 %vm4540_vm9, %v14074_v8  ;;  %v4887_v56 = vmin.f32 %v12089_v19, %v12092_v42 }
 0x83b   : > { %7699 = vmatprep.subr.msk.mxu0 %vm4539_vm3, %v14074_v8  ;;  %v4459_v41 = vpop.xlane.xlu0 %4458 }
 0x83c   : > { %vm4536_vm15 = vcmp.eq.f32.partialorder %v8904_v38, %v4459_v41  ;;  %4888 = vmin.xlane.f32.xlu0 %v4887_v56  ;;  %vm4537_vm4 = vcmp.eq.f32.partialorder %v8907_v33, %v4459_v41 }
 0x83d   : > { %v12101_v52 = vsel %vm4536_vm15, inf, %v14104_v16  ;;  %v12104_v23 = vsel %vm4537_vm4, inf, %v14071_v1  ;;  %v14109_v16 = vld [vmem:[#allocation14_spill] sm:$0xff] }
 0x83e   : > { %14105 = vst [vmem:[#allocation27_spill] sm:$0xff] %v12101_v52  ;;  %14106 = vst [vmem:[#allocation19_spill] sm:$0xff] %v12104_v23  ;;  %7700 = vmatpush2.xpose.msk.msra.mxu0 %vm4538_vm11, %v14074_v8  ;;  %v4884_v13 = vmin.f32 %v12101_v52, %v12104_v23 }
 0x83f   : > { %7701 = vmatprep.subr.msk.mxu0 %vm4537_vm4, %v14074_v8  ;;  %v4456_v42 = vpop.xlane.xlu0 %4455 }
 0x840   : > { %vm4534_vm13 = vcmp.eq.f32.partialorder %v8904_v38, %v4456_v42  ;;  %4885 = vmin.xlane.f32.xlu0 %v4884_v13  ;;  %vm4535_vm6 = vcmp.eq.f32.partialorder %v8907_v33, %v4456_v42  ;;  %v14110_v13 = vld [vmem:[#allocation25_spill] sm:$0xff] }
 0x841   : > { %v12113_v56 = vsel %vm4534_vm13, inf, %v14072_v46  ;;  %v12116_v41 = vsel %vm4535_vm6, inf, %v14073_v24 }
 0x842   : > { %14107 = vst [vmem:[#allocation12_spill] sm:$0xff] %v12113_v56  ;;  %14108 = vst [vmem:[#allocation20_spill] sm:$0xff] %v12116_v41  ;;  %7702 = vmatpush2.xpose.msk.msra.mxu0 %vm4536_vm15, %v14074_v8  ;;  %v4881_v1 = vmin.f32 %v12113_v56, %v12116_v41 }
 0x843   : > { %7703 = vmatprep.subr.msk.mxu0 %vm4535_vm6, %v14074_v8 }
 0x844   : > { %4882 = vmin.xlane.f32.xlu0 %v4881_v1  ;;  %v14111_v1 = vld [vmem:[#allocation9_spill] sm:$0xff] }
 0x846   : > { %7704 = vmatpush2.xpose.msk.msra.mxu0 %vm4534_vm13, %v14074_v8 }
 0x849   : > { %4759 = vmatmul.mubr.f32.vlgmr.msra.gmra.mxu0 %v14109_v16 }
 0x84a   : > { %6060 = vmatprep.mubr.f32.mxu0 %v14110_v13 }
 0x854   : > { %v4880_v42 = vpop.xlane.xlu1 %4879 }
 0x855   : > { %vm4959_vm14 = vcmp.eq.f32.partialorder %v11722_v3, %v4880_v42  ;;  %vm4960_vm8 = vcmp.eq.f32.partialorder %v11726_v12, %v4880_v42  ;;  %v14112_v42 = vld [vmem:[#allocation18_spill] sm:$0xff] }
 0x856   : > { %v5023_v46 = vsel %vm4959_vm14, %v8904_v38, 256.0  ;;  %v5024_v24 = vsel %vm4960_vm8, %v8907_v33, 256.0 }
 0x857   : > { %v5102_v23 = vmin.f32 %v5023_v46, %v5024_v24 }
 0x858   : > { %v4877_v41 = vpop.xlane.xlu1 %4876 }
 0x859   : > { %vm4957_vm5 = vcmp.eq.f32.partialorder %v11734_v55, %v4877_v41  ;;  %vm4958_vm10 = vcmp.eq.f32.partialorder %v14111_v1, %v4877_v41  ;;  %5103 = vmin.xlane.f32.xlu1 %v5102_v23  ;;  %v14113_v23 = vld [vmem:[#allocation23_spill] sm:$0xff] }
 0x85a   : > { %v5021_v16 = vsel %vm4957_vm5, %v8904_v38, 256.0  ;;  %v5022_v13 = vsel %vm4958_vm10, %v8907_v33, 256.0 }
 0x85b   : > { %v5099_v8 = vmin.f32 %v5021_v16, %v5022_v13 }
 0x85c   : > { %v4874_v56 = vpop.xlane.xlu1 %4873 }
 0x85d   : > { %vm4955_vm7 = vcmp.eq.f32.partialorder %v11746_v43, %v4874_v56  ;;  %vm4956_vm12 = vcmp.eq.f32.partialorder %v14112_v42, %v4874_v56  ;;  %5100 = vmin.xlane.f32.xlu1 %v5099_v8  ;;  %v14114_v8 = vld [vmem:[#allocation21_spill] sm:$0xff]  ;;  %v14115_v42 = vld [vmem:[#allocation28_spill] sm:$0xff] }
 0x85e   : > { %v5019_v12 = vsel %vm4955_vm7, %v8904_v38, 256.0  ;;  %v5020_v46 = vsel %vm4956_vm12, %v8907_v33, 256.0 }
 0x85f   : > { %v5096_v24 = vmin.f32 %v5019_v12, %v5020_v46 }
 0x860   : > { %v4871_v55 = vpop.xlane.xlu1 %4870 }
 0x861   : > { %vm4953_vm9 = vcmp.eq.f32.partialorder %v11758_v18, %v4871_v55  ;;  %vm4954_vm2 = vcmp.eq.f32.partialorder %v14113_v23, %v4871_v55  ;;  %5097 = vmin.xlane.f32.xlu1 %v5096_v24  ;;  %v14116_v55 = vld [vmem:[#allocation15_spill] sm:$0xff] }
 0x862   : > { %v5017_v41 = vsel %vm4953_vm9, %v8904_v38, 256.0  ;;  %v5018_v16 = vsel %vm4954_vm2, %v8907_v33, 256.0 }
 0x863   : > { %v5093_v13 = vmin.f32 %v5017_v41, %v5018_v16 }
 0x864   : > { %v4868_v43 = vpop.xlane.xlu1 %4867 }
 0x865   : > { %vm4951_vm11 = vcmp.eq.f32.partialorder %v11770_v11, %v4868_v43  ;;  %vm4952_vm3 = vcmp.eq.f32.partialorder %v14114_v8, %v4868_v43  ;;  %5094 = vmin.xlane.f32.xlu1 %v5093_v13 }
 0x866   : > { %v5015_v56 = vsel %vm4951_vm11, %v8904_v38, 256.0  ;;  %v5016_v12 = vsel %vm4952_vm3, %v8907_v33, 256.0 }
 0x867   : > { %v5090_v46 = vmin.f32 %v5015_v56, %v5016_v12 }
 0x868   : > { %v4865_v18 = vpop.xlane.xlu1 %4864 }
 0x869   : > { %vm4949_vm15 = vcmp.eq.f32.partialorder %v14115_v42, %v4865_v18  ;;  %vm4950_vm4 = vcmp.eq.f32.partialorder %v14116_v55, %v4865_v18  ;;  %5091 = vmin.xlane.f32.xlu1 %v5090_v46  ;;  %v14117_v18 = vld [vmem:[#allocation13_spill] sm:$0xff]  ;;  %v14118_v46 = vld [vmem:[#allocation7_spill] sm:$0xff] }
 0x86a   : > { %v5013_v24 = vsel %vm4949_vm15, %v8904_v38, 256.0  ;;  %v5014_v41 = vsel %vm4950_vm4, %v8907_v33, 256.0 }
 0x86b   : > { %v5087_v16 = vmin.f32 %v5013_v24, %v5014_v41 }
 0x86c   : > { %v4862_v11 = vpop.xlane.xlu1 %4861 }
 0x86d   : > { %vm4947_vm13 = vcmp.eq.f32.partialorder %v11794_v62, %v4862_v11  ;;  %vm4948_vm6 = vcmp.eq.f32.partialorder %v11798_v34, %v4862_v11  ;;  %5088 = vmin.xlane.f32.xlu1 %v5087_v16 }
 0x86e   : > { %v5011_v43 = vsel %vm4947_vm13, %v8904_v38, 256.0  ;;  %v5012_v13 = vsel %vm4948_vm6, %v8907_v33, 256.0 }
 0x86f   : > { %v5084_v56 = vmin.f32 %v5011_v43, %v5012_v13 }
 0x870   : > { %v4859_v12 = vpop.xlane.xlu1 %4858  ;;  %v4838_v42 = vpop.xlane.xlu0 %4837 }
 0x871   : > { %vm4945_vm14 = vcmp.eq.f32.partialorder %v11812_v57, %v4859_v12  ;;  %vm4946_vm8 = vcmp.eq.f32.partialorder %v11828_v28, %v4859_v12  ;;  %vm4931_vm5 = vcmp.eq.f32.partialorder %v14117_v18, %v4838_v42  ;;  %vm4932_vm10 = vcmp.eq.f32.partialorder %v14118_v46, %v4838_v42  ;;  %5085 = vmin.xlane.f32.xlu1 %v5084_v56 }
 0x872   : > { %v5009_v24 = vsel %vm4945_vm14, %v8904_v38, 256.0  ;;  %v5010_v11 = vsel %vm4946_vm8, %v8907_v33, 256.0  ;;  %v4995_v41 = vsel %vm4931_vm5, %v8904_v38, 256.0  ;;  %v4996_v16 = vsel %vm4932_vm10, %v8907_v33, 256.0 }
 0x873   : > { %v5081_v43 = vmin.f32 %v5009_v24, %v5010_v11  ;;  %v5060_v13 = vmin.f32 %v4995_v41, %v4996_v16 }
 0x874   : > { %v4856_v34 = vpop.xlane.xlu1 %4855 }
 0x875   : > { %vm4943_vm7 = vcmp.eq.f32.partialorder %v11838_v60, %v4856_v34  ;;  %vm4944_vm12 = vcmp.eq.f32.partialorder %v11842_v10, %v4856_v34  ;;  %5082 = vmin.xlane.f32.xlu1 %v5081_v43  ;;  %5061 = vmin.xlane.f32.xlu0 %v5060_v13 }
 0x876   : > { %v5007_v42 = vsel %vm4943_vm7, %v8904_v38, 256.0  ;;  %v5008_v56 = vsel %vm4944_vm12, %v8907_v33, 256.0 }
 0x877   : > { %v5078_v12 = vmin.f32 %v5007_v42, %v5008_v56 }
 0x878   : > { %v4853_v28 = vpop.xlane.xlu1 %4852 }
 0x879   : > { %vm4941_vm9 = vcmp.eq.f32.partialorder %v11850_v5, %v4853_v28  ;;  %vm4942_vm2 = vcmp.eq.f32.partialorder %v11854_v25, %v4853_v28  ;;  %5079 = vmin.xlane.f32.xlu1 %v5078_v12 }
 0x87a   : > { %v5005_v24 = vsel %vm4941_vm9, %v8904_v38, 256.0  ;;  %v5006_v11 = vsel %vm4942_vm2, %v8907_v33, 256.0 }
 0x87b   : > { %v5075_v41 = vmin.f32 %v5005_v24, %v5006_v11 }
 0x87c   : > { %v4850_v16 = vpop.xlane.xlu1 %4849 }
 0x87d   : > { %vm4939_vm11 = vcmp.eq.f32.partialorder %v11862_v48, %v4850_v16  ;;  %vm4940_vm3 = vcmp.eq.f32.partialorder %v11866_v54, %v4850_v16  ;;  %5076 = vmin.xlane.f32.xlu1 %v5075_v41 }
 0x87e   : > { %v5003_v34 = vsel %vm4939_vm11, %v8904_v38, 256.0  ;;  %v5004_v43 = vsel %vm4940_vm3, %v8907_v33, 256.0 }
 0x87f   : > { %v5072_v13 = vmin.f32 %v5003_v34, %v5004_v43 }
 0x880   : > { %v4847_v42 = vpop.xlane.xlu1 %4846 }
 0x881   : > { %vm4937_vm15 = vcmp.eq.f32.partialorder %v11874_v31, %v4847_v42  ;;  %vm4938_vm4 = vcmp.eq.f32.partialorder %v11878_v26, %v4847_v42  ;;  %5073 = vmin.xlane.f32.xlu1 %v5072_v13 }
 0x882   : > { %v5001_v28 = vsel %vm4937_vm15, %v8904_v38, 256.0  ;;  %v5002_v56 = vsel %vm4938_vm4, %v8907_v33, 256.0 }
 0x883   : > { %v5069_v12 = vmin.f32 %v5001_v28, %v5002_v56 }
 0x884   : > { %v4844_v24 = vpop.xlane.xlu1 %4843 }
 0x885   : > { %vm4935_vm13 = vcmp.eq.f32.partialorder %v11886_v17, %v4844_v24  ;;  %vm4936_vm6 = vcmp.eq.f32.partialorder %v11890_v9, %v4844_v24  ;;  %5070 = vmin.xlane.f32.xlu1 %v5069_v12 }
 0x886   : > { %v4999_v11 = vsel %vm4935_vm13, %v8904_v38, 256.0  ;;  %v5000_v41 = vsel %vm4936_vm6, %v8907_v33, 256.0 }
 0x887   : > { %v5066_v16 = vmin.f32 %v4999_v11, %v5000_v41 }
 0x888   : > { %v4841_v34 = vpop.xlane.xlu1 %4840 }
 0x889   : > { %vm4933_vm14 = vcmp.eq.f32.partialorder %v11898_v50, %v4841_v34  ;;  %vm4934_vm8 = vcmp.eq.f32.partialorder %v11902_v0, %v4841_v34  ;;  %5067 = vmin.xlane.f32.xlu1 %v5066_v16 }
 0x88a   : > { %v4997_v43 = vsel %vm4933_vm14, %v8904_v38, 256.0  ;;  %v4998_v13 = vsel %vm4934_vm8, %v8907_v33, 256.0 }
 0x88b   : > { %v5063_v42 = vmin.f32 %v4997_v43, %v4998_v13 }
 0x88c   : > { %v4835_v28 = vpop.xlane.xlu1 %4834 }
 0x88d   : > { %vm4929_vm5 = vcmp.eq.f32.partialorder %v11914_v44, %v4835_v28  ;;  %vm4930_vm10 = vcmp.eq.f32.partialorder %v11917_v58, %v4835_v28  ;;  %5064 = vmin.xlane.f32.xlu1 %v5063_v42 }
 0x88e   : > { %v4993_v56 = vsel %vm4929_vm5, %v8904_v38, 256.0  ;;  %v4994_v12 = vsel %vm4930_vm10, %v8907_v33, 256.0 }
 0x88f   : > { %v5057_v24 = vmin.f32 %v4993_v56, %v4994_v12 }
 0x891   : > { %5058 = vmin.xlane.f32.xlu1 %v5057_v24  ;;  %v4925_v11 = vpop.xlane.xlu1 %4924 }
 0x892   : > { %vm4989_vm7 = vcmp.eq.f32.partialorder %v11931_v2, %v4925_v11  ;;  %vm4990_vm12 = vcmp.eq.f32.partialorder %v11934_v49, %v4925_v11 }
 0x893   : > { %v5053_v41 = vsel %vm4989_vm7, %v8904_v38, 256.0  ;;  %v5054_v16 = vsel %vm4990_vm12, %v8907_v33, 256.0 }
 0x894   : > { %v5147_v34 = vmin.f32 %v5053_v41, %v5054_v16 }
 0x895   : > { %v4928_v43 = vpop.xlane.xlu0 %4927 }
 0x896   : > { %vm4991_vm9 = vcmp.eq.f32.partialorder %v11942_v29, %v4928_v43  ;;  %vm4992_vm2 = vcmp.eq.f32.partialorder %v11946_v61, %v4928_v43  ;;  %5148 = vmin.xlane.f32.xlu1 %v5147_v34 }
 0x897   : > { %v5055_v13 = vsel %vm4991_vm9, %v8904_v38, 256.0  ;;  %v5056_v42 = vsel %vm4992_vm2, %v8907_v33, 256.0 }
 0x898   : > { %v5150_v28 = vmin.f32 %v5055_v13, %v5056_v42 }
 0x899   : > { %v4922_v56 = vpop.xlane.xlu0 %4921 }
 0x89a   : > { %vm4987_vm11 = vcmp.eq.f32.partialorder %v11955_v47, %v4922_v56  ;;  %vm4988_vm3 = vcmp.eq.f32.partialorder %v11958_v39, %v4922_v56  ;;  %5151 = vmin.xlane.f32.xlu0 %v5150_v28 }
 0x89b   : > { %v5051_v12 = vsel %vm4987_vm11, %v8904_v38, 256.0  ;;  %v5052_v24 = vsel %vm4988_vm3, %v8907_v33, 256.0 }
 0x89c   : > { %v5144_v11 = vmin.f32 %v5051_v12, %v5052_v24 }
 0x89d   : > { %v4919_v41 = vpop.xlane.xlu0 %4918 }
 0x89e   : > { %vm4985_vm15 = vcmp.eq.f32.partialorder %v11969_v15, %v4919_v41  ;;  %vm4986_vm4 = vcmp.eq.f32.partialorder %v11972_v27, %v4919_v41  ;;  %5145 = vmin.xlane.f32.xlu0 %v5144_v11 }
 0x89f   : > { %v5049_v16 = vsel %vm4985_vm15, %v8904_v38, 256.0  ;;  %v5050_v34 = vsel %vm4986_vm4, %v8907_v33, 256.0 }
 0x8a0   : > { %v5141_v43 = vmin.f32 %v5049_v16, %v5050_v34 }
 0x8a1   : > { %v4916_v13 = vpop.xlane.xlu0 %4915 }
 0x8a2   : > { %vm4983_vm13 = vcmp.eq.f32.partialorder %v11981_v40, %v4916_v13  ;;  %vm4984_vm6 = vcmp.eq.f32.partialorder %v11984_v20, %v4916_v13  ;;  %5142 = vmin.xlane.f32.xlu0 %v5141_v43 }
 0x8a3   : > { %v5047_v42 = vsel %vm4983_vm13, %v8904_v38, 256.0  ;;  %v5048_v28 = vsel %vm4984_vm6, %v8907_v33, 256.0 }
 0x8a4   : > { %v5138_v56 = vmin.f32 %v5047_v42, %v5048_v28 }
 0x8a5   : > { %v4913_v12 = vpop.xlane.xlu0 %4912 }
 0x8a6   : > { %vm4981_vm14 = vcmp.eq.f32.partialorder %v11993_v32, %v4913_v12  ;;  %vm4982_vm8 = vcmp.eq.f32.partialorder %v11996_v4, %v4913_v12  ;;  %5139 = vmin.xlane.f32.xlu0 %v5138_v56 }
 0x8a7   : > { %v5045_v24 = vsel %vm4981_vm14, %v8904_v38, 256.0  ;;  %v5046_v11 = vsel %vm4982_vm8, %v8907_v33, 256.0 }
 0x8a8   : > { %v5135_v41 = vmin.f32 %v5045_v24, %v5046_v11 }
 0x8a9   : > { %v4910_v16 = vpop.xlane.xlu0 %4909 }
 0x8aa   : > { %vm4979_vm5 = vcmp.eq.f32.partialorder %v12005_v45, %v4910_v16  ;;  %vm4980_vm10 = vcmp.eq.f32.partialorder %v12008_v30, %v4910_v16  ;;  %5136 = vmin.xlane.f32.xlu0 %v5135_v41 }
 0x8ab   : > { %v5043_v34 = vsel %vm4979_vm5, %v8904_v38, 256.0  ;;  %v5044_v43 = vsel %vm4980_vm10, %v8907_v33, 256.0 }
 0x8ac   : > { %v5132_v13 = vmin.f32 %v5043_v34, %v5044_v43 }
 0x8ad   : > { %v4907_v42 = vpop.xlane.xlu0 %4906 }
 0x8ae   : > { %vm4977_vm7 = vcmp.eq.f32.partialorder %v12017_v59, %v4907_v42  ;;  %vm4978_vm12 = vcmp.eq.f32.partialorder %v12020_v37, %v4907_v42  ;;  %5133 = vmin.xlane.f32.xlu0 %v5132_v13 }
 0x8af   : > { %v5041_v28 = vsel %vm4977_vm7, %v8904_v38, 256.0  ;;  %v5042_v56 = vsel %vm4978_vm12, %v8907_v33, 256.0 }
 0x8b0   : > { %v5129_v12 = vmin.f32 %v5041_v28, %v5042_v56 }
 0x8b1   : > { %v4904_v24 = vpop.xlane.xlu0 %4903 }
 0x8b2   : > { %vm4975_vm9 = vcmp.eq.f32.partialorder %v12029_v22, %v4904_v24  ;;  %vm4976_vm2 = vcmp.eq.f32.partialorder %v12032_v21, %v4904_v24  ;;  %5130 = vmin.xlane.f32.xlu0 %v5129_v12 }
 0x8b3   : > { %v5039_v11 = vsel %vm4975_vm9, %v8904_v38, 256.0  ;;  %v5040_v41 = vsel %vm4976_vm2, %v8907_v33, 256.0 }
 0x8b4   : > { %v5126_v16 = vmin.f32 %v5039_v11, %v5040_v41 }
 0x8b5   : > { %v4901_v34 = vpop.xlane.xlu0 %4900 }
 0x8b6   : > { %vm4973_vm11 = vcmp.eq.f32.partialorder %v12041_v35, %v4901_v34  ;;  %vm4974_vm3 = vcmp.eq.f32.partialorder %v12044_v14, %v4901_v34  ;;  %5127 = vmin.xlane.f32.xlu0 %v5126_v16 }
 0x8b7   : > { %v5037_v43 = vsel %vm4973_vm11, %v8904_v38, 256.0  ;;  %v5038_v13 = vsel %vm4974_vm3, %v8907_v33, 256.0 }
 0x8b8   : > { %v5123_v42 = vmin.f32 %v5037_v43, %v5038_v13 }
 0x8b9   : > { %v4898_v28 = vpop.xlane.xlu0 %4897 }
 0x8ba   : > { %vm4971_vm15 = vcmp.eq.f32.partialorder %v12053_v63, %v4898_v28  ;;  %vm4972_vm4 = vcmp.eq.f32.partialorder %v12056_v7, %v4898_v28  ;;  %5124 = vmin.xlane.f32.xlu0 %v5123_v42 }
 0x8bb   : > { %v5035_v56 = vsel %vm4971_vm15, %v8904_v38, 256.0  ;;  %v5036_v12 = vsel %vm4972_vm4, %v8907_v33, 256.0 }
 0x8bc   : > { %v5120_v24 = vmin.f32 %v5035_v56, %v5036_v12  ;;  %v14119_v12 = vld [vmem:[#allocation10_spill] sm:$0xff] }
 0x8bd   : > { %v4895_v11 = vpop.xlane.xlu0 %4894 }
 0x8be   : > { %vm4969_vm13 = vcmp.eq.f32.partialorder %v12065_v53, %v4895_v11  ;;  %vm4970_vm6 = vcmp.eq.f32.partialorder %v12068_v36, %v4895_v11  ;;  %5121 = vmin.xlane.f32.xlu0 %v5120_v24 }
 0x8bf   : > { %v5033_v41 = vsel %vm4969_vm13, %v8904_v38, 256.0  ;;  %v5034_v16 = vsel %vm4970_vm6, %v8907_v33, 256.0 }
 0x8c0   : > { %v5117_v34 = vmin.f32 %v5033_v41, %v5034_v16 }
 0x8c1   : > { %v4892_v43 = vpop.xlane.xlu0 %4891 }
 0x8c2   : > { %vm4967_vm14 = vcmp.eq.f32.partialorder %v12077_v6, %v4892_v43  ;;  %vm4968_vm8 = vcmp.eq.f32.partialorder %v12080_v51, %v4892_v43  ;;  %5118 = vmin.xlane.f32.xlu0 %v5117_v34  ;;  %v14120_v34 = vld [vmem:[#allocation19_spill] sm:$0xff]  ;;  %v14121_v51 = vld [vmem:[#allocation12_spill] sm:$0xff] }
 0x8c3   : > { %v5031_v13 = vsel %vm4967_vm14, %v8904_v38, 256.0  ;;  %v5032_v42 = vsel %vm4968_vm8, %v8907_v33, 256.0 }
 0x8c4   : > { %v5114_v28 = vmin.f32 %v5031_v13, %v5032_v42 }
 0x8c5   : > { %v4889_v56 = vpop.xlane.xlu0 %4888 }
 0x8c6   : > { %vm4965_vm5 = vcmp.eq.f32.partialorder %v12089_v19, %v4889_v56  ;;  %vm4966_vm10 = vcmp.eq.f32.partialorder %v14119_v12, %v4889_v56  ;;  %5115 = vmin.xlane.f32.xlu0 %v5114_v28  ;;  %v14122_v28 = vld [vmem:[#allocation20_spill] sm:$0xff] }
 0x8c7   : > { %v5029_v24 = vsel %vm4965_vm5, %v8904_v38, 256.0  ;;  %v5030_v11 = vsel %vm4966_vm10, %v8907_v33, 256.0 }
 0x8c8   : > { %v5111_v41 = vmin.f32 %v5029_v24, %v5030_v11 }
 0x8c9   : > { %v4886_v16 = vpop.xlane.xlu0 %4885 }
 0x8ca   : > { %vm4963_vm7 = vcmp.eq.f32.partialorder %v12101_v52, %v4886_v16  ;;  %vm4964_vm12 = vcmp.eq.f32.partialorder %v14120_v34, %v4886_v16  ;;  %5112 = vmin.xlane.f32.xlu0 %v5111_v41  ;;  %v14123_v16 = vmov 1.0  }
 0x8cb   : > { %v5027_v43 = vsel %vm4963_vm7, %v8904_v38, 256.0  ;;  %v5028_v13 = vsel %vm4964_vm12, %v8907_v33, 256.0 }
 0x8cc   : > { %v5108_v42 = vmin.f32 %v5027_v43, %v5028_v13  ;;  %v14124_v43 = vld [vmem:[#allocation8_spill] sm:$0xff] }
 0x8cd   : > { %v4883_v19 = vpop.xlane.xlu0 %4882 }
 0x8ce   : > { %vm4961_vm9 = vcmp.eq.f32.partialorder %v14121_v51, %v4883_v19  ;;  %vm4962_vm2 = vcmp.eq.f32.partialorder %v14122_v28, %v4883_v19  ;;  %5109 = vmin.xlane.f32.xlu0 %v5108_v42 }
 0x8cf   : > { %v5025_v56 = vsel %vm4961_vm9, %v8904_v38, 256.0  ;;  %v5026_v24 = vsel %vm4962_vm2, %v8907_v33, 256.0 }
 0x8d0   : > { %v5105_v11 = vmin.f32 %v5025_v56, %v5026_v24 }
 0x8d2   : > { %5106 = vmin.xlane.f32.xlu0 %v5105_v11 }
 0x8e2   : > { %v5104_v52 = vpop.xlane.xlu1 %5103 }
 0x8e3   : > { %vm5183_vm11 = vcmp.eq.f32.partialorder %v8904_v38, %v5104_v52  ;;  %vm5184_vm3 = vcmp.eq.f32.partialorder %v8907_v33, %v5104_v52  ;;  %v14126_v52 = vld [vmem:[#allocation6_spill] sm:$0xff] }
 0x8e4   : > { %v12256_v41 = vsel %vm5183_vm11, inf, %v11722_v3  ;;  %7769 = vmatprep.subr.msk.mxu1 %vm5184_vm3, %v14123_v16  ;;  %v12260_v13 = vsel %vm5184_vm3, inf, %v14124_v43  ;;  %v14129_v43 = vld [vmem:[#allocation5_spill] sm:$0xff] }
 0x8e5   : > { %14125 = vst [vmem:[#allocation9_spill] sm:$0xff] %v12260_v13  ;;  %7770 = vmatpush1.xpose.msk.msra.mxu1 %vm5183_vm11, %v14123_v16  ;;  %v5529_v19 = vmin.f32 %v12256_v41, %v12260_v13 }
 0x8e6   : > { %v5101_v42 = vpop.xlane.xlu1 %5100 }
 0x8e7   : > { %vm5181_vm15 = vcmp.eq.f32.partialorder %v8904_v38, %v5101_v42  ;;  %5530 = vmin.xlane.f32.xlu1 %v5529_v19  ;;  %vm5182_vm4 = vcmp.eq.f32.partialorder %v8907_v33, %v5101_v42  ;;  %v14131_v42 = vld [vmem:[#allocation18_spill] sm:$0xff] }
 0x8e8   : > { %v12268_v56 = vsel %vm5181_vm15, inf, %v14126_v52  ;;  %7771 = vmatprep.subr.msk.mxu1 %vm5182_vm4, %v14123_v16  ;;  %v12272_v3 = vsel %vm5182_vm4, inf, %v14111_v1 }
 0x8e9   : > { %14127 = vst [vmem:[#allocation23_spill] sm:$0xff] %v12268_v56  ;;  %14128 = vst [vmem:[#allocation21_spill] sm:$0xff] %v12272_v3  ;;  %7772 = vmatpush1.xpose.msk.msra.mxu1 %vm5181_vm15, %v14123_v16  ;;  %v5526_v24 = vmin.f32 %v12268_v56, %v12272_v3 }
 0x8ea   : > { %v5098_v11 = vpop.xlane.xlu1 %5097 }
 0x8eb   : > { %vm5179_vm13 = vcmp.eq.f32.partialorder %v8904_v38, %v5098_v11  ;;  %5527 = vmin.xlane.f32.xlu1 %v5526_v24  ;;  %vm5180_vm6 = vcmp.eq.f32.partialorder %v8907_v33, %v5098_v11  ;;  %v14133_v24 = vld [vmem:[#allocation24_spill] sm:$0xff] }
 0x8ec   : > { %v12280_v19 = vsel %vm5179_vm13, inf, %v14129_v43  ;;  %7773 = vmatprep.subr.msk.mxu1 %vm5180_vm6, %v14123_v16  ;;  %v12284_v52 = vsel %vm5180_vm6, inf, %v14131_v42 }
 0x8ed   : > { %14130 = vst [vmem:[#allocation15_spill] sm:$0xff] %v12280_v19  ;;  %14132 = vst [vmem:[#allocation13_spill] sm:$0xff] %v12284_v52  ;;  %7774 = vmatpush1.xpose.msk.msra.mxu1 %vm5179_vm13, %v14123_v16  ;;  %v5523_v1 = vmin.f32 %v12280_v19, %v12284_v52 }
 0x8ee   : > { %v5095_v3 = vpop.xlane.xlu1 %5094 }
 0x8ef   : > { %vm5177_vm14 = vcmp.eq.f32.partialorder %v8904_v38, %v5095_v3  ;;  %5524 = vmin.xlane.f32.xlu1 %v5523_v1  ;;  %vm5178_vm8 = vcmp.eq.f32.partialorder %v8907_v33, %v5095_v3  ;;  %v14136_v3 = vld [vmem:[#allocation22_spill] sm:$0xff] }
 0x8f0   : > { %v12292_v11 = vsel %vm5177_vm14, inf, %v14133_v24  ;;  %7775 = vmatprep.subr.msk.mxu1 %vm5178_vm8, %v14123_v16  ;;  %v12296_v43 = vsel %vm5178_vm8, inf, %v14113_v23 }
 0x8f1   : > { %14134 = vst [vmem:[#allocation7_spill] sm:$0xff] %v12292_v11  ;;  %14135 = vst [vmem:[#allocation10_spill] sm:$0xff] %v12296_v43  ;;  %7776 = vmatpush1.xpose.msk.msra.mxu1 %vm5177_vm14, %v14123_v16  ;;  %v5520_v42 = vmin.f32 %v12292_v11, %v12296_v43 }
 0x8f2   : > { %v5092_v52 = vpop.xlane.xlu1 %5091 }
 0x8f3   : > { %vm5175_vm5 = vcmp.eq.f32.partialorder %v8904_v38, %v5092_v52  ;;  %5521 = vmin.xlane.f32.xlu1 %v5520_v42  ;;  %vm5176_vm10 = vcmp.eq.f32.partialorder %v8907_v33, %v5092_v52  ;;  %v14139_v52 = vld [vmem:[#allocation28_spill] sm:$0xff] }
 0x8f4   : > { %v12304_v1 = vsel %vm5175_vm5, inf, %v14136_v3  ;;  %7777 = vmatprep.subr.msk.mxu1 %vm5176_vm10, %v14123_v16  ;;  %v12308_v24 = vsel %vm5176_vm10, inf, %v14114_v8 }
 0x8f5   : > { %14137 = vst [vmem:[#allocation19_spill] sm:$0xff] %v12304_v1  ;;  %14138 = vst [vmem:[#allocation12_spill] sm:$0xff] %v12308_v24  ;;  %7778 = vmatpush1.xpose.msk.msra.mxu1 %vm5175_vm5, %v14123_v16  ;;  %v5517_v23 = vmin.f32 %v12304_v1, %v12308_v24 }
 0x8f6   : > { %v5089_v43 = vpop.xlane.xlu1 %5088 }
 0x8f7   : > { %vm5173_vm7 = vcmp.eq.f32.partialorder %v8904_v38, %v5089_v43  ;;  %5518 = vmin.xlane.f32.xlu1 %v5517_v23  ;;  %vm5174_vm12 = vcmp.eq.f32.partialorder %v8907_v33, %v5089_v43  ;;  %v14142_v23 = vld [vmem:[#allocation26_spill] sm:$0xff] }
 0x8f8   : > { %v12316_v42 = vsel %vm5173_vm7, inf, %v14139_v52  ;;  %7779 = vmatprep.subr.msk.mxu1 %vm5174_vm12, %v14123_v16  ;;  %v12320_v3 = vsel %vm5174_vm12, inf, %v14116_v55 }
 0x8f9   : > { %14140 = vst [vmem:[#allocation20_spill] sm:$0xff] %v12316_v42  ;;  %14141 = vst [vmem:[#allocation8_spill] sm:$0xff] %v12320_v3  ;;  %7780 = vmatpush1.xpose.msk.msra.mxu1 %vm5173_vm7, %v14123_v16  ;;  %v5514_v8 = vmin.f32 %v12316_v42, %v12320_v3 }
 0x8fa   : > { %v5086_v24 = vpop.xlane.xlu1 %5085 }
 0x8fb   : > { %vm5171_vm9 = vcmp.eq.f32.partialorder %v8904_v38, %v5086_v24  ;;  %5515 = vmin.xlane.f32.xlu1 %v5514_v8  ;;  %vm5172_vm2 = vcmp.eq.f32.partialorder %v8907_v33, %v5086_v24 }
 0x8fc   : > { %v12328_v43 = vsel %vm5171_vm9, inf, %v11794_v62  ;;  %7781 = vmatprep.subr.msk.mxu1 %vm5172_vm2, %v14123_v16  ;;  %v12332_v52 = vsel %vm5172_vm2, inf, %v14142_v23  ;;  %v14146_v23 = vld [vmem:[#allocation17_spill] sm:$0xff] }
 0x8fd   : > { %14143 = vst [vmem:[#allocation6_spill] sm:$0xff] %v12332_v52  ;;  %7782 = vmatpush1.xpose.msk.msra.mxu1 %vm5171_vm9, %v14123_v16  ;;  %v5511_v55 = vmin.f32 %v12328_v43, %v12332_v52 }
 0x8fe   : > { %v5083_v3 = vpop.xlane.xlu1 %5082  ;;  %v12337_v42 = vpop.xlane.xlu0 %5061 }
 0x8ff   : > { %vm5169_vm11 = vcmp.eq.f32.partialorder %v8904_v38, %v5083_v3  ;;  %vm5155_vm3 = vcmp.eq.f32.partialorder %v8904_v38, %v12337_v42  ;;  %vm5156_vm15 = vcmp.eq.f32.partialorder %v8907_v33, %v12337_v42  ;;  %5512 = vmin.xlane.f32.xlu1 %v5511_v55  ;;  %vm5170_vm4 = vcmp.eq.f32.partialorder %v8907_v33, %v5083_v3 }
 0x900   : > { %v12346_v62 = vsel %vm5169_vm11, inf, %v11812_v57  ;;  %v12352_v24 = vsel %vm5155_vm3, inf, %v14117_v18  ;;  %v12358_v8 = vsel %vm5156_vm15, inf, %v14118_v46  ;;  %7783 = vmatprep.subr.msk.mxu1 %vm5170_vm4, %v14123_v16  ;;  %v12362_v55 = vsel %vm5170_vm4, inf, %v14146_v23 }
 0x901   : > { %14144 = vst [vmem:[#allocation5_spill] sm:$0xff] %v12352_v24  ;;  %14145 = vst [vmem:[#allocation18_spill] sm:$0xff] %v12358_v8  ;;  %7784 = vmatpush1.xpose.msk.msra.mxu1 %vm5169_vm11, %v14123_v16  ;;  %v5508_v57 = vmin.f32 %v12346_v62, %v12362_v55  ;;  %v5487_v18 = vmin.f32 %v12352_v24, %v12358_v8 }
 0x902   : > { %v5080_v3 = vpop.xlane.xlu1 %5079 }
 0x903   : > { %vm5167_vm13 = vcmp.eq.f32.partialorder %v8904_v38, %v5080_v3  ;;  %5509 = vmin.xlane.f32.xlu1 %v5508_v57  ;;  %5488 = vmin.xlane.f32.xlu0 %v5487_v18  ;;  %vm5168_vm6 = vcmp.eq.f32.partialorder %v8907_v33, %v5080_v3 }
 0x904   : > { %v12372_v46 = vsel %vm5167_vm13, inf, %v11838_v60  ;;  %7785 = vmatprep.subr.msk.mxu1 %vm5168_vm6, %v14123_v16  ;;  %v12376_v23 = vsel %vm5168_vm6, inf, %v11842_v10 }
 0x905   : > { %7786 = vmatpush1.xpose.msk.msra.mxu1 %vm5167_vm13, %v14123_v16  ;;  %v5505_v8 = vmin.f32 %v12372_v46, %v12376_v23 }
 0x906   : > { %v5077_v24 = vpop.xlane.xlu1 %5076 }
 0x907   : > { %vm5165_vm14 = vcmp.eq.f32.partialorder %v8904_v38, %v5077_v24  ;;  %5506 = vmin.xlane.f32.xlu1 %v5505_v8  ;;  %vm5166_vm8 = vcmp.eq.f32.partialorder %v8907_v33, %v5077_v24 }
 0x908   : > { %v12384_v57 = vsel %vm5165_vm14, inf, %v11850_v5  ;;  %7787 = vmatprep.subr.msk.mxu1 %vm5166_vm8, %v14123_v16  ;;  %v12388_v60 = vsel %vm5166_vm8, inf, %v11854_v25 }
 0x909   : > { %7788 = vmatpush1.xpose.msk.msra.mxu1 %vm5165_vm14, %v14123_v16  ;;  %v5502_v10 = vmin.f32 %v12384_v57, %v12388_v60 }
 0x90a   : > { %v5074_v18 = vpop.xlane.xlu1 %5073 }
 0x90b   : > { %vm5163_vm5 = vcmp.eq.f32.partialorder %v8904_v38, %v5074_v18  ;;  %5503 = vmin.xlane.f32.xlu1 %v5502_v10  ;;  %vm5164_vm10 = vcmp.eq.f32.partialorder %v8907_v33, %v5074_v18 }
 0x90c   : > { %v12396_v24 = vsel %vm5163_vm5, inf, %v11862_v48  ;;  %7789 = vmatprep.subr.msk.mxu1 %vm5164_vm10, %v14123_v16  ;;  %v12400_v5 = vsel %vm5164_vm10, inf, %v11866_v54 }
 0x90d   : > { %7790 = vmatpush1.xpose.msk.msra.mxu1 %vm5163_vm5, %v14123_v16  ;;  %v5499_v25 = vmin.f32 %v12396_v24, %v12400_v5 }
 0x90e   : > { %v5071_v8 = vpop.xlane.xlu1 %5070 }
 0x90f   : > { %vm5161_vm7 = vcmp.eq.f32.partialorder %v8904_v38, %v5071_v8  ;;  %5500 = vmin.xlane.f32.xlu1 %v5499_v25  ;;  %vm5162_vm12 = vcmp.eq.f32.partialorder %v8907_v33, %v5071_v8 }
 0x910   : > { %v12408_v3 = vsel %vm5161_vm7, inf, %v11874_v31  ;;  %7791 = vmatprep.subr.msk.mxu1 %vm5162_vm12, %v14123_v16  ;;  %v12412_v48 = vsel %vm5162_vm12, inf, %v11878_v26 }
 0x911   : > { %7792 = vmatpush1.xpose.msk.msra.mxu1 %vm5161_vm7, %v14123_v16  ;;  %v5496_v54 = vmin.f32 %v12408_v3, %v12412_v48 }
 0x912   : > { %v5068_v10 = vpop.xlane.xlu1 %5067 }
 0x913   : > { %vm5159_vm9 = vcmp.eq.f32.partialorder %v8904_v38, %v5068_v10  ;;  %5497 = vmin.xlane.f32.xlu1 %v5496_v54  ;;  %vm5160_vm2 = vcmp.eq.f32.partialorder %v8907_v33, %v5068_v10 }
 0x914   : > { %v12420_v18 = vsel %vm5159_vm9, inf, %v11886_v17  ;;  %7793 = vmatprep.subr.msk.mxu1 %vm5160_vm2, %v14123_v16  ;;  %v12424_v31 = vsel %vm5160_vm2, inf, %v11890_v9 }
 0x915   : > { %7794 = vmatpush1.xpose.msk.msra.mxu1 %vm5159_vm9, %v14123_v16  ;;  %v5493_v26 = vmin.f32 %v12420_v18, %v12424_v31 }
 0x916   : > { %v5065_v25 = vpop.xlane.xlu1 %5064 }
 0x917   : > { %vm5157_vm11 = vcmp.eq.f32.partialorder %v8904_v38, %v5065_v25  ;;  %5494 = vmin.xlane.f32.xlu1 %v5493_v26  ;;  %vm5158_vm4 = vcmp.eq.f32.partialorder %v8907_v33, %v5065_v25 }
 0x918   : > { %v12432_v8 = vsel %vm5157_vm11, inf, %v11898_v50  ;;  %7795 = vmatprep.subr.msk.mxu1 %vm5158_vm4, %v14123_v16  ;;  %v12436_v17 = vsel %vm5158_vm4, inf, %v11902_v0 }
 0x919   : > { %7796 = vmatpush1.xpose.msk.msra.mxu1 %vm5157_vm11, %v14123_v16  ;;  %v5490_v9 = vmin.f32 %v12432_v8, %v12436_v17 }
 0x91a   : > { %v5059_v54 = vpop.xlane.xlu1 %5058  ;;  %7797 = vmatprep.subr.msk.mxu1 %vm5156_vm15, %v14123_v16 }
 0x91b   : > { %vm5153_vm13 = vcmp.eq.f32.partialorder %v8904_v38, %v5059_v54  ;;  %5491 = vmin.xlane.f32.xlu1 %v5490_v9  ;;  %vm5154_vm6 = vcmp.eq.f32.partialorder %v8907_v33, %v5059_v54 }
 0x91c   : > { %v12448_v50 = vsel %vm5153_vm13, inf, %v11914_v44  ;;  %v12451_v0 = vsel %vm5154_vm6, inf, %v11917_v58 }
 0x91d   : > { %7798 = vmatpush1.xpose.msk.msra.mxu1 %vm5155_vm3, %v14123_v16  ;;  %v5484_v10 = vmin.f32 %v12448_v50, %v12451_v0 }
 0x91e   : > { %7799 = vmatprep.subr.msk.mxu1 %vm5154_vm6, %v14123_v16 }
 0x91f   : > { %5485 = vmin.xlane.f32.xlu1 %v5484_v10  ;;  %v5149_v26 = vpop.xlane.xlu1 %5148 }
 0x920   : > { %vm5213_vm15 = vcmp.eq.f32.partialorder %v8904_v38, %v5149_v26  ;;  %vm5214_vm14 = vcmp.eq.f32.partialorder %v8907_v33, %v5149_v26 }
 0x921   : > { %v12465_v44 = vsel %vm5213_vm15, inf, %v11931_v2  ;;  %v12468_v58 = vsel %vm5214_vm14, inf, %v11934_v49  ;;  %7800 = vmatpush1.xpose.msk.msra.mxu1 %vm5153_vm13, %v14123_v16 }
 0x922   : > { %v5574_v42 = vmin.f32 %v12465_v44, %v12468_v58 }
 0x923   : > { %v5152_v25 = vpop.xlane.xlu0 %5151 }
 0x924   : > { %vm5215_vm3 = vcmp.eq.f32.partialorder %v8904_v38, %v5152_v25  ;;  %5575 = vmin.xlane.f32.xlu1 %v5574_v42  ;;  %vm5216_vm8 = vcmp.eq.f32.partialorder %v8907_v33, %v5152_v25 }
 0x925   : > { %v12476_v9 = vsel %vm5215_vm3, inf, %v11942_v29  ;;  %7801 = vmatprep.subr.msk.mxu1 %vm5216_vm8, %v14123_v16  ;;  %v12480_v2 = vsel %vm5216_vm8, inf, %v11946_v61 }
 0x926   : > { %7802 = vmatpush2.xpose.msk.msra.mxu1 %vm5215_vm3, %v14123_v16  ;;  %v5577_v49 = vmin.f32 %v12476_v9, %v12480_v2 }
 0x927   : > { %7803 = vmatprep.subr.msk.mxu1 %vm5214_vm14, %v14123_v16  ;;  %v5146_v54 = vpop.xlane.xlu0 %5145 }
 0x928   : > { %vm5211_vm5 = vcmp.eq.f32.partialorder %v8904_v38, %v5146_v54  ;;  %5578 = vmin.xlane.f32.xlu0 %v5577_v49  ;;  %vm5212_vm10 = vcmp.eq.f32.partialorder %v8907_v33, %v5146_v54 }
 0x929   : > { %v12489_v29 = vsel %vm5211_vm5, inf, %v11955_v47  ;;  %v12492_v10 = vsel %vm5212_vm10, inf, %v11958_v39 }
 0x92a   : > { %7804 = vmatpush2.xpose.msk.msra.mxu1 %vm5213_vm15, %v14123_v16  ;;  %v5571_v61 = vmin.f32 %v12489_v29, %v12492_v10 }
 0x92b   : > { %7805 = vmatprep.subr.msk.mxu1 %vm5212_vm10, %v14123_v16  ;;  %v5143_v42 = vpop.xlane.xlu0 %5142 }
 0x92c   : > { %vm5209_vm7 = vcmp.eq.f32.partialorder %v8904_v38, %v5143_v42  ;;  %5572 = vmin.xlane.f32.xlu0 %v5571_v61  ;;  %vm5210_vm12 = vcmp.eq.f32.partialorder %v8907_v33, %v5143_v42 }
 0x92d   : > { %v12503_v47 = vsel %vm5209_vm7, inf, %v11969_v15  ;;  %v12506_v39 = vsel %vm5210_vm12, inf, %v11972_v27 }
 0x92e   : > { %7806 = vmatpush2.xpose.msk.msra.mxu1 %vm5211_vm5, %v14123_v16  ;;  %v5568_v26 = vmin.f32 %v12503_v47, %v12506_v39 }
 0x92f   : > { %7807 = vmatprep.subr.msk.mxu1 %vm5210_vm12, %v14123_v16  ;;  %v5140_v25 = vpop.xlane.xlu0 %5139 }
 0x930   : > { %vm5207_vm9 = vcmp.eq.f32.partialorder %v8904_v38, %v5140_v25  ;;  %5569 = vmin.xlane.f32.xlu0 %v5568_v26  ;;  %vm5208_vm2 = vcmp.eq.f32.partialorder %v8907_v33, %v5140_v25 }
 0x931   : > { %v12515_v49 = vsel %vm5207_vm9, inf, %v11981_v40  ;;  %v12518_v15 = vsel %vm5208_vm2, inf, %v11984_v20 }
 0x932   : > { %7808 = vmatpush2.xpose.msk.msra.mxu1 %vm5209_vm7, %v14123_v16  ;;  %v5565_v27 = vmin.f32 %v12515_v49, %v12518_v15 }
 0x933   : > { %7809 = vmatprep.subr.msk.mxu1 %vm5208_vm2, %v14123_v16  ;;  %v5137_v54 = vpop.xlane.xlu0 %5136 }
 0x934   : > { %vm5205_vm11 = vcmp.eq.f32.partialorder %v8904_v38, %v5137_v54  ;;  %5566 = vmin.xlane.f32.xlu0 %v5565_v27  ;;  %vm5206_vm4 = vcmp.eq.f32.partialorder %v8907_v33, %v5137_v54 }
 0x935   : > { %v12527_v61 = vsel %vm5205_vm11, inf, %v11993_v32  ;;  %v12530_v40 = vsel %vm5206_vm4, inf, %v11996_v4 }
 0x936   : > { %7810 = vmatpush2.xpose.msk.msra.mxu1 %vm5207_vm9, %v14123_v16  ;;  %v5562_v20 = vmin.f32 %v12527_v61, %v12530_v40 }
 0x937   : > { %7811 = vmatprep.subr.msk.mxu1 %vm5206_vm4, %v14123_v16  ;;  %v5134_v42 = vpop.xlane.xlu0 %5133 }
 0x938   : > { %vm5203_vm13 = vcmp.eq.f32.partialorder %v8904_v38, %v5134_v42  ;;  %5563 = vmin.xlane.f32.xlu0 %v5562_v20  ;;  %vm5204_vm6 = vcmp.eq.f32.partialorder %v8907_v33, %v5134_v42 }
 0x939   : > { %v12539_v26 = vsel %vm5203_vm13, inf, %v12005_v45  ;;  %v12542_v32 = vsel %vm5204_vm6, inf, %v12008_v30 }
 0x93a   : > { %7812 = vmatpush2.xpose.msk.msra.mxu1 %vm5205_vm11, %v14123_v16  ;;  %v5559_v4 = vmin.f32 %v12539_v26, %v12542_v32 }
 0x93b   : > { %7813 = vmatprep.subr.msk.mxu1 %vm5204_vm6, %v14123_v16  ;;  %v5131_v25 = vpop.xlane.xlu0 %5130 }
 0x93c   : > { %vm5201_vm15 = vcmp.eq.f32.partialorder %v8904_v38, %v5131_v25  ;;  %5560 = vmin.xlane.f32.xlu0 %v5559_v4  ;;  %vm5202_vm14 = vcmp.eq.f32.partialorder %v8907_v33, %v5131_v25 }
 0x93d   : > { %v12551_v27 = vsel %vm5201_vm15, inf, %v12017_v59  ;;  %v12554_v45 = vsel %vm5202_vm14, inf, %v12020_v37 }
 0x93e   : > { %7814 = vmatpush2.xpose.msk.msra.mxu1 %vm5203_vm13, %v14123_v16  ;;  %v5556_v30 = vmin.f32 %v12551_v27, %v12554_v45 }
 0x93f   : > { %7815 = vmatprep.subr.msk.mxu1 %vm5202_vm14, %v14123_v16  ;;  %v5128_v54 = vpop.xlane.xlu0 %5127 }
 0x940   : > { %vm5199_vm3 = vcmp.eq.f32.partialorder %v8904_v38, %v5128_v54  ;;  %5557 = vmin.xlane.f32.xlu0 %v5556_v30  ;;  %vm5200_vm8 = vcmp.eq.f32.partialorder %v8907_v33, %v5128_v54 }
 0x941   : > { %v12563_v20 = vsel %vm5199_vm3, inf, %v12029_v22  ;;  %v12566_v59 = vsel %vm5200_vm8, inf, %v12032_v21 }
 0x942   : > { %7816 = vmatpush2.xpose.msk.msra.mxu1 %vm5201_vm15, %v14123_v16  ;;  %v5553_v37 = vmin.f32 %v12563_v20, %v12566_v59 }
 0x943   : > { %7817 = vmatprep.subr.msk.mxu1 %vm5200_vm8, %v14123_v16  ;;  %v5125_v42 = vpop.xlane.xlu0 %5124 }
 0x944   : > { %vm5197_vm5 = vcmp.eq.f32.partialorder %v8904_v38, %v5125_v42  ;;  %5554 = vmin.xlane.f32.xlu0 %v5553_v37  ;;  %vm5198_vm10 = vcmp.eq.f32.partialorder %v8907_v33, %v5125_v42 }
 0x945   : > { %v12575_v4 = vsel %vm5197_vm5, inf, %v12041_v35  ;;  %v12578_v22 = vsel %vm5198_vm10, inf, %v12044_v14 }
 0x946   : > { %7818 = vmatpush2.xpose.msk.msra.mxu1 %vm5199_vm3, %v14123_v16  ;;  %v5550_v21 = vmin.f32 %v12575_v4, %v12578_v22 }
 0x947   : > { %7819 = vmatprep.subr.msk.mxu1 %vm5198_vm10, %v14123_v16  ;;  %v5122_v25 = vpop.xlane.xlu0 %5121 }
 0x948   : > { %vm5195_vm7 = vcmp.eq.f32.partialorder %v8904_v38, %v5122_v25  ;;  %5551 = vmin.xlane.f32.xlu0 %v5550_v21  ;;  %vm5196_vm12 = vcmp.eq.f32.partialorder %v8907_v33, %v5122_v25 }
 0x949   : > { %v12587_v30 = vsel %vm5195_vm7, inf, %v12053_v63  ;;  %v12590_v35 = vsel %vm5196_vm12, inf, %v12056_v7 }
 0x94a   : > { %7820 = vmatpush2.xpose.msk.msra.mxu1 %vm5197_vm5, %v14123_v16  ;;  %v5547_v14 = vmin.f32 %v12587_v30, %v12590_v35 }
 0x94b   : > { %7821 = vmatprep.subr.msk.mxu1 %vm5196_vm12, %v14123_v16  ;;  %v5119_v54 = vpop.xlane.xlu0 %5118 }
 0x94c   : > { %vm5193_vm9 = vcmp.eq.f32.partialorder %v8904_v38, %v5119_v54  ;;  %5548 = vmin.xlane.f32.xlu0 %v5547_v14  ;;  %vm5194_vm2 = vcmp.eq.f32.partialorder %v8907_v33, %v5119_v54  ;;  %v14149_v54 = vld [vmem:[#allocation11_spill] sm:$0xff] }
 0x94d   : > { %v12599_v37 = vsel %vm5193_vm9, inf, %v12065_v53  ;;  %v12602_v63 = vsel %vm5194_vm2, inf, %v12068_v36  ;;  %v14147_v53 = vld [vmem:[#allocation16_spill] sm:$0xff] }
 0x94e   : > { %7822 = vmatpush2.xpose.msk.msra.mxu1 %vm5195_vm7, %v14123_v16  ;;  %v5544_v7 = vmin.f32 %v12599_v37, %v12602_v63 }
 0x94f   : > { %7823 = vmatprep.subr.msk.mxu1 %vm5194_vm2, %v14123_v16  ;;  %v5116_v42 = vpop.xlane.xlu0 %5115 }
 0x950   : > { %vm5191_vm11 = vcmp.eq.f32.partialorder %v8904_v38, %v5116_v42  ;;  %5545 = vmin.xlane.f32.xlu0 %v5544_v7  ;;  %vm5192_vm4 = vcmp.eq.f32.partialorder %v8907_v33, %v5116_v42 }
 0x951   : > { %v12611_v21 = vsel %vm5191_vm11, inf, %v12077_v6  ;;  %v12614_v25 = vsel %vm5192_vm4, inf, %v14147_v53 }
 0x952   : > { %14148 = vst [vmem:[#allocation24_spill] sm:$0xff] %v12614_v25  ;;  %7824 = vmatpush2.xpose.msk.msra.mxu1 %vm5193_vm9, %v14123_v16  ;;  %v5541_v36 = vmin.f32 %v12611_v21, %v12614_v25 }
 0x953   : > { %7825 = vmatprep.subr.msk.mxu1 %vm5192_vm4, %v14123_v16  ;;  %v5113_v14 = vpop.xlane.xlu0 %5112 }
 0x954   : > { %vm5189_vm13 = vcmp.eq.f32.partialorder %v8904_v38, %v5113_v14  ;;  %5542 = vmin.xlane.f32.xlu0 %v5541_v36  ;;  %vm5190_vm6 = vcmp.eq.f32.partialorder %v8907_v33, %v5113_v14  ;;  %v14152_v36 = vld [vmem:[#allocation27_spill] sm:$0xff] }
 0x955   : > { %v12623_v7 = vsel %vm5189_vm13, inf, %v14149_v54  ;;  %v12626_v6 = vsel %vm5190_vm6, inf, %v14119_v12 }
 0x956   : > { %14150 = vst [vmem:[#allocation22_spill] sm:$0xff] %v12623_v7  ;;  %14151 = vst [vmem:[#allocation28_spill] sm:$0xff] %v12626_v6  ;;  %7826 = vmatpush2.xpose.msk.msra.mxu1 %vm5191_vm11, %v14123_v16  ;;  %v5538_v42 = vmin.f32 %v12623_v7, %v12626_v6 }
 0x957   : > { %7827 = vmatprep.subr.msk.mxu1 %vm5190_vm6, %v14123_v16  ;;  %v5110_v53 = vpop.xlane.xlu0 %5109 }
 0x958   : > { %vm5187_vm15 = vcmp.eq.f32.partialorder %v8904_v38, %v5110_v53  ;;  %5539 = vmin.xlane.f32.xlu0 %v5538_v42  ;;  %vm5188_vm14 = vcmp.eq.f32.partialorder %v8907_v33, %v5110_v53 }
 0x959   : > { %v12635_v14 = vsel %vm5187_vm15, inf, %v14152_v36  ;;  %v12638_v54 = vsel %vm5188_vm14, inf, %v14120_v34  ;;  %v14157_v36 = vld [vmem:[#allocation14_spill] sm:$0xff] }
 0x95a   : > { %14153 = vst [vmem:[#allocation26_spill] sm:$0xff] %v12635_v14  ;;  %14154 = vst [vmem:[#allocation17_spill] sm:$0xff] %v12638_v54  ;;  %7828 = vmatpush2.xpose.msk.msra.mxu1 %vm5189_vm13, %v14123_v16  ;;  %v5535_v12 = vmin.f32 %v12635_v14, %v12638_v54 }
 0x95b   : > { %7829 = vmatprep.subr.msk.mxu1 %vm5188_vm14, %v14123_v16  ;;  %v5107_v6 = vpop.xlane.xlu0 %5106 }
 0x95c   : > { %vm5185_vm3 = vcmp.eq.f32.partialorder %v8904_v38, %v5107_v6  ;;  %5536 = vmin.xlane.f32.xlu0 %v5535_v12  ;;  %vm5186_vm8 = vcmp.eq.f32.partialorder %v8907_v33, %v5107_v6  ;;  %v14158_v12 = vld [vmem:[#allocation25_spill] sm:$0xff] }
 0x95d   : > { %v12647_v42 = vsel %vm5185_vm3, inf, %v14121_v51  ;;  %v12650_v53 = vsel %vm5186_vm8, inf, %v14122_v28 }
 0x95e   : > { %14155 = vst [vmem:[#allocation16_spill] sm:$0xff] %v12647_v42  ;;  %14156 = vst [vmem:[#allocation11_spill] sm:$0xff] %v12650_v53  ;;  %7830 = vmatpush2.xpose.msk.msra.mxu1 %vm5187_vm15, %v14123_v16  ;;  %v5532_v34 = vmin.f32 %v12647_v42, %v12650_v53 }
 0x95f   : > { %7831 = vmatprep.subr.msk.mxu1 %vm5186_vm8, %v14123_v16 }
 0x960   : > { %5533 = vmin.xlane.f32.xlu0 %v5532_v34  ;;  %v14159_v34 = vld [vmem:[#allocation21_spill] sm:$0xff] }
 0x962   : > { %7832 = vmatpush2.xpose.msk.msra.mxu1 %vm5185_vm3, %v14123_v16 }
 0x965   : > { %5410 = vmatmul.mubr.f32.vlgmr.msra.gmra.mxu1 %v14157_v36 }
 0x966   : > { %6711 = vmatprep.mubr.f32.mxu1 %v14158_v12 }
 0x970   : > { %v5531_v6 = vpop.xlane.xlu1 %5530 }
 0x971   : > { %vm5610_vm5 = vcmp.eq.f32.partialorder %v12256_v41, %v5531_v6  ;;  %vm5611_vm10 = vcmp.eq.f32.partialorder %v12260_v13, %v5531_v6  ;;  %v14160_v6 = vld [vmem:[#allocation13_spill] sm:$0xff] }
 0x972   : > { %v5674_v51 = vsel %vm5610_vm5, %v8904_v38, 256.0  ;;  %v5675_v28 = vsel %vm5611_vm10, %v8907_v33, 256.0 }
 0x973   : > { %v5753_v54 = vmin.f32 %v5674_v51, %v5675_v28 }
 0x974   : > { %v5528_v53 = vpop.xlane.xlu1 %5527 }
 0x975   : > { %vm5608_vm7 = vcmp.eq.f32.partialorder %v12268_v56, %v5528_v53  ;;  %vm5609_vm12 = vcmp.eq.f32.partialorder %v14159_v34, %v5528_v53  ;;  %5754 = vmin.xlane.f32.xlu1 %v5753_v54  ;;  %v14161_v54 = vld [vmem:[#allocation10_spill] sm:$0xff] }
 0x976   : > { %v5672_v36 = vsel %vm5608_vm7, %v8904_v38, 256.0  ;;  %v5673_v12 = vsel %vm5609_vm12, %v8907_v33, 256.0 }
 0x977   : > { %v5750_v16 = vmin.f32 %v5672_v36, %v5673_v12 }
 0x978   : > { %v5525_v42 = vpop.xlane.xlu1 %5524 }
 0x979   : > { %vm5606_vm9 = vcmp.eq.f32.partialorder %v12280_v19, %v5525_v42  ;;  %vm5607_vm2 = vcmp.eq.f32.partialorder %v14160_v6, %v5525_v42  ;;  %5751 = vmin.xlane.f32.xlu1 %v5750_v16  ;;  %v14162_v16 = vld [vmem:[#allocation12_spill] sm:$0xff] }
 0x97a   : > { %v5670_v13 = vsel %vm5606_vm9, %v8904_v38, 256.0  ;;  %v5671_v51 = vsel %vm5607_vm2, %v8907_v33, 256.0  ;;  %v14163_v6 = vld [vmem:[#allocation20_spill] sm:$0xff] }
 0x97b   : > { %v5747_v28 = vmin.f32 %v5670_v13, %v5671_v51 }
 0x97c   : > { %v5522_v56 = vpop.xlane.xlu1 %5521 }
 0x97d   : > { %vm5604_vm11 = vcmp.eq.f32.partialorder %v12292_v11, %v5522_v56  ;;  %vm5605_vm4 = vcmp.eq.f32.partialorder %v14161_v54, %v5522_v56  ;;  %5748 = vmin.xlane.f32.xlu1 %v5747_v28  ;;  %v14164_v56 = vld [vmem:[#allocation8_spill] sm:$0xff] }
 0x97e   : > { %v5668_v53 = vsel %vm5604_vm11, %v8904_v38, 256.0  ;;  %v5669_v36 = vsel %vm5605_vm4, %v8907_v33, 256.0 }
 0x97f   : > { %v5744_v12 = vmin.f32 %v5668_v53, %v5669_v36 }
 0x980   : > { %v5519_v19 = vpop.xlane.xlu1 %5518 }
 0x981   : > { %vm5602_vm13 = vcmp.eq.f32.partialorder %v12304_v1, %v5519_v19  ;;  %vm5603_vm6 = vcmp.eq.f32.partialorder %v14162_v16, %v5519_v19  ;;  %5745 = vmin.xlane.f32.xlu1 %v5744_v12 }
 0x982   : > { %v5666_v42 = vsel %vm5602_vm13, %v8904_v38, 256.0  ;;  %v5667_v13 = vsel %vm5603_vm6, %v8907_v33, 256.0 }
 0x983   : > { %v5741_v51 = vmin.f32 %v5666_v42, %v5667_v13 }
 0x984   : > { %v5516_v11 = vpop.xlane.xlu1 %5515 }
 0x985   : > { %vm5600_vm15 = vcmp.eq.f32.partialorder %v14163_v6, %v5516_v11  ;;  %vm5601_vm14 = vcmp.eq.f32.partialorder %v14164_v56, %v5516_v11  ;;  %5742 = vmin.xlane.f32.xlu1 %v5741_v51  ;;  %v14165_v11 = vld [vmem:[#allocation5_spill] sm:$0xff]  ;;  %v14166_v51 = vld [vmem:[#allocation18_spill] sm:$0xff] }
 0x986   : > { %v5664_v28 = vsel %vm5600_vm15, %v8904_v38, 256.0  ;;  %v5665_v53 = vsel %vm5601_vm14, %v8907_v33, 256.0 }
 0x987   : > { %v5738_v36 = vmin.f32 %v5664_v28, %v5665_v53 }
 0x988   : > { %v5513_v1 = vpop.xlane.xlu1 %5512 }
 0x989   : > { %vm5598_vm3 = vcmp.eq.f32.partialorder %v12328_v43, %v5513_v1  ;;  %vm5599_vm8 = vcmp.eq.f32.partialorder %v12332_v52, %v5513_v1  ;;  %5739 = vmin.xlane.f32.xlu1 %v5738_v36 }
 0x98a   : > { %v5662_v19 = vsel %vm5598_vm3, %v8904_v38, 256.0  ;;  %v5663_v12 = vsel %vm5599_vm8, %v8907_v33, 256.0 }
 0x98b   : > { %v5735_v42 = vmin.f32 %v5662_v19, %v5663_v12 }
 0x98c   : > { %v5510_v13 = vpop.xlane.xlu1 %5509  ;;  %v5489_v6 = vpop.xlane.xlu0 %5488 }
 0x98d   : > { %vm5596_vm5 = vcmp.eq.f32.partialorder %v12346_v62, %v5510_v13  ;;  %vm5597_vm10 = vcmp.eq.f32.partialorder %v12362_v55, %v5510_v13  ;;  %vm5582_vm7 = vcmp.eq.f32.partialorder %v14165_v11, %v5489_v6  ;;  %vm5583_vm12 = vcmp.eq.f32.partialorder %v14166_v51, %v5489_v6  ;;  %5736 = vmin.xlane.f32.xlu1 %v5735_v42 }
 0x98e   : > { %v5660_v28 = vsel %vm5596_vm5, %v8904_v38, 256.0  ;;  %v5661_v1 = vsel %vm5597_vm10, %v8907_v33, 256.0  ;;  %v5646_v53 = vsel %vm5582_vm7, %v8904_v38, 256.0  ;;  %v5647_v36 = vsel %vm5583_vm12, %v8907_v33, 256.0 }
 0x98f   : > { %v5732_v19 = vmin.f32 %v5660_v28, %v5661_v1  ;;  %v5711_v12 = vmin.f32 %v5646_v53, %v5647_v36 }
 0x990   : > { %v5507_v52 = vpop.xlane.xlu1 %5506 }
 0x991   : > { %vm5594_vm9 = vcmp.eq.f32.partialorder %v12372_v46, %v5507_v52  ;;  %vm5595_vm2 = vcmp.eq.f32.partialorder %v12376_v23, %v5507_v52  ;;  %5733 = vmin.xlane.f32.xlu1 %v5732_v19  ;;  %5712 = vmin.xlane.f32.xlu0 %v5711_v12 }
 0x992   : > { %v5658_v6 = vsel %vm5594_vm9, %v8904_v38, 256.0  ;;  %v5659_v42 = vsel %vm5595_vm2, %v8907_v33, 256.0 }
 0x993   : > { %v5729_v13 = vmin.f32 %v5658_v6, %v5659_v42 }
 0x994   : > { %v5504_v51 = vpop.xlane.xlu1 %5503 }
 0x995   : > { %vm5592_vm11 = vcmp.eq.f32.partialorder %v12384_v57, %v5504_v51  ;;  %vm5593_vm4 = vcmp.eq.f32.partialorder %v12388_v60, %v5504_v51  ;;  %5730 = vmin.xlane.f32.xlu1 %v5729_v13 }
 0x996   : > { %v5656_v28 = vsel %vm5592_vm11, %v8904_v38, 256.0  ;;  %v5657_v1 = vsel %vm5593_vm4, %v8907_v33, 256.0 }
 0x997   : > { %v5726_v53 = vmin.f32 %v5656_v28, %v5657_v1 }
 0x998   : > { %v5501_v36 = vpop.xlane.xlu1 %5500 }
 0x999   : > { %vm5590_vm13 = vcmp.eq.f32.partialorder %v12396_v24, %v5501_v36  ;;  %vm5591_vm6 = vcmp.eq.f32.partialorder %v12400_v5, %v5501_v36  ;;  %5727 = vmin.xlane.f32.xlu1 %v5726_v53 }
 0x99a   : > { %v5654_v52 = vsel %vm5590_vm13, %v8904_v38, 256.0  ;;  %v5655_v19 = vsel %vm5591_vm6, %v8907_v33, 256.0 }
 0x99b   : > { %v5723_v12 = vmin.f32 %v5654_v52, %v5655_v19 }
 0x99c   : > { %v5498_v6 = vpop.xlane.xlu1 %5497 }
 0x99d   : > { %vm5588_vm15 = vcmp.eq.f32.partialorder %v12408_v3, %v5498_v6  ;;  %vm5589_vm14 = vcmp.eq.f32.partialorder %v12412_v48, %v5498_v6  ;;  %5724 = vmin.xlane.f32.xlu1 %v5723_v12 }
 0x99e   : > { %v5652_v51 = vsel %vm5588_vm15, %v8904_v38, 256.0  ;;  %v5653_v42 = vsel %vm5589_vm14, %v8907_v33, 256.0 }
 0x99f   : > { %v5720_v13 = vmin.f32 %v5652_v51, %v5653_v42 }
 0x9a0   : > { %v5495_v28 = vpop.xlane.xlu1 %5494 }
 0x9a1   : > { %vm5586_vm3 = vcmp.eq.f32.partialorder %v12420_v18, %v5495_v28  ;;  %vm5587_vm8 = vcmp.eq.f32.partialorder %v12424_v31, %v5495_v28  ;;  %5721 = vmin.xlane.f32.xlu1 %v5720_v13 }
 0x9a2   : > { %v5650_v1 = vsel %vm5586_vm3, %v8904_v38, 256.0  ;;  %v5651_v53 = vsel %vm5587_vm8, %v8907_v33, 256.0 }
 0x9a3   : > { %v5717_v36 = vmin.f32 %v5650_v1, %v5651_v53 }
 0x9a4   : > { %v5492_v52 = vpop.xlane.xlu1 %5491 }
 0x9a5   : > { %vm5584_vm5 = vcmp.eq.f32.partialorder %v12432_v8, %v5492_v52  ;;  %vm5585_vm10 = vcmp.eq.f32.partialorder %v12436_v17, %v5492_v52  ;;  %5718 = vmin.xlane.f32.xlu1 %v5717_v36 }
 0x9a6   : > { %v5648_v19 = vsel %vm5584_vm5, %v8904_v38, 256.0  ;;  %v5649_v12 = vsel %vm5585_vm10, %v8907_v33, 256.0 }
 0x9a7   : > { %v5714_v6 = vmin.f32 %v5648_v19, %v5649_v12 }
 0x9a8   : > { %v5486_v51 = vpop.xlane.xlu1 %5485 }
 0x9a9   : > { %vm5580_vm7 = vcmp.eq.f32.partialorder %v12448_v50, %v5486_v51  ;;  %vm5581_vm12 = vcmp.eq.f32.partialorder %v12451_v0, %v5486_v51  ;;  %5715 = vmin.xlane.f32.xlu1 %v5714_v6 }
 0x9aa   : > { %v5644_v42 = vsel %vm5580_vm7, %v8904_v38, 256.0  ;;  %v5645_v13 = vsel %vm5581_vm12, %v8907_v33, 256.0 }
 0x9ab   : > { %v5708_v28 = vmin.f32 %v5644_v42, %v5645_v13 }
 0x9ad   : > { %5709 = vmin.xlane.f32.xlu1 %v5708_v28  ;;  %v5576_v1 = vpop.xlane.xlu1 %5575 }
 0x9ae   : > { %vm5640_vm9 = vcmp.eq.f32.partialorder %v12465_v44, %v5576_v1  ;;  %vm5641_vm2 = vcmp.eq.f32.partialorder %v12468_v58, %v5576_v1 }
 0x9af   : > { %v5704_v53 = vsel %vm5640_vm9, %v8904_v38, 256.0  ;;  %v5705_v36 = vsel %vm5641_vm2, %v8907_v33, 256.0 }
 0x9b0   : > { %v5798_v52 = vmin.f32 %v5704_v53, %v5705_v36 }
 0x9b1   : > { %v5579_v19 = vpop.xlane.xlu0 %5578 }
 0x9b2   : > { %vm5642_vm11 = vcmp.eq.f32.partialorder %v12476_v9, %v5579_v19  ;;  %vm5643_vm4 = vcmp.eq.f32.partialorder %v12480_v2, %v5579_v19  ;;  %5799 = vmin.xlane.f32.xlu1 %v5798_v52 }
 0x9b3   : > { %v5706_v12 = vsel %vm5642_vm11, %v8904_v38, 256.0  ;;  %v5707_v6 = vsel %vm5643_vm4, %v8907_v33, 256.0 }
 0x9b4   : > { %v5801_v51 = vmin.f32 %v5706_v12, %v5707_v6 }
 0x9b5   : > { %v5573_v42 = vpop.xlane.xlu0 %5572 }
 0x9b6   : > { %vm5638_vm13 = vcmp.eq.f32.partialorder %v12489_v29, %v5573_v42  ;;  %vm5639_vm6 = vcmp.eq.f32.partialorder %v12492_v10, %v5573_v42  ;;  %5802 = vmin.xlane.f32.xlu0 %v5801_v51 }
 0x9b7   : > { %v5702_v13 = vsel %vm5638_vm13, %v8904_v38, 256.0  ;;  %v5703_v28 = vsel %vm5639_vm6, %v8907_v33, 256.0 }
 0x9b8   : > { %v5795_v1 = vmin.f32 %v5702_v13, %v5703_v28 }
 0x9b9   : > { %v5570_v53 = vpop.xlane.xlu0 %5569 }
 0x9ba   : > { %vm5636_vm15 = vcmp.eq.f32.partialorder %v12503_v47, %v5570_v53  ;;  %vm5637_vm14 = vcmp.eq.f32.partialorder %v12506_v39, %v5570_v53  ;;  %5796 = vmin.xlane.f32.xlu0 %v5795_v1 }
 0x9bb   : > { %v5700_v36 = vsel %vm5636_vm15, %v8904_v38, 256.0  ;;  %v5701_v52 = vsel %vm5637_vm14, %v8907_v33, 256.0 }
 0x9bc   : > { %v5792_v19 = vmin.f32 %v5700_v36, %v5701_v52 }
 0x9bd   : > { %v5567_v12 = vpop.xlane.xlu0 %5566 }
 0x9be   : > { %vm5634_vm3 = vcmp.eq.f32.partialorder %v12515_v49, %v5567_v12  ;;  %vm5635_vm8 = vcmp.eq.f32.partialorder %v12518_v15, %v5567_v12  ;;  %5793 = vmin.xlane.f32.xlu0 %v5792_v19 }
 0x9bf   : > { %v5698_v6 = vsel %vm5634_vm3, %v8904_v38, 256.0  ;;  %v5699_v51 = vsel %vm5635_vm8, %v8907_v33, 256.0 }
 0x9c0   : > { %v5789_v42 = vmin.f32 %v5698_v6, %v5699_v51 }
 0x9c1   : > { %v5564_v13 = vpop.xlane.xlu0 %5563 }
 0x9c2   : > { %vm5632_vm5 = vcmp.eq.f32.partialorder %v12527_v61, %v5564_v13  ;;  %vm5633_vm10 = vcmp.eq.f32.partialorder %v12530_v40, %v5564_v13  ;;  %5790 = vmin.xlane.f32.xlu0 %v5789_v42 }
 0x9c3   : > { %v5696_v28 = vsel %vm5632_vm5, %v8904_v38, 256.0  ;;  %v5697_v1 = vsel %vm5633_vm10, %v8907_v33, 256.0 }
 0x9c4   : > { %v5786_v53 = vmin.f32 %v5696_v28, %v5697_v1 }
 0x9c5   : > { %v5561_v36 = vpop.xlane.xlu0 %5560 }
 0x9c6   : > { %vm5630_vm7 = vcmp.eq.f32.partialorder %v12539_v26, %v5561_v36  ;;  %vm5631_vm12 = vcmp.eq.f32.partialorder %v12542_v32, %v5561_v36  ;;  %5787 = vmin.xlane.f32.xlu0 %v5786_v53 }
 0x9c7   : > { %v5694_v52 = vsel %vm5630_vm7, %v8904_v38, 256.0  ;;  %v5695_v19 = vsel %vm5631_vm12, %v8907_v33, 256.0 }
 0x9c8   : > { %v5783_v12 = vmin.f32 %v5694_v52, %v5695_v19 }
 0x9c9   : > { %v5558_v6 = vpop.xlane.xlu0 %5557 }
 0x9ca   : > { %vm5628_vm9 = vcmp.eq.f32.partialorder %v12551_v27, %v5558_v6  ;;  %vm5629_vm2 = vcmp.eq.f32.partialorder %v12554_v45, %v5558_v6  ;;  %5784 = vmin.xlane.f32.xlu0 %v5783_v12 }
 0x9cb   : > { %v5692_v51 = vsel %vm5628_vm9, %v8904_v38, 256.0  ;;  %v5693_v42 = vsel %vm5629_vm2, %v8907_v33, 256.0 }
 0x9cc   : > { %v5780_v13 = vmin.f32 %v5692_v51, %v5693_v42 }
 0x9cd   : > { %v5555_v28 = vpop.xlane.xlu0 %5554 }
 0x9ce   : > { %vm5626_vm11 = vcmp.eq.f32.partialorder %v12563_v20, %v5555_v28  ;;  %vm5627_vm4 = vcmp.eq.f32.partialorder %v12566_v59, %v5555_v28  ;;  %5781 = vmin.xlane.f32.xlu0 %v5780_v13 }
 0x9cf   : > { %v5690_v1 = vsel %vm5626_vm11, %v8904_v38, 256.0  ;;  %v5691_v53 = vsel %vm5627_vm4, %v8907_v33, 256.0 }
 0x9d0   : > { %v5777_v36 = vmin.f32 %v5690_v1, %v5691_v53 }
 0x9d1   : > { %v5552_v52 = vpop.xlane.xlu0 %5551 }
 0x9d2   : > { %vm5624_vm13 = vcmp.eq.f32.partialorder %v12575_v4, %v5552_v52  ;;  %vm5625_vm6 = vcmp.eq.f32.partialorder %v12578_v22, %v5552_v52  ;;  %5778 = vmin.xlane.f32.xlu0 %v5777_v36 }
 0x9d3   : > { %v5688_v19 = vsel %vm5624_vm13, %v8904_v38, 256.0  ;;  %v5689_v12 = vsel %vm5625_vm6, %v8907_v33, 256.0 }
 0x9d4   : > { %v5774_v6 = vmin.f32 %v5688_v19, %v5689_v12 }
 0x9d5   : > { %v5549_v51 = vpop.xlane.xlu0 %5548 }
 0x9d6   : > { %vm5622_vm15 = vcmp.eq.f32.partialorder %v12587_v30, %v5549_v51  ;;  %vm5623_vm14 = vcmp.eq.f32.partialorder %v12590_v35, %v5549_v51  ;;  %5775 = vmin.xlane.f32.xlu0 %v5774_v6 }
 0x9d7   : > { %v5686_v42 = vsel %vm5622_vm15, %v8904_v38, 256.0  ;;  %v5687_v13 = vsel %vm5623_vm14, %v8907_v33, 256.0 }
 0x9d8   : > { %v5771_v28 = vmin.f32 %v5686_v42, %v5687_v13  ;;  %v14167_v13 = vld [vmem:[#allocation28_spill] sm:$0xff] }
 0x9d9   : > { %v5546_v1 = vpop.xlane.xlu0 %5545 }
 0x9da   : > { %vm5620_vm3 = vcmp.eq.f32.partialorder %v12599_v37, %v5546_v1  ;;  %vm5621_vm8 = vcmp.eq.f32.partialorder %v12602_v63, %v5546_v1  ;;  %5772 = vmin.xlane.f32.xlu0 %v5771_v28 }
 0x9db   : > { %v5684_v53 = vsel %vm5620_vm3, %v8904_v38, 256.0  ;;  %v5685_v36 = vsel %vm5621_vm8, %v8907_v33, 256.0 }
 0x9dc   : > { %v5768_v52 = vmin.f32 %v5684_v53, %v5685_v36 }
 0x9dd   : > { %v5543_v19 = vpop.xlane.xlu0 %5542 }
 0x9de   : > { %vm5618_vm5 = vcmp.eq.f32.partialorder %v12611_v21, %v5543_v19  ;;  %vm5619_vm10 = vcmp.eq.f32.partialorder %v12614_v25, %v5543_v19  ;;  %5769 = vmin.xlane.f32.xlu0 %v5768_v52  ;;  %v14168_v52 = vld [vmem:[#allocation17_spill] sm:$0xff]  ;;  %v14169_v25 = vld [vmem:[#allocation16_spill] sm:$0xff] }
 0x9df   : > { %v5682_v12 = vsel %vm5618_vm5, %v8904_v38, 256.0  ;;  %v5683_v6 = vsel %vm5619_vm10, %v8907_v33, 256.0 }
 0x9e0   : > { %v5765_v51 = vmin.f32 %v5682_v12, %v5683_v6 }
 0x9e1   : > { %v5540_v42 = vpop.xlane.xlu0 %5539 }
 0x9e2   : > { %vm5616_vm7 = vcmp.eq.f32.partialorder %v12623_v7, %v5540_v42  ;;  %vm5617_vm12 = vcmp.eq.f32.partialorder %v14167_v13, %v5540_v42  ;;  %5766 = vmin.xlane.f32.xlu0 %v5765_v51  ;;  %v14170_v51 = vld [vmem:[#allocation11_spill] sm:$0xff] }
 0x9e3   : > { %v5680_v28 = vsel %vm5616_vm7, %v8904_v38, 256.0  ;;  %v5681_v1 = vsel %vm5617_vm12, %v8907_v33, 256.0 }
 0x9e4   : > { %v5762_v53 = vmin.f32 %v5680_v28, %v5681_v1 }
 0x9e5   : > { %v5537_v36 = vpop.xlane.xlu0 %5536 }
 0x9e6   : > { %vm5614_vm9 = vcmp.eq.f32.partialorder %v12635_v14, %v5537_v36  ;;  %vm5615_vm2 = vcmp.eq.f32.partialorder %v14168_v52, %v5537_v36  ;;  %5763 = vmin.xlane.f32.xlu0 %v5762_v53  ;;  %v14171_v36 = vmov 1.0  }
 0x9e7   : > { %v5678_v19 = vsel %vm5614_vm9, %v8904_v38, 256.0  ;;  %v5679_v12 = vsel %vm5615_vm2, %v8907_v33, 256.0 }
 0x9e8   : > { %v5759_v6 = vmin.f32 %v5678_v19, %v5679_v12  ;;  %v14172_v19 = vld [vmem:[#allocation9_spill] sm:$0xff] }
 0x9e9   : > { %v5534_v7 = vpop.xlane.xlu0 %5533 }
 0x9ea   : > { %vm5612_vm11 = vcmp.eq.f32.partialorder %v14169_v25, %v5534_v7  ;;  %vm5613_vm4 = vcmp.eq.f32.partialorder %v14170_v51, %v5534_v7  ;;  %5760 = vmin.xlane.f32.xlu0 %v5759_v6 }
 0x9eb   : > { %v5676_v42 = vsel %vm5612_vm11, %v8904_v38, 256.0  ;;  %v5677_v28 = vsel %vm5613_vm4, %v8907_v33, 256.0 }
 0x9ec   : > { %v5756_v1 = vmin.f32 %v5676_v42, %v5677_v28 }
 0x9ee   : > { %5757 = vmin.xlane.f32.xlu0 %v5756_v1 }
 0x9fe   : > { %v5755_v14 = vpop.xlane.xlu1 %5754 }
 0x9ff   : > { %vm5834_vm13 = vcmp.eq.f32.partialorder %v8904_v38, %v5755_v14  ;;  %vm5835_vm6 = vcmp.eq.f32.partialorder %v8907_v33, %v5755_v14  ;;  %v14173_v14 = vld [vmem:[#allocation23_spill] sm:$0xff] }
 0xa00   : > { %v12790_v53 = vsel %vm5834_vm13, inf, %v12256_v41  ;;  %7897 = vmatprep.subr.msk.mxu0 %vm5835_vm6, %v14171_v36  ;;  %v12794_v12 = vsel %vm5835_vm6, inf, %v14172_v19  ;;  %v14175_v19 = vld [vmem:[#allocation15_spill] sm:$0xff] }
 0xa01   : > { %7898 = vmatpush1.xpose.msk.msra.mxu0 %vm5834_vm13, %v14171_v36  ;;  %v6180_v7 = vmin.f32 %v12790_v53, %v12794_v12 }
 0xa02   : > { %v5752_v6 = vpop.xlane.xlu1 %5751 }
 0xa03   : > { %vm5832_vm15 = vcmp.eq.f32.partialorder %v8904_v38, %v5752_v6  ;;  %6181 = vmin.xlane.f32.xlu1 %v6180_v7  ;;  %vm5833_vm14 = vcmp.eq.f32.partialorder %v8907_v33, %v5752_v6  ;;  %v14176_v6 = vld [vmem:[#allocation13_spill] sm:$0xff] }
 0xa04   : > { %v12802_v42 = vsel %vm5832_vm15, inf, %v14173_v14  ;;  %7899 = vmatprep.subr.msk.mxu0 %vm5833_vm14, %v14171_v36  ;;  %v12806_v41 = vsel %vm5833_vm14, inf, %v14159_v34 }
 0xa05   : > { %14174 = vst [vmem:[#allocation27_spill] sm:$0xff] %v12806_v41  ;;  %7900 = vmatpush1.xpose.msk.msra.mxu0 %vm5832_vm15, %v14171_v36  ;;  %v6177_v28 = vmin.f32 %v12802_v42, %v12806_v41 }
 0xa06   : > { %v5749_v1 = vpop.xlane.xlu1 %5748 }
 0xa07   : > { %vm5830_vm3 = vcmp.eq.f32.partialorder %v8904_v38, %v5749_v1  ;;  %6178 = vmin.xlane.f32.xlu1 %v6177_v28  ;;  %vm5831_vm8 = vcmp.eq.f32.partialorder %v8907_v33, %v5749_v1  ;;  %v14178_v28 = vld [vmem:[#allocation7_spill] sm:$0xff] }
 0xa08   : > { %v12814_v7 = vsel %vm5830_vm3, inf, %v14175_v19  ;;  %7901 = vmatprep.subr.msk.mxu0 %vm5831_vm8, %v14171_v36  ;;  %v12818_v14 = vsel %vm5831_vm8, inf, %v14176_v6 }
 0xa09   : > { %14177 = vst [vmem:[#allocation21_spill] sm:$0xff] %v12818_v14  ;;  %7902 = vmatpush1.xpose.msk.msra.mxu0 %vm5830_vm3, %v14171_v36  ;;  %v6174_v34 = vmin.f32 %v12814_v7, %v12818_v14 }
 0xa0a   : > { %v5746_v41 = vpop.xlane.xlu1 %5745 }
 0xa0b   : > { %vm5828_vm5 = vcmp.eq.f32.partialorder %v8904_v38, %v5746_v41  ;;  %6175 = vmin.xlane.f32.xlu1 %v6174_v34  ;;  %vm5829_vm10 = vcmp.eq.f32.partialorder %v8907_v33, %v5746_v41  ;;  %v14180_v41 = vld [vmem:[#allocation19_spill] sm:$0xff] }
 0xa0c   : > { %v12826_v1 = vsel %vm5828_vm5, inf, %v14178_v28  ;;  %7903 = vmatprep.subr.msk.mxu0 %vm5829_vm10, %v14171_v36  ;;  %v12830_v19 = vsel %vm5829_vm10, inf, %v14161_v54 }
 0xa0d   : > { %14179 = vst [vmem:[#allocation10_spill] sm:$0xff] %v12830_v19  ;;  %7904 = vmatpush1.xpose.msk.msra.mxu0 %vm5828_vm5, %v14171_v36  ;;  %v6171_v6 = vmin.f32 %v12826_v1, %v12830_v19 }
 0xa0e   : > { %v5743_v14 = vpop.xlane.xlu1 %5742 }
 0xa0f   : > { %vm5826_vm7 = vcmp.eq.f32.partialorder %v8904_v38, %v5743_v14  ;;  %6172 = vmin.xlane.f32.xlu1 %v6171_v6  ;;  %vm5827_vm12 = vcmp.eq.f32.partialorder %v8907_v33, %v5743_v14  ;;  %v14182_v14 = vld [vmem:[#allocation20_spill] sm:$0xff] }
 0xa10   : > { %v12838_v34 = vsel %vm5826_vm7, inf, %v14180_v41  ;;  %7905 = vmatprep.subr.msk.mxu0 %vm5827_vm12, %v14171_v36  ;;  %v12842_v28 = vsel %vm5827_vm12, inf, %v14162_v16 }
 0xa11   : > { %14181 = vst [vmem:[#allocation12_spill] sm:$0xff] %v12842_v28  ;;  %7906 = vmatpush1.xpose.msk.msra.mxu0 %vm5826_vm7, %v14171_v36  ;;  %v6168_v54 = vmin.f32 %v12838_v34, %v12842_v28 }
 0xa12   : > { %v5740_v19 = vpop.xlane.xlu1 %5739 }
 0xa13   : > { %vm5824_vm9 = vcmp.eq.f32.partialorder %v8904_v38, %v5740_v19  ;;  %6169 = vmin.xlane.f32.xlu1 %v6168_v54  ;;  %vm5825_vm2 = vcmp.eq.f32.partialorder %v8907_v33, %v5740_v19  ;;  %v14185_v54 = vld [vmem:[#allocation6_spill] sm:$0xff] }
 0xa14   : > { %v12850_v6 = vsel %vm5824_vm9, inf, %v14182_v14  ;;  %7907 = vmatprep.subr.msk.mxu0 %vm5825_vm2, %v14171_v36  ;;  %v12854_v41 = vsel %vm5825_vm2, inf, %v14164_v56 }
 0xa15   : > { %14183 = vst [vmem:[#allocation8_spill] sm:$0xff] %v12850_v6  ;;  %14184 = vst [vmem:[#allocation5_spill] sm:$0xff] %v12854_v41  ;;  %7908 = vmatpush1.xpose.msk.msra.mxu0 %vm5824_vm9, %v14171_v36  ;;  %v6165_v16 = vmin.f32 %v12850_v6, %v12854_v41 }
 0xa16   : > { %v5737_v28 = vpop.xlane.xlu1 %5736 }
 0xa17   : > { %vm5822_vm11 = vcmp.eq.f32.partialorder %v8904_v38, %v5737_v28  ;;  %vm5823_vm4 = vcmp.eq.f32.partialorder %v8907_v33, %v5737_v28  ;;  %6166 = vmin.xlane.f32.xlu1 %v6165_v16 }
 0xa18   : > { %v12862_v19 = vsel %vm5822_vm11, inf, %v12328_v43  ;;  %v12865_v14 = vsel %vm5823_vm4, inf, %v14185_v54  ;;  %7909 = vmatprep.subr.msk.mxu0 %vm5823_vm4, %v14171_v36 }
 0xa19   : > { %v6162_v56 = vmin.f32 %v12862_v19, %v12865_v14  ;;  %7910 = vmatpush1.xpose.msk.msra.mxu0 %vm5822_vm11, %v14171_v36 }
 0xa1a   : > { %v5734_v41 = vpop.xlane.xlu1 %5733  ;;  %v12871_v6 = vpop.xlane.xlu0 %5712 }
 0xa1b   : > { %vm5820_vm13 = vcmp.eq.f32.partialorder %v8904_v38, %v5734_v41  ;;  %vm5821_vm6 = vcmp.eq.f32.partialorder %v8907_v33, %v5734_v41  ;;  %vm5806_vm15 = vcmp.eq.f32.partialorder %v8904_v38, %v12871_v6  ;;  %vm5807_vm14 = vcmp.eq.f32.partialorder %v8907_v33, %v12871_v6  ;;  %6163 = vmin.xlane.f32.xlu1 %v6162_v56  ;;  %v14187_v41 = vld [vmem:[#allocation18_spill] sm:$0xff] }
 0xa1c   : > { %v12880_v43 = vsel %vm5820_vm13, inf, %v12346_v62  ;;  %v12883_v28 = vsel %vm5821_vm6, inf, %v12362_v55  ;;  %v12889_v16 = vsel %vm5806_vm15, inf, %v14165_v11  ;;  %v12895_v54 = vsel %vm5807_vm14, inf, %v14187_v41  ;;  %7911 = vmatprep.subr.msk.mxu0 %vm5821_vm6, %v14171_v36 }
 0xa1d   : > { %14186 = vst [vmem:[#allocation28_spill] sm:$0xff] %v12889_v16  ;;  %14188 = vst [vmem:[#allocation17_spill] sm:$0xff] %v12895_v54  ;;  %v6159_v62 = vmin.f32 %v12880_v43, %v12883_v28  ;;  %v6138_v55 = vmin.f32 %v12889_v16, %v12895_v54  ;;  %7912 = vmatpush1.xpose.msk.msra.mxu0 %vm5820_vm13, %v14171_v36 }
 0xa1e   : > { %v5731_v56 = vpop.xlane.xlu1 %5730 }
 0xa1f   : > { %vm5818_vm3 = vcmp.eq.f32.partialorder %v8904_v38, %v5731_v56  ;;  %vm5819_vm8 = vcmp.eq.f32.partialorder %v8907_v33, %v5731_v56  ;;  %6160 = vmin.xlane.f32.xlu1 %v6159_v62  ;;  %6139 = vmin.xlane.f32.xlu0 %v6138_v55 }
 0xa20   : > { %v12906_v11 = vsel %vm5818_vm3, inf, %v12372_v46  ;;  %v12909_v41 = vsel %vm5819_vm8, inf, %v12376_v23  ;;  %7913 = vmatprep.subr.msk.mxu0 %vm5819_vm8, %v14171_v36 }
 0xa21   : > { %v6156_v54 = vmin.f32 %v12906_v11, %v12909_v41  ;;  %7914 = vmatpush1.xpose.msk.msra.mxu0 %vm5818_vm3, %v14171_v36 }
 0xa22   : > { %v5728_v16 = vpop.xlane.xlu1 %5727 }
 0xa23   : > { %vm5816_vm5 = vcmp.eq.f32.partialorder %v8904_v38, %v5728_v16  ;;  %vm5817_vm10 = vcmp.eq.f32.partialorder %v8907_v33, %v5728_v16  ;;  %6157 = vmin.xlane.f32.xlu1 %v6156_v54 }
 0xa24   : > { %v12918_v62 = vsel %vm5816_vm5, inf, %v12384_v57  ;;  %v12921_v46 = vsel %vm5817_vm10, inf, %v12388_v60  ;;  %7915 = vmatprep.subr.msk.mxu0 %vm5817_vm10, %v14171_v36 }
 0xa25   : > { %v6153_v23 = vmin.f32 %v12918_v62, %v12921_v46  ;;  %7916 = vmatpush1.xpose.msk.msra.mxu0 %vm5816_vm5, %v14171_v36 }
 0xa26   : > { %v5725_v55 = vpop.xlane.xlu1 %5724 }
 0xa27   : > { %vm5814_vm7 = vcmp.eq.f32.partialorder %v8904_v38, %v5725_v55  ;;  %vm5815_vm12 = vcmp.eq.f32.partialorder %v8907_v33, %v5725_v55  ;;  %6154 = vmin.xlane.f32.xlu1 %v6153_v23 }
 0xa28   : > { %v12930_v16 = vsel %vm5814_vm7, inf, %v12396_v24  ;;  %v12933_v57 = vsel %vm5815_vm12, inf, %v12400_v5  ;;  %7917 = vmatprep.subr.msk.mxu0 %vm5815_vm12, %v14171_v36 }
 0xa29   : > { %v6150_v60 = vmin.f32 %v12930_v16, %v12933_v57  ;;  %7918 = vmatpush1.xpose.msk.msra.mxu0 %vm5814_vm7, %v14171_v36 }
 0xa2a   : > { %v5722_v54 = vpop.xlane.xlu1 %5721 }
 0xa2b   : > { %vm5812_vm9 = vcmp.eq.f32.partialorder %v8904_v38, %v5722_v54  ;;  %vm5813_vm2 = vcmp.eq.f32.partialorder %v8907_v33, %v5722_v54  ;;  %6151 = vmin.xlane.f32.xlu1 %v6150_v60 }
 0xa2c   : > { %v12942_v56 = vsel %vm5812_vm9, inf, %v12408_v3  ;;  %v12945_v24 = vsel %vm5813_vm2, inf, %v12412_v48  ;;  %7919 = vmatprep.subr.msk.mxu0 %vm5813_vm2, %v14171_v36 }
 0xa2d   : > { %v6147_v5 = vmin.f32 %v12942_v56, %v12945_v24  ;;  %7920 = vmatpush1.xpose.msk.msra.mxu0 %vm5812_vm9, %v14171_v36 }
 0xa2e   : > { %v5719_v23 = vpop.xlane.xlu1 %5718 }
 0xa2f   : > { %vm5810_vm11 = vcmp.eq.f32.partialorder %v8904_v38, %v5719_v23  ;;  %vm5811_vm4 = vcmp.eq.f32.partialorder %v8907_v33, %v5719_v23  ;;  %6148 = vmin.xlane.f32.xlu1 %v6147_v5 }
 0xa30   : > { %v12954_v55 = vsel %vm5810_vm11, inf, %v12420_v18  ;;  %v12957_v3 = vsel %vm5811_vm4, inf, %v12424_v31  ;;  %7921 = vmatprep.subr.msk.mxu0 %vm5811_vm4, %v14171_v36 }
 0xa31   : > { %v6144_v48 = vmin.f32 %v12954_v55, %v12957_v3  ;;  %7922 = vmatpush1.xpose.msk.msra.mxu0 %vm5810_vm11, %v14171_v36 }
 0xa32   : > { %v5716_v60 = vpop.xlane.xlu1 %5715 }
 0xa33   : > { %vm5808_vm13 = vcmp.eq.f32.partialorder %v8904_v38, %v5716_v60  ;;  %vm5809_vm6 = vcmp.eq.f32.partialorder %v8907_v33, %v5716_v60  ;;  %6145 = vmin.xlane.f32.xlu1 %v6144_v48 }
 0xa34   : > { %v12966_v54 = vsel %vm5808_vm13, inf, %v12432_v8  ;;  %v12969_v18 = vsel %vm5809_vm6, inf, %v12436_v17  ;;  %7923 = vmatprep.subr.msk.mxu0 %vm5809_vm6, %v14171_v36 }
 0xa35   : > { %v6141_v31 = vmin.f32 %v12966_v54, %v12969_v18  ;;  %7924 = vmatpush1.xpose.msk.msra.mxu0 %vm5808_vm13, %v14171_v36 }
 0xa36   : > { %v5710_v5 = vpop.xlane.xlu1 %5709  ;;  %7925 = vmatprep.subr.msk.mxu0 %vm5807_vm14, %v14171_v36 }
 0xa37   : > { %vm5804_vm3 = vcmp.eq.f32.partialorder %v8904_v38, %v5710_v5  ;;  %vm5805_vm8 = vcmp.eq.f32.partialorder %v8907_v33, %v5710_v5  ;;  %6142 = vmin.xlane.f32.xlu1 %v6141_v31 }
 0xa38   : > { %v12982_v8 = vsel %vm5804_vm3, inf, %v12448_v50  ;;  %v12985_v17 = vsel %vm5805_vm8, inf, %v12451_v0 }
 0xa39   : > { %v6135_v23 = vmin.f32 %v12982_v8, %v12985_v17  ;;  %7926 = vmatpush1.xpose.msk.msra.mxu0 %vm5806_vm15, %v14171_v36 }
 0xa3a   : > { %7927 = vmatprep.subr.msk.mxu0 %vm5805_vm8, %v14171_v36 }
 0xa3b   : > { %6136 = vmin.xlane.f32.xlu1 %v6135_v23  ;;  %v5800_v48 = vpop.xlane.xlu1 %5799 }
 0xa3c   : > { %vm5864_vm14 = vcmp.eq.f32.partialorder %v8904_v38, %v5800_v48  ;;  %vm5865_vm5 = vcmp.eq.f32.partialorder %v8907_v33, %v5800_v48 }
 0xa3d   : > { %v12999_v50 = vsel %vm5864_vm14, inf, %v12465_v44  ;;  %v13002_v0 = vsel %vm5865_vm5, inf, %v12468_v58  ;;  %7928 = vmatpush1.xpose.msk.msra.mxu0 %vm5804_vm3, %v14171_v36 }
 0xa3e   : > { %v6225_v6 = vmin.f32 %v12999_v50, %v13002_v0 }
 0xa3f   : > { %v5803_v60 = vpop.xlane.xlu0 %5802 }
 0xa40   : > { %vm5866_vm15 = vcmp.eq.f32.partialorder %v8904_v38, %v5803_v60  ;;  %vm5867_vm10 = vcmp.eq.f32.partialorder %v8907_v33, %v5803_v60  ;;  %6226 = vmin.xlane.f32.xlu1 %v6225_v6 }
 0xa41   : > { %v13010_v31 = vsel %vm5866_vm15, inf, %v12476_v9  ;;  %v13013_v44 = vsel %vm5867_vm10, inf, %v12480_v2  ;;  %7929 = vmatprep.subr.msk.mxu0 %vm5867_vm10, %v14171_v36 }
 0xa42   : > { %v6228_v58 = vmin.f32 %v13010_v31, %v13013_v44  ;;  %7930 = vmatpush2.xpose.msk.msra.mxu0 %vm5866_vm15, %v14171_v36 }
 0xa43   : > { %7931 = vmatprep.subr.msk.mxu0 %vm5865_vm5, %v14171_v36  ;;  %v5797_v5 = vpop.xlane.xlu0 %5796 }
 0xa44   : > { %vm5862_vm7 = vcmp.eq.f32.partialorder %v8904_v38, %v5797_v5  ;;  %vm5863_vm12 = vcmp.eq.f32.partialorder %v8907_v33, %v5797_v5  ;;  %6229 = vmin.xlane.f32.xlu0 %v6228_v58 }
 0xa45   : > { %v13023_v9 = vsel %vm5862_vm7, inf, %v12489_v29  ;;  %v13026_v2 = vsel %vm5863_vm12, inf, %v12492_v10 }
 0xa46   : > { %v6222_v23 = vmin.f32 %v13023_v9, %v13026_v2  ;;  %7932 = vmatpush2.xpose.msk.msra.mxu0 %vm5864_vm14, %v14171_v36 }
 0xa47   : > { %7933 = vmatprep.subr.msk.mxu0 %vm5863_vm12, %v14171_v36  ;;  %v5794_v6 = vpop.xlane.xlu0 %5793 }
 0xa48   : > { %vm5860_vm9 = vcmp.eq.f32.partialorder %v8904_v38, %v5794_v6  ;;  %vm5861_vm2 = vcmp.eq.f32.partialorder %v8907_v33, %v5794_v6  ;;  %6223 = vmin.xlane.f32.xlu0 %v6222_v23 }
 0xa49   : > { %v13037_v29 = vsel %vm5860_vm9, inf, %v12503_v47  ;;  %v13040_v10 = vsel %vm5861_vm2, inf, %v12506_v39 }
 0xa4a   : > { %v6219_v60 = vmin.f32 %v13037_v29, %v13040_v10  ;;  %7934 = vmatpush2.xpose.msk.msra.mxu0 %vm5862_vm7, %v14171_v36 }
 0xa4b   : > { %7935 = vmatprep.subr.msk.mxu0 %vm5861_vm2, %v14171_v36  ;;  %v5791_v48 = vpop.xlane.xlu0 %5790 }
 0xa4c   : > { %vm5858_vm11 = vcmp.eq.f32.partialorder %v8904_v38, %v5791_v48  ;;  %vm5859_vm4 = vcmp.eq.f32.partialorder %v8907_v33, %v5791_v48  ;;  %6220 = vmin.xlane.f32.xlu0 %v6219_v60 }
 0xa4d   : > { %v13049_v58 = vsel %vm5858_vm11, inf, %v12515_v49  ;;  %v13052_v47 = vsel %vm5859_vm4, inf, %v12518_v15 }
 0xa4e   : > { %v6216_v39 = vmin.f32 %v13049_v58, %v13052_v47  ;;  %7936 = vmatpush2.xpose.msk.msra.mxu0 %vm5860_vm9, %v14171_v36 }
 0xa4f   : > { %7937 = vmatprep.subr.msk.mxu0 %vm5859_vm4, %v14171_v36  ;;  %v5788_v5 = vpop.xlane.xlu0 %5787 }
 0xa50   : > { %vm5856_vm13 = vcmp.eq.f32.partialorder %v8904_v38, %v5788_v5  ;;  %vm5857_vm6 = vcmp.eq.f32.partialorder %v8907_v33, %v5788_v5  ;;  %6217 = vmin.xlane.f32.xlu0 %v6216_v39 }
 0xa51   : > { %v13061_v23 = vsel %vm5856_vm13, inf, %v12527_v61  ;;  %v13064_v49 = vsel %vm5857_vm6, inf, %v12530_v40 }
 0xa52   : > { %v6213_v15 = vmin.f32 %v13061_v23, %v13064_v49  ;;  %7938 = vmatpush2.xpose.msk.msra.mxu0 %vm5858_vm11, %v14171_v36 }
 0xa53   : > { %7939 = vmatprep.subr.msk.mxu0 %vm5857_vm6, %v14171_v36  ;;  %v5785_v6 = vpop.xlane.xlu0 %5784 }
 0xa54   : > { %vm5854_vm3 = vcmp.eq.f32.partialorder %v8904_v38, %v5785_v6  ;;  %vm5855_vm8 = vcmp.eq.f32.partialorder %v8907_v33, %v5785_v6  ;;  %6214 = vmin.xlane.f32.xlu0 %v6213_v15 }
 0xa55   : > { %v13073_v60 = vsel %vm5854_vm3, inf, %v12539_v26  ;;  %v13076_v61 = vsel %vm5855_vm8, inf, %v12542_v32 }
 0xa56   : > { %v6210_v40 = vmin.f32 %v13073_v60, %v13076_v61  ;;  %7940 = vmatpush2.xpose.msk.msra.mxu0 %vm5856_vm13, %v14171_v36 }
 0xa57   : > { %7941 = vmatprep.subr.msk.mxu0 %vm5855_vm8, %v14171_v36  ;;  %v5782_v48 = vpop.xlane.xlu0 %5781 }
 0xa58   : > { %vm5852_vm14 = vcmp.eq.f32.partialorder %v8904_v38, %v5782_v48  ;;  %vm5853_vm5 = vcmp.eq.f32.partialorder %v8907_v33, %v5782_v48  ;;  %6211 = vmin.xlane.f32.xlu0 %v6210_v40 }
 0xa59   : > { %v13085_v39 = vsel %vm5852_vm14, inf, %v12551_v27  ;;  %v13088_v26 = vsel %vm5853_vm5, inf, %v12554_v45 }
 0xa5a   : > { %v6207_v32 = vmin.f32 %v13085_v39, %v13088_v26  ;;  %7942 = vmatpush2.xpose.msk.msra.mxu0 %vm5854_vm3, %v14171_v36 }
 0xa5b   : > { %7943 = vmatprep.subr.msk.mxu0 %vm5853_vm5, %v14171_v36  ;;  %v5779_v5 = vpop.xlane.xlu0 %5778 }
 0xa5c   : > { %vm5850_vm15 = vcmp.eq.f32.partialorder %v8904_v38, %v5779_v5  ;;  %vm5851_vm10 = vcmp.eq.f32.partialorder %v8907_v33, %v5779_v5  ;;  %6208 = vmin.xlane.f32.xlu0 %v6207_v32 }
 0xa5d   : > { %v13097_v15 = vsel %vm5850_vm15, inf, %v12563_v20  ;;  %v13100_v27 = vsel %vm5851_vm10, inf, %v12566_v59 }
 0xa5e   : > { %v6204_v45 = vmin.f32 %v13097_v15, %v13100_v27  ;;  %7944 = vmatpush2.xpose.msk.msra.mxu0 %vm5852_vm14, %v14171_v36 }
 0xa5f   : > { %7945 = vmatprep.subr.msk.mxu0 %vm5851_vm10, %v14171_v36  ;;  %v5776_v6 = vpop.xlane.xlu0 %5775 }
 0xa60   : > { %vm5848_vm7 = vcmp.eq.f32.partialorder %v8904_v38, %v5776_v6  ;;  %vm5849_vm12 = vcmp.eq.f32.partialorder %v8907_v33, %v5776_v6  ;;  %6205 = vmin.xlane.f32.xlu0 %v6204_v45 }
 0xa61   : > { %v13109_v40 = vsel %vm5848_vm7, inf, %v12575_v4  ;;  %v13112_v20 = vsel %vm5849_vm12, inf, %v12578_v22 }
 0xa62   : > { %v6201_v59 = vmin.f32 %v13109_v40, %v13112_v20  ;;  %7946 = vmatpush2.xpose.msk.msra.mxu0 %vm5850_vm15, %v14171_v36 }
 0xa63   : > { %7947 = vmatprep.subr.msk.mxu0 %vm5849_vm12, %v14171_v36  ;;  %v5773_v48 = vpop.xlane.xlu0 %5772 }
 0xa64   : > { %vm5846_vm9 = vcmp.eq.f32.partialorder %v8904_v38, %v5773_v48  ;;  %vm5847_vm2 = vcmp.eq.f32.partialorder %v8907_v33, %v5773_v48  ;;  %6202 = vmin.xlane.f32.xlu0 %v6201_v59 }
 0xa65   : > { %v13121_v32 = vsel %vm5846_vm9, inf, %v12587_v30  ;;  %v13124_v4 = vsel %vm5847_vm2, inf, %v12590_v35 }
 0xa66   : > { %v6198_v22 = vmin.f32 %v13121_v32, %v13124_v4  ;;  %7948 = vmatpush2.xpose.msk.msra.mxu0 %vm5848_vm7, %v14171_v36 }
 0xa67   : > { %7949 = vmatprep.subr.msk.mxu0 %vm5847_vm2, %v14171_v36  ;;  %v5770_v5 = vpop.xlane.xlu0 %5769 }
 0xa68   : > { %vm5844_vm11 = vcmp.eq.f32.partialorder %v8904_v38, %v5770_v5  ;;  %vm5845_vm4 = vcmp.eq.f32.partialorder %v8907_v33, %v5770_v5  ;;  %6199 = vmin.xlane.f32.xlu0 %v6198_v22  ;;  %v14190_v5 = vld [vmem:[#allocation22_spill] sm:$0xff] }
 0xa69   : > { %v13133_v45 = vsel %vm5844_vm11, inf, %v12599_v37  ;;  %v13136_v30 = vsel %vm5845_vm4, inf, %v12602_v63  ;;  %v14189_v37 = vld [vmem:[#allocation24_spill] sm:$0xff] }
 0xa6a   : > { %v6195_v35 = vmin.f32 %v13133_v45, %v13136_v30  ;;  %7950 = vmatpush2.xpose.msk.msra.mxu0 %vm5846_vm9, %v14171_v36 }
 0xa6b   : > { %7951 = vmatprep.subr.msk.mxu0 %vm5845_vm4, %v14171_v36  ;;  %v5767_v6 = vpop.xlane.xlu0 %5766 }
 0xa6c   : > { %vm5842_vm13 = vcmp.eq.f32.partialorder %v8904_v38, %v5767_v6  ;;  %vm5843_vm6 = vcmp.eq.f32.partialorder %v8907_v33, %v5767_v6  ;;  %6196 = vmin.xlane.f32.xlu0 %v6195_v35 }
 0xa6d   : > { %v13145_v59 = vsel %vm5842_vm13, inf, %v12611_v21  ;;  %v13148_v48 = vsel %vm5843_vm6, inf, %v14189_v37 }
 0xa6e   : > { %v6192_v63 = vmin.f32 %v13145_v59, %v13148_v48  ;;  %7952 = vmatpush2.xpose.msk.msra.mxu0 %vm5844_vm11, %v14171_v36 }
 0xa6f   : > { %7953 = vmatprep.subr.msk.mxu0 %vm5843_vm6, %v14171_v36  ;;  %v5764_v22 = vpop.xlane.xlu0 %5763 }
 0xa70   : > { %vm5840_vm3 = vcmp.eq.f32.partialorder %v8904_v38, %v5764_v22  ;;  %vm5841_vm8 = vcmp.eq.f32.partialorder %v8907_v33, %v5764_v22  ;;  %6193 = vmin.xlane.f32.xlu0 %v6192_v63  ;;  %v14192_v63 = vld [vmem:[#allocation26_spill] sm:$0xff] }
 0xa71   : > { %v13157_v35 = vsel %vm5840_vm3, inf, %v14190_v5  ;;  %v13160_v21 = vsel %vm5841_vm8, inf, %v14167_v13 }
 0xa72   : > { %14191 = vst [vmem:[#allocation16_spill] sm:$0xff] %v13160_v21  ;;  %v6189_v6 = vmin.f32 %v13157_v35, %v13160_v21  ;;  %7954 = vmatpush2.xpose.msk.msra.mxu0 %vm5842_vm13, %v14171_v36 }
 0xa73   : > { %7955 = vmatprep.subr.msk.mxu0 %vm5841_vm8, %v14171_v36  ;;  %v5761_v37 = vpop.xlane.xlu0 %5760 }
 0xa74   : > { %vm5838_vm14 = vcmp.eq.f32.partialorder %v8904_v38, %v5761_v37  ;;  %vm5839_vm5 = vcmp.eq.f32.partialorder %v8907_v33, %v5761_v37  ;;  %6190 = vmin.xlane.f32.xlu0 %v6189_v6 }
 0xa75   : > { %v13169_v22 = vsel %vm5838_vm14, inf, %v14192_v63  ;;  %v13172_v5 = vsel %vm5839_vm5, inf, %v14168_v52  ;;  %v14196_v63 = vld [vmem:[#allocation14_spill] sm:$0xff] }
 0xa76   : > { %14193 = vst [vmem:[#allocation11_spill] sm:$0xff] %v13172_v5  ;;  %v6186_v13 = vmin.f32 %v13169_v22, %v13172_v5  ;;  %7956 = vmatpush2.xpose.msk.msra.mxu0 %vm5840_vm3, %v14171_v36 }
 0xa77   : > { %7957 = vmatprep.subr.msk.mxu0 %vm5839_vm5, %v14171_v36  ;;  %v5758_v21 = vpop.xlane.xlu0 %5757 }
 0xa78   : > { %vm5836_vm15 = vcmp.eq.f32.partialorder %v8904_v38, %v5758_v21  ;;  %vm5837_vm10 = vcmp.eq.f32.partialorder %v8907_v33, %v5758_v21  ;;  %6187 = vmin.xlane.f32.xlu0 %v6186_v13  ;;  %v14197_v21 = vmov 0.0  }
 0xa79   : > { %v13181_v6 = vsel %vm5836_vm15, inf, %v14169_v25  ;;  %v13184_v37 = vsel %vm5837_vm10, inf, %v14170_v51 }
 0xa7a   : > { %14194 = vst [vmem:[#allocation9_spill] sm:$0xff] %v13181_v6  ;;  %14195 = vst [vmem:[#allocation23_spill] sm:$0xff] %v13184_v37  ;;  %v6183_v52 = vmin.f32 %v13181_v6, %v13184_v37  ;;  %7958 = vmatpush2.xpose.msk.msra.mxu0 %vm5838_vm14, %v14171_v36 }
 0xa7b   : > { %7959 = vmatprep.subr.msk.mxu0 %vm5837_vm10, %v14171_v36 }
 0xa7c   : > { %6184 = vmin.xlane.f32.xlu0 %v6183_v52  ;;  %v14198_v52 = vld [vmem:[#allocation27_spill] sm:$0xff] }
 0xa7e   : > { %7960 = vmatpush2.xpose.msk.msra.mxu0 %vm5836_vm15, %v14171_v36 }
 0xa81   : > { %6061 = vmatmul.mubr.f32.vlgmr.msra.gmra.mxu0 %v14196_v63 }
 0xa82   : > { %6796 = vmatprep.mubr.f32.mxu0 %v14197_v21 }
 0xa8c   : > { %v6182_v13 = vpop.xlane.xlu1 %6181 }
 0xa8d   : > { %vm6261_vm7 = vcmp.eq.f32.partialorder %v12790_v53, %v6182_v13  ;;  %vm6262_vm12 = vcmp.eq.f32.partialorder %v12794_v12, %v6182_v13  ;;  %v14199_v53 = vld [vmem:[#allocation21_spill] sm:$0xff] }
 0xa8e   : > { %v6325_v25 = vsel %vm6261_vm7, %v8904_v38, 256.0  ;;  %v6326_v51 = vsel %vm6262_vm12, %v8907_v33, 256.0 }
 0xa8f   : > { %v6404_v37 = vmin.f32 %v6325_v25, %v6326_v51 }
 0xa90   : > { %v6179_v6 = vpop.xlane.xlu1 %6178 }
 0xa91   : > { %vm6259_vm9 = vcmp.eq.f32.partialorder %v12802_v42, %v6179_v6  ;;  %vm6260_vm2 = vcmp.eq.f32.partialorder %v14198_v52, %v6179_v6  ;;  %6405 = vmin.xlane.f32.xlu1 %v6404_v37  ;;  %v14200_v6 = vld [vmem:[#allocation10_spill] sm:$0xff] }
 0xa92   : > { %v6323_v63 = vsel %vm6259_vm9, %v8904_v38, 256.0  ;;  %v6324_v21 = vsel %vm6260_vm2, %v8907_v33, 256.0 }
 0xa93   : > { %v6401_v36 = vmin.f32 %v6323_v63, %v6324_v21 }
 0xa94   : > { %v6176_v5 = vpop.xlane.xlu1 %6175 }
 0xa95   : > { %vm6257_vm11 = vcmp.eq.f32.partialorder %v12814_v7, %v6176_v5  ;;  %vm6258_vm4 = vcmp.eq.f32.partialorder %v14199_v53, %v6176_v5  ;;  %6402 = vmin.xlane.f32.xlu1 %v6401_v36  ;;  %v14201_v36 = vld [vmem:[#allocation12_spill] sm:$0xff] }
 0xa96   : > { %v6321_v12 = vsel %vm6257_vm11, %v8904_v38, 256.0  ;;  %v6322_v13 = vsel %vm6258_vm4, %v8907_v33, 256.0  ;;  %v14202_v53 = vld [vmem:[#allocation8_spill] sm:$0xff] }
 0xa97   : > { %v6398_v25 = vmin.f32 %v6321_v12, %v6322_v13  ;;  %v14203_v12 = vld [vmem:[#allocation5_spill] sm:$0xff] }
 0xa98   : > { %v6173_v42 = vpop.xlane.xlu1 %6172 }
 0xa99   : > { %vm6255_vm13 = vcmp.eq.f32.partialorder %v12826_v1, %v6173_v42  ;;  %vm6256_vm6 = vcmp.eq.f32.partialorder %v14200_v6, %v6173_v42  ;;  %6399 = vmin.xlane.f32.xlu1 %v6398_v25 }
 0xa9a   : > { %v6319_v37 = vsel %vm6255_vm13, %v8904_v38, 256.0  ;;  %v6320_v63 = vsel %vm6256_vm6, %v8907_v33, 256.0 }
 0xa9b   : > { %v6395_v51 = vmin.f32 %v6319_v37, %v6320_v63 }
 0xa9c   : > { %v6170_v7 = vpop.xlane.xlu1 %6169 }
 0xa9d   : > { %vm6253_vm3 = vcmp.eq.f32.partialorder %v12838_v34, %v6170_v7  ;;  %vm6254_vm8 = vcmp.eq.f32.partialorder %v14201_v36, %v6170_v7  ;;  %6396 = vmin.xlane.f32.xlu1 %v6395_v51  ;;  %v14204_v36 = vld [vmem:[#allocation28_spill] sm:$0xff] }
 0xa9e   : > { %v6317_v5 = vsel %vm6253_vm3, %v8904_v38, 256.0  ;;  %v6318_v52 = vsel %vm6254_vm8, %v8907_v33, 256.0 }
 0xa9f   : > { %v6392_v21 = vmin.f32 %v6317_v5, %v6318_v52  ;;  %v14205_v5 = vld [vmem:[#allocation17_spill] sm:$0xff] }
 0xaa0   : > { %v6167_v1 = vpop.xlane.xlu1 %6166 }
 0xaa1   : > { %vm6251_vm14 = vcmp.eq.f32.partialorder %v14202_v53, %v6167_v1  ;;  %vm6252_vm5 = vcmp.eq.f32.partialorder %v14203_v12, %v6167_v1  ;;  %6393 = vmin.xlane.f32.xlu1 %v6392_v21 }
 0xaa2   : > { %v6315_v13 = vsel %vm6251_vm14, %v8904_v38, 256.0  ;;  %v6316_v25 = vsel %vm6252_vm5, %v8907_v33, 256.0 }
 0xaa3   : > { %v6389_v42 = vmin.f32 %v6315_v13, %v6316_v25 }
 0xaa4   : > { %v6164_v34 = vpop.xlane.xlu1 %6163 }
 0xaa5   : > { %vm6249_vm15 = vcmp.eq.f32.partialorder %v12862_v19, %v6164_v34  ;;  %vm6250_vm10 = vcmp.eq.f32.partialorder %v12865_v14, %v6164_v34  ;;  %6390 = vmin.xlane.f32.xlu1 %v6389_v42 }
 0xaa6   : > { %v6313_v6 = vsel %vm6249_vm15, %v8904_v38, 256.0  ;;  %v6314_v37 = vsel %vm6250_vm10, %v8907_v33, 256.0 }
 0xaa7   : > { %v6386_v63 = vmin.f32 %v6313_v6, %v6314_v37 }
 0xaa8   : > { %v6161_v51 = vpop.xlane.xlu1 %6160  ;;  %v6140_v7 = vpop.xlane.xlu0 %6139 }
 0xaa9   : > { %vm6247_vm7 = vcmp.eq.f32.partialorder %v12880_v43, %v6161_v51  ;;  %vm6248_vm12 = vcmp.eq.f32.partialorder %v12883_v28, %v6161_v51  ;;  %vm6233_vm9 = vcmp.eq.f32.partialorder %v14204_v36, %v6140_v7  ;;  %vm6234_vm2 = vcmp.eq.f32.partialorder %v14205_v5, %v6140_v7  ;;  %6387 = vmin.xlane.f32.xlu1 %v6386_v63 }
 0xaaa   : > { %v6311_v19 = vsel %vm6247_vm7, %v8904_v38, 256.0  ;;  %v6312_v14 = vsel %vm6248_vm12, %v8907_v33, 256.0  ;;  %v6297_v52 = vsel %vm6233_vm9, %v8904_v38, 256.0  ;;  %v6298_v21 = vsel %vm6234_vm2, %v8907_v33, 256.0 }
 0xaab   : > { %v6383_v1 = vmin.f32 %v6311_v19, %v6312_v14  ;;  %v6362_v53 = vmin.f32 %v6297_v52, %v6298_v21 }
 0xaac   : > { %v6158_v12 = vpop.xlane.xlu1 %6157 }
 0xaad   : > { %vm6245_vm11 = vcmp.eq.f32.partialorder %v12906_v11, %v6158_v12  ;;  %vm6246_vm4 = vcmp.eq.f32.partialorder %v12909_v41, %v6158_v12  ;;  %6384 = vmin.xlane.f32.xlu1 %v6383_v1  ;;  %6363 = vmin.xlane.f32.xlu0 %v6362_v53 }
 0xaae   : > { %v6309_v43 = vsel %vm6245_vm11, %v8904_v38, 256.0  ;;  %v6310_v28 = vsel %vm6246_vm4, %v8907_v33, 256.0 }
 0xaaf   : > { %v6380_v13 = vmin.f32 %v6309_v43, %v6310_v28 }
 0xab0   : > { %v6155_v25 = vpop.xlane.xlu1 %6154 }
 0xab1   : > { %vm6243_vm13 = vcmp.eq.f32.partialorder %v12918_v62, %v6155_v25  ;;  %vm6244_vm6 = vcmp.eq.f32.partialorder %v12921_v46, %v6155_v25  ;;  %6381 = vmin.xlane.f32.xlu1 %v6380_v13 }
 0xab2   : > { %v6307_v42 = vsel %vm6243_vm13, %v8904_v38, 256.0  ;;  %v6308_v34 = vsel %vm6244_vm6, %v8907_v33, 256.0 }
 0xab3   : > { %v6377_v11 = vmin.f32 %v6307_v42, %v6308_v34 }
 0xab4   : > { %v6152_v6 = vpop.xlane.xlu1 %6151 }
 0xab5   : > { %vm6241_vm3 = vcmp.eq.f32.partialorder %v12930_v16, %v6152_v6  ;;  %vm6242_vm8 = vcmp.eq.f32.partialorder %v12933_v57, %v6152_v6  ;;  %6378 = vmin.xlane.f32.xlu1 %v6377_v11 }
 0xab6   : > { %v6305_v41 = vsel %vm6241_vm3, %v8904_v38, 256.0  ;;  %v6306_v37 = vsel %vm6242_vm8, %v8907_v33, 256.0 }
 0xab7   : > { %v6374_v63 = vmin.f32 %v6305_v41, %v6306_v37 }
 0xab8   : > { %v6149_v62 = vpop.xlane.xlu1 %6148 }
 0xab9   : > { %vm6239_vm14 = vcmp.eq.f32.partialorder %v12942_v56, %v6149_v62  ;;  %vm6240_vm5 = vcmp.eq.f32.partialorder %v12945_v24, %v6149_v62  ;;  %6375 = vmin.xlane.f32.xlu1 %v6374_v63 }
 0xaba   : > { %v6303_v46 = vsel %vm6239_vm14, %v8904_v38, 256.0  ;;  %v6304_v51 = vsel %vm6240_vm5, %v8907_v33, 256.0 }
 0xabb   : > { %v6371_v7 = vmin.f32 %v6303_v46, %v6304_v51 }
 0xabc   : > { %v6146_v16 = vpop.xlane.xlu1 %6145 }
 0xabd   : > { %vm6237_vm15 = vcmp.eq.f32.partialorder %v12954_v55, %v6146_v16  ;;  %vm6238_vm10 = vcmp.eq.f32.partialorder %v12957_v3, %v6146_v16  ;;  %6372 = vmin.xlane.f32.xlu1 %v6371_v7 }
 0xabe   : > { %v6301_v57 = vsel %vm6237_vm15, %v8904_v38, 256.0  ;;  %v6302_v36 = vsel %vm6238_vm10, %v8907_v33, 256.0 }
 0xabf   : > { %v6368_v5 = vmin.f32 %v6301_v57, %v6302_v36 }
 0xac0   : > { %v6143_v56 = vpop.xlane.xlu1 %6142 }
 0xac1   : > { %vm6235_vm7 = vcmp.eq.f32.partialorder %v12966_v54, %v6143_v56  ;;  %vm6236_vm12 = vcmp.eq.f32.partialorder %v12969_v18, %v6143_v56  ;;  %6369 = vmin.xlane.f32.xlu1 %v6368_v5 }
 0xac2   : > { %v6299_v24 = vsel %vm6235_vm7, %v8904_v38, 256.0  ;;  %v6300_v19 = vsel %vm6236_vm12, %v8907_v33, 256.0 }
 0xac3   : > { %v6365_v14 = vmin.f32 %v6299_v24, %v6300_v19 }
 0xac4   : > { %v6137_v55 = vpop.xlane.xlu1 %6136 }
 0xac5   : > { %vm6231_vm9 = vcmp.eq.f32.partialorder %v12982_v8, %v6137_v55  ;;  %vm6232_vm2 = vcmp.eq.f32.partialorder %v12985_v17, %v6137_v55  ;;  %6366 = vmin.xlane.f32.xlu1 %v6365_v14 }
 0xac6   : > { %v6295_v3 = vsel %vm6231_vm9, %v8904_v38, 256.0  ;;  %v6296_v52 = vsel %vm6232_vm2, %v8907_v33, 256.0 }
 0xac7   : > { %v6359_v21 = vmin.f32 %v6295_v3, %v6296_v52 }
 0xac9   : > { %6360 = vmin.xlane.f32.xlu1 %v6359_v21  ;;  %v6227_v54 = vpop.xlane.xlu1 %6226 }
 0xaca   : > { %vm6291_vm11 = vcmp.eq.f32.partialorder %v12999_v50, %v6227_v54  ;;  %vm6292_vm4 = vcmp.eq.f32.partialorder %v13002_v0, %v6227_v54 }
 0xacb   : > { %v6355_v18 = vsel %vm6291_vm11, %v8904_v38, 256.0  ;;  %v6356_v1 = vsel %vm6292_vm4, %v8907_v33, 256.0 }
 0xacc   : > { %v6449_v53 = vmin.f32 %v6355_v18, %v6356_v1  ;;  %v14208_v1 = vld [vmem:[#allocation9_spill] sm:$0xff] }
 0xacd   : > { %v6230_v8 = vpop.xlane.xlu0 %6229 }
 0xace   : > { %vm6293_vm13 = vcmp.eq.f32.partialorder %v13010_v31, %v6230_v8  ;;  %vm6294_vm6 = vcmp.eq.f32.partialorder %v13013_v44, %v6230_v8  ;;  %6450 = vmin.xlane.f32.xlu1 %v6449_v53  ;;  %v14209_v53 = vld [vmem:[#allocation23_spill] sm:$0xff] }
 0xacf   : > { %v6357_v17 = vsel %vm6293_vm13, %v8904_v38, 256.0  ;;  %v6358_v12 = vsel %vm6294_vm6, %v8907_v33, 256.0 }
 0xad0   : > { %v6452_v43 = vmin.f32 %v6357_v17, %v6358_v12 }
 0xad1   : > { %v6224_v28 = vpop.xlane.xlu0 %6223 }
 0xad2   : > { %vm6289_vm3 = vcmp.eq.f32.partialorder %v13023_v9, %v6224_v28  ;;  %vm6290_vm8 = vcmp.eq.f32.partialorder %v13026_v2, %v6224_v28  ;;  %6453 = vmin.xlane.f32.xlu0 %v6452_v43  ;;  %v14210_v43 = vmov 1.0  }
 0xad3   : > { %v6353_v50 = vsel %vm6289_vm3, %v8904_v38, 256.0  ;;  %v6354_v0 = vsel %vm6290_vm8, %v8907_v33, 256.0 }
 0xad4   : > { %v6446_v13 = vmin.f32 %v6353_v50, %v6354_v0 }
 0xad5   : > { %v6221_v31 = vpop.xlane.xlu0 %6220 }
 0xad6   : > { %vm6287_vm14 = vcmp.eq.f32.partialorder %v13037_v29, %v6221_v31  ;;  %vm6288_vm5 = vcmp.eq.f32.partialorder %v13040_v10, %v6221_v31  ;;  %6447 = vmin.xlane.f32.xlu0 %v6446_v13 }
 0xad7   : > { %v6351_v44 = vsel %vm6287_vm14, %v8904_v38, 256.0  ;;  %v6352_v25 = vsel %vm6288_vm5, %v8907_v33, 256.0 }
 0xad8   : > { %v6443_v42 = vmin.f32 %v6351_v44, %v6352_v25 }
 0xad9   : > { %v6218_v9 = vpop.xlane.xlu0 %6217 }
 0xada   : > { %vm6285_vm15 = vcmp.eq.f32.partialorder %v13049_v58, %v6218_v9  ;;  %vm6286_vm10 = vcmp.eq.f32.partialorder %v13052_v47, %v6218_v9  ;;  %6444 = vmin.xlane.f32.xlu1 %v6443_v42 }
 0xadb   : > { %v6349_v2 = vsel %vm6285_vm15, %v8904_v38, 256.0  ;;  %v6350_v34 = vsel %vm6286_vm10, %v8907_v33, 256.0 }
 0xadc   : > { %v6440_v11 = vmin.f32 %v6349_v2, %v6350_v34 }
 0xadd   : > { %v6215_v29 = vpop.xlane.xlu0 %6214 }
 0xade   : > { %vm6283_vm7 = vcmp.eq.f32.partialorder %v13061_v23, %v6215_v29  ;;  %vm6284_vm12 = vcmp.eq.f32.partialorder %v13064_v49, %v6215_v29  ;;  %6441 = vmin.xlane.f32.xlu0 %v6440_v11 }
 0xadf   : > { %v6347_v10 = vsel %vm6283_vm7, %v8904_v38, 256.0  ;;  %v6348_v6 = vsel %vm6284_vm12, %v8907_v33, 256.0 }
 0xae0   : > { %v6437_v41 = vmin.f32 %v6347_v10, %v6348_v6 }
 0xae1   : > { %v6212_v58 = vpop.xlane.xlu0 %6211 }
 0xae2   : > { %vm6281_vm9 = vcmp.eq.f32.partialorder %v13073_v60, %v6212_v58  ;;  %vm6282_vm2 = vcmp.eq.f32.partialorder %v13076_v61, %v6212_v58  ;;  %6438 = vmin.xlane.f32.xlu1 %v6437_v41 }
 0xae3   : > { %v6345_v47 = vsel %vm6281_vm9, %v8904_v38, 256.0  ;;  %v6346_v37 = vsel %vm6282_vm2, %v8907_v33, 256.0 }
 0xae4   : > { %v6434_v63 = vmin.f32 %v6345_v47, %v6346_v37 }
 0xae5   : > { %v6209_v23 = vpop.xlane.xlu0 %6208 }
 0xae6   : > { %vm6279_vm11 = vcmp.eq.f32.partialorder %v13085_v39, %v6209_v23  ;;  %vm6280_vm4 = vcmp.eq.f32.partialorder %v13088_v26, %v6209_v23  ;;  %6435 = vmin.xlane.f32.xlu0 %v6434_v63 }
 0xae7   : > { %v6343_v49 = vsel %vm6279_vm11, %v8904_v38, 256.0  ;;  %v6344_v62 = vsel %vm6280_vm4, %v8907_v33, 256.0 }
 0xae8   : > { %v6431_v46 = vmin.f32 %v6343_v49, %v6344_v62 }
 0xae9   : > { %v6206_v60 = vpop.xlane.xlu0 %6205 }
 0xaea   : > { %vm6277_vm13 = vcmp.eq.f32.partialorder %v13097_v15, %v6206_v60  ;;  %vm6278_vm6 = vcmp.eq.f32.partialorder %v13100_v27, %v6206_v60  ;;  %6432 = vmin.xlane.f32.xlu1 %v6431_v46 }
 0xaeb   : > { %v6341_v61 = vsel %vm6277_vm13, %v8904_v38, 256.0  ;;  %v6342_v51 = vsel %vm6278_vm6, %v8907_v33, 256.0 }
 0xaec   : > { %v6428_v7 = vmin.f32 %v6341_v61, %v6342_v51 }
 0xaed   : > { %v6203_v39 = vpop.xlane.xlu0 %6202 }
 0xaee   : > { %vm6275_vm3 = vcmp.eq.f32.partialorder %v13109_v40, %v6203_v39  ;;  %vm6276_vm8 = vcmp.eq.f32.partialorder %v13112_v20, %v6203_v39  ;;  %6429 = vmin.xlane.f32.xlu0 %v6428_v7 }
 0xaef   : > { %v6339_v26 = vsel %vm6275_vm3, %v8904_v38, 256.0  ;;  %v6340_v16 = vsel %vm6276_vm8, %v8907_v33, 256.0 }
 0xaf0   : > { %v6425_v57 = vmin.f32 %v6339_v26, %v6340_v16 }
 0xaf1   : > { %v6200_v15 = vpop.xlane.xlu0 %6199 }
 0xaf2   : > { %vm6273_vm14 = vcmp.eq.f32.partialorder %v13121_v32, %v6200_v15  ;;  %vm6274_vm5 = vcmp.eq.f32.partialorder %v13124_v4, %v6200_v15  ;;  %6426 = vmin.xlane.f32.xlu1 %v6425_v57  ;;  %v14211_v57 = vld [vmem:[#allocation14_spill] sm:$0xff]  ;;  %v1505_v15 = vpop.f32.mrf.mxu1 }
 0xaf3   : > { %v6337_v27 = vsel %vm6273_vm14, %v8904_v38, 256.0  ;;  %v6338_v36 = vsel %vm6274_vm5, %v8907_v33, 256.0 }
 0xaf4   : > { %v6422_v5 = vmin.f32 %v6337_v27, %v6338_v36  ;;  %v1507_v27 = vpop.f32.mrf.mxu1  ;;  %v2156_v36 = vpop.f32.mrf.mxu0 }
 0xaf5   : > { %v6197_v40 = vpop.xlane.xlu0 %6196 }
 0xaf6   : > { %vm6271_vm15 = vcmp.eq.f32.partialorder %v13133_v45, %v6197_v40  ;;  %vm6272_vm10 = vcmp.eq.f32.partialorder %v13136_v30, %v6197_v40  ;;  %6423 = vmin.xlane.f32.xlu0 %v6422_v5  ;;  %v14206_v30 = vld [vmem:[#allocation16_spill] sm:$0xff]  ;;  %v14212_v5 = vld [vmem:[#allocation25_spill] sm:$0xff] }
 0xaf7   : > { %v6335_v20 = vsel %vm6271_vm15, %v8904_v38, 256.0  ;;  %v6336_v56 = vsel %vm6272_vm10, %v8907_v33, 256.0  ;;  %v1511_v40 = vsub.f32 %v1507_v27, %v14212_v5 }
 0xaf8   : > { %v6419_v24 = vmin.f32 %v6335_v20, %v6336_v56  ;;  %v1510_v20 = vsub.f32 %v1505_v15, %v14211_v57  ;;  %v2158_v56 = vpop.f32.mrf.mxu0 }
 0xaf9   : > { %v6194_v32 = vpop.xlane.xlu0 %6193 }
 0xafa   : > { %vm6269_vm7 = vcmp.eq.f32.partialorder %v13145_v59, %v6194_v32  ;;  %vm6270_vm12 = vcmp.eq.f32.partialorder %v13148_v48, %v6194_v32  ;;  %6420 = vmin.xlane.f32.xlu1 %v6419_v24  ;;  %v14207_v48 = vld [vmem:[#allocation11_spill] sm:$0xff]  ;;  %v2807_v24 = vpop.f32.mrf.mxu1  ;;  %v2162_v32 = vsub.f32 %v2158_v56, %v14212_v5 }
 0xafb   : > { %v6333_v4 = vsel %vm6269_vm7, %v8904_v38, 256.0  ;;  %v6334_v19 = vsel %vm6270_vm12, %v8907_v33, 256.0 }
 0xafc   : > { %v6416_v14 = vmin.f32 %v6333_v4, %v6334_v19  ;;  %v1512_v4 = vmax.f32 %v1510_v20, 0.0  ;;  %v2161_v19 = vsub.f32 %v2156_v36, %v14211_v57 }
 0xafd   : > { %v6191_v45 = vpop.xlane.xlu0 %6190 }
 0xafe   : > { %vm6267_vm9 = vcmp.eq.f32.partialorder %v13157_v35, %v6191_v45  ;;  %vm6268_vm2 = vcmp.eq.f32.partialorder %v14206_v30, %v6191_v45  ;;  %6417 = vmin.xlane.f32.xlu0 %v6416_v14  ;;  %v3458_v14 = vpop.f32.mrf.mxu0 }
 0xaff   : > { %v6331_v55 = vsel %vm6267_vm9, %v8904_v38, 256.0  ;;  %v6332_v3 = vsel %vm6268_vm2, %v8907_v33, 256.0 }
 0xb00   : > { %v6413_v52 = vmin.f32 %v6331_v55, %v6332_v3  ;;  %v2163_v55 = vmax.f32 %v1512_v4, %v2161_v19  ;;  %v2812_v3 = vsub.f32 %v2807_v24, %v14211_v57 }
 0xb01   : > { %v6188_v59 = vpop.xlane.xlu0 %6187 }
 0xb02   : > { %vm6265_vm11 = vcmp.eq.f32.partialorder %v13169_v22, %v6188_v59  ;;  %vm6266_vm4 = vcmp.eq.f32.partialorder %v14207_v48, %v6188_v59  ;;  %6414 = vmin.xlane.f32.xlu1 %v6413_v52  ;;  %v3460_v52 = vpop.f32.mrf.mxu0 }
 0xb03   : > { %v6329_v21 = vsel %vm6265_vm11, %v8904_v38, 256.0  ;;  %v6330_v54 = vsel %vm6266_vm4, %v8907_v33, 256.0 }
 0xb04   : > { %v6410_v18 = vmin.f32 %v6329_v21, %v6330_v54  ;;  %v3464_v21 = vsub.f32 %v3460_v52, %v14212_v5  ;;  %v2814_v54 = vmax.f32 %v2163_v55, %v2812_v3 }
 0xb05   : > { %v6185_v35 = vpop.xlane.xlu0 %6184 }
 0xb06   : > { %vm6263_vm13 = vcmp.eq.f32.partialorder %v14208_v1, %v6185_v35  ;;  %vm6264_vm6 = vcmp.eq.f32.partialorder %v14209_v53, %v6185_v35  ;;  %6411 = vmin.xlane.f32.xlu0 %v6410_v18  ;;  %v3463_v18 = vsub.f32 %v3458_v14, %v14211_v57  ;;  %v4760_v1 = vpop.f32.mrf.mxu0 }
 0xb07   : > { %v6327_v8 = vsel %vm6263_vm13, %v8904_v38, 256.0  ;;  %v6328_v17 = vsel %vm6264_vm6, %v8907_v33, 256.0 }
 0xb08   : > { %v6407_v12 = vmin.f32 %v6327_v8, %v6328_v17  ;;  %v3465_v17 = vmax.f32 %v2814_v54, %v3463_v18 }
 0xb0a   : > { %6408 = vmin.xlane.f32.xlu1 %v6407_v12 }
 0xb1a   : > { %v6406_v22 = vpop.xlane.xlu1 %6405 }
 0xb1b   : > { %vm6485_vm3 = vcmp.eq.f32.partialorder %v8904_v38, %v6406_v22  ;;  %vm6486_vm8 = vcmp.eq.f32.partialorder %v8907_v33, %v6406_v22  ;;  %v4762_v22 = vpop.f32.mrf.mxu0 }
 0xb1c   : > { %8025 = vmatprep.subr.msk.mxu1 %vm6486_vm8, %v14210_v43 }
 0xb1d   : > { %8026 = vmatpush1.xpose.msk.msra.mxu1 %vm6485_vm3, %v14210_v43 }
 0xb1e   : > { %v6403_v28 = vpop.xlane.xlu1 %6402 }
 0xb1f   : > { %vm6483_vm14 = vcmp.eq.f32.partialorder %v8904_v38, %v6403_v28  ;;  %vm6484_vm5 = vcmp.eq.f32.partialorder %v8907_v33, %v6403_v28 }
 0xb20   : > { %8027 = vmatprep.subr.msk.mxu1 %vm6484_vm5, %v14210_v43 }
 0xb21   : > { %8028 = vmatpush1.xpose.msk.msra.mxu1 %vm6483_vm14, %v14210_v43 }
 0xb22   : > { %v6400_v50 = vpop.xlane.xlu1 %6399 }
 0xb23   : > { %vm6481_vm15 = vcmp.eq.f32.partialorder %v8904_v38, %v6400_v50  ;;  %vm6482_vm10 = vcmp.eq.f32.partialorder %v8907_v33, %v6400_v50 }
 0xb24   : > { %8029 = vmatprep.subr.msk.mxu1 %vm6482_vm10, %v14210_v43 }
 0xb25   : > { %8030 = vmatpush1.xpose.msk.msra.mxu1 %vm6481_vm15, %v14210_v43 }
 0xb26   : > { %v6397_v0 = vpop.xlane.xlu1 %6396 }
 0xb27   : > { %vm6479_vm7 = vcmp.eq.f32.partialorder %v8904_v38, %v6397_v0  ;;  %vm6480_vm12 = vcmp.eq.f32.partialorder %v8907_v33, %v6397_v0  ;;  %v4766_v0 = vsub.f32 %v4762_v22, %v14212_v5 }
 0xb28   : > { %8031 = vmatprep.subr.msk.mxu1 %vm6480_vm12, %v14210_v43 }
 0xb29   : > { %8032 = vmatpush1.xpose.msk.msra.mxu1 %vm6479_vm7, %v14210_v43 }
 0xb2a   : > { %v6394_v13 = vpop.xlane.xlu1 %6393 }
 0xb2b   : > { %vm6477_vm9 = vcmp.eq.f32.partialorder %v8904_v38, %v6394_v13  ;;  %vm6478_vm2 = vcmp.eq.f32.partialorder %v8907_v33, %v6394_v13 }
 0xb2c   : > { %8033 = vmatprep.subr.msk.mxu1 %vm6478_vm2, %v14210_v43 }
 0xb2d   : > { %8034 = vmatpush1.xpose.msk.msra.mxu1 %vm6477_vm9, %v14210_v43 }
 0xb2e   : > { %v6391_v31 = vpop.xlane.xlu1 %6390 }
 0xb2f   : > { %vm6475_vm11 = vcmp.eq.f32.partialorder %v8904_v38, %v6391_v31  ;;  %vm6476_vm4 = vcmp.eq.f32.partialorder %v8907_v33, %v6391_v31  ;;  %v4765_v31 = vsub.f32 %v4760_v1, %v14211_v57 }
 0xb30   : > { %8035 = vmatprep.subr.msk.mxu1 %vm6476_vm4, %v14210_v43 }
 0xb31   : > { %8036 = vmatpush1.xpose.msk.msra.mxu1 %vm6475_vm11, %v14210_v43 }
 0xb32   : > { %v6388_v44 = vpop.xlane.xlu1 %6387 }
 0xb33   : > { %vm6473_vm13 = vcmp.eq.f32.partialorder %v8904_v38, %v6388_v44  ;;  %vm6474_vm6 = vcmp.eq.f32.partialorder %v8907_v33, %v6388_v44 }
 0xb34   : > { %8037 = vmatprep.subr.msk.mxu1 %vm6474_vm6, %v14210_v43 }
 0xb35   : > { %8038 = vmatpush1.xpose.msk.msra.mxu1 %vm6473_vm13, %v14210_v43 }
 0xb36   : > { %v6385_v25 = vpop.xlane.xlu1 %6384  ;;  %v6364_v29 = vpop.xlane.xlu0 %6363 }
 0xb37   : > { %vm6471_vm3 = vcmp.eq.f32.partialorder %v8904_v38, %v6385_v25  ;;  %vm6472_vm8 = vcmp.eq.f32.partialorder %v8907_v33, %v6385_v25 }
 0xb38   : > { %8039 = vmatprep.subr.msk.mxu1 %vm6472_vm8, %v14210_v43  ;;  %vm6457_vm8 = vcmp.eq.f32.partialorder %v8904_v38, %v6364_v29 }
 0xb39   : > { %8040 = vmatpush1.xpose.msk.msra.mxu1 %vm6471_vm3, %v14210_v43  ;;  %vm6458_vm3 = vcmp.eq.f32.partialorder %v8907_v33, %v6364_v29 }
 0xb3a   : > { %v6382_v42 = vpop.xlane.xlu1 %6381 }
 0xb3b   : > { %vm6469_vm14 = vcmp.eq.f32.partialorder %v8904_v38, %v6382_v42  ;;  %vm6470_vm5 = vcmp.eq.f32.partialorder %v8907_v33, %v6382_v42 }
 0xb3c   : > { %8041 = vmatprep.subr.msk.mxu1 %vm6470_vm5, %v14210_v43 }
 0xb3d   : > { %8042 = vmatpush1.xpose.msk.msra.mxu1 %vm6469_vm14, %v14210_v43 }
 0xb3e   : > { %v6379_v9 = vpop.xlane.xlu1 %6378 }
 0xb3f   : > { %vm6467_vm15 = vcmp.eq.f32.partialorder %v8904_v38, %v6379_v9  ;;  %vm6468_vm10 = vcmp.eq.f32.partialorder %v8907_v33, %v6379_v9 }
 0xb40   : > { %8043 = vmatprep.subr.msk.mxu1 %vm6468_vm10, %v14210_v43 }
 0xb41   : > { %8044 = vmatpush1.xpose.msk.msra.mxu1 %vm6467_vm15, %v14210_v43  ;;  %v6062_v28 = vpop.f32.mrf.mxu0 }
 0xb42   : > { %v6376_v2 = vpop.xlane.xlu1 %6375  ;;  %v6067_v29 = vsub.f32 %v6062_v28, %v14211_v57 }
 0xb43   : > { %vm6465_vm7 = vcmp.eq.f32.partialorder %v8904_v38, %v6376_v2  ;;  %vm6466_vm12 = vcmp.eq.f32.partialorder %v8907_v33, %v6376_v2  ;;  %v6064_v25 = vpop.f32.mrf.mxu0 }
 0xb44   : > { %8045 = vmatprep.subr.msk.mxu1 %vm6466_vm12, %v14210_v43 }
 0xb45   : > { %8046 = vmatpush1.xpose.msk.msra.mxu1 %vm6465_vm7, %v14210_v43 }
 0xb46   : > { %v6373_v34 = vpop.xlane.xlu1 %6372 }
 0xb47   : > { %vm6463_vm9 = vcmp.eq.f32.partialorder %v8904_v38, %v6373_v34  ;;  %vm6464_vm2 = vcmp.eq.f32.partialorder %v8907_v33, %v6373_v34 }
 0xb48   : > { %8047 = vmatprep.subr.msk.mxu1 %vm6464_vm2, %v14210_v43 }
 0xb49   : > { %8048 = vmatpush1.xpose.msk.msra.mxu1 %vm6463_vm9, %v14210_v43 }
 0xb4a   : > { %v6370_v11 = vpop.xlane.xlu1 %6369 }
 0xb4b   : > { %vm6461_vm11 = vcmp.eq.f32.partialorder %v8904_v38, %v6370_v11  ;;  %vm6462_vm4 = vcmp.eq.f32.partialorder %v8907_v33, %v6370_v11  ;;  %v6068_v11 = vsub.f32 %v6064_v25, %v14212_v5 }
 0xb4c   : > { %8049 = vmatprep.subr.msk.mxu1 %vm6462_vm4, %v14210_v43 }
 0xb4d   : > { %8050 = vmatpush1.xpose.msk.msra.mxu1 %vm6461_vm11, %v14210_v43 }
 0xb4e   : > { %v6367_v10 = vpop.xlane.xlu1 %6366 }
 0xb4f   : > { %vm6459_vm13 = vcmp.eq.f32.partialorder %v8904_v38, %v6367_v10  ;;  %vm6460_vm6 = vcmp.eq.f32.partialorder %v8907_v33, %v6367_v10 }
 0xb50   : > { %8051 = vmatprep.subr.msk.mxu1 %vm6460_vm6, %v14210_v43 }
 0xb51   : > { %8052 = vmatpush1.xpose.msk.msra.mxu1 %vm6459_vm13, %v14210_v43 }
 0xb52   : > { %v6361_v6 = vpop.xlane.xlu1 %6360  ;;  %8053 = vmatprep.subr.msk.mxu1 %vm6458_vm3, %v14210_v43 }
 0xb53   : > { %vm6456_vm14 = vcmp.eq.f32.partialorder %v8907_v33, %v6361_v6  ;;  %vm6455_vm5 = vcmp.eq.f32.partialorder %v8904_v38, %v6361_v6 }
 0xb55   : > { %8054 = vmatpush1.xpose.msk.msra.mxu1 %vm6457_vm8, %v14210_v43 }
 0xb56   : > { %8055 = vmatprep.subr.msk.mxu1 %vm6456_vm14, %v14210_v43 }
 0xb57   : > { %v6451_v41 = vpop.xlane.xlu1 %6450 }
 0xb58   : > { %vm6516_vm7 = vcmp.eq.f32.partialorder %v8907_v33, %v6451_v41  ;;  %vm6515_vm12 = vcmp.eq.f32.partialorder %v8904_v38, %v6451_v41 }
 0xb59   : > { %8056 = vmatpush1.xpose.msk.msra.mxu1 %vm6455_vm5, %v14210_v43 }
 0xb5b   : > { %v6454_v58 = vpop.xlane.xlu0 %6453 }
 0xb5c   : > { %vm6517_vm15 = vcmp.eq.f32.partialorder %v8904_v38, %v6454_v58  ;;  %vm6518_vm10 = vcmp.eq.f32.partialorder %v8907_v33, %v6454_v58 }
 0xb5d   : > { %8057 = vmatprep.subr.msk.mxu1 %vm6518_vm10, %v14210_v43 }
 0xb5e   : > { %8058 = vmatpush2.xpose.msk.msra.mxu1 %vm6517_vm15, %v14210_v43 }
 0xb5f   : > { %8059 = vmatprep.subr.msk.mxu1 %vm6516_vm7, %v14210_v43  ;;  %v6448_v47 = vpop.xlane.xlu0 %6447 }
 0xb60   : > { %vm6514_vm9 = vcmp.eq.f32.partialorder %v8907_v33, %v6448_v47  ;;  %vm6513_vm2 = vcmp.eq.f32.partialorder %v8904_v38, %v6448_v47 }
 0xb62   : > { %8060 = vmatpush2.xpose.msk.msra.mxu1 %vm6515_vm12, %v14210_v43 }
 0xb63   : > { %v6445_v37 = vpop.xlane.xlu1 %6444  ;;  %8061 = vmatprep.subr.msk.mxu1 %vm6514_vm9, %v14210_v43 }
 0xb64   : > { %vm6512_vm11 = vcmp.eq.f32.partialorder %v8907_v33, %v6445_v37  ;;  %vm6511_vm4 = vcmp.eq.f32.partialorder %v8904_v38, %v6445_v37 }
 0xb66   : > { %8062 = vmatpush2.xpose.msk.msra.mxu1 %vm6513_vm2, %v14210_v43 }
 0xb67   : > { %8063 = vmatprep.subr.msk.mxu1 %vm6512_vm11, %v14210_v43  ;;  %v6442_v63 = vpop.xlane.xlu0 %6441 }
 0xb68   : > { %vm6510_vm13 = vcmp.eq.f32.partialorder %v8907_v33, %v6442_v63  ;;  %vm6509_vm6 = vcmp.eq.f32.partialorder %v8904_v38, %v6442_v63 }
 0xb6a   : > { %8064 = vmatpush2.xpose.msk.msra.mxu1 %vm6511_vm4, %v14210_v43 }
 0xb6b   : > { %v6439_v23 = vpop.xlane.xlu1 %6438  ;;  %8065 = vmatprep.subr.msk.mxu1 %vm6510_vm13, %v14210_v43 }
 0xb6c   : > { %vm6508_vm3 = vcmp.eq.f32.partialorder %v8907_v33, %v6439_v23  ;;  %vm6507_vm8 = vcmp.eq.f32.partialorder %v8904_v38, %v6439_v23 }
 0xb6e   : > { %8066 = vmatpush2.xpose.msk.msra.mxu1 %vm6509_vm6, %v14210_v43 }
 0xb6f   : > { %8067 = vmatprep.subr.msk.mxu1 %vm6508_vm3, %v14210_v43  ;;  %v6436_v49 = vpop.xlane.xlu0 %6435 }
 0xb70   : > { %vm6506_vm14 = vcmp.eq.f32.partialorder %v8907_v33, %v6436_v49  ;;  %vm6505_vm5 = vcmp.eq.f32.partialorder %v8904_v38, %v6436_v49 }
 0xb72   : > { %8068 = vmatpush2.xpose.msk.msra.mxu1 %vm6507_vm8, %v14210_v43 }
 0xb73   : > { %v6433_v62 = vpop.xlane.xlu1 %6432  ;;  %8069 = vmatprep.subr.msk.mxu1 %vm6506_vm14, %v14210_v43 }
 0xb74   : > { %vm6504_vm15 = vcmp.eq.f32.partialorder %v8907_v33, %v6433_v62  ;;  %vm6503_vm10 = vcmp.eq.f32.partialorder %v8904_v38, %v6433_v62 }
 0xb76   : > { %8070 = vmatpush2.xpose.msk.msra.mxu1 %vm6505_vm5, %v14210_v43 }
 0xb77   : > { %8071 = vmatprep.subr.msk.mxu1 %vm6504_vm15, %v14210_v43  ;;  %v6430_v46 = vpop.xlane.xlu0 %6429 }
 0xb78   : > { %vm6502_vm7 = vcmp.eq.f32.partialorder %v8907_v33, %v6430_v46  ;;  %vm6501_vm12 = vcmp.eq.f32.partialorder %v8904_v38, %v6430_v46  ;;  %v6722_v46 = vld [vmem:[%s13511_s3] sm:$0xf] }
 0xb7a   : > { %8072 = vmatpush2.xpose.msk.msra.mxu1 %vm6503_vm10, %v14210_v43 }
 0xb7b   : > { %v6427_v60 = vpop.xlane.xlu1 %6426  ;;  %8073 = vmatprep.subr.msk.mxu1 %vm6502_vm7, %v14210_v43 }
 0xb7c   : > { %vm6500_vm9 = vcmp.eq.f32.partialorder %v8907_v33, %v6427_v60  ;;  %vm6499_vm2 = vcmp.eq.f32.partialorder %v8904_v38, %v6427_v60 }
 0xb7e   : > { %8074 = vmatpush2.xpose.msk.msra.mxu1 %vm6501_vm12, %v14210_v43 }
 0xb7f   : > { %8075 = vmatprep.subr.msk.mxu1 %vm6500_vm9, %v14210_v43  ;;  %v6424_v61 = vpop.xlane.xlu0 %6423 }
 0xb80   : > { %vm6498_vm11 = vcmp.eq.f32.partialorder %v8907_v33, %v6424_v61  ;;  %vm6497_vm4 = vcmp.eq.f32.partialorder %v8904_v38, %v6424_v61 }
 0xb82   : > { %8076 = vmatpush2.xpose.msk.msra.mxu1 %vm6499_vm2, %v14210_v43 }
 0xb83   : > { %v6421_v51 = vpop.xlane.xlu1 %6420  ;;  %8077 = vmatprep.subr.msk.mxu1 %vm6498_vm11, %v14210_v43 }
 0xb84   : > { %vm6496_vm13 = vcmp.eq.f32.partialorder %v8907_v33, %v6421_v51  ;;  %vm6495_vm6 = vcmp.eq.f32.partialorder %v8904_v38, %v6421_v51 }
 0xb86   : > { %8078 = vmatpush2.xpose.msk.msra.mxu1 %vm6497_vm4, %v14210_v43 }
 0xb87   : > { %8079 = vmatprep.subr.msk.mxu1 %vm6496_vm13, %v14210_v43  ;;  %v6418_v7 = vpop.xlane.xlu0 %6417 }
 0xb88   : > { %vm6494_vm3 = vcmp.eq.f32.partialorder %v8907_v33, %v6418_v7  ;;  %vm6493_vm8 = vcmp.eq.f32.partialorder %v8904_v38, %v6418_v7 }
 0xb8a   : > { %8080 = vmatpush2.xpose.msk.msra.mxu1 %vm6495_vm6, %v14210_v43 }
 0xb8b   : > { %v6415_v39 = vpop.xlane.xlu1 %6414  ;;  %8081 = vmatprep.subr.msk.mxu1 %vm6494_vm3, %v14210_v43 }
 0xb8c   : > { %vm6492_vm14 = vcmp.eq.f32.partialorder %v8907_v33, %v6415_v39  ;;  %vm6491_vm5 = vcmp.eq.f32.partialorder %v8904_v38, %v6415_v39 }
 0xb8e   : > { %8082 = vmatpush2.xpose.msk.msra.mxu1 %vm6493_vm8, %v14210_v43 }
 0xb8f   : > { %8083 = vmatprep.subr.msk.mxu1 %vm6492_vm14, %v14210_v43  ;;  %v6412_v26 = vpop.xlane.xlu0 %6411 }
 0xb90   : > { %vm6490_vm15 = vcmp.eq.f32.partialorder %v8907_v33, %v6412_v26  ;;  %vm6489_vm10 = vcmp.eq.f32.partialorder %v8904_v38, %v6412_v26 }
 0xb92   : > { %8084 = vmatpush2.xpose.msk.msra.mxu1 %vm6491_vm5, %v14210_v43 }
 0xb93   : > { %v6409_v16 = vpop.xlane.xlu1 %6408  ;;  %8085 = vmatprep.subr.msk.mxu1 %vm6490_vm15, %v14210_v43 }
 0xb94   : > { %vm6488_vm7 = vcmp.eq.f32.partialorder %v8907_v33, %v6409_v16  ;;  %vm6487_vm12 = vcmp.eq.f32.partialorder %v8904_v38, %v6409_v16  ;;  %v1513_v33 = vmax.f32 %v1511_v40, 0.0  ;;  %v2809_v38 = vpop.f32.mrf.mxu1 }
 0xb95   : > { %v2813_v30 = vsub.f32 %v2809_v38, %v14212_v5 }
 0xb96   : > { %8086 = vmatpush2.xpose.msk.msra.mxu1 %vm6489_vm10, %v14210_v43  ;;  %v2164_v45 = vmax.f32 %v1513_v33, %v2162_v32  ;;  %v4109_v59 = vpop.f32.mrf.mxu1 }
 0xb97   : > { %8087 = vmatprep.subr.msk.mxu1 %vm6488_vm7, %v14210_v43  ;;  %v4114_v12 = vsub.f32 %v4109_v59, %v14211_v57 }
 0xb98   : > { %v2815_v48 = vmax.f32 %v2164_v45, %v2813_v30  ;;  %v4111_v35 = vpop.f32.mrf.mxu1 }
 0xb99   : > { %v4115_v8 = vsub.f32 %v4111_v35, %v14212_v5  ;;  %v4116_v13 = vmax.f32 %v3465_v17, %v4114_v12 }
 0xb9a   : > { %8088 = vmatpush2.xpose.msk.msra.mxu1 %vm6487_vm12, %v14210_v43  ;;  %v3466_v53 = vmax.f32 %v2815_v48, %v3464_v21  ;;  %v5411_v43 = vpop.f32.mrf.mxu1 }
 0xb9b   : > { %v4767_v2 = vmax.f32 %v4116_v13, %v4765_v31  ;;  %v5416_v34 = vsub.f32 %v5411_v43, %v14211_v57 }
 0xb9c   : > { %v4117_v50 = vmax.f32 %v3466_v53, %v4115_v8  ;;  %v5413_v44 = vpop.f32.mrf.mxu1 }
 0xb9d   : > { %6712 = vmatmul.mubr.f32.vlgmr.msra.gmra.mxu1 %v14211_v57  ;;  %v5417_v9 = vsub.f32 %v5413_v44, %v14212_v5  ;;  %v5418_v41 = vmax.f32 %v4767_v2, %v5416_v34 }
 0xb9e   : > { %v4768_v42 = vmax.f32 %v4117_v50, %v4766_v0 }
 0xb9f   : > { %v6069_v23 = vmax.f32 %v5418_v41, %v6067_v29 }
 0xba0   : > { %v5419_v6 = vmax.f32 %v4768_v42, %v5417_v9 }
 0xba2   : > { %v6070_v37 = vmax.f32 %v5419_v6, %v6068_v11 }
 0xc5d   : > { %v6713_v10 = vpop.f32.mrf.mxu1 }
 0xc5e   : > { %v6718_v58 = vsub.f32 %v6713_v10, %v14211_v57 }
 0xc5f   : > { %v6715_v47 = vpop.f32.mrf.mxu1 }
 0xc60   : > { %v6719_v63 = vsub.f32 %v6715_v47, %v14212_v5  ;;  %v6720_v62 = vmax.f32 %v6069_v23, %v6718_v58 }
 0xc62   : > { %v6721_v49 = vmax.f32 %v6070_v37, %v6719_v63 }
 0xc64   : > { %8089 = vmatprep.subr.msk.mxu0 %vm348_vm0, %v6721_v49 }
 0xc65   : > { %8090 = vmatpush1.msk.msra.mxu0 %vm348_vm0, %v6720_v62 }
 0xc66   : > { %8091 = vmatmul.mubr.msk.f32.vlgmr.msra.gmra.mxu0 %vm251_vm1, %v6722_v46 }
 0xd26   : > { %v6798_v60 = vpop.f32.mrf.mxu0 }
 0xd28   : > { %v6800_v61 = vpop.f32.mrf.mxu0 }
 0xd29   : > { %v6805_v51 = vcombine.low %v6798_v60, %v6800_v61 }
 0xd2b   : > { %6807 = vst [vmem:[%s205_s23] sm:$0xff] %v6805_v51 }
 0xd2c   : > { %8156 = shalt.err (!%p8153_p3)
}
 0xd2d   : > { %s8157_s9 = scalar_lea.hbm %s6821_s30, 128  ;;  %s8161_s12 = scalar_lea.hbm %s13512_s4, 256 }
 0xd2e   : > { %p8158_p4 = scmp.ne.s32.totalorder %s6821_s30, %s8157_s9  ;;  %p8162_p9 = scmp.lt.s32.totalorder %s6821_s30, %s13512_s4 }
 0xd2f   : > { %p8163_p10 = scmp.lt.s32.totalorder %s8161_s12, %s8157_s9 }
 0xd30   : > { %p8159_p7 = pnand %p8158_p4, %p8271_p5 }
 0xd31   : > { %p8164_p11 = por %p8163_p10, %p8162_p9 }
 0xd32   : > { %p8160_p8 = pneg %p8159_p7 }
 0xd34   : > { %p8165_p12 = pnand %p8164_p11, %p8160_p8 }
 0xd36   : > { %8168 = shalt.err (!%p8165_p12)
}
 0xd37   : > { %8100 = dma.vmem_to_hbm [thread:$0]  (%p8271_p5), %s6824_s27, 128, %s6821_s30, %s6809_s5  }
 0xd38 PF: > { %p8106_p13 = scmp.ge.s32.totalorder %s8203_s18, 2  ;;  %s6835_s20 = sand.u32 1, %s8191_s15  }
 0xd39   : > { %s6836_s22 = scalar_lea.sflag [#allocation3], %s6835_s20 }
 0xd3a   : > { %p8103_p0 = pnand %p8106_p13, %p8275_p6 }
 0xd3c   : > { %p8104_p1 = pneg %p8103_p0 }
 0xd3e   : > { %8186 = dma.done.wait (%p8104_p1), %s6836_s22, 128  }
 0xd3f   : > { %8188 = vsyncadd (%p8104_p1), %s6836_s22, 4294967168  ;;  %p14_p2 = scmp.ge.s32.totalorder %s8258_s21, 4   ;;  %s14213_s15 = smov %s8195_s16 }
 0xd40   : > { %s14214_s16 = smov %s8199_s17  ;;  %s14215_s17 = smov %s8269_s24 }
 0xd41   : > { %s14216_s18 = smov %s8258_s21  ;;  %16 = sbr.rel (!%p14_p2) target bundleno = 3 (0x3), region = 74 }
 0xd46   :  { %6841 = vsyncpa [#allocation3], 1 }
 0xd47   :  { %6843 = vsyncpa [#allocation3 + $0x1], 1 }

</bundles_post_ra>
